<compile_context>
chip_gen: v7x
topology: tpu7x:2x2x1
jax: 0.10.0
libtpu: 0.0.40
codegen_flags: <defaults>
</compile_context>

<pallas_src>
import functools
import math

import jax
import jax.numpy as jnp
from jax.experimental import pallas as pl
from jax.experimental.pallas import tpu as pltpu

BBOX_XFORM_CLIP = math.log(1000.0 / 16.0)
LANE = 128  # lane-dense padded head width


def _round_up(x, m):
    return ((x + m - 1) // m) * m


def _vmem_limit_bytes():
    # Explicit scoped-VMEM limit: ~3/4 of physical VMEM, capped well below 128 MiB.
    try:
        cap = int(pltpu.get_tpu_info().vmem_capacity_bytes)
    except Exception:  # fallback if hw query is unavailable
        cap = 64 * 1024 * 1024
    return int(min(cap * 3 // 4, 96 * 1024 * 1024))


_VMEM_LIMIT = _vmem_limit_bytes()


def _cparams(dims):
    return pltpu.CompilerParams(dimension_semantics=dims,
                                vmem_limit_bytes=_VMEM_LIMIT)


# ----------------------------------------------------------------------------
# Pallas kernels
# ----------------------------------------------------------------------------
def matmul_bias_act_kernel(x_ref, w_ref, b_ref, o_ref, acc_ref, *, relu):
    # grid = (N/tm, Kout/tn, K/tk); K is the reduction axis (last, "arbitrary").
    kk = pl.program_id(2)

    @pl.when(kk == 0)
    def _():
        acc_ref[...] = jnp.zeros_like(acc_ref)

    acc_ref[...] += jnp.dot(x_ref[...].astype(jnp.bfloat16), w_ref[...],
                            preferred_element_type=jnp.float32)

    @pl.when(kk == pl.num_programs(2) - 1)
    def _():
        y = acc_ref[...] + b_ref[...]
        if relu:
            y = jnp.maximum(y, 0.0)
        o_ref[...] = y.astype(o_ref.dtype)


def rpn_head_kernel(y_ref, wconv_ref, bconv_ref, whead_ref, bhead_ref, o_ref,
                    *, num_anchors):
    # y_ref:   (1, H, W, C) bf16   un-padded features (halo built in VMEM)
    # wconv:   (9*C, C)    bf16    3x3 conv taps, row blocks ordered (ky, kx)
    # whead:   (C, LANE)   bf16    fused [rpn_cls | rpn_bbox | zero-pad] 1x1 convs
    # o_ref:   (1, H, W, LANE)     lane-dense output; first `num_anchors` lanes
    #                              already sigmoided (objectness probabilities).
    _, H, W, KH = o_ref.shape
    C = y_ref.shape[3]
    yv = y_ref[0]                                              # (H, W, C)
    # Zero halo without an HBM pad: 2 zero rows above/below, then flatten rows.
    # Column borders are handled by masking the wrapped elements per window.
    zrows = jnp.zeros((2, W, C), yv.dtype)
    flat = jnp.concatenate([zrows, yv, zrows], axis=0).reshape((H + 4) * W, C)
    wc = wconv_ref[...]                                        # (9C, C) bf16
    col = jax.lax.broadcasted_iota(jnp.int32, (H * W, 1), 0) % W

    acc = jnp.zeros((H * W, C), jnp.float32)
    for ky in range(3):
        for kx in range(3):
            idx = ky * 3 + kx
            start = (ky + 1) * W + (kx - 1)                    # static offset
            win = flat[start:start + H * W, :]                 # (H*W, C)
            if kx == 0:        # column -1 of each output row is zero padding
                win = jnp.where(col == 0, jnp.zeros_like(win), win)
            elif kx == 2:      # column W of each output row is zero padding
                win = jnp.where(col == W - 1, jnp.zeros_like(win), win)
            acc = acc + jnp.dot(win, wc[idx * C:(idx + 1) * C, :],
                                preferred_element_type=jnp.float32)

    t = jnp.maximum(acc + bconv_ref[...], 0.0).astype(jnp.bfloat16)  # conv+ReLU
    head = jnp.dot(t, whead_ref[...],
                   preferred_element_type=jnp.float32) + bhead_ref[...]
    # fuse objectness sigmoid (first num_anchors lanes); deltas stay raw
    lane = jax.lax.broadcasted_iota(jnp.int32, head.shape, 1)
    head = jnp.where(lane < num_anchors, jax.nn.sigmoid(head), head)
    o_ref[...] = head.reshape(1, H, W, KH)


def roi_head_kernel(x_ref, w6_ref, b6_ref, w7_ref, b7_ref, wh_ref, bh_ref,
                    o_ref, acc_ref, *, num_classes):
    # grid = (R/tm, K/tk); fc6 reduction tiled over k with a VMEM accumulator.
    # On the last k step: fc7 -> fused (cls,bbox) head -> softmax, all in VMEM.
    kk = pl.program_id(1)

    @pl.when(kk == 0)
    def _():
        acc_ref[...] = jnp.zeros_like(acc_ref)

    acc_ref[...] += jnp.dot(x_ref[...].astype(jnp.bfloat16), w6_ref[...],
                            preferred_element_type=jnp.float32)

    @pl.when(kk == pl.num_programs(1) - 1)
    def _():
        h1 = jnp.maximum(acc_ref[...] + b6_ref[...], 0.0)          # fc6 + ReLU
        h2 = jnp.dot(h1.astype(jnp.bfloat16), w7_ref[...],
                     preferred_element_type=jnp.float32) + b7_ref[...]
        h2 = jnp.maximum(h2, 0.0)                                   # fc7 + ReLU
        head = jnp.dot(h2.astype(jnp.bfloat16), wh_ref[...],
                       preferred_element_type=jnp.float32) + bh_ref[...]
        # softmax over the first num_classes lanes, full-width masked ops only
        lane = jax.lax.broadcasted_iota(jnp.int32, head.shape, 1)
        cls_mask = lane < num_classes
        logits = jnp.where(cls_mask, head, jnp.float32(-1e30))
        m = jnp.max(logits, axis=-1, keepdims=True)
        e = jnp.exp(logits - m)
        probs = e / jnp.sum(e, axis=-1, keepdims=True)
        o_ref[...] = jnp.where(cls_mask, probs, head)


def decode_clip_kernel(deltas_ref, boxes_ref, o_ref, *,
                       wx, wy, ww, wh, clip, img_h, img_w):
    # layout: (TM, 4); cols = (x1,y1,x2,y2) / (dx,dy,dw,dh).
    d = deltas_ref[...]
    b = boxes_ref[...]
    bx1, by1, bx2, by2 = b[:, 0:1], b[:, 1:2], b[:, 2:3], b[:, 3:4]
    widths = bx2 - bx1
    heights = by2 - by1
    ctr_x = bx1 + 0.5 * widths
    ctr_y = by1 + 0.5 * heights
    dx = d[:, 0:1] / wx
    dy = d[:, 1:2] / wy
    dw = jnp.minimum(d[:, 2:3] / ww, clip)
    dh = jnp.minimum(d[:, 3:4] / wh, clip)
    pcx = dx * widths + ctr_x
    pcy = dy * heights + ctr_y
    pw = jnp.exp(dw) * widths
    ph = jnp.exp(dh) * heights
    x1 = jnp.clip(pcx - 0.5 * pw, 0.0, img_w)
    y1 = jnp.clip(pcy - 0.5 * ph, 0.0, img_h)
    x2 = jnp.clip(pcx + 0.5 * pw, 0.0, img_w)
    y2 = jnp.clip(pcy + 0.5 * ph, 0.0, img_h)
    o_ref[...] = jnp.concatenate([x1, y1, x2, y2], axis=-1)


# ----------------------------------------------------------------------------
# Pallas wrappers
# ----------------------------------------------------------------------------
def linear(x, w, b, relu=False, *, out_dtype=jnp.float32, tm=256, tn=128, tk=256):
    """Tiled (N, Kout, K) matmul + bias (+ReLU); bf16 MXU, f32 accumulator."""
    N, K = x.shape
    Kout = w.shape[1]
    tm = min(tm, _round_up(N, 8))
    tn = min(tn, _round_up(Kout, 128))
    tk = min(tk, _round_up(K, 128))
    Np, Kp, Koutp = _round_up(N, tm), _round_up(K, tk), _round_up(Kout, tn)
    xp = jnp.pad(x, ((0, Np - N), (0, Kp - K)))
    wp = jnp.pad(w.astype(jnp.bfloat16), ((0, Kp - K), (0, Koutp - Kout)))
    bp = jnp.pad(b, (0, Koutp - Kout)).reshape(1, Koutp)
    out = pl.pallas_call(
        functools.partial(matmul_bias_act_kernel, relu=relu),
        out_shape=jax.ShapeDtypeStruct((Np, Koutp), out_dtype),
        grid=(Np // tm, Koutp // tn, Kp // tk),
        in_specs=[
            pl.BlockSpec((tm, tk), lambda i, j, kk: (i, kk)),
            pl.BlockSpec((tk, tn), lambda i, j, kk: (kk, j)),
            pl.BlockSpec((1, tn), lambda i, j, kk: (0, j)),
        ],
        out_specs=pl.BlockSpec((tm, tn), lambda i, j, kk: (i, j)),
        scratch_shapes=[pltpu.VMEM((tm, tn), jnp.float32)],
        compiler_params=_cparams(("parallel", "parallel", "arbitrary")),
    )(xp, wp, bp)
    return out[:N, :Kout]


def rpn_head(y, p, num_anchors):
    """Fused RPN head: 3x3 conv (9 accumulated MXU matmuls, in-kernel halo) +
    ReLU + fused cls/bbox 1x1 convs + in-kernel sigmoid on objectness lanes."""
    B, H, W, C = y.shape
    KH = p["rpn_head_w"].shape[1]
    # TODO(synk): for production FPN resolutions, row-tile this grid (halo rows
    # via index_map) instead of one full-frame block per image.
    return pl.pallas_call(
        functools.partial(rpn_head_kernel, num_anchors=num_anchors),
        out_shape=jax.ShapeDtypeStruct((B, H, W, KH), jnp.float32),
        grid=(B,),
        in_specs=[
            pl.BlockSpec((1, H, W, C), lambda b: (b, 0, 0, 0)),
            pl.BlockSpec((9 * C, C), lambda b: (0, 0)),
            pl.BlockSpec((1, C), lambda b: (0, 0)),
            pl.BlockSpec((C, KH), lambda b: (0, 0)),
            pl.BlockSpec((1, KH), lambda b: (0, 0)),
        ],
        out_specs=pl.BlockSpec((1, H, W, KH), lambda b: (b, 0, 0, 0)),
        compiler_params=_cparams(("parallel",)),
    )(y, p["rpn_conv_w"], p["rpn_conv_b"].reshape(1, C),
      p["rpn_head_w"], p["rpn_head_b"])


def roi_head(box_feat, p, num_classes, *, tm=128, tk=512):
    """Fused fc6 -> fc7 -> (cls,bbox) -> softmax in a single pallas_call."""
    R, K = box_feat.shape
    rep = p["fc7_w"].shape[0]
    KH = p["roi_head_w"].shape[1]
    tm = min(tm, _round_up(R, 8))
    tk = min(tk, _round_up(K, 128))
    Rp, Kp = _round_up(R, tm), _round_up(K, tk)
    x = jnp.pad(box_feat, ((0, Rp - R), (0, Kp - K)))
    w6 = jnp.pad(p["fc6_w"], ((0, Kp - K), (0, 0)))
    out = pl.pallas_call(
        functools.partial(roi_head_kernel, num_classes=num_classes),
        out_shape=jax.ShapeDtypeStruct((Rp, KH), jnp.float32),
        grid=(Rp // tm, Kp // tk),
        in_specs=[
            pl.BlockSpec((tm, tk), lambda i, kk: (i, kk)),
            pl.BlockSpec((tk, rep), lambda i, kk: (kk, 0)),
            pl.BlockSpec((1, rep), lambda i, kk: (0, 0)),
            pl.BlockSpec((rep, rep), lambda i, kk: (0, 0)),
            pl.BlockSpec((1, rep), lambda i, kk: (0, 0)),
            pl.BlockSpec((rep, KH), lambda i, kk: (0, 0)),
            pl.BlockSpec((1, KH), lambda i, kk: (0, 0)),
        ],
        out_specs=pl.BlockSpec((tm, KH), lambda i, kk: (i, 0)),
        scratch_shapes=[pltpu.VMEM((tm, rep), jnp.float32)],
        compiler_params=_cparams(("parallel", "arbitrary")),
    )(x, w6, p["fc6_b"].reshape(1, rep), p["fc7_w"], p["fc7_b"].reshape(1, rep),
      p["roi_head_w"], p["roi_head_b"])
    scores = out[:R, :num_classes]                       # softmax probs
    box_reg = out[:R, num_classes:5 * num_classes]       # raw bbox deltas
    return scores, box_reg


def decode_boxes(deltas, boxes, weights, img_h, img_w, *, tm=256):
    """Decode + clip; (N,4) layout end-to-end, grid tiled over N (parallel)."""
    N = deltas.shape[0]
    tm = min(tm, _round_up(N, 8))
    Np = _round_up(N, tm)
    d = jnp.pad(deltas, ((0, Np - N), (0, 0)))
    b = jnp.pad(boxes, ((0, Np - N), (0, 0)))
    kern = functools.partial(
        decode_clip_kernel,
        wx=float(weights[0]), wy=float(weights[1]),
        ww=float(weights[2]), wh=float(weights[3]),
        clip=float(BBOX_XFORM_CLIP), img_h=float(img_h), img_w=float(img_w))
    out = pl.pallas_call(
        kern,
        out_shape=jax.ShapeDtypeStruct((Np, 4), jnp.float32),
        grid=(Np // tm,),
        in_specs=[pl.BlockSpec((tm, 4), lambda i: (i, 0)),
                  pl.BlockSpec((tm, 4), lambda i: (i, 0))],
        out_specs=pl.BlockSpec((tm, 4), lambda i: (i, 0)),
        compiler_params=_cparams(("parallel",)),
    )(d, b)
    return out[:N]


# ----------------------------------------------------------------------------
# Plain-JAX glue
# ----------------------------------------------------------------------------
def generate_anchors(feat_h, feat_w, image_h, image_w, sizes, ratios):
    sizes = jnp.asarray(sizes, jnp.float32)
    ratios = jnp.asarray(ratios, jnp.float32)
    h_ratios = jnp.sqrt(ratios)
    w_ratios = 1.0 / h_ratios
    ws = (w_ratios[:, None] * sizes[None, :]).reshape(-1)
    hs = (h_ratios[:, None] * sizes[None, :]).reshape(-1)
    base = jnp.round(jnp.stack([-ws, -hs, ws, hs], axis=1) / 2.0)  # (A, 4)
    stride_h = image_h // feat_h
    stride_w = image_w // feat_w
    shifts_x = jnp.arange(feat_w, dtype=jnp.float32) * stride_w
    shifts_y = jnp.arange(feat_h, dtype=jnp.float32) * stride_h
    sy, sx = jnp.meshgrid(shifts_y, shifts_x, indexing="ij")
    shifts = jnp.stack(
        [sx.reshape(-1), sy.reshape(-1), sx.reshape(-1), sy.reshape(-1)], axis=1)
    anchors = (shifts[:, None, :] + base[None, :, :]).reshape(-1, 4)
    return anchors  # (H*W*A, 4), ordered (y, x, a) like torchvision


def roi_align(feat_nhwc, boxes, batch_idx, out_size, sampling_ratio, spatial_scale):
    # TODO(synk): RoIAlign is a data-dependent bilinear gather with no clean
    # Pallas equivalent; plain JAX (vmap'ed gather). torchvision aligned=False.
    feats = feat_nhwc[batch_idx]  # (R, H, W, C), bf16

    def one(img, box):
        Hh, Ww, Cc = img.shape
        x1 = box[0] * spatial_scale
        y1 = box[1] * spatial_scale
        x2 = box[2] * spatial_scale
        y2 = box[3] * spatial_scale
        roi_w = jnp.maximum(x2 - x1, 1.0)
        roi_h = jnp.maximum(y2 - y1, 1.0)
        S = out_size * sampling_ratio
        ys = y1 + (jnp.arange(S, dtype=jnp.float32) + 0.5) * roi_h / S
        xs = x1 + (jnp.arange(S, dtype=jnp.float32) + 0.5) * roi_w / S
        yy, xx = jnp.meshgrid(ys, xs, indexing="ij")
        y = jnp.clip(yy, 0.0, Hh - 1.0)
        x = jnp.clip(xx, 0.0, Ww - 1.0)
        y0 = jnp.floor(y).astype(jnp.int32)
        x0 = jnp.floor(x).astype(jnp.int32)
        y1i = jnp.minimum(y0 + 1, Hh - 1)
        x1i = jnp.minimum(x0 + 1, Ww - 1)
        wy = (y - y0.astype(jnp.float32))[..., None]
        wx = (x - x0.astype(jnp.float32))[..., None]
        v00 = img[y0, x0].astype(jnp.float32)
        v01 = img[y0, x1i].astype(jnp.float32)
        v10 = img[y1i, x0].astype(jnp.float32)
        v11 = img[y1i, x1i].astype(jnp.float32)
        top = v00 * (1.0 - wx) + v01 * wx
        bot = v10 * (1.0 - wx) + v11 * wx
        val = top * (1.0 - wy) + bot * wy  # (S, S, C) f32
        val = val.reshape(out_size, sampling_ratio, out_size, sampling_ratio, Cc)
        return val.mean(axis=(1, 3))  # (out, out, C)

    return jax.vmap(one)(feats, boxes)


# ----------------------------------------------------------------------------
# Parameters (matmul weights stored bf16; heads pre-fused & lane-padded)
# ----------------------------------------------------------------------------
def init_params(key, C, A, num_classes, rep, pool):
    assert 5 * A <= LANE and 5 * num_classes <= LANE and rep % 128 == 0
    ks = jax.random.split(key, 8)
    s = 0.02
    bf = jnp.bfloat16

    def nrm(k, shape):
        return jax.random.normal(k, shape, jnp.float32) * s

    # RPNHead 1x1 convs fused: columns = [cls (A) | bbox (4A) | zero-pad]
    rpn_head_w = jnp.concatenate([nrm(ks[2], (C, A)), nrm(ks[3], (C, 4 * A))], 1)
    rpn_head_w = jnp.pad(rpn_head_w, ((0, 0), (0, LANE - 5 * A))).astype(bf)
    # FastRCNNPredictor fused: columns = [cls (nc) | bbox (4nc) | zero-pad]
    roi_head_w = jnp.concatenate(
        [nrm(ks[6], (rep, num_classes)), nrm(ks[7], (rep, 4 * num_classes))], 1)
    roi_head_w = jnp.pad(roi_head_w,
                         ((0, 0), (0, LANE - 5 * num_classes))).astype(bf)
    return {
        # DetectionFeatureConnector (approx: 1x1 conv + nearest upsample)
        "conn_w": nrm(ks[0], (C, C)).astype(bf),
        "conn_b": jnp.zeros((C,), jnp.float32),
        # RPNHead 3x3 conv stored pre-reshaped (9*C, C); row block idx = ky*3+kx
        "rpn_conv_w": nrm(ks[1], (3, 3, C, C)).reshape(9 * C, C).astype(bf),
        "rpn_conv_b": jnp.zeros((C,), jnp.float32),
        "rpn_head_w": rpn_head_w,
        "rpn_head_b": jnp.zeros((1, LANE), jnp.float32),
        # TwoMLPHead; fc6_w rows are in NHWC-flatten order (the PyTorch NCHW
        # flatten permutation is folded into the weight at init).
        "fc6_w": nrm(ks[4], (pool * pool * C, rep)).astype(bf),
        "fc6_b": jnp.zeros((rep,), jnp.float32),
        "fc7_w": nrm(ks[5], (rep, rep)).astype(bf),
        "fc7_b": jnp.zeros((rep,), jnp.float32),
        "roi_head_w": roi_head_w,
        "roi_head_b": jnp.zeros((1, LANE), jnp.float32),
    }


# ----------------------------------------------------------------------------
# Forward pass (inference path: targets=None -> losses = {})
# ----------------------------------------------------------------------------
def mask_rcnn_forward(params, features_nchw, image_size, roi_size, cfg):
    del image_size  # TODO(synk): project_roi_results_on_image / extract_roi_feature_maps
    # are dataset-specific glue; treated as identity (outputs in ROI coordinates).
    B = features_nchw.shape[0]
    # bf16 activations through HBM (cast to bf16 happens before the MXU anyway).
    x = jnp.transpose(features_nchw, (0, 2, 3, 1)).astype(jnp.bfloat16)  # NHWC
    _, Hf, Wf, C = x.shape
    A = len(cfg["anchor_sizes"]) * len(cfg["anchor_ratios"])
    num_classes = cfg["num_classes"]
    roi_h, roi_w = roi_size
    factor = roi_h // Hf

    # ---- connector: 1x1 conv (tiled Pallas matmul) + ReLU, bf16 output ----
    y = linear(x.reshape(-1, C), params["conn_w"], params["conn_b"],
               relu=True, out_dtype=jnp.bfloat16)
    y = y.reshape(B, Hf, Wf, C)
    # TODO(synk): fold the nearest-upsample into the connector/RPN kernels to
    # avoid materialising the factor^2-larger feature tensor in HBM.
    y = jnp.repeat(jnp.repeat(y, factor, axis=1), factor, axis=2)  # (B, H, W, C)
    H, W = y.shape[1], y.shape[2]

    # ---- fused RPN head (halo + sigmoid in-kernel, lane-dense 128-wide out) ----
    rpn_out = rpn_head(y, params, A)                                # (B,H,W,128)
    scores = rpn_out[..., :A].reshape(B, H * W * A)                 # sigmoid(obj)
    rpn_deltas = rpn_out[..., A:5 * A].reshape(B, H * W * A, 4)

    # ---- anchors + proposal decoding (tiled Pallas decode kernel, (N,4)) ----
    anchors = generate_anchors(H, W, roi_h, roi_w,
                               cfg["anchor_sizes"], cfg["anchor_ratios"])
    N = H * W * A
    proposals = decode_boxes(rpn_deltas.reshape(B * N, 4),
                             jnp.tile(anchors, (B, 1)),
                             (1.0, 1.0, 1.0, 1.0), roi_h, roi_w)
    proposals = proposals.reshape(B, N, 4)

    # ---- filter_proposals (top-k only; sigmoid is monotonic so same order) ----
    k = cfg["rpn_top_n"]
    _, top_idx = jax.lax.top_k(scores, k)
    top_boxes = jnp.take_along_axis(proposals, top_idx[..., None], axis=1)
    # TODO(synk): RPN min-size removal and per-level NMS produce dynamic shapes;
    # no clean Pallas equivalent — omitted (top-k proposals kept instead).

    # ---- RoI heads ----
    R = B * k
    rois = top_boxes.reshape(R, 4)
    batch_idx = jnp.repeat(jnp.arange(B), k)
    pool = cfg["pool_size"]
    pooled = roi_align(y, rois, batch_idx, pool, 2, float(H) / roi_h)  # (R,p,p,C)
    # NHWC flatten; NCHW permutation is folded into fc6_w at init (no transpose).
    box_feat = pooled.reshape(R, pool * pool * C)

    # fused fc6 -> fc7 -> (cls,bbox) -> softmax, one pallas_call
    pred_scores, box_regression = roi_head(box_feat, params, num_classes)

    # ---- postprocess_detections ----
    pred_boxes = decode_boxes(box_regression.reshape(R * num_classes, 4),
                              jnp.repeat(rois, num_classes, axis=0),
                              (10.0, 10.0, 5.0, 5.0), roi_h, roi_w)
    pred_boxes = pred_boxes.reshape(R, num_classes, 4)

    boxes_fg = pred_boxes[:, 1:, :].reshape(B, k * (num_classes - 1), 4)
    scores_fg = pred_scores[:, 1:].reshape(B, k * (num_classes - 1))
    labels_fg = jnp.tile(jnp.arange(1, num_classes, dtype=jnp.int32), (k,))
    det_k = cfg["detections_per_img"]
    det_scores, det_idx = jax.lax.top_k(scores_fg, det_k)
    det_boxes = jnp.take_along_axis(boxes_fg, det_idx[..., None], axis=1)
    det_labels = labels_fg[det_idx]
    # TODO(synk): score-thresholding and per-class NMS (dynamic shapes) omitted.

    outputs = [{"boxes": det_boxes[i], "scores": det_scores[i],
                "labels": det_labels[i]} for i in range(B)]
    losses = {}  # targets=None -> inference path, no losses
    return outputs, losses


# ----------------------------------------------------------------------------
if __name__ == "__main__":
    key = jax.random.PRNGKey(0)
    B, C, Hin, Win = 2, 32, 8, 8
    roi_size = (16, 16)
    image_size = (32, 32)
    num_classes = 5
    cfg = {
        "anchor_sizes": (4.0, 8.0, 16.0),
        "anchor_ratios": (1.0,),
        "rpn_top_n": 64,
        "detections_per_img": 16,
        "pool_size": 7,
        "num_classes": num_classes,
    }
    A = len(cfg["anchor_sizes"]) * len(cfg["anchor_ratios"])
    params = init_params(key, C=C, A=A, num_classes=num_classes,
                         rep=128, pool=cfg["pool_size"])
    features = jax.random.normal(jax.random.fold_in(key, 123),
                                 (B, C, Hin, Win), jnp.float32)

    @jax.jit
    def run(feats):
        return mask_rcnn_forward(params, feats, image_size, roi_size, cfg)

    outputs, losses = run(features)
    jax.tree_util.tree_map(lambda a: a.block_until_ready(), (outputs, losses))
    print("KERNEL_OK")
</pallas_src>

<mosaic_0001>
module attributes {stable_mosaic.version = 11 : i64} {
  func.func @rpn_head_kernel(%arg0: i32, %arg1: memref<1x16x16x32xbf16, #tpu.memory_space<vmem>>, %arg2: memref<288x32xbf16, #tpu.memory_space<vmem>>, %arg3: memref<1x32xf32, #tpu.memory_space<vmem>>, %arg4: memref<32x128xbf16, #tpu.memory_space<vmem>>, %arg5: memref<1x128xf32, #tpu.memory_space<vmem>>, %arg6: memref<1x16x16x128xf32, #tpu.memory_space<vmem>>) attributes {dimension_semantics = [#tpu.dimension_semantics<parallel>], iteration_bounds = array<i64: 2>, scalar_prefetch = 0 : i64, scratch_operands = 0 : i64, tpu.core_type = #tpu.core_type<tc>, window_params = [{transform_indices = @transform_0, window_bounds = array<i64: 1, 16, 16, 32>}, {pipeline_mode = #tpu.pipeline_mode<synchronous>, transform_indices = @transform_1, window_bounds = array<i64: 288, 32>}, {pipeline_mode = #tpu.pipeline_mode<synchronous>, transform_indices = @transform_2, window_bounds = array<i64: 1, 32>}, {pipeline_mode = #tpu.pipeline_mode<synchronous>, transform_indices = @transform_3, window_bounds = array<i64: 32, 128>}, {pipeline_mode = #tpu.pipeline_mode<synchronous>, transform_indices = @transform_4, window_bounds = array<i64: 1, 128>}, {transform_indices = @transform_5, window_bounds = array<i64: 1, 16, 16, 128>}]} {
    %c0 = arith.constant 0 : index
    %c0_0 = arith.constant 0 : index
    %c0_1 = arith.constant 0 : index
    %c0_2 = arith.constant 0 : index
    %0 = vector.load %arg1[%c0, %c0_0, %c0_1, %c0_2] : memref<1x16x16x32xbf16, #tpu.memory_space<vmem>>, vector<1x16x16x32xbf16>
    %1 = vector.shape_cast %0 : vector<1x16x16x32xbf16> to vector<16x16x32xbf16>
    %cst = arith.constant 0.000000e+00 : bf16
    %2 = vector.broadcast %cst : bf16 to vector<2x16x32xbf16>
    %3 = tpu.concatenate %2, %1, %2 in 0 : vector<2x16x32xbf16>, vector<16x16x32xbf16>, vector<2x16x32xbf16> -> vector<20x16x32xbf16>
    %4 = vector.shape_cast %3 : vector<20x16x32xbf16> to vector<320x32xbf16>
    %c0_3 = arith.constant 0 : index
    %c0_4 = arith.constant 0 : index
    %5 = vector.load %arg2[%c0_3, %c0_4] : memref<288x32xbf16, #tpu.memory_space<vmem>>, vector<288x32xbf16>
    %6 = tpu.iota {dimensions = array<i32: 0>} : vector<256x1xi32>
    %c16_i32 = arith.constant 16 : i32
    %c0_i32 = arith.constant 0 : i32
    %7 = arith.cmpi eq, %c16_i32, %c0_i32 : i32
    %c1_i32 = arith.constant 1 : i32
    %8 = arith.select %7, %c1_i32, %c16_i32 : i32
    %9 = vector.broadcast %8 : i32 to vector<256x1xi32>
    %10 = arith.remsi %6, %9 : vector<256x1xi32>
    %c0_i32_5 = arith.constant 0 : i32
    %11 = vector.broadcast %c0_i32_5 : i32 to vector<256x1xi32>
    %12 = arith.cmpi ne, %10, %11 : vector<256x1xi32>
    %c0_i32_6 = arith.constant 0 : i32
    %13 = vector.broadcast %c0_i32_6 : i32 to vector<256x1xi32>
    %14 = arith.cmpi slt, %10, %13 : vector<256x1xi32>
    %c0_i32_7 = arith.constant 0 : i32
    %15 = arith.cmpi slt, %8, %c0_i32_7 : i32
    %16 = vector.broadcast %15 : i1 to vector<256x1xi1>
    %17 = vector.broadcast %16 : vector<256x1xi1> to vector<256x1xi1>
    %18 = arith.xori %14, %17 : vector<256x1xi1>
    %19 = arith.andi %18, %12 : vector<256x1xi1>
    %20 = vector.broadcast %8 : i32 to vector<256x1xi32>
    %21 = arith.addi %10, %20 : vector<256x1xi32>
    %22 = arith.select %19, %21, %10 : vector<256x1xi1>, vector<256x1xi32>
    %cst_8 = arith.constant 0.000000e+00 : f32
    %23 = vector.broadcast %cst_8 : f32 to vector<256x32xf32>
    %24 = vector.extract_strided_slice %4 {offsets = [15, 0], sizes = [256, 32], strides = [1, 1]} : vector<320x32xbf16> to vector<256x32xbf16>
    %c0_i32_9 = arith.constant 0 : i32
    %25 = vector.broadcast %c0_i32_9 : i32 to vector<256x1xi32>
    %26 = arith.cmpi eq, %22, %25 : vector<256x1xi32>
    %cst_10 = arith.constant 0.000000e+00 : bf16
    %27 = vector.broadcast %cst_10 : bf16 to vector<256x32xbf16>
    %28 = vector.shape_cast %26 : vector<256x1xi1> to vector<256x1xi1>
    %29 = vector.broadcast %28 : vector<256x1xi1> to vector<256x32xi1>
    %30 = arith.select %29, %27, %24 : vector<256x32xi1>, vector<256x32xbf16>
    %31 = vector.extract_strided_slice %5 {offsets = [0, 0], sizes = [32, 32], strides = [1, 1]} : vector<288x32xbf16> to vector<32x32xbf16>
    %cst_11 = arith.constant dense<0.000000e+00> : vector<256x32xf32>
    %32 = tpu.matmul %30, %31, %cst_11 {dimension_numbers = #tpu.dot_dimension_numbers<[1], [0], [0], [1], [0, 0, 1, 1], [], []>} : vector<256x32xbf16>, vector<32x32xbf16>, vector<256x32xf32> -> vector<256x32xf32>
    %33 = arith.addf %23, %32 : vector<256x32xf32>
    %34 = vector.extract_strided_slice %4 {offsets = [16, 0], sizes = [256, 32], strides = [1, 1]} : vector<320x32xbf16> to vector<256x32xbf16>
    %35 = vector.extract_strided_slice %5 {offsets = [32, 0], sizes = [32, 32], strides = [1, 1]} : vector<288x32xbf16> to vector<32x32xbf16>
    %cst_12 = arith.constant dense<0.000000e+00> : vector<256x32xf32>
    %36 = tpu.matmul %34, %35, %cst_12 {dimension_numbers = #tpu.dot_dimension_numbers<[1], [0], [0], [1], [0, 0, 1, 1], [], []>} : vector<256x32xbf16>, vector<32x32xbf16>, vector<256x32xf32> -> vector<256x32xf32>
    %37 = arith.addf %33, %36 : vector<256x32xf32>
    %38 = vector.extract_strided_slice %4 {offsets = [17, 0], sizes = [256, 32], strides = [1, 1]} : vector<320x32xbf16> to vector<256x32xbf16>
    %c15_i32 = arith.constant 15 : i32
    %39 = vector.broadcast %c15_i32 : i32 to vector<256x1xi32>
    %40 = arith.cmpi eq, %22, %39 : vector<256x1xi32>
    %cst_13 = arith.constant 0.000000e+00 : bf16
    %41 = vector.broadcast %cst_13 : bf16 to vector<256x32xbf16>
    %42 = vector.shape_cast %40 : vector<256x1xi1> to vector<256x1xi1>
    %43 = vector.broadcast %42 : vector<256x1xi1> to vector<256x32xi1>
    %44 = arith.select %43, %41, %38 : vector<256x32xi1>, vector<256x32xbf16>
    %45 = vector.extract_strided_slice %5 {offsets = [64, 0], sizes = [32, 32], strides = [1, 1]} : vector<288x32xbf16> to vector<32x32xbf16>
    %cst_14 = arith.constant dense<0.000000e+00> : vector<256x32xf32>
    %46 = tpu.matmul %44, %45, %cst_14 {dimension_numbers = #tpu.dot_dimension_numbers<[1], [0], [0], [1], [0, 0, 1, 1], [], []>} : vector<256x32xbf16>, vector<32x32xbf16>, vector<256x32xf32> -> vector<256x32xf32>
    %47 = arith.addf %37, %46 : vector<256x32xf32>
    %48 = vector.extract_strided_slice %4 {offsets = [31, 0], sizes = [256, 32], strides = [1, 1]} : vector<320x32xbf16> to vector<256x32xbf16>
    %c0_i32_15 = arith.constant 0 : i32
    %49 = vector.broadcast %c0_i32_15 : i32 to vector<256x1xi32>
    %50 = arith.cmpi eq, %22, %49 : vector<256x1xi32>
    %cst_16 = arith.constant 0.000000e+00 : bf16
    %51 = vector.broadcast %cst_16 : bf16 to vector<256x32xbf16>
    %52 = vector.shape_cast %50 : vector<256x1xi1> to vector<256x1xi1>
    %53 = vector.broadcast %52 : vector<256x1xi1> to vector<256x32xi1>
    %54 = arith.select %53, %51, %48 : vector<256x32xi1>, vector<256x32xbf16>
    %55 = vector.extract_strided_slice %5 {offsets = [96, 0], sizes = [32, 32], strides = [1, 1]} : vector<288x32xbf16> to vector<32x32xbf16>
    %cst_17 = arith.constant dense<0.000000e+00> : vector<256x32xf32>
    %56 = tpu.matmul %54, %55, %cst_17 {dimension_numbers = #tpu.dot_dimension_numbers<[1], [0], [0], [1], [0, 0, 1, 1], [], []>} : vector<256x32xbf16>, vector<32x32xbf16>, vector<256x32xf32> -> vector<256x32xf32>
    %57 = arith.addf %47, %56 : vector<256x32xf32>
    %58 = vector.extract_strided_slice %4 {offsets = [32, 0], sizes = [256, 32], strides = [1, 1]} : vector<320x32xbf16> to vector<256x32xbf16>
    %59 = vector.extract_strided_slice %5 {offsets = [128, 0], sizes = [32, 32], strides = [1, 1]} : vector<288x32xbf16> to vector<32x32xbf16>
    %cst_18 = arith.constant dense<0.000000e+00> : vector<256x32xf32>
    %60 = tpu.matmul %58, %59, %cst_18 {dimension_numbers = #tpu.dot_dimension_numbers<[1], [0], [0], [1], [0, 0, 1, 1], [], []>} : vector<256x32xbf16>, vector<32x32xbf16>, vector<256x32xf32> -> vector<256x32xf32>
    %61 = arith.addf %57, %60 : vector<256x32xf32>
    %62 = vector.extract_strided_slice %4 {offsets = [33, 0], sizes = [256, 32], strides = [1, 1]} : vector<320x32xbf16> to vector<256x32xbf16>
    %c15_i32_19 = arith.constant 15 : i32
    %63 = vector.broadcast %c15_i32_19 : i32 to vector<256x1xi32>
    %64 = arith.cmpi eq, %22, %63 : vector<256x1xi32>
    %cst_20 = arith.constant 0.000000e+00 : bf16
    %65 = vector.broadcast %cst_20 : bf16 to vector<256x32xbf16>
    %66 = vector.shape_cast %64 : vector<256x1xi1> to vector<256x1xi1>
    %67 = vector.broadcast %66 : vector<256x1xi1> to vector<256x32xi1>
    %68 = arith.select %67, %65, %62 : vector<256x32xi1>, vector<256x32xbf16>
    %69 = vector.extract_strided_slice %5 {offsets = [160, 0], sizes = [32, 32], strides = [1, 1]} : vector<288x32xbf16> to vector<32x32xbf16>
    %cst_21 = arith.constant dense<0.000000e+00> : vector<256x32xf32>
    %70 = tpu.matmul %68, %69, %cst_21 {dimension_numbers = #tpu.dot_dimension_numbers<[1], [0], [0], [1], [0, 0, 1, 1], [], []>} : vector<256x32xbf16>, vector<32x32xbf16>, vector<256x32xf32> -> vector<256x32xf32>
    %71 = arith.addf %61, %70 : vector<256x32xf32>
    %72 = vector.extract_strided_slice %4 {offsets = [47, 0], sizes = [256, 32], strides = [1, 1]} : vector<320x32xbf16> to vector<256x32xbf16>
    %c0_i32_22 = arith.constant 0 : i32
    %73 = vector.broadcast %c0_i32_22 : i32 to vector<256x1xi32>
    %74 = arith.cmpi eq, %22, %73 : vector<256x1xi32>
    %cst_23 = arith.constant 0.000000e+00 : bf16
    %75 = vector.broadcast %cst_23 : bf16 to vector<256x32xbf16>
    %76 = vector.shape_cast %74 : vector<256x1xi1> to vector<256x1xi1>
    %77 = vector.broadcast %76 : vector<256x1xi1> to vector<256x32xi1>
    %78 = arith.select %77, %75, %72 : vector<256x32xi1>, vector<256x32xbf16>
    %79 = vector.extract_strided_slice %5 {offsets = [192, 0], sizes = [32, 32], strides = [1, 1]} : vector<288x32xbf16> to vector<32x32xbf16>
    %cst_24 = arith.constant dense<0.000000e+00> : vector<256x32xf32>
    %80 = tpu.matmul %78, %79, %cst_24 {dimension_numbers = #tpu.dot_dimension_numbers<[1], [0], [0], [1], [0, 0, 1, 1], [], []>} : vector<256x32xbf16>, vector<32x32xbf16>, vector<256x32xf32> -> vector<256x32xf32>
    %81 = arith.addf %71, %80 : vector<256x32xf32>
    %82 = vector.extract_strided_slice %4 {offsets = [48, 0], sizes = [256, 32], strides = [1, 1]} : vector<320x32xbf16> to vector<256x32xbf16>
    %83 = vector.extract_strided_slice %5 {offsets = [224, 0], sizes = [32, 32], strides = [1, 1]} : vector<288x32xbf16> to vector<32x32xbf16>
    %cst_25 = arith.constant dense<0.000000e+00> : vector<256x32xf32>
    %84 = tpu.matmul %82, %83, %cst_25 {dimension_numbers = #tpu.dot_dimension_numbers<[1], [0], [0], [1], [0, 0, 1, 1], [], []>} : vector<256x32xbf16>, vector<32x32xbf16>, vector<256x32xf32> -> vector<256x32xf32>
    %85 = arith.addf %81, %84 : vector<256x32xf32>
    %86 = vector.extract_strided_slice %4 {offsets = [49, 0], sizes = [256, 32], strides = [1, 1]} : vector<320x32xbf16> to vector<256x32xbf16>
    %c15_i32_26 = arith.constant 15 : i32
    %87 = vector.broadcast %c15_i32_26 : i32 to vector<256x1xi32>
    %88 = arith.cmpi eq, %22, %87 : vector<256x1xi32>
    %cst_27 = arith.constant 0.000000e+00 : bf16
    %89 = vector.broadcast %cst_27 : bf16 to vector<256x32xbf16>
    %90 = vector.shape_cast %88 : vector<256x1xi1> to vector<256x1xi1>
    %91 = vector.broadcast %90 : vector<256x1xi1> to vector<256x32xi1>
    %92 = arith.select %91, %89, %86 : vector<256x32xi1>, vector<256x32xbf16>
    %93 = vector.extract_strided_slice %5 {offsets = [256, 0], sizes = [32, 32], strides = [1, 1]} : vector<288x32xbf16> to vector<32x32xbf16>
    %cst_28 = arith.constant dense<0.000000e+00> : vector<256x32xf32>
    %94 = tpu.matmul %92, %93, %cst_28 {dimension_numbers = #tpu.dot_dimension_numbers<[1], [0], [0], [1], [0, 0, 1, 1], [], []>} : vector<256x32xbf16>, vector<32x32xbf16>, vector<256x32xf32> -> vector<256x32xf32>
    %95 = arith.addf %85, %94 : vector<256x32xf32>
    %c0_29 = arith.constant 0 : index
    %c0_30 = arith.constant 0 : index
    %96 = vector.load %arg3[%c0_29, %c0_30] : memref<1x32xf32, #tpu.memory_space<vmem>>, vector<1x32xf32>
    %97 = vector.broadcast %96 : vector<1x32xf32> to vector<256x32xf32>
    %98 = arith.addf %95, %97 : vector<256x32xf32>
    %cst_31 = arith.constant 0.000000e+00 : f32
    %99 = vector.broadcast %cst_31 : f32 to vector<256x32xf32>
    %100 = arith.maximumf %98, %99 : vector<256x32xf32>
    %101 = arith.truncf %100 : vector<256x32xf32> to vector<256x32xbf16>
    %c0_32 = arith.constant 0 : index
    %c0_33 = arith.constant 0 : index
    %102 = vector.load %arg4[%c0_32, %c0_33] : memref<32x128xbf16, #tpu.memory_space<vmem>>, vector<32x128xbf16>
    %cst_34 = arith.constant dense<0.000000e+00> : vector<256x128xf32>
    %103 = tpu.matmul %101, %102, %cst_34 {dimension_numbers = #tpu.dot_dimension_numbers<[1], [0], [0], [1], [0, 0, 1, 1], [], []>} : vector<256x32xbf16>, vector<32x128xbf16>, vector<256x128xf32> -> vector<256x128xf32>
    %c0_35 = arith.constant 0 : index
    %c0_36 = arith.constant 0 : index
    %104 = vector.load %arg5[%c0_35, %c0_36] : memref<1x128xf32, #tpu.memory_space<vmem>>, vector<1x128xf32>
    %105 = vector.broadcast %104 : vector<1x128xf32> to vector<256x128xf32>
    %106 = arith.addf %103, %105 : vector<256x128xf32>
    %107 = tpu.iota {dimensions = array<i32: 1>} : vector<256x128xi32>
    %c3_i32 = arith.constant 3 : i32
    %108 = vector.broadcast %c3_i32 : i32 to vector<256x128xi32>
    %109 = arith.cmpi slt, %107, %108 : vector<256x128xi32>
    %110 = arith.negf %106 : vector<256x128xf32>
    %111 = math.exp %110 : vector<256x128xf32>
    %cst_37 = arith.constant 1.000000e+00 : f32
    %112 = vector.broadcast %cst_37 : f32 to vector<256x128xf32>
    %113 = arith.addf %112, %111 : vector<256x128xf32>
    %114 = arith.divf %112, %113 : vector<256x128xf32>
    %115 = arith.select %109, %114, %106 : vector<256x128xi1>, vector<256x128xf32>
    %116 = vector.shape_cast %115 : vector<256x128xf32> to vector<1x16x16x128xf32>
    %c0_38 = arith.constant 0 : index
    %c0_39 = arith.constant 0 : index
    %c0_40 = arith.constant 0 : index
    %c0_41 = arith.constant 0 : index
    %117 = vector.load %arg6[%c0_38, %c0_39, %c0_40, %c0_41] : memref<1x16x16x128xf32, #tpu.memory_space<vmem>>, vector<1x16x16x128xf32>
    tpu.vector_store %arg6[%c0_38, %c0_39, %c0_40, %c0_41], %116 {strides = array<i32>} : memref<1x16x16x128xf32, #tpu.memory_space<vmem>>, vector<1x16x16x128xf32>,
    return
  }
  func.func @transform_0(%arg0: i32) -> (i32, i32, i32, i32) {
    %c0_i32 = arith.constant 0 : i32
    %c0_i32_0 = arith.constant 0 : i32
    %c0_i32_1 = arith.constant 0 : i32
    %c0_i32_2 = arith.constant 0 : i32
    return %arg0, %c0_i32, %c0_i32_0, %c0_i32_1 : i32, i32, i32, i32
  }
  func.func @transform_1(%arg0: i32) -> (i32, i32) {
    %c0_i32 = arith.constant 0 : i32
    %c0_i32_0 = arith.constant 0 : i32
    %c0_i32_1 = arith.constant 0 : i32
    return %c0_i32, %c0_i32_0 : i32, i32
  }
  func.func @transform_2(%arg0: i32) -> (i32, i32) {
    %c0_i32 = arith.constant 0 : i32
    %c0_i32_0 = arith.constant 0 : i32
    %c0_i32_1 = arith.constant 0 : i32
    return %c0_i32, %c0_i32_0 : i32, i32
  }
  func.func @transform_3(%arg0: i32) -> (i32, i32) {
    %c0_i32 = arith.constant 0 : i32
    %c0_i32_0 = arith.constant 0 : i32
    %c0_i32_1 = arith.constant 0 : i32
    return %c0_i32, %c0_i32_0 : i32, i32
  }
  func.func @transform_4(%arg0: i32) -> (i32, i32) {
    %c0_i32 = arith.constant 0 : i32
    %c0_i32_0 = arith.constant 0 : i32
    %c0_i32_1 = arith.constant 0 : i32
    return %c0_i32, %c0_i32_0 : i32, i32
  }
  func.func @transform_5(%arg0: i32) -> (i32, i32, i32, i32) {
    %c0_i32 = arith.constant 0 : i32
    %c0_i32_0 = arith.constant 0 : i32
    %c0_i32_1 = arith.constant 0 : i32
    %c0_i32_2 = arith.constant 0 : i32
    return %arg0, %c0_i32, %c0_i32_0, %c0_i32_1 : i32, i32, i32, i32
  }
}

module attributes {stable_mosaic.version = 11 : i64} {
  func.func @matmul_bias_act_kernel(%arg0: i32, %arg1: i32, %arg2: i32, %arg3: memref<128x128xbf16, #tpu.memory_space<vmem>>, %arg4: memref<128x128xbf16, #tpu.memory_space<vmem>>, %arg5: memref<1x128xf32, #tpu.memory_space<vmem>>, %arg6: memref<128x128xbf16, #tpu.memory_space<vmem>>, %arg7: memref<128x128xf32, #tpu.memory_space<vmem>>) attributes {dimension_semantics = [#tpu.dimension_semantics<parallel>, #tpu.dimension_semantics<parallel>, #tpu.dimension_semantics<arbitrary>], iteration_bounds = array<i64: 1, 1, 1>, scalar_prefetch = 0 : i64, scratch_operands = 1 : i64, tpu.core_type = #tpu.core_type<tc>, window_params = [{transform_indices = @transform_0, window_bounds = array<i64: 128, 128>}, {transform_indices = @transform_1, window_bounds = array<i64: 128, 128>}, {transform_indices = @transform_2, window_bounds = array<i64: 1, 128>}, {transform_indices = @transform_3, window_bounds = array<i64: 128, 128>}]} {
    %c0_i32 = arith.constant 0 : i32
    %0 = arith.cmpi eq, %arg2, %c0_i32 : i32
    %1 = arith.extui %0 : i1 to i32
    %c0_i32_0 = arith.constant 0 : i32
    %2 = arith.cmpi ne, %1, %c0_i32_0 : i32
    scf.if %2 {
      %cst_10 = arith.constant 0.000000e+00 : f32
      %12 = vector.broadcast %cst_10 : f32 to vector<128x128xf32>
      %c0_11 = arith.constant 0 : index
      %c0_12 = arith.constant 0 : index
      %13 = vector.load %arg7[%c0_11, %c0_12] : memref<128x128xf32, #tpu.memory_space<vmem>>, vector<128x128xf32>
      tpu.vector_store %arg7[%c0_11, %c0_12], %12 {strides = array<i32>} : memref<128x128xf32, #tpu.memory_space<vmem>>, vector<128x128xf32>,
    } else {
    }
    %c0 = arith.constant 0 : index
    %c0_1 = arith.constant 0 : index
    %3 = vector.load %arg7[%c0, %c0_1] : memref<128x128xf32, #tpu.memory_space<vmem>>, vector<128x128xf32>
    %c0_2 = arith.constant 0 : index
    %c0_3 = arith.constant 0 : index
    %4 = vector.load %arg3[%c0_2, %c0_3] : memref<128x128xbf16, #tpu.memory_space<vmem>>, vector<128x128xbf16>
    %c0_4 = arith.constant 0 : index
    %c0_5 = arith.constant 0 : index
    %5 = vector.load %arg4[%c0_4, %c0_5] : memref<128x128xbf16, #tpu.memory_space<vmem>>, vector<128x128xbf16>
    %cst = arith.constant dense<0.000000e+00> : vector<128x128xf32>
    %6 = tpu.matmul %4, %5, %cst {dimension_numbers = #tpu.dot_dimension_numbers<[1], [0], [0], [1], [0, 0, 1, 1], [], []>} : vector<128x128xbf16>, vector<128x128xbf16>, vector<128x128xf32> -> vector<128x128xf32>
    %7 = arith.addf %3, %6 : vector<128x128xf32>
    %c0_6 = arith.constant 0 : index
    %c0_7 = arith.constant 0 : index
    %8 = vector.load %arg7[%c0_6, %c0_7] : memref<128x128xf32, #tpu.memory_space<vmem>>, vector<128x128xf32>
    tpu.vector_store %arg7[%c0_6, %c0_7], %7 {strides = array<i32>} : memref<128x128xf32, #tpu.memory_space<vmem>>, vector<128x128xf32>,
    %c0_i32_8 = arith.constant 0 : i32
    %9 = arith.cmpi eq, %arg2, %c0_i32_8 : i32
    %10 = arith.extui %9 : i1 to i32
    %c0_i32_9 = arith.constant 0 : i32
    %11 = arith.cmpi ne, %10, %c0_i32_9 : i32
    scf.if %11 {
      %c0_10 = arith.constant 0 : index
      %c0_11 = arith.constant 0 : index
      %12 = vector.load %arg7[%c0_10, %c0_11] : memref<128x128xf32, #tpu.memory_space<vmem>>, vector<128x128xf32>
      %c0_12 = arith.constant 0 : index
      %c0_13 = arith.constant 0 : index
      %13 = vector.load %arg5[%c0_12, %c0_13] : memref<1x128xf32, #tpu.memory_space<vmem>>, vector<1x128xf32>
      %14 = vector.broadcast %13 : vector<1x128xf32> to vector<128x128xf32>
      %15 = arith.addf %12, %14 : vector<128x128xf32>
      %cst_14 = arith.constant 0.000000e+00 : f32
      %16 = vector.broadcast %cst_14 : f32 to vector<128x128xf32>
      %17 = arith.maximumf %15, %16 : vector<128x128xf32>
      %18 = arith.truncf %17 : vector<128x128xf32> to vector<128x128xbf16>
      %c0_15 = arith.constant 0 : index
      %c0_16 = arith.constant 0 : index
      %19 = vector.load %arg6[%c0_15, %c0_16] : memref<128x128xbf16, #tpu.memory_space<vmem>>, vector<128x128xbf16>
      tpu.vector_store %arg6[%c0_15, %c0_16], %18 {strides = array<i32>} : memref<128x128xbf16, #tpu.memory_space<vmem>>, vector<128x128xbf16>,
    } else {
    }
    return
  }
  func.func @transform_0(%arg0: i32, %arg1: i32, %arg2: i32) -> (i32, i32) {
    %c0_i32 = arith.constant 0 : i32
    return %arg0, %arg2 : i32, i32
  }
  func.func @transform_1(%arg0: i32, %arg1: i32, %arg2: i32) -> (i32, i32) {
    %c0_i32 = arith.constant 0 : i32
    return %arg2, %arg1 : i32, i32
  }
  func.func @transform_2(%arg0: i32, %arg1: i32, %arg2: i32) -> (i32, i32) {
    %c0_i32 = arith.constant 0 : i32
    %c0_i32_0 = arith.constant 0 : i32
    return %c0_i32, %arg1 : i32, i32
  }
  func.func @transform_3(%arg0: i32, %arg1: i32, %arg2: i32) -> (i32, i32) {
    %c0_i32 = arith.constant 0 : i32
    return %arg0, %arg1 : i32, i32
  }
}

module attributes {stable_mosaic.version = 11 : i64} {
  func.func @decode_clip_kernel(%arg0: i32, %arg1: memref<256x4xf32, #tpu.memory_space<vmem>>, %arg2: memref<256x4xf32, #tpu.memory_space<vmem>>, %arg3: memref<256x4xf32, #tpu.memory_space<vmem>>) attributes {dimension_semantics = [#tpu.dimension_semantics<parallel>], iteration_bounds = array<i64: 6>, scalar_prefetch = 0 : i64, scratch_operands = 0 : i64, tpu.core_type = #tpu.core_type<tc>, window_params = [{transform_indices = @transform_0, window_bounds = array<i64: 256, 4>}, {transform_indices = @transform_1, window_bounds = array<i64: 256, 4>}, {transform_indices = @transform_2, window_bounds = array<i64: 256, 4>}]} {
    %c0 = arith.constant 0 : index
    %c0_0 = arith.constant 0 : index
    %0 = vector.load %arg1[%c0, %c0_0] : memref<256x4xf32, #tpu.memory_space<vmem>>, vector<256x4xf32>
    %c0_1 = arith.constant 0 : index
    %c0_2 = arith.constant 0 : index
    %1 = vector.load %arg2[%c0_1, %c0_2] : memref<256x4xf32, #tpu.memory_space<vmem>>, vector<256x4xf32>
    %2 = vector.extract_strided_slice %1 {offsets = [0, 0], sizes = [256, 1], strides = [1, 1]} : vector<256x4xf32> to vector<256x1xf32>
    %3 = vector.extract_strided_slice %1 {offsets = [0, 1], sizes = [256, 1], strides = [1, 1]} : vector<256x4xf32> to vector<256x1xf32>
    %4 = vector.extract_strided_slice %1 {offsets = [0, 2], sizes = [256, 1], strides = [1, 1]} : vector<256x4xf32> to vector<256x1xf32>
    %5 = vector.extract_strided_slice %1 {offsets = [0, 3], sizes = [256, 1], strides = [1, 1]} : vector<256x4xf32> to vector<256x1xf32>
    %6 = arith.subf %4, %2 : vector<256x1xf32>
    %7 = arith.subf %5, %3 : vector<256x1xf32>
    %cst = arith.constant 5.000000e-01 : f32
    %8 = vector.broadcast %cst : f32 to vector<256x1xf32>
    %9 = arith.mulf %8, %6 : vector<256x1xf32>
    %10 = arith.addf %2, %9 : vector<256x1xf32>
    %cst_3 = arith.constant 5.000000e-01 : f32
    %11 = vector.broadcast %cst_3 : f32 to vector<256x1xf32>
    %12 = arith.mulf %11, %7 : vector<256x1xf32>
    %13 = arith.addf %3, %12 : vector<256x1xf32>
    %14 = vector.extract_strided_slice %0 {offsets = [0, 0], sizes = [256, 1], strides = [1, 1]} : vector<256x4xf32> to vector<256x1xf32>
    %cst_4 = arith.constant 1.000000e+00 : f32
    %15 = vector.broadcast %cst_4 : f32 to vector<256x1xf32>
    %16 = arith.divf %14, %15 : vector<256x1xf32>
    %17 = vector.extract_strided_slice %0 {offsets = [0, 1], sizes = [256, 1], strides = [1, 1]} : vector<256x4xf32> to vector<256x1xf32>
    %cst_5 = arith.constant 1.000000e+00 : f32
    %18 = vector.broadcast %cst_5 : f32 to vector<256x1xf32>
    %19 = arith.divf %17, %18 : vector<256x1xf32>
    %20 = vector.extract_strided_slice %0 {offsets = [0, 2], sizes = [256, 1], strides = [1, 1]} : vector<256x4xf32> to vector<256x1xf32>
    %cst_6 = arith.constant 1.000000e+00 : f32
    %21 = vector.broadcast %cst_6 : f32 to vector<256x1xf32>
    %22 = arith.divf %20, %21 : vector<256x1xf32>
    %cst_7 = arith.constant 4.13516665 : f32
    %23 = vector.broadcast %cst_7 : f32 to vector<256x1xf32>
    %24 = arith.minimumf %22, %23 : vector<256x1xf32>
    %25 = vector.extract_strided_slice %0 {offsets = [0, 3], sizes = [256, 1], strides = [1, 1]} : vector<256x4xf32> to vector<256x1xf32>
    %cst_8 = arith.constant 1.000000e+00 : f32
    %26 = vector.broadcast %cst_8 : f32 to vector<256x1xf32>
    %27 = arith.divf %25, %26 : vector<256x1xf32>
    %cst_9 = arith.constant 4.13516665 : f32
    %28 = vector.broadcast %cst_9 : f32 to vector<256x1xf32>
    %29 = arith.minimumf %27, %28 : vector<256x1xf32>
    %30 = arith.mulf %16, %6 : vector<256x1xf32>
    %31 = arith.addf %30, %10 : vector<256x1xf32>
    %32 = arith.mulf %19, %7 : vector<256x1xf32>
    %33 = arith.addf %32, %13 : vector<256x1xf32>
    %34 = math.exp %24 : vector<256x1xf32>
    %35 = arith.mulf %34, %6 : vector<256x1xf32>
    %36 = math.exp %29 : vector<256x1xf32>
    %37 = arith.mulf %36, %7 : vector<256x1xf32>
    %cst_10 = arith.constant 5.000000e-01 : f32
    %38 = vector.broadcast %cst_10 : f32 to vector<256x1xf32>
    %39 = arith.mulf %38, %35 : vector<256x1xf32>
    %40 = arith.subf %31, %39 : vector<256x1xf32>
    %cst_11 = arith.constant 0.000000e+00 : f32
    %cst_12 = arith.constant 1.600000e+01 : f32
    %41 = vector.broadcast %cst_11 : f32 to vector<256x1xf32>
    %42 = arith.maximumf %41, %40 : vector<256x1xf32>
    %43 = vector.broadcast %cst_12 : f32 to vector<256x1xf32>
    %44 = arith.minimumf %43, %42 : vector<256x1xf32>
    %cst_13 = arith.constant 5.000000e-01 : f32
    %45 = vector.broadcast %cst_13 : f32 to vector<256x1xf32>
    %46 = arith.mulf %45, %37 : vector<256x1xf32>
    %47 = arith.subf %33, %46 : vector<256x1xf32>
    %cst_14 = arith.constant 0.000000e+00 : f32
    %cst_15 = arith.constant 1.600000e+01 : f32
    %48 = vector.broadcast %cst_14 : f32 to vector<256x1xf32>
    %49 = arith.maximumf %48, %47 : vector<256x1xf32>
    %50 = vector.broadcast %cst_15 : f32 to vector<256x1xf32>
    %51 = arith.minimumf %50, %49 : vector<256x1xf32>
    %cst_16 = arith.constant 5.000000e-01 : f32
    %52 = vector.broadcast %cst_16 : f32 to vector<256x1xf32>
    %53 = arith.mulf %52, %35 : vector<256x1xf32>
    %54 = arith.addf %31, %53 : vector<256x1xf32>
    %cst_17 = arith.constant 0.000000e+00 : f32
    %cst_18 = arith.constant 1.600000e+01 : f32
    %55 = vector.broadcast %cst_17 : f32 to vector<256x1xf32>
    %56 = arith.maximumf %55, %54 : vector<256x1xf32>
    %57 = vector.broadcast %cst_18 : f32 to vector<256x1xf32>
    %58 = arith.minimumf %57, %56 : vector<256x1xf32>
    %cst_19 = arith.constant 5.000000e-01 : f32
    %59 = vector.broadcast %cst_19 : f32 to vector<256x1xf32>
    %60 = arith.mulf %59, %37 : vector<256x1xf32>
    %61 = arith.addf %33, %60 : vector<256x1xf32>
    %cst_20 = arith.constant 0.000000e+00 : f32
    %cst_21 = arith.constant 1.600000e+01 : f32
    %62 = vector.broadcast %cst_20 : f32 to vector<256x1xf32>
    %63 = arith.maximumf %62, %61 : vector<256x1xf32>
    %64 = vector.broadcast %cst_21 : f32 to vector<256x1xf32>
    %65 = arith.minimumf %64, %63 : vector<256x1xf32>
    %66 = tpu.concatenate %44, %51, %58, %65 in 1 : vector<256x1xf32>, vector<256x1xf32>, vector<256x1xf32>, vector<256x1xf32> -> vector<256x4xf32>
    %c0_22 = arith.constant 0 : index
    %c0_23 = arith.constant 0 : index
    %67 = vector.load %arg3[%c0_22, %c0_23] : memref<256x4xf32, #tpu.memory_space<vmem>>, vector<256x4xf32>
    tpu.vector_store %arg3[%c0_22, %c0_23], %66 {strides = array<i32>} : memref<256x4xf32, #tpu.memory_space<vmem>>, vector<256x4xf32>,
    return
  }
  func.func @transform_0(%arg0: i32) -> (i32, i32) {
    %c0_i32 = arith.constant 0 : i32
    %c0_i32_0 = arith.constant 0 : i32
    return %arg0, %c0_i32 : i32, i32
  }
  func.func @transform_1(%arg0: i32) -> (i32, i32) {
    %c0_i32 = arith.constant 0 : i32
    %c0_i32_0 = arith.constant 0 : i32
    return %arg0, %c0_i32 : i32, i32
  }
  func.func @transform_2(%arg0: i32) -> (i32, i32) {
    %c0_i32 = arith.constant 0 : i32
    %c0_i32_0 = arith.constant 0 : i32
    return %arg0, %c0_i32 : i32, i32
  }
}

module attributes {stable_mosaic.version = 11 : i64} {
  func.func @roi_head_kernel(%arg0: i32, %arg1: i32, %arg2: memref<128x512xf32, #tpu.memory_space<vmem>>, %arg3: memref<512x128xbf16, #tpu.memory_space<vmem>>, %arg4: memref<1x128xf32, #tpu.memory_space<vmem>>, %arg5: memref<128x128xbf16, #tpu.memory_space<vmem>>, %arg6: memref<1x128xf32, #tpu.memory_space<vmem>>, %arg7: memref<128x128xbf16, #tpu.memory_space<vmem>>, %arg8: memref<1x128xf32, #tpu.memory_space<vmem>>, %arg9: memref<128x128xf32, #tpu.memory_space<vmem>>, %arg10: memref<128x128xf32, #tpu.memory_space<vmem>>) attributes {dimension_semantics = [#tpu.dimension_semantics<parallel>, #tpu.dimension_semantics<arbitrary>], iteration_bounds = array<i64: 1, 4>, scalar_prefetch = 0 : i64, scratch_operands = 1 : i64, tpu.core_type = #tpu.core_type<tc>, window_params = [{transform_indices = @transform_0, window_bounds = array<i64: 128, 512>}, {transform_indices = @transform_1, window_bounds = array<i64: 512, 128>}, {pipeline_mode = #tpu.pipeline_mode<synchronous>, transform_indices = @transform_2, window_bounds = array<i64: 1, 128>}, {pipeline_mode = #tpu.pipeline_mode<synchronous>, transform_indices = @transform_3, window_bounds = array<i64: 128, 128>}, {pipeline_mode = #tpu.pipeline_mode<synchronous>, transform_indices = @transform_4, window_bounds = array<i64: 1, 128>}, {pipeline_mode = #tpu.pipeline_mode<synchronous>, transform_indices = @transform_5, window_bounds = array<i64: 128, 128>}, {pipeline_mode = #tpu.pipeline_mode<synchronous>, transform_indices = @transform_6, window_bounds = array<i64: 1, 128>}, {transform_indices = @transform_7, window_bounds = array<i64: 128, 128>}]} {
    %c0_i32 = arith.constant 0 : i32
    %0 = arith.cmpi eq, %arg1, %c0_i32 : i32
    %1 = arith.extui %0 : i1 to i32
    %c0_i32_0 = arith.constant 0 : i32
    %2 = arith.cmpi ne, %1, %c0_i32_0 : i32
    scf.if %2 {
      %cst_9 = arith.constant 0.000000e+00 : f32
      %13 = vector.broadcast %cst_9 : f32 to vector<128x128xf32>
      %c0_10 = arith.constant 0 : index
      %c0_11 = arith.constant 0 : index
      %14 = vector.load %arg10[%c0_10, %c0_11] : memref<128x128xf32, #tpu.memory_space<vmem>>, vector<128x128xf32>
      tpu.vector_store %arg10[%c0_10, %c0_11], %13 {strides = array<i32>} : memref<128x128xf32, #tpu.memory_space<vmem>>, vector<128x128xf32>,
    } else {
    }
    %c0 = arith.constant 0 : index
    %c0_1 = arith.constant 0 : index
    %3 = vector.load %arg10[%c0, %c0_1] : memref<128x128xf32, #tpu.memory_space<vmem>>, vector<128x128xf32>
    %c0_2 = arith.constant 0 : index
    %c0_3 = arith.constant 0 : index
    %4 = vector.load %arg2[%c0_2, %c0_3] : memref<128x512xf32, #tpu.memory_space<vmem>>, vector<128x512xf32>
    %5 = arith.truncf %4 : vector<128x512xf32> to vector<128x512xbf16>
    %c0_4 = arith.constant 0 : index
    %c0_5 = arith.constant 0 : index
    %6 = vector.load %arg3[%c0_4, %c0_5] : memref<512x128xbf16, #tpu.memory_space<vmem>>, vector<512x128xbf16>
    %cst = arith.constant dense<0.000000e+00> : vector<128x128xf32>
    %7 = tpu.matmul %5, %6, %cst {dimension_numbers = #tpu.dot_dimension_numbers<[1], [0], [0], [1], [0, 0, 1, 1], [], []>} : vector<128x512xbf16>, vector<512x128xbf16>, vector<128x128xf32> -> vector<128x128xf32>
    %8 = arith.addf %3, %7 : vector<128x128xf32>
    %c0_6 = arith.constant 0 : index
    %c0_7 = arith.constant 0 : index
    %9 = vector.load %arg10[%c0_6, %c0_7] : memref<128x128xf32, #tpu.memory_space<vmem>>, vector<128x128xf32>
    tpu.vector_store %arg10[%c0_6, %c0_7], %8 {strides = array<i32>} : memref<128x128xf32, #tpu.memory_space<vmem>>, vector<128x128xf32>,
    %c3_i32 = arith.constant 3 : i32
    %10 = arith.cmpi eq, %arg1, %c3_i32 : i32
    %11 = arith.extui %10 : i1 to i32
    %c0_i32_8 = arith.constant 0 : i32
    %12 = arith.cmpi ne, %11, %c0_i32_8 : i32
    scf.if %12 {
      %c0_9 = arith.constant 0 : index
      %c0_10 = arith.constant 0 : index
      %13 = vector.load %arg10[%c0_9, %c0_10] : memref<128x128xf32, #tpu.memory_space<vmem>>, vector<128x128xf32>
      %c0_11 = arith.constant 0 : index
      %c0_12 = arith.constant 0 : index
      %14 = vector.load %arg4[%c0_11, %c0_12] : memref<1x128xf32, #tpu.memory_space<vmem>>, vector<1x128xf32>
      %15 = vector.broadcast %14 : vector<1x128xf32> to vector<128x128xf32>
      %16 = arith.addf %13, %15 : vector<128x128xf32>
      %cst_13 = arith.constant 0.000000e+00 : f32
      %17 = vector.broadcast %cst_13 : f32 to vector<128x128xf32>
      %18 = arith.maximumf %16, %17 : vector<128x128xf32>
      %19 = arith.truncf %18 : vector<128x128xf32> to vector<128x128xbf16>
      %c0_14 = arith.constant 0 : index
      %c0_15 = arith.constant 0 : index
      %20 = vector.load %arg5[%c0_14, %c0_15] : memref<128x128xbf16, #tpu.memory_space<vmem>>, vector<128x128xbf16>
      %cst_16 = arith.constant dense<0.000000e+00> : vector<128x128xf32>
      %21 = tpu.matmul %19, %20, %cst_16 {dimension_numbers = #tpu.dot_dimension_numbers<[1], [0], [0], [1], [0, 0, 1, 1], [], []>} : vector<128x128xbf16>, vector<128x128xbf16>, vector<128x128xf32> -> vector<128x128xf32>
      %c0_17 = arith.constant 0 : index
      %c0_18 = arith.constant 0 : index
      %22 = vector.load %arg6[%c0_17, %c0_18] : memref<1x128xf32, #tpu.memory_space<vmem>>, vector<1x128xf32>
      %23 = vector.broadcast %22 : vector<1x128xf32> to vector<128x128xf32>
      %24 = arith.addf %21, %23 : vector<128x128xf32>
      %cst_19 = arith.constant 0.000000e+00 : f32
      %25 = vector.broadcast %cst_19 : f32 to vector<128x128xf32>
      %26 = arith.maximumf %24, %25 : vector<128x128xf32>
      %27 = arith.truncf %26 : vector<128x128xf32> to vector<128x128xbf16>
      %c0_20 = arith.constant 0 : index
      %c0_21 = arith.constant 0 : index
      %28 = vector.load %arg7[%c0_20, %c0_21] : memref<128x128xbf16, #tpu.memory_space<vmem>>, vector<128x128xbf16>
      %cst_22 = arith.constant dense<0.000000e+00> : vector<128x128xf32>
      %29 = tpu.matmul %27, %28, %cst_22 {dimension_numbers = #tpu.dot_dimension_numbers<[1], [0], [0], [1], [0, 0, 1, 1], [], []>} : vector<128x128xbf16>, vector<128x128xbf16>, vector<128x128xf32> -> vector<128x128xf32>
      %c0_23 = arith.constant 0 : index
      %c0_24 = arith.constant 0 : index
      %30 = vector.load %arg8[%c0_23, %c0_24] : memref<1x128xf32, #tpu.memory_space<vmem>>, vector<1x128xf32>
      %31 = vector.broadcast %30 : vector<1x128xf32> to vector<128x128xf32>
      %32 = arith.addf %29, %31 : vector<128x128xf32>
      %33 = tpu.iota {dimensions = array<i32: 1>} : vector<128x128xi32>
      %c5_i32 = arith.constant 5 : i32
      %34 = vector.broadcast %c5_i32 : i32 to vector<128x128xi32>
      %35 = arith.cmpi slt, %33, %34 : vector<128x128xi32>
      %cst_25 = arith.constant -1.000000e+30 : f32
      %36 = vector.broadcast %cst_25 : f32 to vector<128x128xf32>
      %37 = arith.select %35, %32, %36 : vector<128x128xi1>, vector<128x128xf32>
      %cst_26 = arith.constant dense<0xFF800000> : vector<128xf32>
      %38 = vector.multi_reduction <maximumf>, %37, %cst_26 [1] : vector<128x128xf32> to vector<128xf32>
      %39 = vector.shape_cast %38 : vector<128xf32> to vector<128x1xf32>
      %40 = vector.broadcast %39 : vector<128x1xf32> to vector<128x128xf32>
      %41 = arith.subf %37, %40 : vector<128x128xf32>
      %42 = math.exp %41 : vector<128x128xf32>
      %cst_27 = arith.constant dense<0.000000e+00> : vector<128xf32>
      %43 = vector.multi_reduction <add>, %42, %cst_27 [1] : vector<128x128xf32> to vector<128xf32>
      %44 = vector.shape_cast %43 : vector<128xf32> to vector<128x1xf32>
      %45 = vector.broadcast %44 : vector<128x1xf32> to vector<128x128xf32>
      %46 = arith.divf %42, %45 : vector<128x128xf32>
      %47 = arith.select %35, %46, %32 : vector<128x128xi1>, vector<128x128xf32>
      %c0_28 = arith.constant 0 : index
      %c0_29 = arith.constant 0 : index
      %48 = vector.load %arg9[%c0_28, %c0_29] : memref<128x128xf32, #tpu.memory_space<vmem>>, vector<128x128xf32>
      tpu.vector_store %arg9[%c0_28, %c0_29], %47 {strides = array<i32>} : memref<128x128xf32, #tpu.memory_space<vmem>>, vector<128x128xf32>,
    } else {
    }
    return
  }
  func.func @transform_0(%arg0: i32, %arg1: i32) -> (i32, i32) {
    %c0_i32 = arith.constant 0 : i32
    return %arg0, %arg1 : i32, i32
  }
  func.func @transform_1(%arg0: i32, %arg1: i32) -> (i32, i32) {
    %c0_i32 = arith.constant 0 : i32
    %c0_i32_0 = arith.constant 0 : i32
    return %arg1, %c0_i32 : i32, i32
  }
  func.func @transform_2(%arg0: i32, %arg1: i32) -> (i32, i32) {
    %c0_i32 = arith.constant 0 : i32
    %c0_i32_0 = arith.constant 0 : i32
    %c0_i32_1 = arith.constant 0 : i32
    return %c0_i32, %c0_i32_0 : i32, i32
  }
  func.func @transform_3(%arg0: i32, %arg1: i32) -> (i32, i32) {
    %c0_i32 = arith.constant 0 : i32
    %c0_i32_0 = arith.constant 0 : i32
    %c0_i32_1 = arith.constant 0 : i32
    return %c0_i32, %c0_i32_0 : i32, i32
  }
  func.func @transform_4(%arg0: i32, %arg1: i32) -> (i32, i32) {
    %c0_i32 = arith.constant 0 : i32
    %c0_i32_0 = arith.constant 0 : i32
    %c0_i32_1 = arith.constant 0 : i32
    return %c0_i32, %c0_i32_0 : i32, i32
  }
  func.func @transform_5(%arg0: i32, %arg1: i32) -> (i32, i32) {
    %c0_i32 = arith.constant 0 : i32
    %c0_i32_0 = arith.constant 0 : i32
    %c0_i32_1 = arith.constant 0 : i32
    return %c0_i32, %c0_i32_0 : i32, i32
  }
  func.func @transform_6(%arg0: i32, %arg1: i32) -> (i32, i32) {
    %c0_i32 = arith.constant 0 : i32
    %c0_i32_0 = arith.constant 0 : i32
    %c0_i32_1 = arith.constant 0 : i32
    return %c0_i32, %c0_i32_0 : i32, i32
  }
  func.func @transform_7(%arg0: i32, %arg1: i32) -> (i32, i32) {
    %c0_i32 = arith.constant 0 : i32
    %c0_i32_0 = arith.constant 0 : i32
    return %arg0, %c0_i32 : i32, i32
  }
}

module attributes {stable_mosaic.version = 11 : i64} {
  func.func @decode_clip_kernel(%arg0: i32, %arg1: memref<256x4xf32, #tpu.memory_space<vmem>>, %arg2: memref<256x4xf32, #tpu.memory_space<vmem>>, %arg3: memref<256x4xf32, #tpu.memory_space<vmem>>) attributes {dimension_semantics = [#tpu.dimension_semantics<parallel>], iteration_bounds = array<i64: 3>, scalar_prefetch = 0 : i64, scratch_operands = 0 : i64, tpu.core_type = #tpu.core_type<tc>, window_params = [{transform_indices = @transform_0, window_bounds = array<i64: 256, 4>}, {transform_indices = @transform_1, window_bounds = array<i64: 256, 4>}, {transform_indices = @transform_2, window_bounds = array<i64: 256, 4>}]} {
    %c0 = arith.constant 0 : index
    %c0_0 = arith.constant 0 : index
    %0 = vector.load %arg1[%c0, %c0_0] : memref<256x4xf32, #tpu.memory_space<vmem>>, vector<256x4xf32>
    %c0_1 = arith.constant 0 : index
    %c0_2 = arith.constant 0 : index
    %1 = vector.load %arg2[%c0_1, %c0_2] : memref<256x4xf32, #tpu.memory_space<vmem>>, vector<256x4xf32>
    %2 = vector.extract_strided_slice %1 {offsets = [0, 0], sizes = [256, 1], strides = [1, 1]} : vector<256x4xf32> to vector<256x1xf32>
    %3 = vector.extract_strided_slice %1 {offsets = [0, 1], sizes = [256, 1], strides = [1, 1]} : vector<256x4xf32> to vector<256x1xf32>
    %4 = vector.extract_strided_slice %1 {offsets = [0, 2], sizes = [256, 1], strides = [1, 1]} : vector<256x4xf32> to vector<256x1xf32>
    %5 = vector.extract_strided_slice %1 {offsets = [0, 3], sizes = [256, 1], strides = [1, 1]} : vector<256x4xf32> to vector<256x1xf32>
    %6 = arith.subf %4, %2 : vector<256x1xf32>
    %7 = arith.subf %5, %3 : vector<256x1xf32>
    %cst = arith.constant 5.000000e-01 : f32
    %8 = vector.broadcast %cst : f32 to vector<256x1xf32>
    %9 = arith.mulf %8, %6 : vector<256x1xf32>
    %10 = arith.addf %2, %9 : vector<256x1xf32>
    %cst_3 = arith.constant 5.000000e-01 : f32
    %11 = vector.broadcast %cst_3 : f32 to vector<256x1xf32>
    %12 = arith.mulf %11, %7 : vector<256x1xf32>
    %13 = arith.addf %3, %12 : vector<256x1xf32>
    %14 = vector.extract_strided_slice %0 {offsets = [0, 0], sizes = [256, 1], strides = [1, 1]} : vector<256x4xf32> to vector<256x1xf32>
    %cst_4 = arith.constant 1.000000e+01 : f32
    %15 = vector.broadcast %cst_4 : f32 to vector<256x1xf32>
    %16 = arith.divf %14, %15 : vector<256x1xf32>
    %17 = vector.extract_strided_slice %0 {offsets = [0, 1], sizes = [256, 1], strides = [1, 1]} : vector<256x4xf32> to vector<256x1xf32>
    %cst_5 = arith.constant 1.000000e+01 : f32
    %18 = vector.broadcast %cst_5 : f32 to vector<256x1xf32>
    %19 = arith.divf %17, %18 : vector<256x1xf32>
    %20 = vector.extract_strided_slice %0 {offsets = [0, 2], sizes = [256, 1], strides = [1, 1]} : vector<256x4xf32> to vector<256x1xf32>
    %cst_6 = arith.constant 5.000000e+00 : f32
    %21 = vector.broadcast %cst_6 : f32 to vector<256x1xf32>
    %22 = arith.divf %20, %21 : vector<256x1xf32>
    %cst_7 = arith.constant 4.13516665 : f32
    %23 = vector.broadcast %cst_7 : f32 to vector<256x1xf32>
    %24 = arith.minimumf %22, %23 : vector<256x1xf32>
    %25 = vector.extract_strided_slice %0 {offsets = [0, 3], sizes = [256, 1], strides = [1, 1]} : vector<256x4xf32> to vector<256x1xf32>
    %cst_8 = arith.constant 5.000000e+00 : f32
    %26 = vector.broadcast %cst_8 : f32 to vector<256x1xf32>
    %27 = arith.divf %25, %26 : vector<256x1xf32>
    %cst_9 = arith.constant 4.13516665 : f32
    %28 = vector.broadcast %cst_9 : f32 to vector<256x1xf32>
    %29 = arith.minimumf %27, %28 : vector<256x1xf32>
    %30 = arith.mulf %16, %6 : vector<256x1xf32>
    %31 = arith.addf %30, %10 : vector<256x1xf32>
    %32 = arith.mulf %19, %7 : vector<256x1xf32>
    %33 = arith.addf %32, %13 : vector<256x1xf32>
    %34 = math.exp %24 : vector<256x1xf32>
    %35 = arith.mulf %34, %6 : vector<256x1xf32>
    %36 = math.exp %29 : vector<256x1xf32>
    %37 = arith.mulf %36, %7 : vector<256x1xf32>
    %cst_10 = arith.constant 5.000000e-01 : f32
    %38 = vector.broadcast %cst_10 : f32 to vector<256x1xf32>
    %39 = arith.mulf %38, %35 : vector<256x1xf32>
    %40 = arith.subf %31, %39 : vector<256x1xf32>
    %cst_11 = arith.constant 0.000000e+00 : f32
    %cst_12 = arith.constant 1.600000e+01 : f32
    %41 = vector.broadcast %cst_11 : f32 to vector<256x1xf32>
    %42 = arith.maximumf %41, %40 : vector<256x1xf32>
    %43 = vector.broadcast %cst_12 : f32 to vector<256x1xf32>
    %44 = arith.minimumf %43, %42 : vector<256x1xf32>
    %cst_13 = arith.constant 5.000000e-01 : f32
    %45 = vector.broadcast %cst_13 : f32 to vector<256x1xf32>
    %46 = arith.mulf %45, %37 : vector<256x1xf32>
    %47 = arith.subf %33, %46 : vector<256x1xf32>
    %cst_14 = arith.constant 0.000000e+00 : f32
    %cst_15 = arith.constant 1.600000e+01 : f32
    %48 = vector.broadcast %cst_14 : f32 to vector<256x1xf32>
    %49 = arith.maximumf %48, %47 : vector<256x1xf32>
    %50 = vector.broadcast %cst_15 : f32 to vector<256x1xf32>
    %51 = arith.minimumf %50, %49 : vector<256x1xf32>
    %cst_16 = arith.constant 5.000000e-01 : f32
    %52 = vector.broadcast %cst_16 : f32 to vector<256x1xf32>
    %53 = arith.mulf %52, %35 : vector<256x1xf32>
    %54 = arith.addf %31, %53 : vector<256x1xf32>
    %cst_17 = arith.constant 0.000000e+00 : f32
    %cst_18 = arith.constant 1.600000e+01 : f32
    %55 = vector.broadcast %cst_17 : f32 to vector<256x1xf32>
    %56 = arith.maximumf %55, %54 : vector<256x1xf32>
    %57 = vector.broadcast %cst_18 : f32 to vector<256x1xf32>
    %58 = arith.minimumf %57, %56 : vector<256x1xf32>
    %cst_19 = arith.constant 5.000000e-01 : f32
    %59 = vector.broadcast %cst_19 : f32 to vector<256x1xf32>
    %60 = arith.mulf %59, %37 : vector<256x1xf32>
    %61 = arith.addf %33, %60 : vector<256x1xf32>
    %cst_20 = arith.constant 0.000000e+00 : f32
    %cst_21 = arith.constant 1.600000e+01 : f32
    %62 = vector.broadcast %cst_20 : f32 to vector<256x1xf32>
    %63 = arith.maximumf %62, %61 : vector<256x1xf32>
    %64 = vector.broadcast %cst_21 : f32 to vector<256x1xf32>
    %65 = arith.minimumf %64, %63 : vector<256x1xf32>
    %66 = tpu.concatenate %44, %51, %58, %65 in 1 : vector<256x1xf32>, vector<256x1xf32>, vector<256x1xf32>, vector<256x1xf32> -> vector<256x4xf32>
    %c0_22 = arith.constant 0 : index
    %c0_23 = arith.constant 0 : index
    %67 = vector.load %arg3[%c0_22, %c0_23] : memref<256x4xf32, #tpu.memory_space<vmem>>, vector<256x4xf32>
    tpu.vector_store %arg3[%c0_22, %c0_23], %66 {strides = array<i32>} : memref<256x4xf32, #tpu.memory_space<vmem>>, vector<256x4xf32>,
    return
  }
  func.func @transform_0(%arg0: i32) -> (i32, i32) {
    %c0_i32 = arith.constant 0 : i32
    %c0_i32_0 = arith.constant 0 : i32
    return %arg0, %c0_i32 : i32, i32
  }
  func.func @transform_1(%arg0: i32) -> (i32, i32) {
    %c0_i32 = arith.constant 0 : i32
    %c0_i32_0 = arith.constant 0 : i32
    return %arg0, %c0_i32 : i32, i32
  }
  func.func @transform_2(%arg0: i32) -> (i32, i32) {
    %c0_i32 = arith.constant 0 : i32
    %c0_i32_0 = arith.constant 0 : i32
    return %arg0, %c0_i32 : i32, i32
  }
}

</mosaic_0001>

<bundles_post_ra>
// kernel: run.5
= control target key start
LH: loop header
LB: loop body
LE: loop exit
PB: predicated region body
PF: predicated region fallthrough
CT: control target
= control target key end

     0   :  { %8 = vsyncpa [#allocation4], 0  ;;  %s668_s12 = smov [#allocation3]   ;;  %s754_s0 = inlined_call_operand.vmem [shape: bf16[128,128], index: 0, kind: input, shape index: {}]   ;;  %s755_s1 = inlined_call_operand.hbm [shape: bf16[128,128], index: 1, kind: input, shape index: {}]   ;;  %s756_s2 = inlined_call_operand.vmem [shape: f32[1,128], index: 2, kind: input, shape index: {}]   ;;  %s757_s3 = inlined_call_operand.vmem [shape: bf16[128,128], index: 3, kind: output, shape index: {}]  }
   0x1   :  { %s16_s13 = sshll.u32 %s668_s12, 4  ;;  %s644_s16 = scalar_lea.hbm %s755_s1, 1024  ;;  %s17_s13 = int_to_ptr.vmem [resolvable:$true] %s16_s13 }
   0x2   :  { %p645_p0 = scmp.ne.s32.totalorder %s755_s1, %s644_s16  ;;  %p648_p1 = scmp.lt.u32.totalorder %s644_s16, %s755_s1 }
   0x4   :  { %p650_p2 = pnand %p648_p1, %p645_p0 }
   0x6   :  { %653 = shalt.err (!%p650_p2)
}
   0x7   :  { %s654_s21 = scalar_lea.vmem %s17_s13, 1024  ;;  %p659_p4 = scmp.lt.s32.totalorder %s17_s13, %s17_s13 }
   0x8   :  { %p655_p3 = scmp.ne.s32.totalorder %s17_s13, %s654_s21  ;;  %p660_p5 = scmp.lt.s32.totalorder %s654_s21, %s654_s21 }
   0xa   :  { %p661_p6 = por %p660_p5, %p659_p4 }
   0xc   :  { %p662_p7 = pnand %p661_p6, %p655_p3 }
   0xe   :  { %665 = shalt.err (!%p662_p7)
}
   0xf   :  { %s669_s22 = smov 64   ;;  %s670_s23 = smov 4  }
  0x10   :  { %22 = dma.hbm_to_vmem [thread:$0]  %s755_s1, 1024, %s17_s13, [#allocation4], %s669_s22, %s669_s22, %s670_s23  }
  0x11   :  { %666 = dma.done.wait [#allocation4], 1024  }
  0x12   :  { %667 = vsyncadd [#allocation4], 4294966272  ;;  %v628_v0 = vld [vmem:[#allocation3] sm:$0xff]   ;;  %v629_v1 = vld [vmem:[#allocation3 + $0x8] sm:$0xff]  }
  0x13   :  { %577 = vmatprep.subr.bf16.mxu0 %v628_v0  ;;  %609 = vmatprep.subr.bf16.mxu1 %v628_v0  ;;  %v630_v2 = vld [vmem:[#allocation3 + $0x10] sm:$0xff]   ;;  %v631_v3 = vld [vmem:[#allocation3 + $0x18] sm:$0xff]   ;;  %v636_v4 = vld [vmem:[%s754_s0] sm:$0xff]  }
  0x14   :  { %578 = vmatpush3.bf16.msra.mxu0 %v628_v0  ;;  %617 = vmatpush3.bf16.msra.mxu1 %v628_v0  ;;  %v637_v5 = vld [vmem:[%s754_s0 + $0x20] sm:$0xff]   ;;  %v633_v7 = vld [vmem:[#allocation3 + $0x28] sm:$0xff]   ;;  %v634_v8 = vld [vmem:[#allocation3 + $0x30] sm:$0xff]  }
  0x15   :  { %579 = vmatprep.subr.bf16.mxu0 %v629_v1  ;;  %610 = vmatprep.subr.bf16.mxu1 %v629_v1  ;;  %v632_v6 = vld [vmem:[#allocation3 + $0x20] sm:$0xff]   ;;  %v635_v9 = vld [vmem:[#allocation3 + $0x38] sm:$0xff]   ;;  %v638_v10 = vld [vmem:[%s754_s0 + $0x8] sm:$0xff]  }
  0x16   :  { %593 = vmatprep.mubr.bf16.mxu0 %v636_v4  ;;  %601 = vmatprep.mubr.bf16.mxu1 %v637_v5  ;;  %v639_v11 = vld [vmem:[%s754_s0 + $0x28] sm:$0xff]   ;;  %v640_v12 = vld [vmem:[%s754_s0 + $0x10] sm:$0xff]   ;;  %v642_v14 = vld [vmem:[%s754_s0 + $0x18] sm:$0xff]  }
  0x17   :  { %v641_v13 = vld [vmem:[%s754_s0 + $0x30] sm:$0xff]   ;;  %v643_v15 = vld [vmem:[%s754_s0 + $0x38] sm:$0xff]   ;;  %v481_v16 = vld [vmem:[%s756_s2] ss:$0 sm:$0xff] }
  0x18   :  { %580 = vmatpush3.bf16.msra.mxu0 %v629_v1  ;;  %618 = vmatpush3.bf16.msra.mxu1 %v629_v1 }
  0x19   :  { %581 = vmatprep.subr.bf16.mxu0 %v630_v2  ;;  %611 = vmatprep.subr.bf16.mxu1 %v630_v2 }
  0x1c   :  { %582 = vmatpush3.bf16.msra.mxu0 %v630_v2  ;;  %619 = vmatpush3.bf16.msra.mxu1 %v630_v2 }
  0x1d   :  { %583 = vmatprep.subr.bf16.mxu0 %v631_v3  ;;  %612 = vmatprep.subr.bf16.mxu1 %v631_v3 }
  0x20   :  { %584 = vmatpush3.bf16.msra.mxu0 %v631_v3  ;;  %620 = vmatpush3.bf16.msra.mxu1 %v631_v3 }
  0x21   :  { %585 = vmatprep.subr.bf16.mxu0 %v632_v6  ;;  %613 = vmatprep.subr.bf16.mxu1 %v632_v6 }
  0x24   :  { %586 = vmatpush3.bf16.msra.mxu0 %v632_v6  ;;  %621 = vmatpush3.bf16.msra.mxu1 %v632_v6 }
  0x25   :  { %587 = vmatprep.subr.bf16.mxu0 %v633_v7  ;;  %614 = vmatprep.subr.bf16.mxu1 %v633_v7 }
  0x28   :  { %588 = vmatpush3.bf16.msra.mxu0 %v633_v7  ;;  %622 = vmatpush3.bf16.msra.mxu1 %v633_v7 }
  0x29   :  { %589 = vmatprep.subr.bf16.mxu0 %v634_v8  ;;  %615 = vmatprep.subr.bf16.mxu1 %v634_v8 }
  0x2c   :  { %590 = vmatpush3.bf16.msra.mxu0 %v634_v8  ;;  %623 = vmatpush3.bf16.msra.mxu1 %v634_v8 }
  0x2d   :  { %591 = vmatprep.subr.bf16.mxu0 %v635_v9  ;;  %616 = vmatprep.subr.bf16.mxu1 %v635_v9 }
  0x30   :  { %592 = vmatpush3.bf16.msra.mxu0 %v635_v9  ;;  %624 = vmatpush3.bf16.msra.mxu1 %v635_v9 }
  0x33   :  { %594 = vmatmul.mubr.bf16.vlgmr.msra.gmra.mrb[0].mxu0 %v638_v10  ;;  %602 = vmatmul.mubr.bf16.vlgmr.msra.gmra.mrb[0].mxu1 %v639_v11 }
  0x34   :  { %597 = vmatprep.mubr.bf16.mxu0 %v640_v12  ;;  %605 = vmatprep.mubr.bf16.mxu1 %v641_v13 }
  0x3b   :  { %598 = vmatmul.mubr.bf16.gmra.mrb[4].mxu0 %v642_v14  ;;  %606 = vmatmul.mubr.bf16.gmra.mrb[4].mxu1 %v643_v15 }
 0x106   :  { %v595_v17 = vpop.f32.mrb[0].mxu0  ;;  %v603_v18 = vpop.f32.mrb[0].mxu1 }
 0x107   :  { %v350_v19 = vadd.f32 %v595_v17, %v481_v16  ;;  %v358_v20 = vadd.f32 %v603_v18, %v481_v16  ;;  %v227_v21 = vpop.f32.mrb[1].mxu0  ;;  %v259_v22 = vpop.f32.mrb[1].mxu1 }
 0x108   :  { %v348_v23 = vadd.f32 %v481_v16, %v227_v21  ;;  %v356_v24 = vadd.f32 %v481_v16, %v259_v22  ;;  %v596_v25 = vpop.f32.mrb[2].mxu0  ;;  %v604_v26 = vpop.f32.mrb[2].mxu1 }
 0x109   :  { %v351_v27 = vadd.f32 %v596_v25, %v481_v16  ;;  %v359_v28 = vadd.f32 %v604_v26, %v481_v16  ;;  %v230_v29 = vpop.f32.mrb[3].mxu0  ;;  %v262_v30 = vpop.f32.mrb[3].mxu1  ;;  %v366_v33 = vmax.f32 %v350_v19, 0.0  ;;  %v374_v34 = vmax.f32 %v358_v20, 0.0 }
 0x10a   :  { %v349_v31 = vadd.f32 %v481_v16, %v230_v29  ;;  %v357_v32 = vadd.f32 %v481_v16, %v262_v30  ;;  %v364_v37 = vmax.f32 %v348_v23, 0.0  ;;  %v372_v38 = vmax.f32 %v356_v24, 0.0 }
 0x10b   :  { %v367_v35 = vmax.f32 %v351_v27, 0.0  ;;  %v375_v36 = vmax.f32 %v359_v28, 0.0 }
 0x10c   :  { %v365_v39 = vmax.f32 %v349_v31, 0.0  ;;  %v373_v40 = vmax.f32 %v357_v32, 0.0 }
 0x10d   :  { %v522_v41 = vpack.c.bf16 %v367_v35, %v366_v33  ;;  %v542_v42 = vpack.c.bf16 %v375_v36, %v374_v34 }
 0x10e   :  { %v517_v43 = vpack.c.bf16 %v365_v39, %v364_v37  ;;  %v537_v44 = vpack.c.bf16 %v373_v40, %v372_v38  ;;  %v599_v45 = vpop.f32.mrb[4].mxu0  ;;  %v607_v46 = vpop.f32.mrb[4].mxu1 }
 0x10f   :  { %554 = vst [vmem:[%s757_s3 + $0x8] sm:$0xff] %v522_v41   ;;  %558 = vst [vmem:[%s757_s3 + $0x28] sm:$0xff] %v542_v42   ;;  %v354_v47 = vadd.f32 %v599_v45, %v481_v16  ;;  %v362_v48 = vadd.f32 %v607_v46, %v481_v16  ;;  %v243_v49 = vpop.f32.mrb[5].mxu0  ;;  %v275_v50 = vpop.f32.mrb[5].mxu1 }
 0x110   :  { %518 = vst [vmem:[%s757_s3] sm:$0xff] %v517_v43   ;;  %557 = vst [vmem:[%s757_s3 + $0x20] sm:$0xff] %v537_v44   ;;  %v352_v51 = vadd.f32 %v481_v16, %v243_v49  ;;  %v360_v52 = vadd.f32 %v481_v16, %v275_v50  ;;  %v600_v53 = vpop.f32.mrb[6].mxu0  ;;  %v608_v54 = vpop.f32.mrb[6].mxu1 }
 0x111   :  { %v355_v55 = vadd.f32 %v600_v53, %v481_v16  ;;  %v363_v56 = vadd.f32 %v608_v54, %v481_v16  ;;  %v246_v57 = vpop.f32.mrb[7].mxu0  ;;  %v278_v58 = vpop.f32.mrb[7].mxu1  ;;  %v370_v61 = vmax.f32 %v354_v47, 0.0  ;;  %v378_v62 = vmax.f32 %v362_v48, 0.0 }
 0x112   :  { %v353_v59 = vadd.f32 %v481_v16, %v246_v57  ;;  %v361_v60 = vadd.f32 %v481_v16, %v278_v58  ;;  %v368_v1 = vmax.f32 %v352_v51, 0.0  ;;  %v376_v2 = vmax.f32 %v360_v52, 0.0 }
 0x113   :  { %v371_v63 = vmax.f32 %v355_v55, 0.0  ;;  %v379_v0 = vmax.f32 %v363_v56, 0.0 }
 0x114   :  { %v369_v3 = vmax.f32 %v353_v59, 0.0  ;;  %v377_v4 = vmax.f32 %v361_v60, 0.0 }
 0x115   :  { %v532_v5 = vpack.c.bf16 %v371_v63, %v370_v61  ;;  %v552_v6 = vpack.c.bf16 %v379_v0, %v378_v62 }
 0x116   :  { %v527_v7 = vpack.c.bf16 %v369_v3, %v368_v1  ;;  %v547_v8 = vpack.c.bf16 %v377_v4, %v376_v2 }
 0x117   :  { %556 = vst [vmem:[%s757_s3 + $0x18] sm:$0xff] %v532_v5   ;;  %560 = vst [vmem:[%s757_s3 + $0x38] sm:$0xff] %v552_v6  }
 0x118   :  { %555 = vst [vmem:[%s757_s3 + $0x10] sm:$0xff] %v527_v7   ;;  %559 = vst [vmem:[%s757_s3 + $0x30] sm:$0xff] %v547_v8  }
 0x119   :  { %464 = vsyncpa [#allocation4], 1 }

// kernel: run.6
= control target key start
LH: loop header
LB: loop body
LE: loop exit
PB: predicated region body
PF: predicated region fallthrough
CT: control target
= control target key end

     0   :  { %10 = vsyncpa [#allocation3], 0  ;;  %s8217_s0 = inlined_call_operand.vmem [shape: bf16[2,16,16,32], index: 0, kind: input, shape index: {}]   ;;  %s8218_s1 = inlined_call_operand.hbm [shape: bf16[288,32], index: 1, kind: input, shape index: {}]   ;;  %s8219_s2 = inlined_call_operand.vmem [shape: f32[1,32], index: 2, kind: input, shape index: {}]   ;;  %s8220_s3 = inlined_call_operand.hbm [shape: bf16[32,128], index: 3, kind: input, shape index: {}]   ;;  %s8221_s4 = inlined_call_operand.vmem [shape: f32[1,128], index: 4, kind: input, shape index: {}]   ;;  %s8222_s5 = inlined_call_operand.vmem [shape: f32[2,16,16,128], index: 5, kind: output, shape index: {}]  }
   0x1   :  { %11 = vsyncpa [#allocation5], 0  ;;  %s6565_s18 = smov 0  }
   0x2 LB: > { %s6571_s19 = sadd.s32 4294967295, %s6527_s18   ;;  %p5173_p0 = scmp.ge.s32.totalorder %s6527_s18, 1  ;;  %s6527_s18 = sphi %s6565_s18, %s17_s18  }
   0x3   : > { %p158_p1 = scmp.lt.s32.totalorder %s6527_s18, 3  ;;  %s6529_s20 = smov [#allocation2]  }
   0x4   : > { %s170_s21 = sshll.u32 %s6529_s20, 4  ;;  %p8223_p3 = scmp.eq.s32.totalorder %s6571_s19, 0  ;;  %s171_s21 = int_to_ptr.vmem [resolvable:$true] %s170_s21 }
   0x5   : > { %p6575_p2 = pnand %p5173_p0, %p158_p1  ;;  %s6530_s23 = smov [#allocation4]  }
   0x6   : > { %s186_s24 = sshll.u32 %s6530_s23, 4  ;;  %s6457_s28 = scalar_lea.hbm %s8218_s1, 2304  ;;  %s6588_s24 = int_to_ptr.vmem [resolvable:$true] %s186_s24 }
   0x7   : > { %s8263_s22 = scalar_select %p6575_p2, 1, 0 }
   0x8   : > { %p6252_p4 = pneg %p6575_p2  ;;  %p6458_p6 = scmp.ne.s32.totalorder %s8218_s1, %s6457_s28 }
   0x9   : > { %p6464_p10 = scmp.lt.u32.totalorder %s6457_s28, %s8218_s1 }
   0xa   : > { %p6584_p5 = pnand %p8223_p3, %p6252_p4 }
   0xc   : > { %p6459_p7 = pneg %p6584_p5 }
   0xe   : > { %p6460_p8 = pnand %p6459_p7, %p6458_p6 }
  0x10   : > { %p6461_p9 = pneg %p6460_p8 }
  0x12   : > { %p6466_p11 = pnand %p6464_p10, %p6461_p9 }
  0x14   : > { %6469 = shalt.err (!%p6466_p11)
}
  0x15   : > { %s6470_s8 = scalar_lea.vmem %s171_s21, 2304  ;;  %p6478_p1 = scmp.lt.s32.totalorder %s171_s21, %s171_s21 }
  0x16   : > { %p6471_p12 = scmp.ne.s32.totalorder %s171_s21, %s6470_s8  ;;  %p6479_p4 = scmp.lt.s32.totalorder %s6470_s8, %s6470_s8 }
  0x18   : > { %p6473_p13 = pnand %p6471_p12, %p6459_p7  ;;  %p6480_p3 = por %p6479_p4, %p6478_p1 }
  0x1a   : > { %p6474_p0 = pneg %p6473_p13 }
  0x1c   : > { %p6481_p2 = pnand %p6480_p3, %p6474_p0 }
  0x1e   : > { %6484 = shalt.err (!%p6481_p2)
}
  0x1f   : > { %s6531_s9 = smov 64   ;;  %s6532_s10 = smov 4  }
  0x20   : > { %6255 = dma.hbm_to_vmem [thread:$0]  (!%p6584_p5), %s8218_s1, 2304, %s171_s21, [#allocation3], %s6531_s9, %s6531_s9, %s6532_s10  }
  0x21   : > { %s6485_s15 = scalar_lea.hbm %s8220_s3, 256 }
  0x22   : > { %p6486_p6 = scmp.ne.s32.totalorder %s8220_s3, %s6485_s15  ;;  %p6492_p8 = scmp.lt.u32.totalorder %s6485_s15, %s8220_s3 }
  0x24   : > { %p6488_p2 = pnand %p6486_p6, %p6459_p7 }
  0x26   : > { %p6489_p3 = pneg %p6488_p2 }
  0x28   : > { %p6494_p9 = pnand %p6492_p8, %p6489_p3 }
  0x2a   : > { %6497 = shalt.err (!%p6494_p9)
}
  0x2b   : > { %s6498_s21 = scalar_lea.vmem %s6588_s24, 256  ;;  %p6506_p13 = scmp.lt.s32.totalorder %s6588_s24, %s6588_s24 }
  0x2c   : > { %p6499_p10 = scmp.ne.s32.totalorder %s6588_s24, %s6498_s21  ;;  %p6507_p0 = scmp.lt.s32.totalorder %s6498_s21, %s6498_s21 }
  0x2e   : > { %p6501_p11 = pnand %p6499_p10, %p6459_p7  ;;  %p6508_p1 = por %p6507_p0, %p6506_p13 }
  0x30   : > { %p6502_p12 = pneg %p6501_p11 }
  0x32   : > { %p6509_p4 = pnand %p6508_p1, %p6502_p12 }
  0x34   : > { %6512 = shalt.err (!%p6509_p4)
}
  0x35   : > { %6258 = dma.hbm_to_vmem [thread:$0]  (!%p6584_p5), %s8220_s3, 256, %s6588_s24, [#allocation5], %s6531_s9, %s6531_s9, %s6532_s10  }
  0x36   : > { %p8265_p6 = scmp.ne.s32.totalorder %s8263_s22, 0 }
  0x38   : > { %213 = sbr.rel (%p8265_p6) target bundleno = 888 (0x378), region = 40 }
  0x3f   : > { %p8266_p2 = scmp.eq.s32.totalorder %s6571_s19, 0 }
  0x41   : > { %6518 = dma.done.wait (%p8266_p2), [#allocation3], 2304   ;;  %p8267_p7 = pmov %p8266_p2 }
  0x42   : > { %p8268_p3 = pmov %p8266_p2 }
  0x43   : > { %6520 = vsyncadd (%p8267_p7), [#allocation3], 4294964992 }
  0x44   : > { %6522 = dma.done.wait (%p8268_p3), [#allocation5], 256   ;;  %p8269_p8 = pmov %p8266_p2 }
  0x45   : > { %p245_p9 = scmp.lt.s32.totalorder %s6571_s19, 1  ;;  %v8248_v0 = vmov 0   ;;  %v8245_v1 = vlaneseq  ;;  %vm6534_vm0 = vmmov 0   ;;  %v6277_v3 = vld [vmem:[#allocation2 + $0x10] sm:$0xff]   ;;  %v6278_v4 = vld [vmem:[#allocation2 + $0x40] sm:$0xff]   ;;  %v6279_v6 = vld [vmem:[#allocation2 + $0x18] sm:$0xff]  }
  0x46   : > { %6524 = vsyncadd (%p8269_p8), [#allocation5], 4294967040  ;;  %5632 = vmatprep.mubr.bf16.mxu1 %v8248_v0  ;;  %5628 = vmatprep.subr.bf16.mxu1 %v6277_v3  ;;  %v6280_v7 = vld [vmem:[#allocation2 + $0x48] sm:$0xff]   ;;  %vm1202_vm2 = vcmask 261120   ;;  %v6669_v9 = vrot.slane %v8248_v0, 7  ;;  %v6283_v12 = vld [vmem:[#allocation2 + $0x50] sm:$0xff]  }
  0x47   : > { %s8370_s19 = smov (!%p245_p9, %s6571_s19), 1  ;;  %vm6653_vm1 = vmpackc.low %vm6534_vm0, %vm6534_vm0  ;;  %v6663_v5 = vshrl.u32 %v8245_v1, 7  ;;  %5772 = vmatprep.subr.bf16.mxu0 %v6278_v4  ;;  %5629 = vmatpush3.bf16.msra.mxu1 %v6277_v3  ;;  %v6292_v31 = vld [vmem:[#allocation2 + $0x58] sm:$0xff]   ;;  %v6298_v44 = vld [vmem:[#allocation2] sm:$0xff]   ;;  %vm1412_vm10 = vsmask.f32 256 }
  0x48   : > { %s5446_s22 = sshll.u32 %s8370_s19, 7  ;;  %5773 = vmatpush3.bf16.msra.mxu0 %v6278_v4  ;;  %5630 = vmatprep.subr.bf16.mxu1 %v6279_v6  ;;  %v6675_v11 = vsel %vm6653_vm1, 65537, %v8248_v0  ;;  %v6300_v49 = vld [vmem:[#allocation2 + $0x8] sm:$0xff]   ;;  %vm1040_vm12 = vsmask.f32 7424  ;;  %v6779_v54 = vld [vmem:[#allocation2 + $0x60] sm:$0xff]  }
  0x49   : > { %s6660_s28 = scalar_lea.vmem %s8217_s0, %s5446_s22  ;;  %5774 = vmatprep.subr.bf16.mxu0 %v6280_v7  ;;  %v424_v10 = vadd.s32 8, %v6663_v5  ;;  %v426_v13 = vadd.s32 24, %v6663_v5  ;;  %v425_v15 = vadd.s32 16, %v6663_v5  ;;  %v427_v17 = vadd.s32 32, %v6663_v5  ;;  %v6797_v62 = vld [vmem:[#allocation2 + $0x20] sm:$0xff]   ;;  %s5447_s8 = sshll.u32 %s8370_s19, 8 }
  0x4a   : > { %v6666_v8 = vld [vmem:[%s6660_s28] sm:$0xff]   ;;  %v6681_v14 = vld [vmem:[%s6660_s28 + $0x8] sm:$0xff]   ;;  %v6685_v16 = vld [vmem:[%s6660_s28 + $0x10] sm:$0xff]   ;;  %v428_v19 = vadd.s32 40, %v6663_v5  ;;  %v429_v21 = vadd.s32 48, %v6663_v5  ;;  %v430_v22 = vadd.s32 56, %v6663_v5  ;;  %s8010_s10 = scalar_lea.vmem %s8222_s5, %s5447_s8 }
  0x4b   : > { %5776 = vmatprep.mubr.msk.bf16.mxu0 %vm1202_vm2, %v6666_v8  ;;  %5631 = vmatpush3.bf16.msra.mxu1 %v6279_v6  ;;  %v466_v18 = vand.u32 15, %v424_v10  ;;  %v480_v20 = vand.u32 15, %v426_v13  ;;  %v6698_v23 = vadd.s32 64, %v6663_v5  ;;  %v473_v24 = vand.u32 15, %v425_v15  ;;  %v6707_v28 = vld [vmem:[%s6660_s28 + $0x18] sm:$0xff]   ;;  %v6714_v33 = vld [vmem:[%s6660_s28 + $0x20] sm:$0xff]  }
  0x4c   : > { %5775 = vmatpush3.bf16.msra.mxu0 %v6280_v7  ;;  %v487_v25 = vand.u32 15, %v427_v17  ;;  %v494_v27 = vand.u32 15, %v428_v19  ;;  %v501_v30 = vand.u32 15, %v429_v21  ;;  %v508_v32 = vand.u32 15, %v430_v22  ;;  %v6755_v43 = vld [vmem:[%s6660_s28 + $0x28] sm:$0xff]   ;;  %v6761_v46 = vld [vmem:[%s6660_s28 + $0x30] sm:$0xff]   ;;  %5664 = vmatprep.subr.bf16.mxu1 %v6298_v44 }
  0x4d   : > { %5808 = vmatprep.subr.bf16.mxu0 %v6283_v12  ;;  %vm6702_vm3 = vcmp.eq.s32.totalorder %v466_v18, 15  ;;  %vm6709_vm4 = vcmp.eq.s32.totalorder %v480_v20, 15  ;;  %vm6716_vm5 = vcmp.eq.s32.totalorder %v473_v24, 0  ;;  %v6731_v37 = vadd.s32 72, %v6663_v5  ;;  %v6827_v19 = vld [vmem:[%s6660_s28 + $0x38] sm:$0xff]  }
  0x4e   : > { %5633 = vmatmul.mubr.msk.bf16.vlgmr.msra.gmra.mrb[0].mxu1 %vm1202_vm2, %v6666_v8  ;;  %vm6720_vm6 = vcmp.eq.s32.totalorder %v487_v25, 0  ;;  %vm6724_vm7 = vcmp.eq.s32.totalorder %v494_v27, 15  ;;  %v6734_v38 = vadd.s32 80, %v6663_v5  ;;  %vm6740_vm8 = vcmp.eq.s32.totalorder %v501_v30, 0  ;;  %vm1858_vm11 = vmpackc.low %vm6702_vm3, %vm6702_vm3  ;;  %v6839_v30 = vld [vmem:[%s6660_s28 + $0x40] sm:$0xff]  }
  0x4f   : > { %5777 = vmatmul.mubr.msk.bf16.vlgmr.msra.gmra.mrb[0].mxu0 %vm1202_vm2, %v6681_v14  ;;  %5636 = vmatprep.mubr.msk.bf16.mxu1 %vm1202_vm2, %v6681_v14  ;;  %vm6744_vm9 = vcmp.eq.s32.totalorder %v508_v32, 15  ;;  %v515_v41 = vand.u32 15, %v6698_v23  ;;  %v6752_v42 = vadd.s32 88, %v6663_v5  ;;  %v6758_v45 = vadd.s32 96, %v6663_v5  ;;  %vm1860_vm13 = vmpackc.low %vm6709_vm4, %vm6709_vm4 }
  0x50   : > { %5809 = vmatpush3.bf16.msra.mxu0 %v6283_v12  ;;  %5780 = vmatprep.mubr.msk.bf16.mxu0 %vm1202_vm2, %v6685_v16  ;;  %v522_v47 = vand.u32 15, %v6731_v37  ;;  %v529_v48 = vand.u32 15, %v6734_v38  ;;  %v6766_v50 = vadd.s32 104, %v6663_v5  ;;  %v6773_v52 = vadd.s32 112, %v6663_v5  ;;  %vm935_vm14 = vmpackc.low %vm6716_vm5, %vm6716_vm5 }
  0x51   : > { %5810 = vmatprep.subr.bf16.mxu0 %v6292_v31  ;;  %5665 = vmatpush3.bf16.msra.mxu1 %v6298_v44  ;;  %v536_v51 = vand.u32 15, %v6752_v42  ;;  %v1890_v53 = vsel %vm1858_vm11, 65537, %v8248_v0  ;;  %v543_v55 = vand.u32 15, %v6758_v45  ;;  %v6784_v57 = vadd.s32 120, %v6663_v5  ;;  %vm937_vm15 = vmpackc.low %vm6720_vm6, %vm6720_vm6 }
  0x52   : > { %5666 = vmatprep.subr.bf16.mxu1 %v6300_v49  ;;  %v550_v56 = vand.u32 15, %v6766_v50  ;;  %v1892_v58 = vsel %vm1860_vm13, 65537, %v8248_v0  ;;  %v5250_v59 = vcombine.low %v6675_v11, %v1890_v53  ;;  %v557_v60 = vand.u32 15, %v6773_v52  ;;  %vm1862_vm0 = vmpackc.low %vm6724_vm7, %vm6724_vm7 }
  0x53   : > { %v6795_v61 = vadd.s32 128, %v6663_v5  ;;  %v5251_v63 = vcombine.low %v6675_v11, %v1892_v58  ;;  %v965_v2 = vsel %vm935_vm14, 65537, %v8248_v0  ;;  %v564_v3 = vand.u32 15, %v6784_v57  ;;  %vm939_vm1 = vmpackc.low %vm6740_vm8, %vm6740_vm8 }
  0x54   : > { %5811 = vmatpush3.bf16.msra.mxu0 %v6292_v31  ;;  %v6810_v4 = vadd.s32 136, %v6663_v5  ;;  %v1970_v6 = vshrl.u32 %v5250_v59, 16  ;;  %v3126_v7 = vshll.u32 %v5250_v59, 16  ;;  %v967_v10 = vsel %vm937_vm15, 65537, %v8248_v0  ;;  %vm1864_vm3 = vmpackc.low %vm6744_vm9, %vm6744_vm9 }
  0x55   : > { %5667 = vmatpush3.bf16.msra.mxu1 %v6300_v49  ;;  %v5200_v12 = vcombine.low %v965_v2, %v6675_v11  ;;  %v1974_v13 = vshrl.u32 %v5251_v63, 16  ;;  %v1977_v15 = vshll.u32 %v5251_v63, 16  ;;  %v5201_v17 = vcombine.low %v967_v10, %v6675_v11  ;;  %5844 = vmatprep.subr.bf16.mxu0 %v6779_v54 }
  0x56   : > { %5637 = vmatmul.mubr.msk.bf16.gmra.mrb[4].mxu1 %vm1202_vm2, %v6685_v16  ;;  %v1894_v18 = vsel %vm1862_vm0, 65537, %v8248_v0  ;;  %5700 = vmatprep.subr.bf16.mxu1 %v6797_v62  ;;  %v1972_v20 = vrot.slane %v1970_v6, 7  ;;  %vm6833_vm4 = vcmp.eq.s32.totalorder %v515_v41, 0  ;;  %v969_v27 = vsel %vm939_vm1, 65537, %v8248_v0 }
  0x57   : > { %5781 = vmatmul.mubr.msk.bf16.gmra.mrb[4].mxu0 %vm1202_vm2, %v6707_v28  ;;  %5640 = vmatprep.mubr.msk.bf16.mxu1 %vm1202_vm2, %v6707_v28  ;;  %v1042_v21 = vshrl.u32 %v5200_v12, 16  ;;  %v1044_v22 = vshll.u32 %v5200_v12, 16  ;;  %v5252_v23 = vcombine.low %v6675_v11, %v1894_v18  ;;  %v1976_v25 = vrot.slane %v1974_v13, 7  ;;  %vm941_vm0 = vmpackc.low %vm6833_vm4, %vm6833_vm4 }
  0x58   : > { %5784 = vmatprep.mubr.msk.bf16.mxu0 %vm1202_vm2, %v6714_v33  ;;  %v1049_v26 = vshll.u32 %v5201_v17, 16  ;;  %v1053_v29 = vshrl.u32 %v5201_v17, 16  ;;  %v6841_v31 = vor.u32 %v3126_v7, %v1972_v20  ;;  %vm6845_vm5 = vcmp.eq.s32.totalorder %v522_v47, 15 }
  0x59   : > { %v6843_v32 = vrot.slane %v1044_v22, 1  ;;  %v1982_v34 = vshrl.u32 %v5252_v23, 16  ;;  %v1985_v35 = vshll.u32 %v5252_v23, 16  ;;  %v1979_v37 = vor.u32 %v1977_v15, %v1976_v25 }
  0x5a   : > { %8288 = vst [vmem:[#allocation8_spill] sm:$0xff] %v6841_v31  ;;  %v1051_v39 = vrot.slane %v1049_v26, 1  ;;  %v6850_v40 = vcombine.low %v969_v27, %v6675_v11  ;;  %v1896_v41 = vsel %vm1864_vm3, 65537, %v8248_v0  ;;  %vm8225_vm6 = vcmp.ne.s16.totalorder %v6841_v31, 0  ;;  %v6913_v27 = vld [vmem:[%s6660_s28 + $0x50] sm:$0xff]   ;;  %vm1866_vm3 = vmpackc.low %vm6845_vm5, %vm6845_vm5 }
  0x5b   : > { %v1047_v44 = vor.u32 %v6843_v32, %v1042_v21  ;;  %v6857_v49 = vrot.slane %v1982_v34, 7  ;;  %v5253_v47 = vcombine.low %v6675_v11, %v1896_v41  ;;  %vm6862_vm7 = vcmp.eq.s32.totalorder %v529_v48, 0  ;;  %v7474_v31 = vld [vmem:[%s6660_s28 + $0x30] sm:$0xff]  }
  0x5c   : > { %v6871_v58 = vsel %vm1412_vm10, %v1972_v20, %v1979_v37  ;;  %v3130_v59 = vsel %vm8225_vm6, 0, %v6666_v8  ;;  %v1055_v63 = vor.u32 %v1053_v29, %v1051_v39  ;;  %v1057_v38 = vshll.u32 %v6850_v40, 16  ;;  %v6904_v20 = vld [vmem:[%s6660_s28 + $0x48] sm:$0xff]   ;;  %vm943_vm5 = vmpackc.low %vm6862_vm7, %vm6862_vm7 }
  0x5d   : > { %8293 = vst [vmem:[#allocation9_spill] sm:$0xff] %v6871_v58  ;;  %vm8242_vm8 = vcmp.ne.s16.totalorder %v6871_v58, 0  ;;  %v3147_v48 = vshrl.u32 %v3130_v59, 16  ;;  %v3149_v2 = vshll.u32 %v3130_v59, 16  ;;  %v6881_v6 = vsel %vm1040_vm12, %v1047_v44, %v1051_v39 }
  0x5e   : > { %5641 = vmatmul.mubr.msk.bf16.gmra.mrb[8].mxu1 %vm1202_vm2, %v6714_v33  ;;  %vm6885_vm9 = vcmp.eq.s32.totalorder %v536_v51, 15  ;;  %v3131_v10 = vsel %vm8242_vm8, 0, %v6681_v14  ;;  %vm1160_vm11 = vcmp.ne.s16.totalorder %v6881_v6, 0  ;;  %v1987_v12 = vor.u32 %v1985_v35, %v6857_v49 }
  0x5f   : > { %5785 = vmatmul.mubr.msk.bf16.gmra.mrb[8].mxu0 %vm1202_vm2, %v6755_v43  ;;  %5644 = vmatprep.mubr.msk.bf16.mxu1 %vm1202_vm2, %v6755_v43  ;;  %v1059_v13 = vrot.slane %v1057_v38, 1  ;;  %v3151_v15 = vrot.slane %v3149_v2, 1  ;;  %v3154_v17 = vshll.u32 %v3131_v10, 16  ;;  %v3158_v18 = vshrl.u32 %v3131_v10, 16  ;;  %vm1868_vm4 = vmpackc.low %vm6885_vm9, %vm6885_vm9 }
  0x60   : > { %5788 = vmatprep.mubr.msk.bf16.mxu0 %vm1202_vm2, %v6761_v46  ;;  %v1175_v42 = vsel %vm1160_vm11, 0, %v6666_v8  ;;  %vm6899_vm13 = vcmp.eq.s32.totalorder %v543_v55, 0  ;;  %v6907_v23 = vsel %vm1412_vm10, %v1976_v25, %v1987_v12  ;;  %v1990_v34 = vshrl.u32 %v5253_v47, 16 }
  0x61   : > { %v1421_v21 = vshrl.u32 %v1175_v42, 16  ;;  %v1424_v22 = vshll.u32 %v1175_v42, 16  ;;  %8298 = vst [vmem:[#allocation10_spill] sm:$0xff] %v6907_v23  ;;  %v6910_v26 = vsel %vm1040_vm12, %v1055_v63, %v1059_v13  ;;  %v3152_v29 = vor.u32 %v3151_v15, %v3147_v48  ;;  %v6969_v42 = vld [vmem:[%s6660_s28 + $0x58] sm:$0xff]   ;;  %vm945_vm9 = vmpackc.low %vm6899_vm13, %vm6899_vm13 }
  0x62   : > { %v3156_v8 = vrot.slane %v3154_v17, 1  ;;  %vm2094_vm14 = vcmp.ne.s16.totalorder %v6907_v23, 0  ;;  %vm1161_vm15 = vcmp.ne.s16.totalorder %v6910_v26, 0  ;;  %vm6933_vm1 = vcmp.eq.s32.totalorder %v550_v56, 15 }
  0x63   : > { %v1423_v45 = vrot.slane %v1421_v21, 7  ;;  %v3132_v55 = vsel %vm2094_vm14, 0, %v6685_v16  ;;  %v1176_v25 = vsel %vm1161_vm15, 0, %v6681_v14  ;;  %v1992_v63 = vrot.slane %v1990_v34, 7 }
  0x64   : > { %v6929_v35 = vsel %vm1040_vm12, %v3152_v29, %v3156_v8  ;;  %v3160_v37 = vor.u32 %v3158_v18, %v3156_v8  ;;  %v3162_v39 = vshll.u32 %v3132_v55, 16  ;;  %v1429_v41 = vshrl.u32 %v1176_v25, 16  ;;  %v6980_v29 = vld [vmem:[%s6660_s28 + $0x60] sm:$0xff]  }
  0x65   : > { %v1426_v14 = vor.u32 %v1424_v22, %v1423_v45  ;;  %v1432_v59 = vshll.u32 %v1176_v25, 16  ;;  %v1993_v38 = vshll.u32 %v5253_v47, 16  ;;  %v3166_v48 = vshrl.u32 %v3132_v55, 16 }
  0x66   : > { %5645 = vmatmul.mubr.msk.bf16.gmra.mrb[12].mxu1 %vm1202_vm2, %v6761_v46  ;;  %v3164_v50 = vrot.slane %v3162_v39, 1  ;;  %v6946_v56 = vrot.slane %v1429_v41, 7  ;;  %v971_v2 = vsel %vm941_vm0, 65537, %v8248_v0  ;;  %v1061_v12 = vshrl.u32 %v6850_v40, 16 }
  0x67   : > { %5789 = vmatmul.mubr.msk.bf16.gmra.mrb[12].mxu0 %vm1202_vm2, %v6827_v19  ;;  %5648 = vmatprep.mubr.msk.bf16.mxu1 %vm1202_vm2, %v6827_v19  ;;  %v6956_v36 = vsel %vm1412_vm10, %v6669_v9, %v1426_v14  ;;  %v1995_v47 = vor.u32 %v1993_v38, %v1992_v63  ;;  %v5203_v10 = vcombine.low %v971_v2, %v6675_v11  ;;  %v1898_v18 = vsel %vm1866_vm3, 65537, %v8248_v0  ;;  %vm1870_vm3 = vmpackc.low %vm6933_vm1, %vm6933_vm1 }
  0x68   : > { %5792 = vmatprep.mubr.msk.bf16.mxu0 %vm1202_vm2, %v6839_v30  ;;  %v6964_v15 = vsel %vm1040_vm12, %v3160_v37, %v3164_v50  ;;  %v1434_v24 = vor.u32 %v1432_v59, %v6946_v56  ;;  %v3168_v17 = vor.u32 %v3166_v48, %v3164_v50  ;;  %v1063_v22 = vor.u32 %v1061_v12, %v1059_v13 }
  0x69   : > { %v6973_v21 = vsel %vm1412_vm10, %v6857_v49, %v1995_v47  ;;  %v1065_v40 = vshll.u32 %v5203_v10, 16  ;;  %v5254_v53 = vcombine.low %v6675_v11, %v1898_v18  ;;  %v973_v55 = vsel %vm943_vm5, 65537, %v8248_v0 }
  0x6a   : > { %8301 = vst [vmem:[#allocation11_spill] sm:$0xff] %v6973_v21  ;;  %v6983_v8 = vsel %vm1412_vm10, %v1423_v45, %v1434_v24  ;;  %vm2095_vm7 = vcmp.ne.s16.totalorder %v6973_v21, 0  ;;  %v1069_v25 = vshrl.u32 %v5203_v10, 16  ;;  %v5204_v39 = vcombine.low %v973_v55, %v6675_v11  ;;  %v7024_v55 = vld [vmem:[%s6660_s28 + $0x68] sm:$0xff]  }
  0x6b   : > { %v3133_v49 = vsel %vm2095_vm7, 0, %v6707_v28  ;;  %v1067_v13 = vrot.slane %v1065_v40, 1  ;;  %v1998_v34 = vshrl.u32 %v5254_v53, 16  ;;  %v2001_v37 = vshll.u32 %v5254_v53, 16 }
  0x6c   : > { %v3170_v7 = vshll.u32 %v3133_v49, 16  ;;  %v3174_v45 = vshrl.u32 %v3133_v49, 16  ;;  %v1900_v41 = vsel %vm1868_vm4, 65537, %v8248_v0  ;;  %v1073_v2 = vshll.u32 %v5204_v39, 16 }
  0x6d   : > { %v7002_v14 = vsel %vm1040_vm12, %v1063_v22, %v1067_v13  ;;  %v2000_v59 = vrot.slane %v1998_v34, 7  ;;  %v1071_v38 = vor.u32 %v1069_v25, %v1067_v13  ;;  %v5255_v50 = vcombine.low %v6675_v11, %v1900_v41  ;;  %v7033_v34 = vld [vmem:[%s6660_s28 + $0x70] sm:$0xff]  }
  0x6e   : > { %5649 = vmatmul.mubr.msk.bf16.gmra.mrb[16].mxu1 %vm1202_vm2, %v6839_v30  ;;  %v3172_v48 = vrot.slane %v3170_v7, 1  ;;  %vm1162_vm0 = vcmp.ne.s16.totalorder %v7002_v14, 0  ;;  %v975_v47 = vsel %vm945_vm9, 65537, %v8248_v0  ;;  %v1075_v49 = vrot.slane %v1073_v2, 1 }
  0x6f   : > { %5793 = vmatmul.mubr.msk.bf16.gmra.mrb[16].mxu0 %vm1202_vm2, %v6904_v20  ;;  %5652 = vmatprep.mubr.msk.bf16.mxu1 %vm1202_vm2, %v6904_v20  ;;  %v1177_v10 = vsel %vm1162_vm0, 0, %v6685_v16  ;;  %v2003_v12 = vor.u32 %v2001_v37, %v2000_v59  ;;  %v2006_v24 = vshrl.u32 %v5255_v50, 16  ;;  %v2009_v18 = vshll.u32 %v5255_v50, 16 }
  0x70   : > { %5796 = vmatprep.mubr.msk.bf16.mxu0 %vm1202_vm2, %v6913_v27  ;;  %v7021_v22 = vsel %vm1040_vm12, %v3168_v17, %v3172_v48  ;;  %v1437_v40 = vshrl.u32 %v1177_v10, 16  ;;  %v1440_v53 = vshll.u32 %v1177_v10, 16  ;;  %v3176_v51 = vor.u32 %v3174_v45, %v3172_v48 }
  0x71   : > { %v7027_v25 = vsel %vm1412_vm10, %v1992_v63, %v2003_v12  ;;  %v7029_v16 = vrot.slane %v2006_v24, 7  ;;  %v5205_v13 = vcombine.low %v975_v47, %v6675_v11  ;;  %v1077_v17 = vshrl.u32 %v5204_v39, 16 }
  0x72   : > { %8302 = vst [vmem:[#allocation12_spill] sm:$0xff] %v7027_v25  ;;  %v1439_v44 = vrot.slane %v1437_v40, 7  ;;  %vm2096_vm13 = vcmp.ne.s16.totalorder %v7027_v25, 0  ;;  %v1902_v37 = vsel %vm1870_vm3, 65537, %v8248_v0  ;;  %v7041_v63 = vsel %vm1040_vm12, %v1071_v38, %v1075_v49 }
  0x73   : > { %v3134_v7 = vsel %vm2096_vm13, 0, %v6714_v33  ;;  %v2011_v45 = vor.u32 %v2009_v18, %v7029_v16  ;;  %v1081_v41 = vshll.u32 %v5205_v13, 16  ;;  %vm8231_vm1 = vcmp.ne.s16.totalorder %v7041_v63, 0 }
  0x74   : > { %v1442_v50 = vor.u32 %v1440_v53, %v1439_v44  ;;  %v3178_v48 = vshll.u32 %v3134_v7, 16  ;;  %v3182_v39 = vshrl.u32 %v3134_v7, 16  ;;  %v1178_v38 = vsel %vm8231_vm1, 0, %v6707_v28  ;;  %v7077_v7 = vld [vmem:[%s6660_s28 + $0x78] sm:$0xff]  }
  0x75   : > { %v7055_v2 = vsel %vm1412_vm10, %v2000_v59, %v2011_v45  ;;  %v1079_v47 = vor.u32 %v1077_v17, %v1075_v49  ;;  %v1083_v10 = vrot.slane %v1081_v41, 1  ;;  %v1445_v18 = vshrl.u32 %v1178_v38, 16 }
  0x76   : > { %5653 = vmatmul.mubr.msk.bf16.gmra.mrb[20].mxu1 %vm1202_vm2, %v6913_v27  ;;  %8303 = vst [vmem:[#allocation13_spill] sm:$0xff] %v7055_v2  ;;  %v7061_v12 = vsel %vm1412_vm10, %v6946_v56, %v1442_v50  ;;  %v3180_v24 = vrot.slane %v3178_v48, 1  ;;  %v1448_v40 = vshll.u32 %v1178_v38, 16  ;;  %vm8251_vm5 = vcmp.ne.s16.totalorder %v7055_v2, 0 }
  0x77   : > { %5797 = vmatmul.mubr.msk.bf16.gmra.mrb[20].mxu0 %vm1202_vm2, %v6969_v42  ;;  %5656 = vmatprep.mubr.msk.bf16.mxu1 %vm1202_vm2, %v6969_v42  ;;  %v7065_v28 = vsel %vm1040_vm12, %v1079_v47, %v1083_v10  ;;  %v5256_v59 = vcombine.low %v6675_v11, %v1902_v37  ;;  %vm853_vm4 = vcmp.eq.s32.totalorder %v557_v60, 0  ;;  %v1447_v49 = vrot.slane %v1445_v18, 7 }
  0x78   : > { %5800 = vmatprep.mubr.msk.bf16.mxu0 %vm1202_vm2, %v6980_v29  ;;  %v7071_v53 = vsel %vm1040_vm12, %v3176_v51, %v3180_v24  ;;  %v3135_v56 = vsel %vm8251_vm5, 0, %v6755_v43  ;;  %v3184_v17 = vor.u32 %v3182_v39, %v3180_v24  ;;  %vm947_vm9 = vmpackc.low %vm853_vm4, %vm853_vm4  ;;  %vm8226_vm3 = vcmp.ne.s16.totalorder %v7065_v28, 0 }
  0x79   : > { %v3186_v45 = vshll.u32 %v3135_v56, 16  ;;  %v2014_v41 = vshrl.u32 %v5256_v59, 16  ;;  %v2017_v37 = vshll.u32 %v5256_v59, 16  ;;  %v1450_v50 = vor.u32 %v1448_v40, %v1447_v49 }
  0x7a   : > { %v1179_v52 = vsel %vm8226_vm3, 0, %v6714_v33  ;;  %v3190_v60 = vshrl.u32 %v3135_v56, 16  ;;  %v977_v51 = vsel %vm947_vm9, 65537, %v8248_v0  ;;  %v1085_v40 = vshrl.u32 %v5205_v13, 16 }
  0x7b   : > { %v3188_v48 = vrot.slane %v3186_v45, 1  ;;  %v1453_v38 = vshrl.u32 %v1179_v52, 16  ;;  %v1456_v47 = vshll.u32 %v1179_v52, 16  ;;  %v2016_v39 = vrot.slane %v2014_v41, 7 }
  0x7c   : > { %v7087_v24 = vsel %vm1412_vm10, %v1439_v44, %v1450_v50  ;;  %v5206_v18 = vcombine.low %v977_v51, %v6675_v11  ;;  %vm1776_vm4 = vcmp.eq.s32.totalorder %v564_v3, 15  ;;  %v1087_v13 = vor.u32 %v1085_v40, %v1083_v10  ;;  %v6302_v40 = vld [vmem:[#allocation2 + $0x68] sm:$0xff]  }
  0x7d   : > { %v7097_v33 = vsel %vm1040_vm12, %v3184_v17, %v3188_v48  ;;  %v7099_v59 = vrot.slane %v1453_v38, 7  ;;  %v2019_v56 = vor.u32 %v2017_v37, %v2016_v39  ;;  %v3192_v44 = vor.u32 %v3190_v60, %v3188_v48  ;;  %vm1872_vm9 = vmpackc.low %vm1776_vm4, %vm1776_vm4 }
  0x7e   : > { %5657 = vmatmul.mubr.msk.bf16.gmra.mrb[24].mxu1 %vm1202_vm2, %v6980_v29  ;;  %v1089_v57 = vshll.u32 %v5206_v18, 16  ;;  %v1904_v3 = vsel %vm1872_vm9, 65537, %v8248_v0  ;;  %v571_v45 = vand.u32 15, %v6795_v61  ;;  %v1093_v37 = vshrl.u32 %v5206_v18, 16 }
  0x7f   : > { %5801 = vmatmul.mubr.msk.bf16.gmra.mrb[24].mxu0 %vm1202_vm2, %v7024_v55  ;;  %5660 = vmatprep.mubr.msk.bf16.mxu1 %vm1202_vm2, %v7024_v55  ;;  %v1458_v41 = vor.u32 %v1456_v47, %v7099_v59  ;;  %v7108_v17 = vsel %vm1412_vm10, %v7029_v16, %v2019_v56  ;;  %v5257_v50 = vcombine.low %v6675_v11, %v1904_v3  ;;  %v6304_v3 = vld [vmem:[#allocation2 + $0x28] sm:$0xff]  }
  0x80   : > { %5804 = vmatprep.mubr.msk.bf16.mxu0 %vm1202_vm2, %v7033_v34  ;;  %vm8228_vm4 = vcmp.ne.s16.totalorder %v7108_v17, 0  ;;  %v1091_v52 = vrot.slane %v1089_v57, 1  ;;  %vm855_vm6 = vcmp.eq.s32.totalorder %v571_v45, 0  ;;  %v441_v57 = vadd.s32 144, %v6663_v5 }
  0x81   : > { %v7114_v10 = vsel %vm1412_vm10, %v1447_v49, %v1458_v41  ;;  %v3136_v61 = vsel %vm8228_vm4, 0, %v6761_v46  ;;  %v2022_v60 = vshrl.u32 %v5257_v50, 16  ;;  %v2025_v51 = vshll.u32 %v5257_v50, 16  ;;  %vm949_vm9 = vmpackc.low %vm855_vm6, %vm855_vm6 }
  0x82   : > { %v3194_v16 = vshll.u32 %v3136_v61, 16  ;;  %v7120_v48 = vsel %vm1040_vm12, %v1087_v13, %v1091_v52  ;;  %v3198_v38 = vshrl.u32 %v3136_v61, 16  ;;  %v979_v47 = vsel %vm949_vm9, 65537, %v8248_v0 }
  0x83   : > { %vm8227_vm3 = vcmp.ne.s16.totalorder %v7120_v48, 0  ;;  %v5207_v49 = vcombine.low %v979_v47, %v6675_v11  ;;  %v1095_v18 = vor.u32 %v1093_v37, %v1091_v52  ;;  %v585_v52 = vand.u32 15, %v441_v57 }
  0x84   : > { %v3196_v56 = vrot.slane %v3194_v16, 1  ;;  %v1180_v13 = vsel %vm8227_vm3, 0, %v6755_v43 }
  0x85   : > { %v1461_v45 = vshrl.u32 %v1180_v13, 16  ;;  %v1464_v41 = vshll.u32 %v1180_v13, 16  ;;  %vm7153_vm3 = vcmp.eq.s32.totalorder %v585_v52, 0 }
  0x86   : > { %5661 = vmatmul.mubr.msk.bf16.gmra.mrb[28].mxu1 %vm1202_vm2, %v7033_v34  ;;  %v7142_v43 = vsel %vm1040_vm12, %v3192_v44, %v3196_v56  ;;  %v3200_v37 = vor.u32 %v3198_v38, %v3196_v56  ;;  %v1101_v44 = vshrl.u32 %v5207_v49, 16 }
  0x87   : > { %5805 = vmatmul.mubr.msk.bf16.gmra.mrb[28].mxu0 %vm1202_vm2, %v7077_v7  ;;  %5668 = vmatprep.mubr.msk.bf16.mxu1 %vm1202_vm2, %v6669_v9 }
  0x88   : > { %5812 = vmatprep.mubr.msk.bf16.mxu0 %vm1202_vm2, %v6929_v35  ;;  %v578_v35 = vand.u32 15, %v6810_v4  ;;  %v7124_v4 = vrot.slane %v2022_v60, 7 }
  0x8a   : > { %vm1778_vm6 = vcmp.eq.s32.totalorder %v578_v35, 15  ;;  %v2027_v50 = vor.u32 %v2025_v51, %v7124_v4  ;;  %v1463_v35 = vrot.slane %v1461_v45, 7  ;;  %v442_v51 = vadd.s32 152, %v6663_v5 }
  0x8b   : > { %vm1874_vm9 = vmpackc.low %vm1778_vm6, %vm1778_vm6 }
  0x8e   : > { %5669 = vmatmul.mubr.msk.bf16.vlgmr.msra.gmra.mrb[0].mxu1 %vm1202_vm2, %v6956_v36  ;;  %v1097_v36 = vshll.u32 %v5207_v49, 16 }
  0x8f   : > { %5813 = vmatmul.mubr.msk.bf16.vlgmr.msra.gmra.mrb[0].mxu0 %vm1202_vm2, %v6964_v15  ;;  %5672 = vmatprep.mubr.msk.bf16.mxu1 %vm1202_vm2, %v6983_v8  ;;  %v1906_v15 = vsel %vm1874_vm9, 65537, %v8248_v0  ;;  %v7146_v8 = vsel %vm1412_vm10, %v2016_v39, %v2027_v50  ;;  %v1466_v39 = vor.u32 %v1464_v41, %v1463_v35  ;;  %vm951_vm9 = vmpackc.low %vm7153_vm3, %vm7153_vm3 }
  0x90   : > { %5845 = vmatpush3.bf16.msra.mxu0 %v6779_v54  ;;  %5816 = vmatprep.mubr.msk.bf16.mxu0 %vm1202_vm2, %v7021_v22  ;;  %8304 = vst [vmem:[#allocation14_spill] sm:$0xff] %v7146_v8  ;;  %v1099_v61 = vrot.slane %v1097_v36, 1  ;;  %v5258_v60 = vcombine.low %v6675_v11, %v1906_v15  ;;  %v7150_v54 = vld [vmem:[#allocation2 + $0x70] sm:$0xff]   ;;  %vm8230_vm6 = vcmp.ne.s16.totalorder %v7146_v8, 0  ;;  %v981_v45 = vsel %vm951_vm9, 65537, %v8248_v0 }
  0x91   : > { %5846 = vmatprep.subr.bf16.mxu0 %v6302_v40  ;;  %5701 = vmatpush3.bf16.msra.mxu1 %v6797_v62  ;;  %v3137_v16 = vsel %vm8230_vm6, 0, %v6827_v19  ;;  %v1467_v13 = vsel %vm1412_vm10, %v7099_v59, %v1466_v39  ;;  %v5208_v36 = vcombine.low %v981_v45, %v6675_v11  ;;  %v443_v15 = vadd.s32 160, %v6663_v5 }
  0x92   : > { %5702 = vmatprep.subr.bf16.mxu1 %v6304_v3  ;;  %v7162_v38 = vsel %vm1040_vm12, %v1095_v18, %v1099_v61  ;;  %v2030_v62 = vshrl.u32 %v5258_v60, 16  ;;  %v3202_v47 = vshll.u32 %v3137_v16, 16  ;;  %v2033_v49 = vshll.u32 %v5258_v60, 16 }
  0x93   : > { %vm8229_vm4 = vcmp.ne.s16.totalorder %v7162_v38, 0  ;;  %v3206_v56 = vshrl.u32 %v3137_v16, 16  ;;  %v1103_v59 = vor.u32 %v1101_v44, %v1099_v61  ;;  %v1105_v22 = vshll.u32 %v5208_v36, 16 }
  0x94   : > { %5847 = vmatpush3.bf16.msra.mxu0 %v6302_v40  ;;  %v1181_v57 = vsel %vm8229_vm4, 0, %v6761_v46  ;;  %v7173_v18 = vrot.slane %v2030_v62, 7  ;;  %v3204_v41 = vrot.slane %v3202_v47, 1  ;;  %v1109_v39 = vshrl.u32 %v5208_v36, 16 }
  0x95   : > { %5703 = vmatpush3.bf16.msra.mxu1 %v6304_v3  ;;  %5880 = vmatprep.subr.bf16.mxu0 %v7150_v54  ;;  %v1469_v50 = vshrl.u32 %v1181_v57, 16  ;;  %v1472_v40 = vshll.u32 %v1181_v57, 16  ;;  %v592_v3 = vand.u32 15, %v442_v51  ;;  %v1107_v61 = vrot.slane %v1105_v22, 1 }
  0x96   : > { %5673 = vmatmul.mubr.msk.bf16.gmra.mrb[4].mxu1 %vm1202_vm2, %v7061_v12  ;;  %v2035_v46 = vor.u32 %v2033_v49, %v7173_v18  ;;  %v3205_v12 = vsel %vm1040_vm12, %v3200_v37, %v3204_v41  ;;  %v3208_v60 = vor.u32 %v3206_v56, %v3204_v41  ;;  %v444_v44 = vadd.s32 168, %v6663_v5  ;;  %v7205_v56 = vld [vmem:[#allocation2 + $0x30] sm:$0xff]  }
  0x97   : > { %5817 = vmatmul.mubr.msk.bf16.gmra.mrb[4].mxu0 %vm1202_vm2, %v7071_v53  ;;  %5676 = vmatprep.mubr.msk.bf16.mxu1 %vm1202_vm2, %v7087_v24  ;;  %v1471_v52 = vrot.slane %v1469_v50, 7  ;;  %vm1780_vm3 = vcmp.eq.s32.totalorder %v592_v3, 15  ;;  %v599_v24 = vand.u32 15, %v443_v15  ;;  %v7202_v47 = vsel %vm1040_vm12, %v1103_v59, %v1107_v61 }
  0x98   : > { %5820 = vmatprep.mubr.msk.bf16.mxu0 %vm1202_vm2, %v7097_v33  ;;  %v7191_v53 = vsel %vm1412_vm10, %v7124_v4, %v2035_v46  ;;  %vm1876_vm4 = vmpackc.low %vm1780_vm3, %vm1780_vm3  ;;  %v445_v4 = vadd.s32 176, %v6663_v5  ;;  %vm8232_vm1 = vcmp.ne.s16.totalorder %v7202_v47, 0  ;;  %v1111_v41 = vor.u32 %v1109_v39, %v1107_v61  ;;  %5736 = vmatprep.subr.bf16.mxu1 %v7205_v56 }
  0x99   : > { %8307 = vst [vmem:[#allocation15_spill] sm:$0xff] %v7191_v53  ;;  %v1474_v16 = vor.u32 %v1472_v40, %v1471_v52  ;;  %vm8235_vm9 = vcmp.ne.s16.totalorder %v7191_v53, 0  ;;  %v1908_v37 = vsel %vm1876_vm4, 65537, %v8248_v0  ;;  %vm859_vm6 = vcmp.eq.s32.totalorder %v599_v24, 0 }
  0x9a   : > { %v3138_v33 = vsel %vm8235_vm9, 0, %v6839_v30  ;;  %v5259_v49 = vcombine.low %v6675_v11, %v1908_v37  ;;  %vm953_vm3 = vmpackc.low %vm859_vm6, %vm859_vm6  ;;  %v606_v15 = vand.u32 15, %v444_v44  ;;  %v613_v24 = vand.u32 15, %v445_v4 }
  0x9b   : > { %v1475_v51 = vsel %vm1412_vm10, %v1463_v35, %v1474_v16  ;;  %v3210_v62 = vshll.u32 %v3138_v33, 16  ;;  %v3214_v57 = vshrl.u32 %v3138_v33, 16  ;;  %v983_v45 = vsel %vm953_vm3, 65537, %v8248_v0 }
  0x9c   : > { %v1182_v35 = vsel %vm8232_vm1, 0, %v6827_v19  ;;  %v2038_v40 = vshrl.u32 %v5259_v49, 16  ;;  %v2041_v36 = vshll.u32 %v5259_v49, 16  ;;  %v5209_v3 = vcombine.low %v983_v45, %v6675_v11 }
  0x9d   : > { %v3212_v50 = vrot.slane %v3210_v62, 1  ;;  %v1477_v46 = vshrl.u32 %v1182_v35, 16  ;;  %v1480_v59 = vshll.u32 %v1182_v35, 16  ;;  %vm1782_vm4 = vcmp.eq.s32.totalorder %v606_v15, 15 }
  0x9e   : > { %5677 = vmatmul.mubr.msk.bf16.gmra.mrb[8].mxu1 %vm1202_vm2, %v7114_v10  ;;  %v2040_v22 = vrot.slane %v2038_v40, 7  ;;  %v1113_v16 = vshll.u32 %v5209_v3, 16  ;;  %v1117_v61 = vshrl.u32 %v5209_v3, 16  ;;  %vm1878_vm6 = vmpackc.low %vm1782_vm4, %vm1782_vm4  ;;  %vm861_vm3 = vcmp.eq.s32.totalorder %v613_v24, 0 }
  0x9f   : > { %5821 = vmatmul.mubr.msk.bf16.gmra.mrb[8].mxu0 %vm1202_vm2, %v7142_v43  ;;  %5680 = vmatprep.mubr.msk.bf16.mxu1 %vm1202_vm2, %v1467_v13  ;;  %v3213_v10 = vsel %vm1040_vm12, %v3208_v60, %v3212_v50  ;;  %v3216_v19 = vor.u32 %v3214_v57, %v3212_v50  ;;  %v1479_v39 = vrot.slane %v1477_v46, 7  ;;  %v446_v43 = vadd.s32 184, %v6663_v5  ;;  %vm955_vm1 = vmpackc.low %vm861_vm3, %vm861_vm3 }
  0xa0   : > { %5824 = vmatprep.mubr.msk.bf16.mxu0 %vm1202_vm2, %v3205_v12  ;;  %v2043_v33 = vor.u32 %v2041_v36, %v2040_v22  ;;  %v447_v13 = vadd.s32 192, %v6663_v5  ;;  %v1115_v44 = vrot.slane %v1113_v16, 1  ;;  %v1910_v12 = vsel %vm1878_vm6, 65537, %v8248_v0 }
  0xa1   : > { %v1482_v37 = vor.u32 %v1480_v59, %v1479_v39  ;;  %v448_v60 = vadd.s32 200, %v6663_v5  ;;  %v5260_v62 = vcombine.low %v6675_v11, %v1910_v12  ;;  %v985_v49 = vsel %vm955_vm1, 65537, %v8248_v0 }
  0xa2   : > { %v7227_v4 = vsel %vm1412_vm10, %v7173_v18, %v2043_v33  ;;  %v620_v57 = vand.u32 15, %v446_v43  ;;  %v7234_v50 = vsel %vm1040_vm12, %v1111_v41, %v1115_v44  ;;  %v5210_v35 = vcombine.low %v985_v49, %v6675_v11 }
  0xa3   : > { %8308 = vst [vmem:[#allocation16_spill] sm:$0xff] %v7227_v4  ;;  %v1483_v45 = vsel %vm1412_vm10, %v1471_v52, %v1482_v37  ;;  %vm8234_vm4 = vcmp.ne.s16.totalorder %v7227_v4, 0  ;;  %vm8233_vm6 = vcmp.ne.s16.totalorder %v7234_v50, 0  ;;  %v2046_v40 = vshrl.u32 %v5260_v62, 16 }
  0xa4   : > { %v3139_v18 = vsel %vm8234_vm4, 0, %v6904_v20  ;;  %v2049_v36 = vshll.u32 %v5260_v62, 16  ;;  %v1183_v41 = vsel %vm8233_vm6, 0, %v6839_v30  ;;  %v1119_v59 = vor.u32 %v1117_v61, %v1115_v44 }
  0xa5   : > { %v3218_v52 = vshll.u32 %v3139_v18, 16  ;;  %v3222_v46 = vshrl.u32 %v3139_v18, 16  ;;  %v1488_v3 = vshll.u32 %v1183_v41, 16  ;;  %v2048_v15 = vrot.slane %v2046_v40, 7 }
  0xa6   : > { %5681 = vmatmul.mubr.msk.bf16.gmra.mrb[12].mxu1 %vm1202_vm2, %v1475_v51  ;;  %v1485_v51 = vshrl.u32 %v1183_v41, 16  ;;  %v1121_v24 = vshll.u32 %v5210_v35, 16  ;;  %vm1784_vm1 = vcmp.eq.s32.totalorder %v620_v57, 15  ;;  %v627_v33 = vand.u32 15, %v447_v13 }
  0xa7   : > { %5825 = vmatmul.mubr.msk.bf16.gmra.mrb[12].mxu0 %vm1202_vm2, %v3213_v10  ;;  %5684 = vmatprep.mubr.msk.bf16.mxu1 %vm1202_vm2, %v1483_v45  ;;  %v3220_v16 = vrot.slane %v3218_v52, 1  ;;  %v1125_v43 = vshrl.u32 %v5210_v35, 16  ;;  %v2051_v12 = vor.u32 %v2049_v36, %v2048_v15  ;;  %vm1880_vm3 = vmpackc.low %vm1784_vm1, %vm1784_vm1  ;;  %v634_v62 = vand.u32 15, %v448_v60 }
  0xa8   : > { %v1487_v37 = vrot.slane %v1485_v51, 7  ;;  %v1123_v10 = vrot.slane %v1121_v24, 1  ;;  %v1912_v30 = vsel %vm1880_vm3, 65537, %v8248_v0  ;;  %vm863_vm6 = vcmp.eq.s32.totalorder %v627_v33, 0 }
  0xa9   : > { %v3221_v49 = vsel %vm1040_vm12, %v3216_v19, %v3220_v16  ;;  %v3224_v45 = vor.u32 %v3222_v46, %v3220_v16  ;;  %v7251_v44 = vsel %vm1412_vm10, %v2040_v22, %v2051_v12  ;;  %v5261_v57 = vcombine.low %v6675_v11, %v1912_v30  ;;  %vm957_vm4 = vmpackc.low %vm863_vm6, %vm863_vm6 }
  0xaa   : > { %5828 = vmatprep.mubr.msk.bf16.mxu0 %vm1202_vm2, %v3221_v49  ;;  %v1490_v61 = vor.u32 %v1488_v3, %v1487_v37  ;;  %8309 = vst [vmem:[#allocation17_spill] sm:$0xff] %v7251_v44  ;;  %v7254_v13 = vsel %vm1040_vm12, %v1119_v59, %v1123_v10  ;;  %vm8237_vm1 = vcmp.ne.s16.totalorder %v7251_v44, 0  ;;  %v987_v19 = vsel %vm957_vm4, 65537, %v8248_v0 }
  0xab   : > { %vm8236_vm9 = vcmp.ne.s16.totalorder %v7254_v13, 0  ;;  %v1127_v60 = vor.u32 %v1125_v43, %v1123_v10  ;;  %v3140_v22 = vsel %vm8237_vm1, 0, %v6913_v27  ;;  %v2054_v40 = vshrl.u32 %v5261_v57, 16 }
  0xac   : > { %v1491_v35 = vsel %vm1412_vm10, %v1479_v39, %v1490_v61  ;;  %v1184_v18 = vsel %vm8236_vm9, 0, %v6904_v20  ;;  %v3226_v36 = vshll.u32 %v3140_v22, 16  ;;  %v2057_v46 = vshll.u32 %v5261_v57, 16 }
  0xad   : > { %v1493_v52 = vshrl.u32 %v1184_v18, 16  ;;  %v1496_v41 = vshll.u32 %v1184_v18, 16  ;;  %v2056_v59 = vrot.slane %v2054_v40, 7  ;;  %v3230_v51 = vshrl.u32 %v3140_v22, 16 }
  0xae   : > { %5685 = vmatmul.mubr.msk.bf16.gmra.mrb[16].mxu1 %vm1202_vm2, %v1491_v35  ;;  %v5211_v3 = vcombine.low %v987_v19, %v6675_v11  ;;  %vm1786_vm4 = vcmp.eq.s32.totalorder %v634_v62, 15  ;;  %v3228_v39 = vrot.slane %v3226_v36, 1  ;;  %v449_v16 = vadd.s32 208, %v6663_v5 }
  0xaf   : > { %v7269_v24 = vrot.slane %v1493_v52, 7  ;;  %vm1882_vm6 = vmpackc.low %vm1786_vm4, %vm1786_vm4  ;;  %v450_v20 = vadd.s32 216, %v6663_v5  ;;  %v2059_v33 = vor.u32 %v2057_v46, %v2056_v59 }
  0xb0   : > { %v1129_v43 = vshll.u32 %v5211_v3, 16  ;;  %v1914_v12 = vsel %vm1882_vm6, 65537, %v8248_v0  ;;  %v1133_v10 = vshrl.u32 %v5211_v3, 16  ;;  %v3229_v49 = vsel %vm1040_vm12, %v3224_v45, %v3228_v39 }
  0xb1   : > { %v1498_v30 = vor.u32 %v1496_v41, %v7269_v24  ;;  %v3232_v61 = vor.u32 %v3230_v51, %v3228_v39  ;;  %v5262_v62 = vcombine.low %v6675_v11, %v1914_v12  ;;  %5829 = vmatmul.mubr.msk.bf16.gmra.mrb[16].mxu0 %vm1202_vm2, %v3229_v49  ;;  %v7279_v57 = vsel %vm1412_vm10, %v2048_v15, %v2059_v33 }
  0xb2   : > { %8310 = vst [vmem:[#allocation18_spill] sm:$0xff] %v7279_v57  ;;  %v1131_v19 = vrot.slane %v1129_v43, 1  ;;  %v641_v35 = vand.u32 15, %v449_v16  ;;  %v648_v22 = vand.u32 15, %v450_v20  ;;  %vm8238_vm3 = vcmp.ne.s16.totalorder %v7279_v57, 0 }
  0xb3   : > { %v1499_v18 = vsel %vm1412_vm10, %v1487_v37, %v1498_v30  ;;  %v2062_v40 = vshrl.u32 %v5262_v62, 16  ;;  %v2065_v36 = vshll.u32 %v5262_v62, 16  ;;  %v3141_v45 = vsel %vm8238_vm3, 0, %v6969_v42 }
  0xb4   : > { %5688 = vmatprep.mubr.msk.bf16.mxu1 %vm1202_vm2, %v1499_v18  ;;  %v7288_v52 = vsel %vm1040_vm12, %v1127_v60, %v1131_v19  ;;  %vm865_vm4 = vcmp.eq.s32.totalorder %v641_v35, 0  ;;  %v1135_v15 = vor.u32 %v1133_v10, %v1131_v19  ;;  %v3234_v41 = vshll.u32 %v3141_v45, 16 }
  0xb5   : > { %vm8239_vm6 = vcmp.ne.s16.totalorder %v7288_v52, 0  ;;  %v2064_v46 = vrot.slane %v2062_v40, 7  ;;  %v3238_v37 = vshrl.u32 %v3141_v45, 16  ;;  %vm959_vm9 = vmpackc.low %vm865_vm4, %vm865_vm4  ;;  %vm1788_vm1 = vcmp.eq.s32.totalorder %v648_v22, 15 }
  0xb6   : > { %v1185_v51 = vsel %vm8239_vm6, 0, %v6913_v27  ;;  %v989_v3 = vsel %vm959_vm9, 65537, %v8248_v0  ;;  %v451_v39 = vadd.s32 224, %v6663_v5  ;;  %v3236_v16 = vrot.slane %v3234_v41, 1  ;;  %vm1884_vm3 = vmpackc.low %vm1788_vm1, %vm1788_vm1 }
  0xb7   : > { %v1501_v60 = vshrl.u32 %v1185_v51, 16  ;;  %v1504_v20 = vshll.u32 %v1185_v51, 16  ;;  %v2067_v33 = vor.u32 %v2065_v36, %v2064_v46  ;;  %v5212_v43 = vcombine.low %v989_v3, %v6675_v11 }
  0xb8   : > { %v1916_v12 = vsel %vm1884_vm3, 65537, %v8248_v0  ;;  %v655_v10 = vand.u32 15, %v451_v39  ;;  %v452_v49 = vadd.s32 232, %v6663_v5  ;;  %v3237_v30 = vsel %vm1040_vm12, %v3232_v61, %v3236_v16 }
  0xb9   : > { %v1503_v27 = vrot.slane %v1501_v60, 7  ;;  %v7301_v62 = vsel %vm1412_vm10, %v2056_v59, %v2067_v33  ;;  %v3240_v19 = vor.u32 %v3238_v37, %v3236_v16  ;;  %5832 = vmatprep.mubr.msk.bf16.mxu0 %vm1202_vm2, %v3237_v30  ;;  %v1137_v35 = vshll.u32 %v5212_v43, 16 }
  0xba   : > { %8311 = vst [vmem:[#allocation19_spill] sm:$0xff] %v7301_v62  ;;  %vm2104_vm9 = vcmp.ne.s16.totalorder %v7301_v62, 0  ;;  %v5263_v22 = vcombine.low %v6675_v11, %v1916_v12  ;;  %vm867_vm1 = vcmp.eq.s32.totalorder %v655_v10, 0  ;;  %v1141_v61 = vshrl.u32 %v5212_v43, 16 }
  0xbb   : > { %v1506_v18 = vor.u32 %v1504_v20, %v1503_v27  ;;  %v3142_v40 = vsel %vm2104_vm9, 0, %v6980_v29  ;;  %vm961_vm3 = vmpackc.low %vm867_vm1, %vm867_vm1  ;;  %v662_v36 = vand.u32 15, %v452_v49  ;;  %v1139_v59 = vrot.slane %v1137_v35, 1 }
  0xbc   : > { %v3242_v45 = vshll.u32 %v3142_v40, 16  ;;  %v2070_v41 = vshrl.u32 %v5263_v22, 16  ;;  %v2073_v37 = vshll.u32 %v5263_v22, 16  ;;  %v3246_v3 = vshrl.u32 %v3142_v40, 16 }
  0xbd   : > { %v1507_v51 = vsel %vm1412_vm10, %v7269_v24, %v1506_v18  ;;  %v991_v39 = vsel %vm961_vm3, 65537, %v8248_v0  ;;  %vm1790_vm4 = vcmp.eq.s32.totalorder %v662_v36, 15  ;;  %v7314_v60 = vsel %vm1040_vm12, %v1135_v15, %v1139_v59 }
  0xbe   : > { %5689 = vmatmul.mubr.msk.bf16.gmra.mrb[20].mxu1 %vm1202_vm2, %v1507_v51  ;;  %v3244_v16 = vrot.slane %v3242_v45, 1  ;;  %v2072_v20 = vrot.slane %v2070_v41, 7  ;;  %v5213_v33 = vcombine.low %v991_v39, %v6675_v11  ;;  %vm1886_vm1 = vmpackc.low %vm1790_vm4, %vm1790_vm4  ;;  %vm8240_vm6 = vcmp.ne.s16.totalorder %v7314_v60, 0 }
  0xbf   : > { %v1143_v43 = vor.u32 %v1141_v61, %v1139_v59  ;;  %v1918_v12 = vsel %vm1886_vm1, 65537, %v8248_v0  ;;  %v453_v24 = vadd.s32 240, %v6663_v5  ;;  %v1186_v49 = vsel %vm8240_vm6, 0, %v6969_v42 }
  0xc0   : > { %v3245_v10 = vsel %vm1040_vm12, %v3240_v19, %v3244_v16  ;;  %v2075_v30 = vor.u32 %v2073_v37, %v2072_v20  ;;  %v3248_v15 = vor.u32 %v3246_v3, %v3244_v16  ;;  %v1509_v35 = vshrl.u32 %v1186_v49, 16 }
  0xc1   : > { %5833 = vmatmul.mubr.msk.bf16.gmra.mrb[20].mxu0 %vm1202_vm2, %v3245_v10  ;;  %v1512_v22 = vshll.u32 %v1186_v49, 16  ;;  %v1145_v18 = vshll.u32 %v5213_v33, 16  ;;  %v5264_v40 = vcombine.low %v6675_v11, %v1918_v12  ;;  %v669_v36 = vand.u32 15, %v453_v24 }
  0xc2   : > { %v7327_v61 = vsel %vm1412_vm10, %v2064_v46, %v2075_v30  ;;  %v1149_v45 = vshrl.u32 %v5213_v33, 16  ;;  %v454_v19 = vadd.s32 248, %v6663_v5  ;;  %v1511_v59 = vrot.slane %v1509_v35, 7 }
  0xc3   : > { %8312 = vst [vmem:[#allocation20_spill] sm:$0xff] %v7327_v61  ;;  %vm2105_vm3 = vcmp.ne.s16.totalorder %v7327_v61, 0  ;;  %v1147_v42 = vrot.slane %v1145_v18, 1  ;;  %v2078_v41 = vshrl.u32 %v5264_v40, 16  ;;  %v2081_v51 = vshll.u32 %v5264_v40, 16 }
  0xc4   : > { %v3143_v37 = vsel %vm2105_vm3, 0, %v7024_v55  ;;  %vm869_vm4 = vcmp.eq.s32.totalorder %v669_v36, 0  ;;  %v676_v3 = vand.u32 15, %v454_v19  ;;  %v1514_v39 = vor.u32 %v1512_v22, %v1511_v59 }
  0xc5   : > { %v3250_v16 = vshll.u32 %v3143_v37, 16  ;;  %v7335_v46 = vsel %vm1040_vm12, %v1143_v43, %v1147_v42  ;;  %v2080_v33 = vrot.slane %v2078_v41, 7  ;;  %vm963_vm1 = vmpackc.low %vm869_vm4, %vm869_vm4  ;;  %v3254_v12 = vshrl.u32 %v3143_v37, 16 }
  0xc6   : > { %vm8241_vm6 = vcmp.ne.s16.totalorder %v7335_v46, 0  ;;  %v993_v24 = vsel %vm963_vm1, 65537, %v8248_v0  ;;  %v1515_v10 = vsel %vm1412_vm10, %v1503_v27, %v1514_v39  ;;  %vm1792_vm4 = vcmp.eq.s32.totalorder %v676_v3, 15  ;;  %v7357_v3 = vld [vmem:[%s6660_s28] sm:$0xff]  }
  0xc7   : > { %v3252_v49 = vrot.slane %v3250_v16, 1  ;;  %v1187_v30 = vsel %vm8241_vm6, 0, %v6980_v29  ;;  %v2083_v35 = vor.u32 %v2081_v51, %v2080_v33  ;;  %5692 = vmatprep.mubr.msk.bf16.mxu1 %vm1202_vm2, %v1515_v10  ;;  %v5214_v18 = vcombine.low %v993_v24, %v6675_v11  ;;  %vm1888_vm1 = vmpackc.low %vm1792_vm4, %vm1792_vm4 }
  0xc8   : > { %v1517_v22 = vshrl.u32 %v1187_v30, 16  ;;  %v1520_v43 = vshll.u32 %v1187_v30, 16  ;;  %v1151_v27 = vor.u32 %v1149_v45, %v1147_v42  ;;  %v1920_v41 = vsel %vm1888_vm1, 65537, %v8248_v0 }
  0xc9   : > { %v3253_v40 = vsel %vm1040_vm12, %v3248_v15, %v3252_v49  ;;  %v7347_v36 = vsel %vm1412_vm10, %v2072_v20, %v2083_v35  ;;  %v1153_v29 = vshll.u32 %v5214_v18, 16  ;;  %v5265_v51 = vcombine.low %v6675_v11, %v1920_v41 }
  0xca   : > { %5836 = vmatprep.mubr.msk.bf16.mxu0 %vm1202_vm2, %v3253_v40  ;;  %v1519_v19 = vrot.slane %v1517_v22, 7  ;;  %vm8244_vm6 = vcmp.ne.s16.totalorder %v7347_v36, 0  ;;  %v1157_v15 = vshrl.u32 %v5214_v18, 16  ;;  %v2109_v20 = vsel %vm8242_vm8, 0, %v7357_v3 }
  0xcb   : > { %v3144_v37 = vsel %vm8244_vm6, 0, %v7033_v34  ;;  %v3256_v42 = vor.u32 %v3254_v12, %v3252_v49  ;;  %v1155_v16 = vrot.slane %v1153_v29, 1  ;;  %v2086_v24 = vshrl.u32 %v5265_v51, 16 }
  0xcc   : > { %v1522_v45 = vor.u32 %v1520_v43, %v1519_v19  ;;  %v3258_v39 = vshll.u32 %v3144_v37, 16  ;;  %v2089_v10 = vshll.u32 %v5265_v51, 16  ;;  %v3262_v30 = vshrl.u32 %v3144_v37, 16 }
  0xcd   : > { %v2128_v35 = vshll.u32 %v2109_v20, 16  ;;  %v7364_v41 = vsel %vm1040_vm12, %v1151_v27, %v1155_v16  ;;  %v7366_v18 = vor.u32 %v1157_v15, %v1155_v16  ;;  %v7370_v43 = vrot.slane %v2086_v24, 7 }
  0xce   : > { %v1523_v22 = vsel %vm1412_vm10, %v1511_v59, %v1522_v45  ;;  %v3260_v40 = vrot.slane %v3258_v39, 1  ;;  %vm8243_vm4 = vcmp.ne.s16.totalorder %v7364_v41, 0  ;;  %v7373_v12 = vrot.slane %v8248_v0, 1 }
  0xcf   : > { %5693 = vmatmul.mubr.msk.bf16.gmra.mrb[24].mxu1 %vm1202_vm2, %v1523_v22  ;;  %v459_v49 = vand.u32 15, %v6663_v5  ;;  %v1188_v59 = vsel %vm8243_vm4, 0, %v7024_v55  ;;  %vm1174_vm1 = vcmp.ne.s16.totalorder %v7366_v18, 0  ;;  %v2132_v27 = vshrl.u32 %v2109_v20, 16  ;;  %v7390_v20 = vld [vmem:[%s6660_s28 + $0x8] sm:$0xff]  }
  0xd0   : > { %8313 = vst [vmem:[#allocation21_spill] sm:$0xff] %v7373_v12  ;;  %v3261_v29 = vsel %vm1040_vm12, %v3256_v42, %v3260_v40  ;;  %v1525_v37 = vshrl.u32 %v1188_v59, 16  ;;  %v1528_v51 = vshll.u32 %v1188_v59, 16  ;;  %v2091_v15 = vor.u32 %v2089_v10, %v7370_v43 }
  0xd1   : > { %5837 = vmatmul.mubr.msk.bf16.gmra.mrb[24].mxu0 %vm1202_vm2, %v3261_v29  ;;  %v1189_v5 = vsel %vm1174_vm1, 0, %v7033_v34  ;;  %v3264_v45 = vor.u32 %v3262_v30, %v3260_v40  ;;  %v2130_v16 = vrot.slane %v2128_v35, 1  ;;  %vm839_vm8 = vcmp.eq.s32.totalorder %v459_v49, 0  ;;  %v7397_v30 = vld [vmem:[%s6660_s28 + $0x10] sm:$0xff]  }
  0xd2   : > { %v1533_v42 = vshrl.u32 %v1189_v5, 16  ;;  %v1536_v39 = vshll.u32 %v1189_v5, 16  ;;  %v1527_v24 = vrot.slane %v1525_v37, 7  ;;  %v7387_v55 = vsel %vm1412_vm10, %v2080_v33, %v2091_v15  ;;  %vm2505_vm6 = vmpackc.low %vm839_vm8, %vm839_vm8 }
  0xd3   : > { %v2110_v22 = vsel %vm2094_vm14, 0, %v7390_v20  ;;  %vm2107_vm4 = vcmp.ne.s16.totalorder %v7387_v55, 0  ;;  %v3530_v35 = vsel %vm1160_vm11, 0, %v7397_v30  ;;  %v2507_v49 = vsel %vm2505_vm6, 65537, %v8248_v0  ;;  %v7599_v55 = vld [vmem:[%s6660_s28 + $0x78] sm:$0xff]  }
  0xd4   : > { %v1535_v10 = vrot.slane %v1533_v42, 7  ;;  %v2136_v34 = vshll.u32 %v2110_v22, 16  ;;  %v1530_v33 = vor.u32 %v1528_v51, %v1527_v24  ;;  %v3145_v40 = vsel %vm2107_vm4, 0, %v7077_v7 }
  0xd5   : > { %v3557_v29 = vshrl.u32 %v3530_v35, 16  ;;  %v3266_v59 = vshll.u32 %v3145_v40, 16  ;;  %v3270_v15 = vshrl.u32 %v3145_v40, 16  ;;  %v5284_v5 = vcombine.low %v2507_v49, %v6675_v11  ;;  %v7422_v49 = vld [vmem:[%s6660_s28 + $0x18] sm:$0xff]  }
  0xd6   : > { %v1538_v37 = vor.u32 %v1536_v39, %v1535_v10  ;;  %v1531_v42 = vsel %vm1412_vm10, %v1519_v19, %v1530_v33  ;;  %v2131_v1 = vsel %vm1040_vm12, %v7373_v12, %v2130_v16  ;;  %v2134_v23 = vor.u32 %v2132_v27, %v2130_v16 }
  0xd7   : > { %5696 = vmatprep.mubr.msk.bf16.mxu1 %vm1202_vm2, %v1531_v42  ;;  %v3268_v51 = vrot.slane %v3266_v59, 1  ;;  %v2513_v58 = vshrl.u32 %v5284_v5, 16  ;;  %v2515_v0 = vshll.u32 %v5284_v5, 16  ;;  %v2138_v39 = vrot.slane %v2136_v34, 1 }
  0xd8   : > { %v1539_v7 = vsel %vm1412_vm10, %v1527_v24, %v1538_v37  ;;  %v7413_v10 = vrot.slane %v3557_v29, 7  ;;  %v2111_v11 = vsel %vm2095_vm7, 0, %v7397_v30  ;;  %v2140_v19 = vshrl.u32 %v2110_v22, 16 }
  0xd9   : > { %5697 = vmatmul.mubr.msk.bf16.gmra.mrb[28].mxu1 %vm1202_vm2, %v1539_v7  ;;  %v3269_v27 = vsel %vm1040_vm12, %v3264_v45, %v3268_v51  ;;  %v3272_v16 = vor.u32 %v3270_v15, %v3268_v51  ;;  %v2517_v33 = vrot.slane %v2515_v0, 1  ;;  %v2144_v40 = vshll.u32 %v2111_v11, 16 }
  0xda   : > { %5704 = vmatprep.mubr.msk.bf16.mxu1 %vm1202_vm2, %v2131_v1  ;;  %5840 = vmatprep.mubr.msk.bf16.mxu0 %vm1202_vm2, %v3269_v27  ;;  %v2142_v24 = vor.u32 %v2140_v19, %v2138_v39  ;;  %v3531_v34 = vsel %vm1161_vm15, 0, %v7422_v49  ;;  %v2112_v22 = vsel %vm2096_vm13, 0, %v7422_v49  ;;  %v2148_v29 = vshrl.u32 %v2111_v11, 16  ;;  %v7444_v27 = vld [vmem:[%s6660_s28 + $0x20] sm:$0xff]  }
  0xdb   : > { %v3273_v45 = vsel %vm1040_vm12, %v3272_v16, %v7373_v12  ;;  %v2518_v0 = vor.u32 %v2517_v33, %v2513_v58  ;;  %vm3527_vm8 = vcmp.ne.s16.totalorder %v2517_v33, 0  ;;  %v2146_v1 = vrot.slane %v2144_v40, 1  ;;  %v6308_v16 = vld [vmem:[#allocation2 + $0x38] sm:$0xff]   ;;  %v7459_v12 = vld [vmem:[%s6660_s28 + $0x28] sm:$0xff]  }
  0xdc   : > { %5841 = vmatmul.mubr.msk.bf16.gmra.mrb[28].mxu0 %vm1202_vm2, %v3273_v45  ;;  %v3528_v59 = vsel %vm3527_vm8, 0, %v7357_v3  ;;  %v3560_v37 = vshll.u32 %v3530_v35, 16  ;;  %v3565_v15 = vshrl.u32 %v3531_v34, 16  ;;  %v2152_v5 = vshll.u32 %v2112_v22, 16 }
  0xdd   : > { %v7436_v42 = vsel %vm1040_vm12, %v2518_v0, %v6843_v32  ;;  %v3545_v51 = vshrl.u32 %v3528_v59, 16  ;;  %v2139_v7 = vsel %vm1040_vm12, %v2134_v23, %v2138_v39  ;;  %v3568_v11 = vshll.u32 %v3531_v34, 16 }
  0xde   : > { %vm2520_vm6 = vcmp.ne.s16.totalorder %v7436_v42, 0  ;;  %v2147_v58 = vsel %vm1040_vm12, %v2142_v24, %v2146_v1  ;;  %v7441_v19 = vrot.slane %v3565_v15, 7  ;;  %v3532_v35 = vsel %vm1162_vm0, 0, %v7444_v27 }
  0xdf   : > { %v3529_v32 = vsel %vm2520_vm6, 0, %v7390_v20  ;;  %v2150_v23 = vor.u32 %v2148_v29, %v2146_v1  ;;  %v2154_v39 = vrot.slane %v2152_v5, 1  ;;  %v3573_v33 = vshrl.u32 %v3532_v35, 16 }
  0xe0   : > { %v3547_v40 = vrot.slane %v3545_v51, 7  ;;  %v3549_v34 = vshrl.u32 %v3529_v32, 16  ;;  %v3552_v24 = vshll.u32 %v3529_v32, 16  ;;  %v3562_v45 = vor.u32 %v3560_v37, %v7413_v10 }
  0xe1   : > { %5705 = vmatmul.mubr.msk.bf16.vlgmr.msra.gmra.mrb[0].mxu1 %vm1202_vm2, %v2139_v7  ;;  %v3576_v0 = vshll.u32 %v3532_v35, 16  ;;  %v2113_v59 = vsel %vm8251_vm5, 0, %v7444_v27  ;;  %v2156_v15 = vshrl.u32 %v2112_v22, 16  ;;  %vm8314_vm8 = vcmp.ne.s16.totalorder %v7041_v63, 0 }
  0xe2   : > { %5708 = vmatprep.mubr.msk.bf16.mxu1 %vm1202_vm2, %v2147_v58  ;;  %v3533_v29 = vsel %vm8314_vm8, 0, %v7459_v12  ;;  %5737 = vmatpush3.bf16.msra.mxu1 %v7205_v56  ;;  %v3551_v1 = vrot.slane %v3549_v34, 7  ;;  %v3570_v37 = vor.u32 %v3568_v11, %v7441_v19  ;;  %v2160_v5 = vshll.u32 %v2113_v59, 16 }
  0xe3   : > { %v3581_v51 = vshrl.u32 %v3533_v29, 16  ;;  %5738 = vmatprep.subr.bf16.mxu1 %v6308_v16  ;;  %v2155_v7 = vsel %vm1040_vm12, %v2150_v23, %v2154_v39  ;;  %v3575_v58 = vrot.slane %v3573_v33, 7  ;;  %v2158_v35 = vor.u32 %v2156_v15, %v2154_v39 }
  0xe4   : > { %vm8315_vm5 = vcmp.ne.s16.totalorder %v7108_v17, 0  ;;  %v3554_v32 = vor.u32 %v3552_v24, %v3551_v1  ;;  %v3563_v2 = vsel %vm1412_vm10, %v3551_v1, %v3562_v45  ;;  %v2162_v25 = vrot.slane %v2160_v5, 1  ;;  %v6306_v24 = vld [vmem:[#allocation2 + $0x78] sm:$0xff]  }
  0xe5   : > { %v2114_v22 = vsel %vm8315_vm5, 0, %v7459_v12  ;;  %v3584_v56 = vshll.u32 %v3533_v29, 16  ;;  %v7471_v34 = vrot.slane %v3581_v51, 7  ;;  %v2164_v21 = vshrl.u32 %v2113_v59, 16 }
  0xe6   : > { %v2168_v11 = vshll.u32 %v2114_v22, 16  ;;  %vm8316_vm8 = vcmp.ne.s16.totalorder %v7065_v28, 0  ;;  %5739 = vmatpush3.bf16.msra.mxu1 %v6308_v16  ;;  %v3555_v39 = vsel %vm1412_vm10, %v3547_v40, %v3554_v32  ;;  %v3571_v33 = vsel %vm1412_vm10, %v7413_v10, %v3570_v37  ;;  %v7493_v37 = vld [vmem:[%s6660_s28 + $0x38] sm:$0xff]  }
  0xe7   : > { %v3534_v23 = vsel %vm8316_vm8, 0, %v7474_v31  ;;  %5848 = vmatprep.mubr.msk.bf16.mxu0 %vm1202_vm2, %v3555_v39  ;;  %v3578_v45 = vor.u32 %v3576_v0, %v3575_v58  ;;  %v2163_v59 = vsel %vm1040_vm12, %v2158_v35, %v2162_v25  ;;  %vm8317_vm5 = vcmp.ne.s16.totalorder %v7146_v8, 0  ;;  %v7502_v35 = vld [vmem:[#allocation2 + $0x80] sm:$0xff]   ;;  %v7533_v8 = vld [vmem:[%s6660_s28 + $0x50] sm:$0xff]  }
  0xe8   : > { %v2115_v15 = vsel %vm8317_vm5, 0, %v7474_v31  ;;  %5849 = vmatmul.mubr.msk.bf16.vlgmr.msra.gmra.mrb[0].mxu0 %vm1202_vm2, %v3563_v2  ;;  %v2170_v16 = vrot.slane %v2168_v11, 1  ;;  %v3589_v40 = vshrl.u32 %v3534_v23, 16  ;;  %v2172_v29 = vshrl.u32 %v2114_v22, 16  ;;  %v7507_v22 = vld [vmem:[%s6660_s28 + $0x40] sm:$0xff]  }
  0xe9   : > { %5709 = vmatmul.mubr.msk.bf16.gmra.mrb[4].mxu1 %vm1202_vm2, %v2155_v7  ;;  %v2176_v1 = vshll.u32 %v2115_v15, 16  ;;  %5881 = vmatpush3.bf16.msra.mxu0 %v7150_v54  ;;  %v3586_v10 = vor.u32 %v3584_v56, %v7471_v34  ;;  %v2166_v0 = vor.u32 %v2164_v21, %v2162_v25  ;;  %vm8318_vm8 = vcmp.ne.s16.totalorder %v7120_v48, 0 }
  0xea   : > { %5852 = vmatprep.mubr.msk.bf16.mxu0 %vm1202_vm2, %v3571_v33  ;;  %v3535_v2 = vsel %vm8318_vm8, 0, %v7493_v37  ;;  %vm8319_vm5 = vcmp.ne.s16.totalorder %v7191_v53, 0  ;;  %5712 = vmatprep.mubr.msk.bf16.mxu1 %vm1202_vm2, %v2163_v59  ;;  %v2174_v51 = vor.u32 %v2172_v29, %v2170_v16  ;;  %v3579_v21 = vsel %vm1412_vm10, %v7441_v19, %v3578_v45 }
  0xeb   : > { %v2116_v5 = vsel %vm8319_vm5, 0, %v7493_v37  ;;  %v2178_v7 = vrot.slane %v2176_v1, 1  ;;  %v3597_v54 = vshrl.u32 %v3535_v2, 16  ;;  %5882 = vmatprep.subr.bf16.mxu0 %v6306_v24  ;;  %v3592_v25 = vshll.u32 %v3534_v23, 16 }
  0xec   : > { %vm8320_vm8 = vcmp.ne.s16.totalorder %v7227_v4, 0  ;;  %v3591_v56 = vrot.slane %v3589_v40, 7  ;;  %v2180_v11 = vshrl.u32 %v2115_v15, 16  ;;  %v2184_v39 = vshll.u32 %v2116_v5, 16  ;;  %v7519_v4 = vld [vmem:[%s6660_s28 + $0x48] sm:$0xff]  }
  0xed   : > { %v2117_v32 = vsel %vm8320_vm8, 0, %v7507_v22  ;;  %vm8321_vm5 = vcmp.ne.s16.totalorder %v7162_v38, 0  ;;  %v3587_v59 = vsel %vm1412_vm10, %v3575_v58, %v3586_v10  ;;  %v2171_v29 = vsel %vm1040_vm12, %v2166_v0, %v2170_v16  ;;  %5883 = vmatpush3.bf16.msra.mxu0 %v6306_v24 }
  0xee   : > { %v3536_v33 = vsel %vm8321_vm5, 0, %v7507_v22  ;;  %v3599_v19 = vrot.slane %v3597_v54, 7  ;;  %v3600_v45 = vshll.u32 %v3535_v2, 16  ;;  %v2179_v23 = vsel %vm1040_vm12, %v2174_v51, %v2178_v7  ;;  %5916 = vmatprep.subr.bf16.mxu0 %v7502_v35 }
  0xef   : > { %v2188_v1 = vshrl.u32 %v2116_v5, 16  ;;  %v2192_v53 = vshll.u32 %v2117_v32, 16  ;;  %vm8322_vm8 = vcmp.ne.s16.totalorder %v7202_v47, 0  ;;  %v3605_v40 = vshrl.u32 %v3536_v33, 16 }
  0xf0   : > { %v3537_v15 = vsel %vm8322_vm8, 0, %v7519_v4  ;;  %5853 = vmatmul.mubr.msk.bf16.gmra.mrb[4].mxu0 %vm1202_vm2, %v3579_v21  ;;  %v3594_v58 = vor.u32 %v3592_v25, %v3591_v56  ;;  %v2182_v24 = vor.u32 %v2180_v11, %v2178_v7  ;;  %v2186_v16 = vrot.slane %v2184_v39, 1 }
  0xf1   : > { %5713 = vmatmul.mubr.msk.bf16.gmra.mrb[8].mxu1 %vm1202_vm2, %v2171_v29  ;;  %5856 = vmatprep.mubr.msk.bf16.mxu0 %vm1202_vm2, %v3587_v59  ;;  %v3602_v10 = vor.u32 %v3600_v45, %v3599_v19  ;;  %v3613_v0 = vshrl.u32 %v3537_v15, 16  ;;  %vm8323_vm5 = vcmp.ne.s16.totalorder %v7251_v44, 0  ;;  %v2194_v51 = vrot.slane %v2192_v53, 1  ;;  %v7586_v44 = vld [vmem:[%s6660_s28 + $0x70] sm:$0xff]  }
  0xf2   : > { %5716 = vmatprep.mubr.msk.bf16.mxu1 %vm1202_vm2, %v2179_v23  ;;  %v2118_v2 = vsel %vm8323_vm5, 0, %v7519_v4  ;;  %v2190_v5 = vor.u32 %v2188_v1, %v2186_v16  ;;  %v3607_v54 = vrot.slane %v3605_v40, 7  ;;  %v3608_v21 = vshll.u32 %v3536_v33, 16 }
  0xf3   : > { %vm8324_vm8 = vcmp.ne.s16.totalorder %v7279_v57, 0  ;;  %v3595_v25 = vsel %vm1412_vm10, %v7471_v34, %v3594_v58  ;;  %v2187_v11 = vsel %vm1040_vm12, %v2182_v24, %v2186_v16  ;;  %v2196_v39 = vshrl.u32 %v2117_v32, 16  ;;  %v7547_v57 = vld [vmem:[%s6660_s28 + $0x58] sm:$0xff]  }
  0xf4   : > { %v2119_v7 = vsel %vm8324_vm8, 0, %v7533_v8  ;;  %v2200_v59 = vshll.u32 %v2118_v2, 16  ;;  %v3603_v29 = vsel %vm1412_vm10, %v3591_v56, %v3602_v10  ;;  %v3615_v45 = vrot.slane %v3613_v0, 7 }
  0xf5   : > { %v3616_v53 = vshll.u32 %v3537_v15, 16  ;;  %vm8325_vm5 = vcmp.ne.s16.totalorder %v7234_v50, 0  ;;  %v2195_v23 = vsel %vm1040_vm12, %v2190_v5, %v2194_v51  ;;  %v2204_v1 = vshrl.u32 %v2118_v2, 16 }
  0xf6   : > { %v3538_v33 = vsel %vm8325_vm5, 0, %v7533_v8  ;;  %v2208_v40 = vshll.u32 %v2119_v7, 16  ;;  %vm8326_vm8 = vcmp.ne.s16.totalorder %v7254_v13, 0  ;;  %v3610_v32 = vor.u32 %v3608_v21, %v3607_v54 }
  0xf7   : > { %v3539_v34 = vsel %vm8326_vm8, 0, %v7547_v57  ;;  %v2198_v56 = vor.u32 %v2196_v39, %v2194_v51  ;;  %v2202_v15 = vrot.slane %v2200_v59, 1  ;;  %v3621_v58 = vshrl.u32 %v3538_v33, 16 }
  0xf8   : > { %5857 = vmatmul.mubr.msk.bf16.gmra.mrb[8].mxu0 %vm1202_vm2, %v3595_v25  ;;  %v3629_v24 = vshrl.u32 %v3539_v34, 16  ;;  %v2120_v16 = vsel %vm2104_vm9, 0, %v7547_v57  ;;  %v3618_v10 = vor.u32 %v3616_v53, %v3615_v45  ;;  %v2210_v2 = vrot.slane %v2208_v40, 1  ;;  %v7561_v25 = vld [vmem:[%s6660_s28 + $0x60] sm:$0xff]   ;;  %v7571_v40 = vld [vmem:[%s6660_s28 + $0x68] sm:$0xff]  }
  0xf9   : > { %5717 = vmatmul.mubr.msk.bf16.gmra.mrb[12].mxu1 %vm1202_vm2, %v2187_v11  ;;  %5860 = vmatprep.mubr.msk.bf16.mxu0 %vm1202_vm2, %v3603_v29  ;;  %v2206_v0 = vor.u32 %v2204_v1, %v2202_v15  ;;  %v3611_v5 = vsel %vm1412_vm10, %v3599_v19, %v3610_v32  ;;  %v3624_v21 = vshll.u32 %v3538_v33, 16  ;;  %v2121_v51 = vsel %vm2105_vm3, 0, %v7561_v25 }
  0xfa   : > { %5720 = vmatprep.mubr.msk.bf16.mxu1 %vm1202_vm2, %v2195_v23  ;;  %v2203_v11 = vsel %vm1040_vm12, %v2198_v56, %v2202_v15  ;;  %v3623_v39 = vrot.slane %v3621_v58, 7  ;;  %v2216_v59 = vshll.u32 %v2120_v16, 16  ;;  %vm8327_vm5 = vcmp.ne.s16.totalorder %v7288_v52, 0 }
  0xfb   : > { %v3540_v29 = vsel %vm8327_vm5, 0, %v7561_v25  ;;  %v3631_v53 = vrot.slane %v3629_v24, 7  ;;  %v3632_v23 = vshll.u32 %v3539_v34, 16  ;;  %v2212_v1 = vshrl.u32 %v2119_v7, 16 }
  0xfc   : > { %vm8328_vm8 = vcmp.ne.s16.totalorder %v7314_v60, 0  ;;  %v3619_v33 = vsel %vm1412_vm10, %v3607_v54, %v3618_v10  ;;  %v2211_v32 = vsel %vm1040_vm12, %v2206_v0, %v2210_v2  ;;  %v2220_v56 = vshrl.u32 %v2120_v16, 16 }
  0xfd   : > { %v3541_v19 = vsel %vm8328_vm8, 0, %v7571_v40  ;;  %v2224_v15 = vshll.u32 %v2121_v51, 16  ;;  %v3637_v58 = vshrl.u32 %v3540_v29, 16  ;;  %v2218_v34 = vrot.slane %v2216_v59, 1 }
  0xfe   : > { %v3645_v7 = vshrl.u32 %v3541_v19, 16  ;;  %v3626_v24 = vor.u32 %v3624_v21, %v3623_v39  ;;  %v3634_v61 = vor.u32 %v3632_v23, %v3631_v53  ;;  %v2214_v62 = vor.u32 %v2212_v1, %v2210_v2 }
  0xff   : > { %vm8329_vm5 = vcmp.ne.s16.totalorder %v7347_v36, 0  ;;  %v2222_v16 = vor.u32 %v2220_v56, %v2218_v34  ;;  %v2226_v10 = vrot.slane %v2224_v15, 1  ;;  %v3639_v0 = vrot.slane %v3637_v58, 7 }
 0x100   : > { %5861 = vmatmul.mubr.msk.bf16.gmra.mrb[12].mxu0 %vm1202_vm2, %v3611_v5  ;;  %v2122_v54 = vsel %vm8329_vm5, 0, %v7571_v40  ;;  %v3640_v5 = vshll.u32 %v3540_v29, 16  ;;  %v3647_v21 = vrot.slane %v3645_v7, 7  ;;  %v3648_v59 = vshll.u32 %v3541_v19, 16 }
 0x101   : > { %5721 = vmatmul.mubr.msk.bf16.gmra.mrb[16].mxu1 %vm1202_vm2, %v2203_v11  ;;  %5864 = vmatprep.mubr.msk.bf16.mxu0 %vm1202_vm2, %v3619_v33  ;;  %v2123_v11 = vsel %vm2107_vm4, 0, %v7586_v44  ;;  %v2228_v33 = vshrl.u32 %v2121_v51, 16  ;;  %v2232_v23 = vshll.u32 %v2122_v54, 16  ;;  %v3627_v2 = vsel %vm1412_vm10, %v3615_v45, %v3626_v24 }
 0x102   : > { %5724 = vmatprep.mubr.msk.bf16.mxu1 %vm1202_vm2, %v2211_v32  ;;  %v3635_v1 = vsel %vm1412_vm10, %v3623_v39, %v3634_v61  ;;  %v2219_v32 = vsel %vm1040_vm12, %v2214_v62, %v2218_v34  ;;  %vm8330_vm8 = vcmp.ne.s16.totalorder %v7335_v46, 0  ;;  %v2227_v56 = vsel %vm1040_vm12, %v2222_v16, %v2226_v10 }
 0x103   : > { %v3542_v29 = vsel %vm8330_vm8, 0, %v7586_v44  ;;  %v2236_v15 = vshrl.u32 %v2122_v54, 16  ;;  %v2240_v58 = vshll.u32 %v2123_v11, 16  ;;  %vm8331_vm4 = vcmp.ne.s16.totalorder %v7364_v41, 0 }
 0x104   : > { %v3543_v51 = vsel %vm8331_vm4, 0, %v7599_v55  ;;  %v3642_v19 = vor.u32 %v3640_v5, %v3639_v0  ;;  %vm2108_vm5 = vcmp.ne.s16.totalorder %v7370_v43, 0  ;;  %v2521_v62 = vsel %vm2520_vm6, 0, %v7357_v3 }
 0x105   : > { %v3650_v61 = vor.u32 %v3648_v59, %v3647_v21  ;;  %v2230_v45 = vor.u32 %v2228_v33, %v2226_v10  ;;  %v2234_v39 = vrot.slane %v2232_v23, 1  ;;  %v3653_v34 = vshrl.u32 %v3542_v29, 16 }
 0x106   : > { %v3661_v7 = vshrl.u32 %v3543_v51, 16  ;;  %v2242_v54 = vrot.slane %v2240_v58, 1  ;;  %v2124_v43 = vsel %vm2108_vm5, 0, %v7599_v55  ;;  %v2538_v16 = vshrl.u32 %v2521_v62, 16 }
 0x107   : > { %v2238_v24 = vor.u32 %v2236_v15, %v2234_v39  ;;  %v3643_v3 = vsel %vm1412_vm10, %v3631_v53, %v3642_v19  ;;  %v3651_v42 = vsel %vm1412_vm10, %v3639_v0, %v3650_v61  ;;  %v2235_v5 = vsel %vm1040_vm12, %v2230_v45, %v2234_v39 }
 0x108   : > { %5865 = vmatmul.mubr.msk.bf16.gmra.mrb[16].mxu0 %vm1202_vm2, %v3627_v2  ;;  %v3655_v59 = vrot.slane %v3653_v34, 7  ;;  %v3656_v10 = vshll.u32 %v3542_v29, 16  ;;  %v3663_v33 = vrot.slane %v3661_v7, 7  ;;  %v3664_v23 = vshll.u32 %v3543_v51, 16 }
 0x109   : > { %5725 = vmatmul.mubr.msk.bf16.gmra.mrb[20].mxu1 %vm1202_vm2, %v2219_v32  ;;  %5868 = vmatprep.mubr.msk.bf16.mxu0 %vm1202_vm2, %v3635_v1  ;;  %v2244_v2 = vshrl.u32 %v2123_v11, 16  ;;  %v2248_v1 = vshll.u32 %v2124_v43, 16  ;;  %v2243_v32 = vsel %vm1040_vm12, %v2238_v24, %v2242_v54  ;;  %v2541_v15 = vshll.u32 %v2521_v62, 16 }
 0x10a   : > { %5728 = vmatprep.mubr.msk.bf16.mxu1 %vm1202_vm2, %v2227_v56  ;;  %v2540_v56 = vrot.slane %v2538_v16, 7  ;;  %v2522_v58 = vsel %vm1160_vm11, 0, %v7390_v20  ;;  %v2523_v53 = vsel %vm1161_vm15, 0, %v7397_v30  ;;  %v3658_v0 = vor.u32 %v3656_v10, %v3655_v59 }
 0x10b   : > { %v3666_v11 = vor.u32 %v3664_v23, %v3663_v33  ;;  %v2246_v29 = vor.u32 %v2244_v2, %v2242_v54  ;;  %v2250_v51 = vrot.slane %v2248_v1, 1  ;;  %v2546_v19 = vshrl.u32 %v2522_v58, 16 }
 0x10c   : > { %v2543_v62 = vor.u32 %v2541_v15, %v2540_v56  ;;  %v2554_v6 = vshrl.u32 %v2523_v53, 16  ;;  %v3659_v61 = vsel %vm1412_vm10, %v3647_v21, %v3658_v0  ;;  %v2549_v34 = vshll.u32 %v2522_v58, 16 }
 0x10d   : > { %v3667_v26 = vsel %vm1412_vm10, %v3655_v59, %v3666_v11  ;;  %v2251_v45 = vsel %vm1040_vm12, %v2246_v29, %v2250_v51  ;;  %v2548_v39 = vrot.slane %v2546_v19, 7  ;;  %v2557_v43 = vshll.u32 %v2523_v53, 16  ;;  %v6310_v51 = vld [vmem:[#allocation2 + $0x88] sm:$0xff]  }
 0x10e   : > { %v2544_v7 = vsel %vm1412_vm10, %v6669_v9, %v2543_v62  ;;  %v2556_v24 = vrot.slane %v2554_v6, 7  ;;  %v2524_v54 = vsel %vm1162_vm0, 0, %v7422_v49  ;;  %vm8332_vm11 = vcmp.ne.s16.totalorder %v7041_v63, 0 }
 0x10f   : > { %v2525_v21 = vsel %vm8332_vm11, 0, %v7444_v27  ;;  %v2551_v16 = vor.u32 %v2549_v34, %v2548_v39  ;;  %v3668_v14 = vsel %vm1412_vm10, %v3663_v33, %v6669_v9  ;;  %v2565_v23 = vshll.u32 %v2524_v54, 16 }
 0x110   : > { %5869 = vmatmul.mubr.msk.bf16.gmra.mrb[20].mxu0 %vm1202_vm2, %v3643_v3  ;;  %v2562_v3 = vshrl.u32 %v2524_v54, 16  ;;  %vm8333_vm15 = vcmp.ne.s16.totalorder %v7065_v28, 0  ;;  %vm8334_vm0 = vcmp.ne.s16.totalorder %v7120_v48, 0  ;;  %vm8335_vm6 = vcmp.ne.s16.totalorder %v7162_v38, 0 }
 0x111   : > { %5729 = vmatmul.mubr.msk.bf16.gmra.mrb[24].mxu1 %vm1202_vm2, %v2235_v5  ;;  %5872 = vmatprep.mubr.msk.bf16.mxu0 %vm1202_vm2, %v3651_v42  ;;  %v2559_v42 = vor.u32 %v2557_v43, %v2556_v24  ;;  %v2570_v5 = vshrl.u32 %v2525_v21, 16  ;;  %v2552_v59 = vsel %vm1412_vm10, %v2540_v56, %v2551_v16  ;;  %v2526_v63 = vsel %vm8333_vm15, 0, %v7459_v12 }
 0x112   : > { %5732 = vmatprep.mubr.msk.bf16.mxu1 %vm1202_vm2, %v2243_v32  ;;  %v2564_v10 = vrot.slane %v2562_v3, 7  ;;  %v2573_v32 = vshll.u32 %v2525_v21, 16  ;;  %v2527_v15 = vsel %vm8334_vm0, 0, %v7474_v31  ;;  %v2578_v33 = vshrl.u32 %v2526_v63, 16 }
 0x113   : > { %v2560_v2 = vsel %vm1412_vm10, %v2548_v39, %v2559_v42  ;;  %v2572_v1 = vrot.slane %v2570_v5, 7  ;;  %v2586_v56 = vshrl.u32 %v2527_v15, 16  ;;  %v2581_v0 = vshll.u32 %v2526_v63, 16 }
 0x114   : > { %v2567_v9 = vor.u32 %v2565_v23, %v2564_v10  ;;  %v2580_v53 = vrot.slane %v2578_v33, 7  ;;  %v2589_v48 = vshll.u32 %v2527_v15, 16  ;;  %v2528_v29 = vsel %vm8335_vm6, 0, %v7493_v37 }
 0x115   : > { %v2575_v28 = vor.u32 %v2573_v32, %v2572_v1  ;;  %v2588_v11 = vrot.slane %v2586_v56, 7  ;;  %vm8336_vm8 = vcmp.ne.s16.totalorder %v7202_v47, 0  ;;  %v2594_v38 = vshrl.u32 %v2528_v29, 16 }
 0x116   : > { %v2568_v58 = vsel %vm1412_vm10, %v2556_v24, %v2567_v9  ;;  %v2529_v62 = vsel %vm8336_vm8, 0, %v7507_v22  ;;  %v2583_v6 = vor.u32 %v2581_v0, %v2580_v53  ;;  %v2597_v39 = vshll.u32 %v2528_v29, 16 }
 0x117   : > { %v2576_v19 = vsel %vm1412_vm10, %v2564_v10, %v2575_v28  ;;  %v2605_v24 = vshll.u32 %v2529_v62, 16  ;;  %vm8337_vm4 = vcmp.ne.s16.totalorder %v7234_v50, 0  ;;  %vm8338_vm5 = vcmp.ne.s16.totalorder %v7254_v13, 0 }
 0x118   : > { %5873 = vmatmul.mubr.msk.bf16.gmra.mrb[24].mxu0 %vm1202_vm2, %v3659_v61  ;;  %v2591_v61 = vor.u32 %v2589_v48, %v2588_v11  ;;  %v2584_v47 = vsel %vm1412_vm10, %v2572_v1, %v2583_v6  ;;  %v2531_v43 = vsel %vm8338_vm5, 0, %v7533_v8  ;;  %vm8339_vm11 = vcmp.ne.s16.totalorder %v7288_v52, 0 }
 0x119   : > { %5733 = vmatmul.mubr.msk.bf16.gmra.mrb[28].mxu1 %vm1202_vm2, %v2251_v45  ;;  %5876 = vmatprep.mubr.msk.bf16.mxu0 %vm1202_vm2, %v3667_v26  ;;  %v2602_v26 = vshrl.u32 %v2529_v62, 16  ;;  %v2596_v45 = vrot.slane %v2594_v38, 7  ;;  %v2618_v3 = vshrl.u32 %v2531_v43, 16  ;;  %v2532_v10 = vsel %vm8339_vm11, 0, %v7547_v57 }
 0x11a   : > { %5740 = vmatprep.mubr.msk.bf16.mxu1 %vm1202_vm2, %v2544_v7  ;;  %v2592_v34 = vsel %vm1412_vm10, %v2580_v53, %v2591_v61  ;;  %vm8340_vm15 = vcmp.ne.s16.totalorder %v7314_v60, 0  ;;  %v2626_v63 = vshrl.u32 %v2532_v10, 16  ;;  %v2629_v9 = vshll.u32 %v2532_v10, 16 }
 0x11b   : > { %v2604_v7 = vrot.slane %v2602_v26, 7  ;;  %v2599_v54 = vor.u32 %v2597_v39, %v2596_v45  ;;  %v2533_v23 = vsel %vm8340_vm15, 0, %v7561_v25  ;;  %vm8341_vm0 = vcmp.ne.s16.totalorder %v7335_v46, 0 }
 0x11c   : > { %v2634_v32 = vshrl.u32 %v2533_v23, 16  ;;  %v2628_v15 = vrot.slane %v2626_v63, 7  ;;  %v2637_v56 = vshll.u32 %v2533_v23, 16  ;;  %v2534_v28 = vsel %vm8341_vm0, 0, %v7571_v40 }
 0x11d   : > { %v2607_v16 = vor.u32 %v2605_v24, %v2604_v7  ;;  %v2600_v50 = vsel %vm1412_vm10, %v2588_v11, %v2599_v54  ;;  %vm8342_vm6 = vcmp.ne.s16.totalorder %v7364_v41, 0  ;;  %v2642_v0 = vshrl.u32 %v2534_v28, 16 }
 0x11e   : > { %v2636_v33 = vrot.slane %v2634_v32, 7  ;;  %v2631_v53 = vor.u32 %v2629_v9, %v2628_v15  ;;  %v2536_v6 = vsel %vm1174_vm1, 0, %v7599_v55 }
 0x11f   : > { %v2608_v13 = vsel %vm1412_vm10, %v2596_v45, %v2607_v16  ;;  %v2644_v29 = vrot.slane %v2642_v0, 7  ;;  %v2658_v61 = vshrl.u32 %v2536_v6, 16  ;;  %v2661_v39 = vshll.u32 %v2536_v6, 16 }
 0x120   : > { %5877 = vmatmul.mubr.msk.bf16.gmra.mrb[28].mxu0 %vm1202_vm2, %v3668_v14  ;;  %v2620_v14 = vrot.slane %v2618_v3, 7  ;;  %v2639_v11 = vor.u32 %v2637_v56, %v2636_v33 }
 0x121   : > { %5741 = vmatmul.mubr.msk.bf16.vlgmr.msra.gmra.mrb[0].mxu1 %vm1202_vm2, %v2552_v59  ;;  %5884 = vmatprep.mubr.msk.bf16.mxu0 %vm1202_vm2, %v7390_v20  ;;  %v2621_v59 = vshll.u32 %v2531_v43, 16  ;;  %v2660_v45 = vrot.slane %v2658_v61, 7  ;;  %v8345_v43 = vld [vmem:[#allocation9_spill] sm:$0xff] }
 0x122   : > { %5744 = vmatprep.mubr.msk.bf16.mxu1 %vm1202_vm2, %v2560_v2  ;;  %v2632_v46 = vsel %vm1412_vm10, %v2620_v14, %v2631_v53  ;;  %v2640_v41 = vsel %vm1412_vm10, %v2628_v15, %v2639_v11  ;;  %vm8346_vm8 = vcmp.ne.s16.totalorder %v8345_v43, 0  ;;  %v4131_v15 = vsel %vm2096_vm13, 0, %v7459_v12 }
 0x123   : > { %v2623_v1 = vor.u32 %v2621_v59, %v2620_v14  ;;  %v2663_v24 = vor.u32 %v2661_v39, %v2660_v45  ;;  %v4128_v54 = vsel %vm8346_vm8, 0, %v7397_v30  ;;  %v4130_v14 = vsel %vm2095_vm7, 0, %v7444_v27 }
 0x124   : > { %v4150_v3 = vshll.u32 %v4128_v54, 16  ;;  %v4154_v10 = vshrl.u32 %v4128_v54, 16  ;;  %v4166_v63 = vshll.u32 %v4130_v14, 16  ;;  %v4174_v56 = vshll.u32 %v4131_v15, 16 }
 0x125   : > { %v4178_v0 = vshrl.u32 %v4131_v15, 16  ;;  %v4140_v15 = vsel %vm2105_vm3, 0, %v7586_v44 }
 0x128   : > { %5885 = vmatmul.mubr.msk.bf16.vlgmr.msra.gmra.mrb[0].mxu0 %vm1202_vm2, %v7397_v30 }
 0x129   : > { %5745 = vmatmul.mubr.msk.bf16.gmra.mrb[4].mxu1 %vm1202_vm2, %v2568_v58  ;;  %5917 = vmatpush3.bf16.msra.mxu0 %v7502_v35  ;;  %v2530_v35 = vsel %vm8337_vm4, 0, %v7519_v4  ;;  %v2535_v58 = vsel %vm8342_vm6, 0, %v7586_v44 }
 0x12a   : > { %5888 = vmatprep.mubr.msk.bf16.mxu0 %vm1202_vm2, %v7422_v49  ;;  %5748 = vmatprep.mubr.msk.bf16.mxu1 %vm1202_vm2, %v2576_v19  ;;  %v2610_v21 = vshrl.u32 %v2530_v35, 16  ;;  %v2613_v5 = vshll.u32 %v2530_v35, 16  ;;  %v2650_v48 = vshrl.u32 %v2535_v58, 16  ;;  %v2653_v62 = vshll.u32 %v2535_v58, 16 }
 0x12b   : > { %5918 = vmatprep.subr.bf16.mxu0 %v6310_v51  ;;  %v4170_v58 = vshrl.u32 %v4130_v14, 16 }
 0x12c   : > { %v2612_v42 = vrot.slane %v2610_v21, 7  ;;  %v2652_v19 = vrot.slane %v2650_v48, 7  ;;  %v4176_v48 = vrot.slane %v4174_v56, 1 }
 0x12d   : > { %5919 = vmatpush3.bf16.msra.mxu0 %v6310_v51  ;;  %v2645_v51 = vshll.u32 %v2534_v28, 16 }
 0x12e   : > { %v2615_v2 = vor.u32 %v2613_v5, %v2612_v42  ;;  %v2624_v60 = vsel %vm1412_vm10, %v2612_v42, %v2623_v1  ;;  %v2655_v26 = vor.u32 %v2653_v62, %v2652_v19  ;;  %v2664_v21 = vsel %vm1412_vm10, %v2652_v19, %v2663_v24 }
 0x12f   : > { %v2647_v38 = vor.u32 %v2645_v51, %v2644_v29  ;;  %v4129_v42 = vsel %vm2094_vm14, 0, %v7422_v49  ;;  %v8349_v1 = vmov 0   ;;  %vm8353_vm14 = vcmp.ne.s16.totalorder %v7108_v17, 0  ;;  %v8354_v51 = vld [vmem:[#allocation14_spill] sm:$0xff] }
 0x130   : > { %5889 = vmatmul.mubr.msk.bf16.gmra.mrb[4].mxu0 %vm1202_vm2, %v7444_v27  ;;  %v2616_v52 = vsel %vm1412_vm10, %v2604_v7, %v2615_v2  ;;  %v2656_v18 = vsel %vm1412_vm10, %v2644_v29, %v2655_v26  ;;  %v4158_v59 = vshll.u32 %v4129_v42, 16  ;;  %v4162_v2 = vshrl.u32 %v4129_v42, 16  ;;  %v8351_v27 = vld [vmem:[#allocation13_spill] sm:$0xff]  ;;  %v8362_v42 = vld [vmem:[#allocation18_spill] sm:$0xff] }
 0x131   : > { %5749 = vmatmul.mubr.msk.bf16.gmra.mrb[8].mxu1 %vm1202_vm2, %v2584_v47  ;;  %5892 = vmatprep.mubr.msk.bf16.mxu0 %vm1202_vm2, %v7459_v12  ;;  %v2648_v47 = vsel %vm1412_vm10, %v2636_v33, %v2647_v38  ;;  %vm8352_vm10 = vcmp.ne.s16.totalorder %v8351_v27, 0  ;;  %v4180_v29 = vor.u32 %v4178_v0, %v4176_v48  ;;  %vm8355_vm7 = vcmp.ne.s16.totalorder %v8354_v51, 0 }
 0x132   : > { %5752 = vmatprep.mubr.msk.bf16.mxu1 %vm1202_vm2, %v2592_v34  ;;  %v8343_v34 = vld [vmem:[#allocation8_spill] sm:$0xff]  ;;  %v4160_v32 = vrot.slane %v4158_v59, 1  ;;  %v4132_v33 = vsel %vm8352_vm10, 0, %v7474_v31  ;;  %vm8363_vm11 = vcmp.ne.s16.totalorder %v8362_v42, 0 }
 0x133   : > { %vm8344_vm1 = vcmp.ne.s16.totalorder %v8343_v34, 0  ;;  %v4182_v11 = vshll.u32 %v4132_v33, 16  ;;  %v4186_v6 = vshrl.u32 %v4132_v33, 16 }
 0x134   : > { %v4127_v7 = vsel %vm8344_vm1, 0, %v7390_v20  ;;  %v4164_v9 = vor.u32 %v4162_v2, %v4160_v32  ;;  %v6311_v2 = vld [vmem:[#allocation4] sm:$0xff]  }
 0x135   : > { %v4145_v35 = vshll.u32 %v4127_v7, 16  ;;  %v4143_v16 = vshrl.u32 %v4127_v7, 16  ;;  %5952 = vmatprep.subr.bf16.mxu1 %v6311_v2 }
 0x136   : > { %5953 = vmatpush3.bf16.msra.mxu1 %v6311_v2 }
 0x137   : > { %v4147_v20 = vrot.slane %v4145_v35, 1 }
 0x138   : > { %5893 = vmatmul.mubr.msk.bf16.gmra.mrb[8].mxu0 %vm1202_vm2, %v7474_v31  ;;  %v4184_v31 = vrot.slane %v4182_v11, 1 }
 0x139   : > { %5753 = vmatmul.mubr.msk.bf16.gmra.mrb[12].mxu1 %vm1202_vm2, %v2600_v50  ;;  %5896 = vmatprep.mubr.msk.bf16.mxu0 %vm1202_vm2, %v7493_v37  ;;  %v4148_v5 = vor.u32 %v4147_v20, %v4143_v16  ;;  %v8360_v20 = vld [vmem:[#allocation17_spill] sm:$0xff] }
 0x13a   : > { %5756 = vmatprep.mubr.msk.bf16.mxu1 %vm1202_vm2, %v2608_v13  ;;  %v4152_v13 = vrot.slane %v4150_v3, 1  ;;  %v4185_v38 = vsel %vm1040_vm12, %v4180_v29, %v4184_v31  ;;  %v4188_v17 = vor.u32 %v4186_v6, %v4184_v31  ;;  %vm8361_vm5 = vcmp.ne.s16.totalorder %v8360_v20, 0 }
 0x13b   : > { %v4137_v3 = vsel %vm8361_vm5, 0, %v7547_v57 }
 0x13c   : > { %v4153_v23 = vsel %vm1040_vm12, %v4148_v5, %v4152_v13  ;;  %v4138_v5 = vsel %vm8363_vm11, 0, %v7561_v25 }
 0x13d   : > { %v4234_v27 = vshrl.u32 %v4138_v5, 16 }
 0x140   : > { %5897 = vmatmul.mubr.msk.bf16.gmra.mrb[12].mxu0 %vm1202_vm2, %v7507_v22 }
 0x141   : > { %5757 = vmatmul.mubr.msk.bf16.gmra.mrb[16].mxu1 %vm1202_vm2, %v2616_v52  ;;  %5900 = vmatprep.mubr.msk.bf16.mxu0 %vm1202_vm2, %v7519_v4  ;;  %v4156_v52 = vor.u32 %v4154_v10, %v4152_v13  ;;  %v4222_v13 = vshll.u32 %v4137_v3, 16  ;;  %v4226_v10 = vshrl.u32 %v4137_v3, 16 }
 0x142   : > { %5760 = vmatprep.mubr.msk.bf16.mxu1 %vm1202_vm2, %v2624_v60  ;;  %v4168_v60 = vrot.slane %v4166_v63, 1 }
 0x143   : > { %v4161_v28 = vsel %vm1040_vm12, %v4156_v52, %v4160_v32  ;;  %v4224_v63 = vrot.slane %v4222_v13, 1 }
 0x144   : > { %v4169_v53 = vsel %vm1040_vm12, %v4164_v9, %v4168_v60  ;;  %v4172_v12 = vor.u32 %v4170_v58, %v4168_v60 }
 0x145   : > { %v4228_v32 = vor.u32 %v4226_v10, %v4224_v63 }
 0x146   : > { %v4177_v62 = vsel %vm1040_vm12, %v4172_v12, %v4176_v48  ;;  %v4250_v12 = vshrl.u32 %v4140_v15, 16 }
 0x148   : > { %5901 = vmatmul.mubr.msk.bf16.gmra.mrb[16].mxu0 %vm1202_vm2, %v7533_v8 }
 0x149   : > { %5761 = vmatmul.mubr.msk.bf16.gmra.mrb[20].mxu1 %vm1202_vm2, %v2632_v46  ;;  %5904 = vmatprep.mubr.msk.bf16.mxu0 %vm1202_vm2, %v7547_v57  ;;  %v4133_v46 = vsel %vm8353_vm14, 0, %v7493_v37  ;;  %v8356_v37 = vld [vmem:[#allocation15_spill] sm:$0xff] }
 0x14a   : > { %5764 = vmatprep.mubr.msk.bf16.mxu1 %vm1202_vm2, %v2640_v41  ;;  %v4134_v41 = vsel %vm8355_vm7, 0, %v7507_v22  ;;  %v4190_v19 = vshll.u32 %v4133_v46, 16  ;;  %v4194_v61 = vshrl.u32 %v4133_v46, 16  ;;  %vm8357_vm13 = vcmp.ne.s16.totalorder %v8356_v37, 0 }
 0x14b   : > { %v4198_v26 = vshll.u32 %v4134_v41, 16  ;;  %v4135_v45 = vsel %vm8357_vm13, 0, %v7519_v4  ;;  %v4202_v35 = vshrl.u32 %v4134_v41, 16 }
 0x14c   : > { %v4206_v7 = vshll.u32 %v4135_v45, 16  ;;  %v4210_v54 = vshrl.u32 %v4135_v45, 16 }
 0x14d   : > { %v4200_v22 = vrot.slane %v4198_v26, 1 }
 0x14e   : > { %v4208_v16 = vrot.slane %v4206_v7, 1 }
 0x14f   : > { %v4204_v4 = vor.u32 %v4202_v35, %v4200_v22 }
 0x150   : > { %5905 = vmatmul.mubr.msk.bf16.gmra.mrb[20].mxu0 %vm1202_vm2, %v7561_v25  ;;  %v4212_v50 = vor.u32 %v4210_v54, %v4208_v16  ;;  %v4139_v25 = vsel %vm2104_vm9, 0, %v7571_v40  ;;  %vm8366_vm9 = vcmp.ne.s16.totalorder %v7347_v36, 0  ;;  %v8367_v36 = vld [vmem:[#allocation21_spill] sm:$0xff] }
 0x151   : > { %5765 = vmatmul.mubr.msk.bf16.gmra.mrb[24].mxu1 %vm1202_vm2, %v2648_v47  ;;  %5908 = vmatprep.mubr.msk.bf16.mxu0 %vm1202_vm2, %v7571_v40  ;;  %v4192_v47 = vrot.slane %v4190_v19, 1  ;;  %v4209_v30 = vsel %vm1040_vm12, %v4204_v4, %v4208_v16  ;;  %v4238_v9 = vshll.u32 %v4139_v25, 16  ;;  %v4242_v56 = vshrl.u32 %v4139_v25, 16 }
 0x152   : > { %5768 = vmatprep.mubr.msk.bf16.mxu1 %vm1202_vm2, %v2656_v18  ;;  %v8358_v18 = vld [vmem:[#allocation16_spill] sm:$0xff] }
 0x153   : > { %v4196_v39 = vor.u32 %v4194_v61, %v4192_v47  ;;  %vm8359_vm4 = vcmp.ne.s16.totalorder %v8358_v18, 0  ;;  %v4193_v24 = vsel %vm1040_vm12, %v4188_v17, %v4192_v47  ;;  %v4240_v58 = vrot.slane %v4238_v9, 1 }
 0x154   : > { %v4136_v34 = vsel %vm8359_vm4, 0, %v7533_v8 }
 0x155   : > { %v4201_v43 = vsel %vm1040_vm12, %v4196_v39, %v4200_v22  ;;  %v4218_v14 = vshrl.u32 %v4136_v34, 16  ;;  %v4244_v0 = vor.u32 %v4242_v56, %v4240_v58 }
 0x158   : > { %5909 = vmatmul.mubr.msk.bf16.gmra.mrb[24].mxu0 %vm1202_vm2, %v7586_v44 }
 0x159   : > { %5769 = vmatmul.mubr.msk.bf16.gmra.mrb[28].mxu1 %vm1202_vm2, %v2664_v21  ;;  %5912 = vmatprep.mubr.msk.bf16.mxu0 %vm1202_vm2, %v7599_v55  ;;  %v4214_v21 = vshll.u32 %v4136_v34, 16 }
 0x15b   : > { %v4216_v8 = vrot.slane %v4214_v21, 1 }
 0x15d   : > { %v4217_v59 = vsel %vm1040_vm12, %v4212_v50, %v4216_v8  ;;  %v4220_v57 = vor.u32 %v4218_v14, %v4216_v8 }
 0x15f   : > { %v4225_v60 = vsel %vm1040_vm12, %v4220_v57, %v4224_v63  ;;  %v7869_v63 = vld [vmem:[%s8219_s2] ss:$0 sm:$0xff] }
 0x160   : > { %5913 = vmatmul.mubr.bf16.gmra.mrb[28].mxu0 %v8349_v1 }
 0x161   : > { %5920 = vmatprep.mubr.msk.bf16.mxu0 %vm1202_vm2, %v4153_v23  ;;  %v4230_v23 = vshll.u32 %v4138_v5, 16 }
 0x163   : > { %v4232_v52 = vrot.slane %v4230_v23, 1 }
 0x165   : > { %v4233_v33 = vsel %vm1040_vm12, %v4228_v32, %v4232_v52  ;;  %v4236_v40 = vor.u32 %v4234_v27, %v4232_v52 }
 0x167   : > { %v4241_v48 = vsel %vm1040_vm12, %v4236_v40, %v4240_v58 }
 0x168   : > { %5921 = vmatmul.mubr.msk.bf16.vlgmr.msra.gmra.mrb[0].mxu0 %vm1202_vm2, %v4161_v28  ;;  %v4246_v28 = vshll.u32 %v4140_v15, 16 }
 0x169   : > { %5924 = vmatprep.mubr.msk.bf16.mxu0 %vm1202_vm2, %v4169_v53  ;;  %v4141_v53 = vsel %vm8366_vm9, 0, %v7599_v55 }
 0x16a   : > { %v4248_v44 = vrot.slane %v4246_v28, 1  ;;  %v4254_v11 = vshll.u32 %v4141_v53, 16  ;;  %v4258_v29 = vshrl.u32 %v4141_v53, 16 }
 0x16c   : > { %v4249_v46 = vsel %vm1040_vm12, %v4244_v0, %v4248_v44  ;;  %v4256_v31 = vrot.slane %v4254_v11, 1  ;;  %v4252_v51 = vor.u32 %v4250_v12, %v4248_v44 }
 0x16e   : > { %v4260_v41 = vor.u32 %v4258_v29, %v4256_v31  ;;  %v4257_v19 = vsel %vm1040_vm12, %v4252_v51, %v4256_v31 }
 0x170   : > { %5925 = vmatmul.mubr.msk.bf16.gmra.mrb[4].mxu0 %vm1202_vm2, %v4177_v62  ;;  %v4261_v55 = vsel %vm1040_vm12, %v4260_v41, %v8367_v36  ;;  %v6312_v62 = vld [vmem:[#allocation4 + $0x8] sm:$0xff]  }
 0x171   : > { %5928 = vmatprep.mubr.msk.bf16.mxu0 %vm1202_vm2, %v4185_v38  ;;  %5954 = vmatprep.subr.bf16.mxu1 %v6312_v62 }
 0x172   : > { %5955 = vmatpush3.bf16.msra.mxu1 %v6312_v62 }
 0x178   : > { %5929 = vmatmul.mubr.msk.bf16.gmra.mrb[8].mxu0 %vm1202_vm2, %v4193_v24 }
 0x179   : > { %5932 = vmatprep.mubr.msk.bf16.mxu0 %vm1202_vm2, %v4201_v43 }
 0x180   : > { %5933 = vmatmul.mubr.msk.bf16.gmra.mrb[12].mxu0 %vm1202_vm2, %v4209_v30 }
 0x181   : > { %5936 = vmatprep.mubr.msk.bf16.mxu0 %vm1202_vm2, %v4217_v59 }
 0x188   : > { %5937 = vmatmul.mubr.msk.bf16.gmra.mrb[16].mxu0 %vm1202_vm2, %v4225_v60 }
 0x189   : > { %5940 = vmatprep.mubr.msk.bf16.mxu0 %vm1202_vm2, %v4233_v33 }
 0x190   : > { %5941 = vmatmul.mubr.msk.bf16.gmra.mrb[20].mxu0 %vm1202_vm2, %v4241_v48 }
 0x191   : > { %5944 = vmatprep.mubr.msk.bf16.mxu0 %vm1202_vm2, %v4249_v46 }
 0x198   : > { %5945 = vmatmul.mubr.msk.bf16.gmra.mrb[24].mxu0 %vm1202_vm2, %v4257_v19 }
 0x199   : > { %5948 = vmatprep.mubr.msk.bf16.mxu0 %vm1202_vm2, %v4261_v55 }
 0x1a0   : > { %5949 = vmatmul.mubr.msk.bf16.gmra.mrb[28].mxu0 %vm1202_vm2, %v8367_v36 }
 0x1f4   : > { %v5742_v6 = vpop.f32.mrb[0].mxu1 }
 0x1f5   : > { %v2759_v38 = vpop.f32.mrb[1].mxu1 }
 0x1f6   : > { %v5743_v61 = vpop.f32.mrb[2].mxu1 }
 0x1f7   : > { %v2762_v26 = vpop.f32.mrb[3].mxu1 }
 0x1fc   : > { %v5746_v47 = vpop.f32.mrb[4].mxu1 }
 0x1fd   : > { %v2775_v17 = vpop.f32.mrb[5].mxu1 }
 0x1fe   : > { %v5747_v37 = vpop.f32.mrb[6].mxu1 }
 0x1ff   : > { %v2778_v45 = vpop.f32.mrb[7].mxu1 }
 0x204   : > { %v7818_v39 = vpop.f32.mrb[8].mxu1 }
 0x205   : > { %v7820_v22 = vpop.f32.mrb[9].mxu1 }
 0x206   : > { %v7822_v18 = vpop.f32.mrb[10].mxu1 }
 0x207   : > { %v7824_v34 = vpop.f32.mrb[11].mxu1 }
 0x20c   : > { %v7826_v7 = vpop.f32.mrb[12].mxu1 }
 0x20d   : > { %v7828_v24 = vpop.f32.mrb[13].mxu1 }
 0x20e   : > { %v7830_v35 = vpop.f32.mrb[14].mxu1 }
 0x20f   : > { %v7832_v43 = vpop.f32.mrb[15].mxu1 }
 0x214   : > { %v7834_v54 = vpop.f32.mrb[16].mxu1 }
 0x215   : > { %v7836_v21 = vpop.f32.mrb[17].mxu1 }
 0x216   : > { %v7838_v16 = vpop.f32.mrb[18].mxu1 }
 0x217   : > { %v7840_v4 = vpop.f32.mrb[19].mxu1 }
 0x21c   : > { %v7842_v20 = vpop.f32.mrb[20].mxu1 }
 0x21d   : > { %v7844_v3 = vpop.f32.mrb[21].mxu1 }
 0x21e   : > { %v7846_v50 = vpop.f32.mrb[22].mxu1 }
 0x21f   : > { %v7848_v8 = vpop.f32.mrb[23].mxu1 }
 0x224   : > { %v7850_v42 = vpop.f32.mrb[24].mxu1 }
 0x225   : > { %v7852_v5 = vpop.f32.mrb[25].mxu1 }
 0x226   : > { %v7854_v13 = vpop.f32.mrb[26].mxu1 }
 0x227   : > { %v7856_v30 = vpop.f32.mrb[27].mxu1 }
 0x22c   : > { %v7858_v14 = vpop.f32.mrb[28].mxu1 }
 0x22d   : > { %v7860_v59 = vpop.f32.mrb[29].mxu1 }
 0x22e   : > { %v7862_v10 = vpop.f32.mrb[30].mxu1 }
 0x22f   : > { %v7864_v23 = vpop.f32.mrb[31].mxu1 }
 0x23b   : > { %v5922_v2 = vpop.f32.mrb[0].mxu0 }
 0x23c   : > { %v5988_v57 = vadd.f32 %v5922_v2, %v5742_v6  ;;  %v4357_v1 = vpop.f32.mrb[1].mxu0 }
 0x23d   : > { %v5989_v25 = vadd.f32 %v4357_v1, %v2759_v38  ;;  %v5923_v32 = vpop.f32.mrb[2].mxu0 }
 0x23e   : > { %v4525_v52 = vadd.f32 %v5988_v57, %v7869_v63  ;;  %v5990_v49 = vadd.f32 %v5923_v32, %v5743_v61  ;;  %v4360_v15 = vpop.f32.mrb[3].mxu0 }
 0x23f   : > { %v4523_v9 = vadd.f32 %v5989_v25, %v7869_v63  ;;  %v5991_v60 = vadd.f32 %v4360_v15, %v2762_v26 }
 0x240   : > { %v4526_v27 = vadd.f32 %v5990_v49, %v7869_v63  ;;  %v4557_v56 = vmax.f32 %v4525_v52, 0.0 }
 0x241   : > { %v4524_v33 = vadd.f32 %v5991_v60, %v7869_v63  ;;  %v4555_v58 = vmax.f32 %v4523_v9, 0.0 }
 0x242   : > { %v4558_v28 = vmax.f32 %v4526_v27, 0.0 }
 0x243   : > { %v4556_v40 = vmax.f32 %v4524_v33, 0.0  ;;  %v5926_v53 = vpop.f32.mrb[4].mxu0 }
 0x244   : > { %v4588_v0 = vpack.c.bf16 %v4558_v28, %v4557_v56  ;;  %v5992_v44 = vadd.f32 %v5926_v53, %v5746_v47  ;;  %v4373_v11 = vpop.f32.mrb[5].mxu0 }
 0x245   : > { %v4587_v48 = vpack.c.bf16 %v4556_v40, %v4555_v58  ;;  %v5993_v12 = vadd.f32 %v4373_v11, %v2775_v17  ;;  %v5927_v46 = vpop.f32.mrb[6].mxu0 }
 0x246   : > { %v4529_v29 = vadd.f32 %v5992_v44, %v7869_v63  ;;  %v5994_v31 = vadd.f32 %v5927_v46, %v5747_v37  ;;  %v4376_v51 = vpop.f32.mrb[7].mxu0 }
 0x247   : > { %v4527_v41 = vadd.f32 %v5993_v12, %v7869_v63  ;;  %v5995_v19 = vadd.f32 %v4376_v51, %v2778_v45  ;;  %5956 = vmatprep.mubr.msk.bf16.mxu1 %vm1202_vm2, %v4587_v48 }
 0x248   : > { %v4530_v36 = vadd.f32 %v5994_v31, %v7869_v63  ;;  %5957 = vmatmul.mubr.msk.bf16.vlgmr.msra.gmra.mrb[32].mxu1 %vm1202_vm2, %v4588_v0  ;;  %v4561_v62 = vmax.f32 %v4529_v29, 0.0 }
 0x249   : > { %v4528_v55 = vadd.f32 %v5995_v19, %v7869_v63  ;;  %v4559_v38 = vmax.f32 %v4527_v41, 0.0 }
 0x24a   : > { %v4562_v6 = vmax.f32 %v4530_v36, 0.0 }
 0x24b   : > { %v4560_v61 = vmax.f32 %v4528_v55, 0.0  ;;  %v5930_v26 = vpop.f32.mrb[8].mxu0 }
 0x24c   : > { %v4590_v47 = vpack.c.bf16 %v4562_v6, %v4561_v62  ;;  %v5996_v17 = vadd.f32 %v5930_v26, %v7818_v39  ;;  %v4389_v37 = vpop.f32.mrb[9].mxu0 }
 0x24d   : > { %v4589_v2 = vpack.c.bf16 %v4560_v61, %v4559_v38  ;;  %v5997_v45 = vadd.f32 %v4389_v37, %v7820_v22  ;;  %v5931_v57 = vpop.f32.mrb[10].mxu0 }
 0x24e   : > { %v4533_v1 = vadd.f32 %v5996_v17, %v7869_v63  ;;  %v5998_v25 = vadd.f32 %v5931_v57, %v7822_v18  ;;  %v4392_v32 = vpop.f32.mrb[11].mxu0 }
 0x24f   : > { %v4531_v52 = vadd.f32 %v5997_v45, %v7869_v63  ;;  %v5999_v49 = vadd.f32 %v4392_v32, %v7824_v34  ;;  %5960 = vmatprep.mubr.msk.bf16.mxu1 %vm1202_vm2, %v4589_v2 }
 0x250   : > { %v4534_v15 = vadd.f32 %v5998_v25, %v7869_v63  ;;  %5961 = vmatmul.mubr.msk.bf16.gmra.mrb[36].mxu1 %vm1202_vm2, %v4590_v47  ;;  %v4565_v9 = vmax.f32 %v4533_v1, 0.0 }
 0x251   : > { %v4532_v39 = vadd.f32 %v5999_v49, %v7869_v63  ;;  %v4563_v60 = vmax.f32 %v4531_v52, 0.0 }
 0x252   : > { %v4566_v22 = vmax.f32 %v4534_v15, 0.0 }
 0x253   : > { %v4564_v27 = vmax.f32 %v4532_v39, 0.0  ;;  %v5934_v33 = vpop.f32.mrb[12].mxu0 }
 0x254   : > { %v4592_v56 = vpack.c.bf16 %v4566_v22, %v4565_v9  ;;  %v6000_v18 = vadd.f32 %v5934_v33, %v7826_v7  ;;  %v4405_v28 = vpop.f32.mrb[13].mxu0 }
 0x255   : > { %v4591_v58 = vpack.c.bf16 %v4564_v27, %v4563_v60  ;;  %v6001_v34 = vadd.f32 %v4405_v28, %v7828_v24  ;;  %v5935_v40 = vpop.f32.mrb[14].mxu0 }
 0x256   : > { %v4537_v53 = vadd.f32 %v6000_v18, %v7869_v63  ;;  %v6002_v0 = vadd.f32 %v5935_v40, %v7830_v35  ;;  %v4408_v44 = vpop.f32.mrb[15].mxu0 }
 0x257   : > { %v4535_v11 = vadd.f32 %v6001_v34, %v7869_v63  ;;  %v6003_v48 = vadd.f32 %v4408_v44, %v7832_v43  ;;  %5964 = vmatprep.mubr.msk.bf16.mxu1 %vm1202_vm2, %v4591_v58 }
 0x258   : > { %v4538_v12 = vadd.f32 %v6002_v0, %v7869_v63  ;;  %5965 = vmatmul.mubr.msk.bf16.gmra.mrb[40].mxu1 %vm1202_vm2, %v4592_v56  ;;  %v4569_v46 = vmax.f32 %v4537_v53, 0.0 }
 0x259   : > { %v4536_v7 = vadd.f32 %v6003_v48, %v7869_v63  ;;  %v4567_v29 = vmax.f32 %v4535_v11, 0.0 }
 0x25a   : > { %v4570_v24 = vmax.f32 %v4538_v12, 0.0 }
 0x25b   : > { %v4568_v31 = vmax.f32 %v4536_v7, 0.0  ;;  %v5938_v51 = vpop.f32.mrb[16].mxu0 }
 0x25c   : > { %v4594_v41 = vpack.c.bf16 %v4570_v24, %v4569_v46  ;;  %v6004_v35 = vadd.f32 %v5938_v51, %v7834_v54  ;;  %v4421_v19 = vpop.f32.mrb[17].mxu0 }
 0x25d   : > { %v4593_v36 = vpack.c.bf16 %v4568_v31, %v4567_v29  ;;  %v6005_v43 = vadd.f32 %v4421_v19, %v7836_v21  ;;  %v5939_v55 = vpop.f32.mrb[18].mxu0 }
 0x25e   : > { %v4541_v62 = vadd.f32 %v6004_v35, %v7869_v63  ;;  %v6006_v6 = vadd.f32 %v5939_v55, %v7838_v16  ;;  %v4424_v38 = vpop.f32.mrb[19].mxu0 }
 0x25f   : > { %v4539_v61 = vadd.f32 %v6005_v43, %v7869_v63  ;;  %v6007_v26 = vadd.f32 %v4424_v38, %v7840_v4  ;;  %5968 = vmatprep.mubr.msk.bf16.mxu1 %vm1202_vm2, %v4593_v36 }
 0x260   : > { %v4542_v47 = vadd.f32 %v6006_v6, %v7869_v63  ;;  %5969 = vmatmul.mubr.msk.bf16.gmra.mrb[44].mxu1 %vm1202_vm2, %v4594_v41  ;;  %v4573_v17 = vmax.f32 %v4541_v62, 0.0 }
 0x261   : > { %v4540_v54 = vadd.f32 %v6007_v26, %v7869_v63  ;;  %v4571_v37 = vmax.f32 %v4539_v61, 0.0 }
 0x262   : > { %v4574_v21 = vmax.f32 %v4542_v47, 0.0 }
 0x263   : > { %v4572_v2 = vmax.f32 %v4540_v54, 0.0  ;;  %v5942_v45 = vpop.f32.mrb[20].mxu0 }
 0x264   : > { %v4596_v57 = vpack.c.bf16 %v4574_v21, %v4573_v17  ;;  %v6008_v16 = vadd.f32 %v5942_v45, %v7842_v20  ;;  %v4437_v1 = vpop.f32.mrb[21].mxu0 }
 0x265   : > { %v4595_v25 = vpack.c.bf16 %v4572_v2, %v4571_v37  ;;  %v6009_v4 = vadd.f32 %v4437_v1, %v7844_v3  ;;  %v5943_v32 = vpop.f32.mrb[22].mxu0 }
 0x266   : > { %v4545_v52 = vadd.f32 %v6008_v16, %v7869_v63  ;;  %v6010_v49 = vadd.f32 %v5943_v32, %v7846_v50  ;;  %v4440_v15 = vpop.f32.mrb[23].mxu0 }
 0x267   : > { %v4543_v39 = vadd.f32 %v6009_v4, %v7869_v63  ;;  %v6011_v9 = vadd.f32 %v4440_v15, %v7848_v8  ;;  %5972 = vmatprep.mubr.msk.bf16.mxu1 %vm1202_vm2, %v4595_v25 }
 0x268   : > { %v4546_v22 = vadd.f32 %v6010_v49, %v7869_v63  ;;  %5973 = vmatmul.mubr.msk.bf16.gmra.mrb[48].mxu1 %vm1202_vm2, %v4596_v57  ;;  %v4577_v60 = vmax.f32 %v4545_v52, 0.0 }
 0x269   : > { %v4544_v20 = vadd.f32 %v6011_v9, %v7869_v63  ;;  %v4575_v27 = vmax.f32 %v4543_v39, 0.0 }
 0x26a   : > { %v4578_v3 = vmax.f32 %v4546_v22, 0.0 }
 0x26b   : > { %v4576_v33 = vmax.f32 %v4544_v20, 0.0  ;;  %v5946_v56 = vpop.f32.mrb[24].mxu0 }
 0x26c   : > { %v4598_v18 = vpack.c.bf16 %v4578_v3, %v4577_v60  ;;  %v6012_v50 = vadd.f32 %v5946_v56, %v7850_v42  ;;  %v4453_v28 = vpop.f32.mrb[25].mxu0 }
 0x26d   : > { %v4597_v58 = vpack.c.bf16 %v4576_v33, %v4575_v27  ;;  %v6013_v8 = vadd.f32 %v4453_v28, %v7852_v5  ;;  %v5947_v34 = vpop.f32.mrb[26].mxu0 }
 0x26e   : > { %v4549_v40 = vadd.f32 %v6012_v50, %v7869_v63  ;;  %v6014_v53 = vadd.f32 %v5947_v34, %v7854_v13  ;;  %v4456_v0 = vpop.f32.mrb[27].mxu0 }
 0x26f   : > { %v4547_v44 = vadd.f32 %v6013_v8, %v7869_v63  ;;  %v6015_v11 = vadd.f32 %v4456_v0, %v7856_v30  ;;  %5976 = vmatprep.mubr.msk.bf16.mxu1 %vm1202_vm2, %v4597_v58 }
 0x270   : > { %v4550_v48 = vadd.f32 %v6014_v53, %v7869_v63  ;;  %5977 = vmatmul.mubr.msk.bf16.gmra.mrb[52].mxu1 %vm1202_vm2, %v4598_v18  ;;  %v4581_v12 = vmax.f32 %v4549_v40, 0.0 }
 0x271   : > { %v4548_v42 = vadd.f32 %v6015_v11, %v7869_v63  ;;  %v4579_v7 = vmax.f32 %v4547_v44, 0.0 }
 0x272   : > { %v4582_v5 = vmax.f32 %v4550_v48, 0.0 }
 0x273   : > { %v4580_v46 = vmax.f32 %v4548_v42, 0.0  ;;  %v5950_v24 = vpop.f32.mrb[28].mxu0 }
 0x274   : > { %v4600_v29 = vpack.c.bf16 %v4582_v5, %v4581_v12  ;;  %v6016_v13 = vadd.f32 %v5950_v24, %v7858_v14  ;;  %v4469_v31 = vpop.f32.mrb[29].mxu0  ;;  %v8368_v24 = vlaneseq }
 0x275   : > { %v4599_v51 = vpack.c.bf16 %v4580_v46, %v4579_v7  ;;  %v6017_v30 = vadd.f32 %v4469_v31, %v7860_v59  ;;  %v5951_v41 = vpop.f32.mrb[30].mxu0 }
 0x276   : > { %v4553_v35 = vadd.f32 %v6016_v13, %v7869_v63  ;;  %v6018_v19 = vadd.f32 %v5951_v41, %v7862_v10  ;;  %v4472_v36 = vpop.f32.mrb[31].mxu0  ;;  %v7946_v10 = vld [vmem:[%s8221_s4] ss:$0 sm:$0xff] }
 0x277   : > { %v4551_v43 = vadd.f32 %v6017_v30, %v7869_v63  ;;  %v6019_v55 = vadd.f32 %v4472_v36, %v7864_v23  ;;  %5980 = vmatprep.mubr.msk.bf16.mxu1 %vm1202_vm2, %v4599_v51 }
 0x278   : > { %v4554_v62 = vadd.f32 %v6018_v19, %v7869_v63  ;;  %5981 = vmatmul.mubr.msk.bf16.gmra.mrb[56].mxu1 %vm1202_vm2, %v4600_v29  ;;  %v4585_v6 = vmax.f32 %v4553_v35, 0.0  ;;  %v7996_v29 = vand.u32 127, %v8368_v24 }
 0x279   : > { %v4552_v14 = vadd.f32 %v6019_v55, %v7869_v63  ;;  %v4583_v38 = vmax.f32 %v4551_v43, 0.0 }
 0x27a   : > { %v4586_v59 = vmax.f32 %v4554_v62, 0.0 }
 0x27b   : > { %v4584_v61 = vmax.f32 %v4552_v14, 0.0 }
 0x27c   : > { %v4602_v26 = vpack.c.bf16 %v4586_v59, %v4585_v6 }
 0x27d   : > { %v4601_v47 = vpack.c.bf16 %v4584_v61, %v4583_v38 }
 0x27f   : > { %5984 = vmatprep.mubr.msk.bf16.mxu1 %vm1202_vm2, %v4601_v47 }
 0x280   : > { %5985 = vmatmul.mubr.msk.bf16.gmra.mrb[60].mxu1 %vm1202_vm2, %v4602_v26  ;;  %vm4837_vm2 = vcmp.lt.s32.totalorder %v7996_v29, 3 }
 0x31b   : > { %v5958_v23 = vpop.f32.mrb[32].mxu1 }
 0x31c   : > { %v7949_v54 = vadd.f32 %v5958_v23, %v7946_v10  ;;  %v4708_v63 = vpop.f32.mrb[33].mxu1 }
 0x31d   : > { %v7952_v17 = vadd.f32 %v7946_v10, %v4708_v63  ;;  %v5959_v21 = vpop.f32.mrb[34].mxu1 }
 0x31e   : > { %v5414_v37 = vmul.f32 -1.442695, %v7949_v54  ;;  %v7956_v2 = vadd.f32 %v5959_v21, %v7946_v10  ;;  %v4711_v45 = vpop.f32.mrb[35].mxu1 }
 0x31f   : > { %v5412_v57 = vmul.f32 -1.442695, %v7952_v17  ;;  %v7960_v16 = vadd.f32 %v7946_v10, %v4711_v45 }
 0x320   : > { %6313 = vpow2.f32 %v5414_v37  ;;  %v5415_v1 = vmul.f32 -1.442695, %v7956_v2 }
 0x321   : > { %6315 = vpow2.f32 %v5412_v57  ;;  %v5413_v25 = vmul.f32 -1.442695, %v7960_v16 }
 0x322   : > { %6317 = vpow2.f32 %v5415_v1 }
 0x323   : > { %6319 = vpow2.f32 %v5413_v25  ;;  %v5962_v4 = vpop.f32.mrb[36].mxu1 }
 0x324   : > { %v7965_v32 = vadd.f32 %v5962_v4, %v7946_v10  ;;  %v4724_v52 = vpop.f32.mrb[37].mxu1 }
 0x325   : > { %v7968_v49 = vadd.f32 %v7946_v10, %v4724_v52  ;;  %v5963_v15 = vpop.f32.mrb[38].mxu1 }
 0x326   : > { %v5418_v39 = vmul.f32 -1.442695, %v7965_v32  ;;  %v7972_v9 = vadd.f32 %v5963_v15, %v7946_v10  ;;  %v4727_v22 = vpop.f32.mrb[39].mxu1 }
 0x327   : > { %v5416_v20 = vmul.f32 -1.442695, %v7968_v49  ;;  %v7976_v60 = vadd.f32 %v7946_v10, %v4727_v22 }
 0x328   : > { %6321 = vpow2.f32 %v5418_v39  ;;  %v5419_v3 = vmul.f32 -1.442695, %v7972_v9 }
 0x329   : > { %6323 = vpow2.f32 %v5416_v20  ;;  %v5417_v27 = vmul.f32 -1.442695, %v7976_v60 }
 0x32a   : > { %v6314_v33 = vpop.eup %6313  ;;  %6325 = vpow2.f32 %v5419_v3 }
 0x32b   : > { %v6316_v56 = vpop.eup %6315  ;;  %v4936_v18 = vadd.f32 1.0, %v6314_v33  ;;  %6327 = vpow2.f32 %v5417_v27  ;;  %v5966_v50 = vpop.f32.mrb[40].mxu1 }
 0x32c   : > { %v6318_v28 = vpop.eup %6317  ;;  %v4934_v58 = vadd.f32 1.0, %v6316_v56  ;;  %v7981_v8 = vadd.f32 %v5966_v50, %v7946_v10  ;;  %v4740_v34 = vpop.f32.mrb[41].mxu1 }
 0x32d   : > { %v6320_v40 = vpop.eup %6319  ;;  %6329 = vrcp.f32 %v4936_v18  ;;  %v4937_v53 = vadd.f32 1.0, %v6318_v28  ;;  %v7984_v0 = vadd.f32 %v7946_v10, %v4740_v34  ;;  %v5967_v44 = vpop.f32.mrb[42].mxu1 }
 0x32e   : > { %6331 = vrcp.f32 %v4934_v58  ;;  %v4935_v11 = vadd.f32 1.0, %v6320_v40  ;;  %v5422_v48 = vmul.f32 -1.442695, %v7981_v8  ;;  %v7988_v42 = vadd.f32 %v5967_v44, %v7946_v10  ;;  %v4743_v12 = vpop.f32.mrb[43].mxu1 }
 0x32f   : > { %6333 = vrcp.f32 %v4937_v53  ;;  %v5420_v5 = vmul.f32 -1.442695, %v7984_v0  ;;  %v7992_v7 = vadd.f32 %v7946_v10, %v4743_v12 }
 0x330   : > { %6335 = vrcp.f32 %v4935_v11  ;;  %v5423_v46 = vmul.f32 -1.442695, %v7988_v42 }
 0x331   : > { %6337 = vpow2.f32 %v5422_v48  ;;  %v5421_v13 = vmul.f32 -1.442695, %v7992_v7 }
 0x332   : > { %v6322_v31 = vpop.eup %6321  ;;  %6339 = vpow2.f32 %v5420_v5 }
 0x333   : > { %v6324_v51 = vpop.eup %6323  ;;  %v4940_v30 = vadd.f32 1.0, %v6322_v31  ;;  %6341 = vpow2.f32 %v5423_v46  ;;  %v5970_v41 = vpop.f32.mrb[44].mxu1 }
 0x334   : > { %v6326_v35 = vpop.eup %6325  ;;  %v4938_v19 = vadd.f32 1.0, %v6324_v51  ;;  %6343 = vpow2.f32 %v5421_v13  ;;  %v8001_v36 = vadd.f32 %v5970_v41, %v7946_v10  ;;  %v4756_v43 = vpop.f32.mrb[45].mxu1 }
 0x335   : > { %v6328_v55 = vpop.eup %6327  ;;  %6345 = vrcp.f32 %v4940_v30  ;;  %v4941_v62 = vadd.f32 1.0, %v6326_v35  ;;  %v8005_v14 = vadd.f32 %v7946_v10, %v4756_v43  ;;  %v5971_v6 = vpop.f32.mrb[46].mxu1 }
 0x336   : > { %6347 = vrcp.f32 %v4938_v19  ;;  %v4939_v59 = vadd.f32 1.0, %v6328_v55  ;;  %v5426_v38 = vmul.f32 -1.442695, %v8001_v36  ;;  %v8014_v61 = vadd.f32 %v5971_v6, %v7946_v10  ;;  %v4759_v26 = vpop.f32.mrb[47].mxu1 }
 0x337   : > { %v6330_v47 = vpop.eup %6329  ;;  %6349 = vrcp.f32 %v4941_v62  ;;  %v5424_v23 = vmul.f32 -1.442695, %v8005_v14  ;;  %v8018_v63 = vadd.f32 %v7946_v10, %v4759_v26 }
 0x338   : > { %v6332_v21 = vpop.eup %6331  ;;  %v5032_v37 = vsel %vm4837_vm2, %v6330_v47, %v7949_v54  ;;  %6351 = vrcp.f32 %v4939_v59  ;;  %v5427_v45 = vmul.f32 -1.442695, %v8014_v61 }
 0x339   : > { %v6334_v57 = vpop.eup %6333  ;;  %5064 = vst [vmem:[%s8010_s10 + $0x10] sm:$0xff] %v5032_v37  ;;  %v5030_v1 = vsel %vm4837_vm2, %v6332_v21, %v7952_v17  ;;  %6353 = vpow2.f32 %v5426_v38  ;;  %v5425_v25 = vmul.f32 -1.442695, %v8018_v63 }
 0x33a   : > { %v6336_v4 = vpop.eup %6335  ;;  %5062 = vst [vmem:[%s8010_s10] sm:$0xff] %v5030_v1  ;;  %v5033_v52 = vsel %vm4837_vm2, %v6334_v57, %v7956_v2  ;;  %6355 = vpow2.f32 %v5424_v23 }
 0x33b   : > { %v6338_v54 = vpop.eup %6337  ;;  %5065 = vst [vmem:[%s8010_s10 + $0x18] sm:$0xff] %v5033_v52  ;;  %v5031_v15 = vsel %vm4837_vm2, %v6336_v4, %v7960_v16  ;;  %6357 = vpow2.f32 %v5427_v45  ;;  %v5974_v39 = vpop.f32.mrb[48].mxu1 }
 0x33c   : > { %v6340_v22 = vpop.eup %6339  ;;  %5063 = vst [vmem:[%s8010_s10 + $0x8] sm:$0xff] %v5031_v15  ;;  %v4944_v17 = vadd.f32 1.0, %v6338_v54  ;;  %6359 = vpow2.f32 %v5425_v25  ;;  %v8039_v20 = vadd.f32 %v5974_v39, %v7946_v10  ;;  %v4772_v3 = vpop.f32.mrb[49].mxu1 }
 0x33d   : > { %v6342_v27 = vpop.eup %6341  ;;  %v4942_v33 = vadd.f32 1.0, %v6340_v22  ;;  %v8042_v2 = vadd.f32 %v7946_v10, %v4772_v3  ;;  %v5975_v56 = vpop.f32.mrb[50].mxu1 }
 0x33e   : > { %v6344_v18 = vpop.eup %6343  ;;  %6361 = vrcp.f32 %v4944_v17  ;;  %v4945_v16 = vadd.f32 1.0, %v6342_v27  ;;  %v5430_v50 = vmul.f32 -1.442695, %v8039_v20  ;;  %v8046_v28 = vadd.f32 %v5975_v56, %v7946_v10  ;;  %v4775_v58 = vpop.f32.mrb[51].mxu1 }
 0x33f   : > { %v6346_v34 = vpop.eup %6345  ;;  %6363 = vrcp.f32 %v4942_v33  ;;  %v4943_v40 = vadd.f32 1.0, %v6344_v18  ;;  %v5428_v53 = vmul.f32 -1.442695, %v8042_v2  ;;  %v8050_v44 = vadd.f32 %v7946_v10, %v4775_v58 }
 0x340   : > { %v6348_v11 = vpop.eup %6347  ;;  %v5036_v48 = vsel %vm4837_vm2, %v6346_v34, %v7965_v32  ;;  %6365 = vrcp.f32 %v4945_v16  ;;  %v5431_v12 = vmul.f32 -1.442695, %v8046_v28 }
 0x341   : > { %v6350_v5 = vpop.eup %6349  ;;  %5068 = vst [vmem:[%s8010_s10 + $0x30] sm:$0xff] %v5036_v48  ;;  %v5034_v46 = vsel %vm4837_vm2, %v6348_v11, %v7968_v49  ;;  %6367 = vrcp.f32 %v4943_v40  ;;  %v5429_v24 = vmul.f32 -1.442695, %v8050_v44 }
 0x342   : > { %v6352_v13 = vpop.eup %6351  ;;  %5066 = vst [vmem:[%s8010_s10 + $0x20] sm:$0xff] %v5034_v46  ;;  %v5037_v31 = vsel %vm4837_vm2, %v6350_v5, %v7972_v9  ;;  %6369 = vpow2.f32 %v5430_v50 }
 0x343   : > { %v6354_v32 = vpop.eup %6353  ;;  %5069 = vst [vmem:[%s8010_s10 + $0x38] sm:$0xff] %v5037_v31  ;;  %v5035_v51 = vsel %vm4837_vm2, %v6352_v13, %v7976_v60  ;;  %6371 = vpow2.f32 %v5428_v53  ;;  %v5978_v30 = vpop.f32.mrb[52].mxu1 }
 0x344   : > { %v6356_v41 = vpop.eup %6355  ;;  %5067 = vst [vmem:[%s8010_s10 + $0x28] sm:$0xff] %v5035_v51  ;;  %v4948_v49 = vadd.f32 1.0, %v6354_v32  ;;  %6373 = vpow2.f32 %v5431_v12  ;;  %v8071_v35 = vadd.f32 %v5978_v30, %v7946_v10  ;;  %v4788_v19 = vpop.f32.mrb[53].mxu1 }
 0x345   : > { %v6358_v43 = vpop.eup %6357  ;;  %v4946_v55 = vadd.f32 1.0, %v6356_v41  ;;  %6375 = vpow2.f32 %v5429_v24  ;;  %v8074_v9 = vadd.f32 %v7946_v10, %v4788_v19  ;;  %v5979_v62 = vpop.f32.mrb[54].mxu1 }
 0x346   : > { %v6360_v6 = vpop.eup %6359  ;;  %6377 = vrcp.f32 %v4948_v49  ;;  %v4949_v60 = vadd.f32 1.0, %v6358_v43  ;;  %v5434_v59 = vmul.f32 -1.442695, %v8071_v35  ;;  %v8078_v38 = vadd.f32 %v5979_v62, %v7946_v10  ;;  %v4791_v26 = vpop.f32.mrb[55].mxu1 }
 0x347   : > { %6379 = vrcp.f32 %v4946_v55  ;;  %v4947_v47 = vadd.f32 1.0, %v6360_v6  ;;  %v5432_v23 = vmul.f32 -1.442695, %v8074_v9  ;;  %v8082_v21 = vadd.f32 %v7946_v10, %v4791_v26 }
 0x348   : > { %v6362_v37 = vpop.eup %6361  ;;  %6381 = vrcp.f32 %v4949_v60  ;;  %v5435_v45 = vmul.f32 -1.442695, %v8078_v38 }
 0x349   : > { %v6364_v57 = vpop.eup %6363  ;;  %v5040_v1 = vsel %vm4837_vm2, %v6362_v37, %v7981_v8  ;;  %6383 = vrcp.f32 %v4947_v47  ;;  %v5433_v25 = vmul.f32 -1.442695, %v8082_v21 }
 0x34a   : > { %v6366_v4 = vpop.eup %6365  ;;  %5072 = vst [vmem:[%s8010_s10 + $0x50] sm:$0xff] %v5040_v1  ;;  %v5038_v52 = vsel %vm4837_vm2, %v6364_v57, %v7984_v0  ;;  %6385 = vpow2.f32 %v5434_v59 }
 0x34b   : > { %v6368_v54 = vpop.eup %6367  ;;  %5070 = vst [vmem:[%s8010_s10 + $0x40] sm:$0xff] %v5038_v52  ;;  %v5041_v15 = vsel %vm4837_vm2, %v6366_v4, %v7988_v42  ;;  %6387 = vpow2.f32 %v5432_v23  ;;  %v5982_v39 = vpop.f32.mrb[56].mxu1 }
 0x34c   : > { %v6370_v8 = vpop.eup %6369  ;;  %5073 = vst [vmem:[%s8010_s10 + $0x58] sm:$0xff] %v5041_v15  ;;  %v5039_v22 = vsel %vm4837_vm2, %v6368_v54, %v7992_v7  ;;  %6389 = vpow2.f32 %v5435_v45  ;;  %v8102_v17 = vadd.f32 %v5982_v39, %v7946_v10  ;;  %v4804_v0 = vpop.f32.mrb[57].mxu1 }
 0x34d   : > { %v6372_v3 = vpop.eup %6371  ;;  %5071 = vst [vmem:[%s8010_s10 + $0x48] sm:$0xff] %v5039_v22  ;;  %v4952_v27 = vadd.f32 1.0, %v6370_v8  ;;  %6391 = vpow2.f32 %v5433_v25  ;;  %v8106_v33 = vadd.f32 %v7946_v10, %v4804_v0  ;;  %v5983_v42 = vpop.f32.mrb[58].mxu1 }
 0x34e   : > { %v6374_v56 = vpop.eup %6373  ;;  %v4950_v18 = vadd.f32 1.0, %v6372_v3  ;;  %v8109_v16 = vadd.f32 %v5983_v42, %v7946_v10  ;;  %v4807_v7 = vpop.f32.mrb[59].mxu1  ;;  %v5438_v34 = vmul.f32 -1.442695, %v8102_v17 }
 0x34f   : > { %v6376_v50 = vpop.eup %6375  ;;  %6393 = vrcp.f32 %v4952_v27  ;;  %v4953_v58 = vadd.f32 1.0, %v6374_v56  ;;  %v8113_v40 = vadd.f32 %v7946_v10, %v4807_v7  ;;  %v5436_v48 = vmul.f32 -1.442695, %v8106_v33 }
 0x350   : > { %v6378_v53 = vpop.eup %6377  ;;  %6395 = vrcp.f32 %v4950_v18  ;;  %v4951_v11 = vadd.f32 1.0, %v6376_v50  ;;  %v5439_v46 = vmul.f32 -1.442695, %v8109_v16 }
 0x351   : > { %v6380_v12 = vpop.eup %6379  ;;  %v5044_v5 = vsel %vm4837_vm2, %v6378_v53, %v8001_v36  ;;  %6397 = vrcp.f32 %v4953_v58  ;;  %v5437_v31 = vmul.f32 -1.442695, %v8113_v40 }
 0x352   : > { %v6382_v24 = vpop.eup %6381  ;;  %5076 = vst [vmem:[%s8010_s10 + $0x70] sm:$0xff] %v5044_v5  ;;  %v5042_v13 = vsel %vm4837_vm2, %v6380_v12, %v8005_v14  ;;  %6399 = vrcp.f32 %v4951_v11 }
 0x353   : > { %v6384_v32 = vpop.eup %6383  ;;  %5074 = vst [vmem:[%s8010_s10 + $0x60] sm:$0xff] %v5042_v13  ;;  %v5045_v51 = vsel %vm4837_vm2, %v6382_v24, %v8014_v61  ;;  %6401 = vpow2.f32 %v5438_v34  ;;  %v5986_v36 = vpop.f32.mrb[60].mxu1 }
 0x354   : > { %v6386_v30 = vpop.eup %6385  ;;  %5077 = vst [vmem:[%s8010_s10 + $0x78] sm:$0xff] %v5045_v51  ;;  %v5043_v41 = vsel %vm4837_vm2, %v6384_v32, %v8018_v63  ;;  %6403 = vpow2.f32 %v5436_v48  ;;  %v8134_v14 = vadd.f32 %v5986_v36, %v7946_v10  ;;  %v4820_v49 = vpop.f32.mrb[61].mxu1 }
 0x355   : > { %v6388_v19 = vpop.eup %6387  ;;  %5075 = vst [vmem:[%s8010_s10 + $0x68] sm:$0xff] %v5043_v41  ;;  %v4956_v43 = vadd.f32 1.0, %v6386_v30  ;;  %6405 = vpow2.f32 %v5439_v46  ;;  %v8138_v55 = vadd.f32 %v7946_v10, %v4820_v49  ;;  %v5987_v61 = vpop.f32.mrb[62].mxu1 }
 0x356   : > { %v6390_v62 = vpop.eup %6389  ;;  %v4954_v6 = vadd.f32 1.0, %v6388_v19  ;;  %6407 = vpow2.f32 %v5437_v31  ;;  %v8141_v60 = vadd.f32 %v5987_v61, %v7946_v10  ;;  %v4823_v63 = vpop.f32.mrb[63].mxu1  ;;  %v5442_v47 = vmul.f32 -1.442695, %v8134_v14 }
 0x357   : > { %v6392_v59 = vpop.eup %6391  ;;  %6409 = vrcp.f32 %v4956_v43  ;;  %v4957_v26 = vadd.f32 1.0, %v6390_v62  ;;  %v8145_v23 = vadd.f32 %v7946_v10, %v4823_v63  ;;  %v5440_v45 = vmul.f32 -1.442695, %v8138_v55 }
 0x358   : > { %6411 = vrcp.f32 %v4954_v6  ;;  %v4955_v37 = vadd.f32 1.0, %v6392_v59  ;;  %v5443_v1 = vmul.f32 -1.442695, %v8141_v60 }
 0x359   : > { %v6394_v57 = vpop.eup %6393  ;;  %6413 = vrcp.f32 %v4957_v26  ;;  %v5441_v10 = vmul.f32 -1.442695, %v8145_v23 }
 0x35a   : > { %v6396_v25 = vpop.eup %6395  ;;  %v5048_v4 = vsel %vm4837_vm2, %v6394_v57, %v8039_v20  ;;  %6415 = vrcp.f32 %v4955_v37 }
 0x35b   : > { %v6398_v52 = vpop.eup %6397  ;;  %5080 = vst [vmem:[%s8010_s10 + $0x90] sm:$0xff] %v5048_v4  ;;  %v5046_v54 = vsel %vm4837_vm2, %v6396_v25, %v8042_v2  ;;  %6417 = vpow2.f32 %v5442_v47 }
 0x35c   : > { %v6400_v15 = vpop.eup %6399  ;;  %5078 = vst [vmem:[%s8010_s10 + $0x80] sm:$0xff] %v5046_v54  ;;  %v5049_v39 = vsel %vm4837_vm2, %v6398_v52, %v8046_v28  ;;  %6419 = vpow2.f32 %v5440_v45 }
 0x35d   : > { %v6402_v8 = vpop.eup %6401  ;;  %5081 = vst [vmem:[%s8010_s10 + $0x98] sm:$0xff] %v5049_v39  ;;  %v5047_v20 = vsel %vm4837_vm2, %v6400_v15, %v8050_v44  ;;  %6421 = vpow2.f32 %v5443_v1 }
 0x35e   : > { %v6404_v22 = vpop.eup %6403  ;;  %5079 = vst [vmem:[%s8010_s10 + $0x88] sm:$0xff] %v5047_v20  ;;  %v4960_v0 = vadd.f32 1.0, %v6402_v8  ;;  %6423 = vpow2.f32 %v5441_v10 }
 0x35f   : > { %v6406_v2 = vpop.eup %6405  ;;  %v4958_v3 = vadd.f32 1.0, %v6404_v22 }
 0x360   : > { %v6408_v27 = vpop.eup %6407  ;;  %6425 = vrcp.f32 %v4960_v0  ;;  %v4961_v28 = vadd.f32 1.0, %v6406_v2 }
 0x361   : > { %v6410_v42 = vpop.eup %6409  ;;  %6427 = vrcp.f32 %v4958_v3  ;;  %v4959_v56 = vadd.f32 1.0, %v6408_v27 }
 0x362   : > { %v6412_v18 = vpop.eup %6411  ;;  %v5052_v44 = vsel %vm4837_vm2, %v6410_v42, %v8071_v35  ;;  %6429 = vrcp.f32 %v4961_v28 }
 0x363   : > { %v6414_v7 = vpop.eup %6413  ;;  %5084 = vst [vmem:[%s8010_s10 + $0xb0] sm:$0xff] %v5052_v44  ;;  %v5050_v50 = vsel %vm4837_vm2, %v6412_v18, %v8074_v9  ;;  %6431 = vrcp.f32 %v4959_v56 }
 0x364   : > { %v6416_v58 = vpop.eup %6415  ;;  %5082 = vst [vmem:[%s8010_s10 + $0xa0] sm:$0xff] %v5050_v50  ;;  %v5053_v34 = vsel %vm4837_vm2, %v6414_v7, %v8078_v38 }
 0x365   : > { %v6418_v53 = vpop.eup %6417  ;;  %5085 = vst [vmem:[%s8010_s10 + $0xb8] sm:$0xff] %v5053_v34  ;;  %v5051_v35 = vsel %vm4837_vm2, %v6416_v58, %v8082_v21 }
 0x366   : > { %v6420_v11 = vpop.eup %6419  ;;  %5083 = vst [vmem:[%s8010_s10 + $0xa8] sm:$0xff] %v5051_v35  ;;  %v4964_v48 = vadd.f32 1.0, %v6418_v53 }
 0x367   : > { %v6422_v12 = vpop.eup %6421  ;;  %v4962_v9 = vadd.f32 1.0, %v6420_v11 }
 0x368   : > { %v6424_v5 = vpop.eup %6423  ;;  %6433 = vrcp.f32 %v4964_v48  ;;  %v4965_v46 = vadd.f32 1.0, %v6422_v12 }
 0x369   : > { %6435 = vrcp.f32 %v4962_v9  ;;  %v4963_v38 = vadd.f32 1.0, %v6424_v5 }
 0x36a   : > { %v6426_v24 = vpop.eup %6425  ;;  %6437 = vrcp.f32 %v4965_v46 }
 0x36b   : > { %v6428_v13 = vpop.eup %6427  ;;  %v5056_v21 = vsel %vm4837_vm2, %v6426_v24, %v8102_v17  ;;  %6439 = vrcp.f32 %v4963_v38 }
 0x36c   : > { %v6430_v31 = vpop.eup %6429  ;;  %5088 = vst [vmem:[%s8010_s10 + $0xd0] sm:$0xff] %v5056_v21  ;;  %v5054_v32 = vsel %vm4837_vm2, %v6428_v13, %v8106_v33 }
 0x36d   : > { %v6432_v51 = vpop.eup %6431  ;;  %5086 = vst [vmem:[%s8010_s10 + $0xc0] sm:$0xff] %v5054_v32  ;;  %v5057_v36 = vsel %vm4837_vm2, %v6430_v31, %v8109_v16 }
 0x36e   : > { %5089 = vst [vmem:[%s8010_s10 + $0xd8] sm:$0xff] %v5057_v36  ;;  %v5055_v17 = vsel %vm4837_vm2, %v6432_v51, %v8113_v40 }
 0x36f   : > { %5087 = vst [vmem:[%s8010_s10 + $0xc8] sm:$0xff] %v5055_v17 }
 0x372   : > { %v6434_v30 = vpop.eup %6433 }
 0x373   : > { %v6436_v41 = vpop.eup %6435  ;;  %v5060_v33 = vsel %vm4837_vm2, %v6434_v30, %v8134_v14 }
 0x374   : > { %v6438_v49 = vpop.eup %6437  ;;  %5092 = vst [vmem:[%s8010_s10 + $0xf0] sm:$0xff] %v5060_v33  ;;  %v5058_v19 = vsel %vm4837_vm2, %v6436_v41, %v8138_v55 }
 0x375   : > { %v6440_v43 = vpop.eup %6439  ;;  %5090 = vst [vmem:[%s8010_s10 + $0xe0] sm:$0xff] %v5058_v19  ;;  %v5061_v16 = vsel %vm4837_vm2, %v6438_v49, %v8141_v60 }
 0x376   : > { %5093 = vst [vmem:[%s8010_s10 + $0xf8] sm:$0xff] %v5061_v16  ;;  %v5059_v40 = vsel %vm4837_vm2, %v6440_v43, %v8145_v23 }
 0x377   : > { %5091 = vst [vmem:[%s8010_s10 + $0xe8] sm:$0xff] %v5059_v40 }
 0x378 PF: > { %s17_s18 = sadd.s32 1, %s6527_s18  }
 0x379   : > { %p14_p5 = scmp.ge.s32.totalorder %s17_s18, 4  }
 0x37b   :  { %16 = sbr.rel (!%p14_p5) target bundleno = 2 (0x2), region = 79 }
 0x382   :  { %5115 = vsyncpa [#allocation3], 1 }
 0x383   :  { %5117 = vsyncpa [#allocation3 + $0x1], 1 }
 0x384   :  { %5118 = vsyncpa [#allocation5], 1 }

// kernel: run.7
= control target key start
LH: loop header
LB: loop body
LE: loop exit
PB: predicated region body
PF: predicated region fallthrough
CT: control target
= control target key end

     0   :  { %s1696_s9 = smov 0   ;;  %s3050_s0 = inlined_call_operand.vmem [shape: f32[1536,4], index: 0, kind: input, shape index: {}]   ;;  %s3051_s1 = inlined_call_operand.vmem [shape: f32[1536,4], index: 1, kind: input, shape index: {}]   ;;  %s3052_s2 = inlined_call_operand.vmem [shape: f32[1536,4], index: 2, kind: output, shape index: {}]  }
   0x1 LB: > { %s1552_s10 = sadd.s32 4294967295, %s1677_s9   ;;  %p1556_p0 = scmp.ge.s32.totalorder %s1677_s9, 1  ;;  %s1677_s9 = sphi %s1696_s9, %s12_s9  }
   0x2   : > { %p124_p1 = scmp.lt.s32.totalorder %s1677_s9, 7 }
   0x4   : > { %p125_p2 = pnand %p1556_p0, %p124_p1 }
   0x6   : > { %128 = sbr.rel (%p125_p2) target bundleno = 570 (0x23a), region = 28 }
   0xd   : > { %s1557_s11 = sshll.u32 %s1552_s10, 5  ;;  %s1679_s16 = smov 2   ;;  %vm1385_vm0 = vcmask 15360   ;;  %vm1418_vm1 = vcmask 23552   ;;  %vm1451_vm2 = vcmask 31744  }
   0xe   : > { %p152_p3 = scmp.lt.s32.totalorder %s1557_s11, 191  ;;  %s1680_s17 = smov 126  }
  0x10   : > { %s3232_s11 = smov (!%p152_p3, %s1557_s11), 191 }
  0x11   : > { %s1704_s12 = sshll.u32 %s3232_s11, 3 }
  0x12   : > { %s1710_s15 = scalar_lea.vmem %s3051_s1, %s1704_s12  ;;  %s2066_s20 = scalar_lea.vmem %s3050_s0, %s1704_s12 }
  0x13   : > { %v1713_v0 = vld [vmem:[%s1710_s15] sm:$0xff]  ;;  %v1716_v1 = vld [vmem:[%s1710_s15 + $0x10] sm:$0xff]  ;;  %v1723_v2 = vld [vmem:[%s1710_s15 + $0x8] sm:$0xff]  ;;  %s2830_s23 = scalar_lea.vmem %s3052_s2, %s1704_s12 }
  0x14   : > { %265 = vrot.lane.b32.xlu0 %v1713_v0, %s1679_s16  ;;  %269 = vrot.lane.b32.xlu1 %v1716_v1, %s1679_s16  ;;  %v1726_v3 = vld [vmem:[%s1710_s15 + $0x18] sm:$0xff]  ;;  %v1733_v4 = vld [vmem:[%s1710_s15 + $0x20] sm:$0xff] }
  0x15   : > { %v1736_v5 = vld [vmem:[%s1710_s15 + $0x28] sm:$0xff]  ;;  %v1743_v6 = vld [vmem:[%s1710_s15 + $0x30] sm:$0xff]  ;;  %v1746_v7 = vld [vmem:[%s1710_s15 + $0x38] sm:$0xff] }
  0x16   : > { %v1753_v8 = vld [vmem:[%s1710_s15 + $0x40] sm:$0xff]  ;;  %v1756_v9 = vld [vmem:[%s1710_s15 + $0x48] sm:$0xff]  ;;  %v1763_v10 = vld [vmem:[%s1710_s15 + $0x50] sm:$0xff] }
  0x17   : > { %v1766_v11 = vld [vmem:[%s1710_s15 + $0x58] sm:$0xff]  ;;  %v1773_v12 = vld [vmem:[%s1710_s15 + $0x60] sm:$0xff]  ;;  %v1776_v13 = vld [vmem:[%s1710_s15 + $0x68] sm:$0xff] }
  0x18   : > { %267 = vrot.lane.b32.xlu0 %v1723_v2, %s1679_s16  ;;  %271 = vrot.lane.b32.xlu1 %v1726_v3, %s1679_s16  ;;  %v1783_v14 = vld [vmem:[%s1710_s15 + $0x70] sm:$0xff]  ;;  %v1786_v15 = vld [vmem:[%s1710_s15 + $0x78] sm:$0xff] }
  0x19   : > { %v1793_v16 = vld [vmem:[%s1710_s15 + $0x80] sm:$0xff]  ;;  %v1796_v17 = vld [vmem:[%s1710_s15 + $0x88] sm:$0xff]  ;;  %v1803_v18 = vld [vmem:[%s1710_s15 + $0x90] sm:$0xff] }
  0x1a   : > { %v1806_v19 = vld [vmem:[%s1710_s15 + $0x98] sm:$0xff]  ;;  %v1813_v20 = vld [vmem:[%s1710_s15 + $0xa0] sm:$0xff]  ;;  %v1816_v21 = vld [vmem:[%s1710_s15 + $0xa8] sm:$0xff] }
  0x1b   : > { %v1823_v22 = vld [vmem:[%s1710_s15 + $0xb0] sm:$0xff]  ;;  %v1826_v23 = vld [vmem:[%s1710_s15 + $0xb8] sm:$0xff]  ;;  %v1833_v24 = vld [vmem:[%s1710_s15 + $0xc0] sm:$0xff] }
  0x1c   : > { %273 = vrot.lane.b32.xlu0 %v1733_v4, %s1679_s16  ;;  %275 = vrot.lane.b32.xlu1 %v1736_v5, %s1679_s16  ;;  %v1836_v25 = vld [vmem:[%s1710_s15 + $0xc8] sm:$0xff]  ;;  %v1843_v26 = vld [vmem:[%s1710_s15 + $0xd0] sm:$0xff] }
  0x1d   : > { %v1846_v27 = vld [vmem:[%s1710_s15 + $0xd8] sm:$0xff]  ;;  %v1853_v28 = vld [vmem:[%s1710_s15 + $0xe0] sm:$0xff]  ;;  %v1856_v29 = vld [vmem:[%s1710_s15 + $0xe8] sm:$0xff] }
  0x1e   : > { %v1863_v30 = vld [vmem:[%s1710_s15 + $0xf0] sm:$0xff]  ;;  %v1866_v31 = vld [vmem:[%s1710_s15 + $0xf8] sm:$0xff] }
  0x20   : > { %277 = vrot.lane.b32.xlu0 %v1743_v6, %s1679_s16  ;;  %279 = vrot.lane.b32.xlu1 %v1746_v7, %s1679_s16 }
  0x24   : > { %281 = vrot.lane.b32.xlu0 %v1753_v8, %s1679_s16  ;;  %283 = vrot.lane.b32.xlu1 %v1756_v9, %s1679_s16 }
  0x28   : > { %285 = vrot.lane.b32.xlu0 %v1763_v10, %s1679_s16  ;;  %287 = vrot.lane.b32.xlu1 %v1766_v11, %s1679_s16 }
  0x2c   : > { %289 = vrot.lane.b32.xlu0 %v1773_v12, %s1679_s16  ;;  %291 = vrot.lane.b32.xlu1 %v1776_v13, %s1679_s16 }
  0x30   : > { %293 = vrot.lane.b32.xlu0 %v1783_v14, %s1679_s16  ;;  %295 = vrot.lane.b32.xlu1 %v1786_v15, %s1679_s16 }
  0x34   : > { %297 = vrot.lane.b32.xlu0 %v1793_v16, %s1679_s16  ;;  %299 = vrot.lane.b32.xlu1 %v1796_v17, %s1679_s16 }
  0x38   : > { %301 = vrot.lane.b32.xlu0 %v1803_v18, %s1679_s16  ;;  %303 = vrot.lane.b32.xlu1 %v1806_v19, %s1679_s16 }
  0x3c   : > { %305 = vrot.lane.b32.xlu0 %v1813_v20, %s1679_s16  ;;  %307 = vrot.lane.b32.xlu1 %v1816_v21, %s1679_s16 }
  0x40   : > { %309 = vrot.lane.b32.xlu0 %v1823_v22, %s1679_s16  ;;  %311 = vrot.lane.b32.xlu1 %v1826_v23, %s1679_s16 }
  0x44   : > { %313 = vrot.lane.b32.xlu0 %v1833_v24, %s1679_s16  ;;  %315 = vrot.lane.b32.xlu1 %v1836_v25, %s1679_s16 }
  0x48   : > { %317 = vrot.lane.b32.xlu0 %v1843_v26, %s1679_s16  ;;  %319 = vrot.lane.b32.xlu1 %v1846_v27, %s1679_s16 }
  0x4c   : > { %321 = vrot.lane.b32.xlu0 %v1853_v28, %s1679_s16  ;;  %323 = vrot.lane.b32.xlu1 %v1856_v29, %s1679_s16 }
  0x50   : > { %325 = vrot.lane.b32.xlu0 %v1863_v30, %s1679_s16  ;;  %327 = vrot.lane.b32.xlu1 %v1866_v31, %s1679_s16 }
  0x86   : > { %v266_v32 = vpop.permute.xlu0 %265  ;;  %v270_v33 = vpop.permute.xlu1 %269 }
  0x87   : > { %v1873_v34 = vsub.f32 %v1713_v0, %v266_v32  ;;  %v1876_v35 = vsub.f32 %v1716_v1, %v270_v33 }
  0x89   : > { %v393_v36 = vmul.f32 0.5, %v1873_v34  ;;  %v395_v41 = vmul.f32 0.5, %v1876_v35 }
  0x8a   : > { %v268_v37 = vpop.permute.xlu0 %267  ;;  %v272_v38 = vpop.permute.xlu1 %271 }
  0x8b   : > { %v1880_v39 = vsub.f32 %v1723_v2, %v268_v37  ;;  %457 = vrot.lane.b32.xlu0 %v393_v36, %s1680_s17  ;;  %v1884_v40 = vsub.f32 %v1726_v3, %v272_v38 }
  0x8d   : > { %v394_v42 = vmul.f32 0.5, %v1880_v39  ;;  %v396_v47 = vmul.f32 0.5, %v1884_v40 }
  0x8e   : > { %v274_v43 = vpop.permute.xlu0 %273  ;;  %v276_v44 = vpop.permute.xlu1 %275 }
  0x8f   : > { %v1889_v45 = vsub.f32 %v1733_v4, %v274_v43  ;;  %461 = vrot.lane.b32.xlu0 %v395_v41, %s1680_s17  ;;  %459 = vrot.lane.b32.xlu1 %v394_v42, %s1680_s17  ;;  %v1894_v46 = vsub.f32 %v1736_v5, %v276_v44 }
  0x91   : > { %v397_v48 = vmul.f32 0.5, %v1889_v45  ;;  %v398_v53 = vmul.f32 0.5, %v1894_v46 }
  0x92   : > { %v278_v49 = vpop.permute.xlu0 %277  ;;  %v280_v50 = vpop.permute.xlu1 %279 }
  0x93   : > { %v1899_v51 = vsub.f32 %v1743_v6, %v278_v49  ;;  %463 = vrot.lane.b32.xlu1 %v396_v47, %s1680_s17  ;;  %465 = vrot.lane.b32.xlu0 %v397_v48, %s1680_s17  ;;  %v1904_v52 = vsub.f32 %v1746_v7, %v280_v50 }
  0x95   : > { %v399_v54 = vmul.f32 0.5, %v1899_v51  ;;  %v400_v59 = vmul.f32 0.5, %v1904_v52 }
  0x96   : > { %v282_v55 = vpop.permute.xlu0 %281  ;;  %v284_v56 = vpop.permute.xlu1 %283 }
  0x97   : > { %v1909_v57 = vsub.f32 %v1753_v8, %v282_v55  ;;  %467 = vrot.lane.b32.xlu1 %v398_v53, %s1680_s17  ;;  %469 = vrot.lane.b32.xlu0 %v399_v54, %s1680_s17  ;;  %v1914_v58 = vsub.f32 %v1756_v9, %v284_v56 }
  0x99   : > { %v401_v60 = vmul.f32 0.5, %v1909_v57  ;;  %v402_v1 = vmul.f32 0.5, %v1914_v58 }
  0x9a   : > { %v286_v61 = vpop.permute.xlu0 %285  ;;  %v288_v62 = vpop.permute.xlu1 %287 }
  0x9b   : > { %v1919_v63 = vsub.f32 %v1763_v10, %v286_v61  ;;  %471 = vrot.lane.b32.xlu1 %v400_v59, %s1680_s17  ;;  %473 = vrot.lane.b32.xlu0 %v401_v60, %s1680_s17  ;;  %v1924_v0 = vsub.f32 %v1766_v11, %v288_v62 }
  0x9d   : > { %v403_v2 = vmul.f32 0.5, %v1919_v63  ;;  %v404_v7 = vmul.f32 0.5, %v1924_v0 }
  0x9e   : > { %v290_v3 = vpop.permute.xlu0 %289  ;;  %v292_v4 = vpop.permute.xlu1 %291 }
  0x9f   : > { %v1929_v5 = vsub.f32 %v1773_v12, %v290_v3  ;;  %475 = vrot.lane.b32.xlu1 %v402_v1, %s1680_s17  ;;  %477 = vrot.lane.b32.xlu0 %v403_v2, %s1680_s17  ;;  %v1934_v6 = vsub.f32 %v1776_v13, %v292_v4 }
  0xa1   : > { %v405_v8 = vmul.f32 0.5, %v1929_v5  ;;  %v406_v32 = vmul.f32 0.5, %v1934_v6 }
  0xa2   : > { %v294_v9 = vpop.permute.xlu0 %293  ;;  %v296_v10 = vpop.permute.xlu1 %295 }
  0xa3   : > { %v1939_v11 = vsub.f32 %v1783_v14, %v294_v9  ;;  %479 = vrot.lane.b32.xlu1 %v404_v7, %s1680_s17  ;;  %481 = vrot.lane.b32.xlu0 %v405_v8, %s1680_s17  ;;  %v1944_v12 = vsub.f32 %v1786_v15, %v296_v10 }
  0xa5   : > { %v407_v13 = vmul.f32 0.5, %v1939_v11  ;;  %v408_v38 = vmul.f32 0.5, %v1944_v12 }
  0xa6   : > { %v298_v33 = vpop.permute.xlu0 %297  ;;  %v300_v36 = vpop.permute.xlu1 %299 }
  0xa7   : > { %v1949_v37 = vsub.f32 %v1793_v16, %v298_v33  ;;  %483 = vrot.lane.b32.xlu1 %v406_v32, %s1680_s17  ;;  %485 = vrot.lane.b32.xlu0 %v407_v13, %s1680_s17  ;;  %v1954_v14 = vsub.f32 %v1796_v17, %v300_v36 }
  0xa9   : > { %v409_v15 = vmul.f32 0.5, %v1949_v37  ;;  %v410_v44 = vmul.f32 0.5, %v1954_v14 }
  0xaa   : > { %v302_v41 = vpop.permute.xlu0 %301  ;;  %v304_v42 = vpop.permute.xlu1 %303 }
  0xab   : > { %v1959_v43 = vsub.f32 %v1803_v18, %v302_v41  ;;  %487 = vrot.lane.b32.xlu1 %v408_v38, %s1680_s17  ;;  %489 = vrot.lane.b32.xlu0 %v409_v15, %s1680_s17  ;;  %v1964_v16 = vsub.f32 %v1806_v19, %v304_v42  ;;  %v2084_v41 = vld [vmem:[%s2066_s20 + $0x8] sm:$0xff] }
  0xad   : > { %v411_v17 = vmul.f32 0.5, %v1959_v43  ;;  %v412_v50 = vmul.f32 0.5, %v1964_v16 }
  0xae   : > { %v306_v47 = vpop.permute.xlu0 %305  ;;  %v308_v48 = vpop.permute.xlu1 %307 }
  0xaf   : > { %v1969_v49 = vsub.f32 %v1813_v20, %v306_v47  ;;  %491 = vrot.lane.b32.xlu1 %v410_v44, %s1680_s17  ;;  %493 = vrot.lane.b32.xlu0 %v411_v17, %s1680_s17  ;;  %v1974_v18 = vsub.f32 %v1816_v21, %v308_v48  ;;  %v2092_v44 = vld [vmem:[%s2066_s20 + $0x18] sm:$0xff]  ;;  %v586_v47 = vmin.f32 %v2084_v41, 4.1351666  ;;  %v2096_v48 = vld [vmem:[%s2066_s20 + $0x20] sm:$0xff] }
  0xb1   : > { %v413_v19 = vmul.f32 0.5, %v1969_v49  ;;  %v414_v56 = vmul.f32 0.5, %v1974_v18 }
  0xb2   : > { %v310_v53 = vpop.permute.xlu0 %309  ;;  %v312_v54 = vpop.permute.xlu1 %311 }
  0xb3   : > { %v1979_v55 = vsub.f32 %v1823_v22, %v310_v53  ;;  %495 = vrot.lane.b32.xlu1 %v412_v50, %s1680_s17  ;;  %497 = vrot.lane.b32.xlu0 %v413_v19, %s1680_s17  ;;  %v1984_v20 = vsub.f32 %v1826_v23, %v312_v54  ;;  %v588_v19 = vmin.f32 %v2092_v44, 4.1351666  ;;  %v589_v53 = vmin.f32 %v2096_v48, 4.1351666  ;;  %v2105_v54 = vld [vmem:[%s2066_s20 + $0x28] sm:$0xff] }
  0xb5   : > { %v415_v21 = vmul.f32 0.5, %v1979_v55  ;;  %v416_v62 = vmul.f32 0.5, %v1984_v20 }
  0xb6   : > { %v314_v59 = vpop.permute.xlu0 %313  ;;  %v316_v60 = vpop.permute.xlu1 %315 }
  0xb7   : > { %v1989_v61 = vsub.f32 %v1833_v24, %v314_v59  ;;  %499 = vrot.lane.b32.xlu1 %v414_v56, %s1680_s17  ;;  %501 = vrot.lane.b32.xlu0 %v415_v21, %s1680_s17  ;;  %v1994_v22 = vsub.f32 %v1836_v25, %v316_v60  ;;  %v811_v56 = vmul.f32 1.442695, %v586_v47  ;;  %v2108_v21 = vld [vmem:[%s2066_s20 + $0x30] sm:$0xff]  ;;  %v815_v59 = vmul.f32 1.442695, %v588_v19  ;;  %v2147_v47 = vld [vmem:[%s2066_s20 + $0x58] sm:$0xff] }
  0xb8   : > { %v590_v60 = vmin.f32 %v2105_v54, 4.1351666  ;;  %3094 = vst [vmem:[#allocation5_spill] sm:$0xff] %v2147_v47  ;;  %v2150_v19 = vld [vmem:[%s2066_s20 + $0x60] sm:$0xff] }
  0xb9   : > { %v417_v23 = vmul.f32 0.5, %v1989_v61  ;;  %v418_v4 = vmul.f32 0.5, %v1994_v22  ;;  %3095 = vst [vmem:[#allocation6_spill] sm:$0xff] %v2150_v19 }
  0xba   : > { %v318_v1 = vpop.permute.xlu0 %317  ;;  %v320_v2 = vpop.permute.xlu1 %319 }
  0xbb   : > { %v1999_v3 = vsub.f32 %v1843_v26, %v318_v1  ;;  %503 = vrot.lane.b32.xlu1 %v416_v62, %s1680_s17  ;;  %505 = vrot.lane.b32.xlu0 %v417_v23, %s1680_s17  ;;  %v2004_v24 = vsub.f32 %v1846_v27, %v320_v2  ;;  %v817_v62 = vmul.f32 1.442695, %v589_v53  ;;  %v591_v23 = vmin.f32 %v2108_v21, 4.1351666  ;;  %v2117_v1 = vld [vmem:[%s2066_s20 + $0x38] sm:$0xff]  ;;  %v2120_v2 = vld [vmem:[%s2066_s20 + $0x40] sm:$0xff] }
  0xbc   : > { %3091 = vst [vmem:[#allocation2_spill] sm:$0xff] %v2120_v2 }
  0xbd   : > { %v419_v25 = vmul.f32 0.5, %v1999_v3  ;;  %v420_v10 = vmul.f32 0.5, %v2004_v24 }
  0xbe   : > { %v322_v7 = vpop.permute.xlu0 %321  ;;  %v324_v8 = vpop.permute.xlu1 %323 }
  0xbf   : > { %v2009_v9 = vsub.f32 %v1853_v28, %v322_v7  ;;  %507 = vrot.lane.b32.xlu1 %v418_v4, %s1680_s17  ;;  %509 = vrot.lane.b32.xlu0 %v419_v25, %s1680_s17  ;;  %v2014_v26 = vsub.f32 %v1856_v29, %v324_v8  ;;  %v819_v25 = vmul.f32 1.442695, %v590_v60  ;;  %v592_v7 = vmin.f32 %v2117_v1, 4.1351666 }
  0xc0   : > { %v821_v8 = vmul.f32 1.442695, %v591_v23  ;;  %v596_v23 = vmin.f32 %v2147_v47, 4.1351666 }
  0xc1   : > { %v421_v27 = vmul.f32 0.5, %v2009_v9  ;;  %v422_v36 = vmul.f32 0.5, %v2014_v26 }
  0xc2   : > { %v326_v32 = vpop.permute.xlu0 %325  ;;  %v328_v13 = vpop.permute.xlu1 %327 }
  0xc3   : > { %v2019_v33 = vsub.f32 %v1863_v30, %v326_v32  ;;  %511 = vrot.lane.b32.xlu1 %v420_v10, %s1680_s17  ;;  %513 = vrot.lane.b32.xlu0 %v421_v27, %s1680_s17  ;;  %v2024_v28 = vsub.f32 %v1866_v31, %v328_v13  ;;  %v2073_v30 = vld [vmem:[%s2066_s20] sm:$0xff]  ;;  %v2080_v31 = vld [vmem:[%s2066_s20 + $0x10] sm:$0xff]  ;;  %v593_v10 = vmin.f32 %v2120_v2, 4.1351666 }
  0xc4   : > { %v585_v15 = vmin.f32 %v2073_v30, 4.1351666  ;;  %v587_v42 = vmin.f32 %v2080_v31, 4.1351666  ;;  %v2131_v27 = vld [vmem:[%s2066_s20 + $0x48] sm:$0xff]  ;;  %v2134_v32 = vld [vmem:[%s2066_s20 + $0x50] sm:$0xff] }
  0xc5   : > { %v423_v29 = vmul.f32 0.5, %v2019_v33  ;;  %v424_v38 = vmul.f32 0.5, %v2024_v28  ;;  %3092 = vst [vmem:[#allocation3_spill] sm:$0xff] %v2131_v27  ;;  %3093 = vst [vmem:[#allocation4_spill] sm:$0xff] %v2134_v32 }
  0xc6   : > { %v809_v17 = vmul.f32 1.442695, %v585_v15  ;;  %v813_v50 = vmul.f32 1.442695, %v587_v42  ;;  %v594_v15 = vmin.f32 %v2131_v27, 4.1351666 }
  0xc7   : > { %515 = vrot.lane.b32.xlu1 %v422_v36, %s1680_s17  ;;  %517 = vrot.lane.b32.xlu0 %v423_v29, %s1680_s17  ;;  %v825_v42 = vmul.f32 1.442695, %v593_v10  ;;  %v2181_v27 = vld [vmem:[%s2066_s20 + $0x78] sm:$0xff] }
  0xc8   : > { %1575 = vpow2.f32 %v809_v17  ;;  %v595_v17 = vmin.f32 %v2134_v32, 4.1351666  ;;  %3098 = vst [vmem:[#allocation9_spill] sm:$0xff] %v2181_v27 }
  0xc9   : > { %1577 = vpow2.f32 %v813_v50 }
  0xca   : > { %1579 = vpow2.f32 %v811_v56 }
  0xcb   : > { %519 = vrot.lane.b32.xlu1 %v424_v38, %s1680_s17  ;;  %649 = vrot.lane.b32.xlu0 %v1873_v34, %s1680_s17  ;;  %1581 = vpow2.f32 %v815_v59  ;;  %v823_v38 = vmul.f32 1.442695, %v592_v7  ;;  %v597_v7 = vmin.f32 %v2150_v19, 4.1351666 }
  0xcc   : > { %1583 = vpow2.f32 %v817_v62  ;;  %v827_v62 = vmul.f32 1.442695, %v594_v15 }
  0xcd   : > { %1585 = vpow2.f32 %v819_v25  ;;  %v829_v25 = vmul.f32 1.442695, %v595_v17  ;;  %v831_v17 = vmul.f32 1.442695, %v596_v23 }
  0xce   : > { %1587 = vpow2.f32 %v821_v8  ;;  %v2164_v8 = vld [vmem:[%s2066_s20 + $0x68] sm:$0xff] }
  0xcf   : > { %651 = vrot.lane.b32.xlu1 %v1880_v39, %s1680_s17  ;;  %653 = vrot.lane.b32.xlu0 %v1876_v35, %s1680_s17  ;;  %1589 = vpow2.f32 %v823_v38  ;;  %3096 = vst [vmem:[#allocation7_spill] sm:$0xff] %v2164_v8  ;;  %v598_v19 = vmin.f32 %v2164_v8, 4.1351666 }
  0xd0   : > { %1591 = vpow2.f32 %v825_v42 }
  0xd1   : > { %1593 = vpow2.f32 %v827_v62  ;;  %v2186_v62 = vld [vmem:[%s2066_s20 + $0x80] sm:$0xff] }
  0xd2   : > { %v1576_v29 = vpop.eup %1575  ;;  %1595 = vpow2.f32 %v829_v25  ;;  %3099 = vst [vmem:[#allocation10_spill] sm:$0xff] %v2186_v62 }
  0xd3   : > { %655 = vrot.lane.b32.xlu1 %v1884_v40, %s1680_s17  ;;  %657 = vrot.lane.b32.xlu0 %v1889_v45, %s1680_s17  ;;  %v1578_v50 = vpop.eup %1577  ;;  %v873_v59 = vmul.f32 %v1576_v29, %v1873_v34  ;;  %v2168_v29 = vld [vmem:[%s2066_s20 + $0x70] sm:$0xff]  ;;  %1597 = vpow2.f32 %v831_v17 }
  0xd4   : > { %v1580_v60 = vpop.eup %1579  ;;  %v875_v34 = vmul.f32 %v1578_v50, %v1876_v35  ;;  %3097 = vst [vmem:[#allocation8_spill] sm:$0xff] %v2168_v29  ;;  %v833_v35 = vmul.f32 1.442695, %v597_v7  ;;  %v599_v50 = vmin.f32 %v2168_v29, 4.1351666  ;;  %v2202_v17 = vld [vmem:[%s2066_s20 + $0x90] sm:$0xff] }
  0xd5   : > { %v1582_v10 = vpop.eup %1581  ;;  %v905_v47 = vmul.f32 0.5, %v873_v59  ;;  %v874_v32 = vmul.f32 %v1580_v60, %v1880_v39  ;;  %v835_v7 = vmul.f32 1.442695, %v598_v19  ;;  %v600_v29 = vmin.f32 %v2181_v27, 4.1351666  ;;  %3102 = vst [vmem:[#allocation13_spill] sm:$0xff] %v2202_v17 }
  0xd6   : > { %v1584_v42 = vpop.eup %1583  ;;  %v907_v2 = vmul.f32 0.5, %v875_v34  ;;  %v876_v39 = vmul.f32 %v1582_v10, %v1884_v40  ;;  %1599 = vpow2.f32 %v833_v35  ;;  %v837_v40 = vmul.f32 1.442695, %v599_v50  ;;  %v2197_v10 = vld [vmem:[%s2066_s20 + $0x88] sm:$0xff] }
  0xd7   : > { %659 = vrot.lane.b32.xlu1 %v1894_v46, %s1680_s17  ;;  %661 = vrot.lane.b32.xlu0 %v1899_v51, %s1680_s17  ;;  %v1586_v59 = vpop.eup %1585  ;;  %v877_v60 = vmul.f32 %v1584_v42, %v1889_v45  ;;  %v601_v45 = vmin.f32 %v2186_v62, 4.1351666  ;;  %3101 = vst [vmem:[#allocation12_spill] sm:$0xff] %v2197_v10  ;;  %1601 = vpow2.f32 %v835_v7  ;;  %v839_v35 = vmul.f32 1.442695, %v600_v29  ;;  %v2218_v7 = vld [vmem:[%s2066_s20 + $0xa0] sm:$0xff] }
  0xd8   : > { %v1588_v25 = vpop.eup %1587  ;;  %v908_v42 = vmul.f32 0.5, %v876_v39  ;;  %v602_v50 = vmin.f32 %v2197_v10, 4.1351666  ;;  %1603 = vpow2.f32 %v837_v40  ;;  %3104 = vst [vmem:[#allocation15_spill] sm:$0xff] %v2218_v7 }
  0xd9   : > { %v1590_v34 = vpop.eup %1589  ;;  %v879_v19 = vmul.f32 %v1588_v25, %v1899_v51  ;;  %v603_v51 = vmin.f32 %v2202_v17, 4.1351666  ;;  %1605 = vpow2.f32 %v839_v35 }
  0xda   : > { %v880_v62 = vmul.f32 %v1590_v34, %v1904_v52 }
  0xdb   : > { %663 = vrot.lane.b32.xlu1 %v1904_v52, %s1680_s17  ;;  %665 = vrot.lane.b32.xlu0 %v1909_v57, %s1680_s17  ;;  %v911_v25 = vmul.f32 0.5, %v879_v19  ;;  %v845_v52 = vmul.f32 1.442695, %v603_v51 }
  0xdc   : > { %v912_v19 = vmul.f32 0.5, %v880_v62  ;;  %v2245_v62 = vld [vmem:[%s2066_s20 + $0xb8] sm:$0xff] }
  0xdd   : > { %3107 = vst [vmem:[#allocation18_spill] sm:$0xff] %v2245_v62 }
  0xdf   : > { %667 = vrot.lane.b32.xlu1 %v1914_v58, %s1680_s17  ;;  %669 = vrot.lane.b32.xlu0 %v1919_v63, %s1680_s17 }
  0xe3   : > { %671 = vrot.lane.b32.xlu1 %v1924_v0, %s1680_s17  ;;  %673 = vrot.lane.b32.xlu0 %v1929_v5, %s1680_s17 }
  0xe7   : > { %675 = vrot.lane.b32.xlu1 %v1934_v6, %s1680_s17  ;;  %677 = vrot.lane.b32.xlu0 %v1939_v11, %s1680_s17 }
  0xeb   : > { %679 = vrot.lane.b32.xlu1 %v1944_v12, %s1680_s17  ;;  %681 = vrot.lane.b32.xlu0 %v1949_v37, %s1680_s17 }
  0xef   : > { %683 = vrot.lane.b32.xlu1 %v1954_v14, %s1680_s17  ;;  %685 = vrot.lane.b32.xlu0 %v1959_v43, %s1680_s17 }
  0xf3   : > { %687 = vrot.lane.b32.xlu1 %v1964_v16, %s1680_s17  ;;  %689 = vrot.lane.b32.xlu0 %v1969_v49, %s1680_s17 }
  0xf7   : > { %691 = vrot.lane.b32.xlu1 %v1974_v18, %s1680_s17  ;;  %693 = vrot.lane.b32.xlu0 %v1979_v55, %s1680_s17 }
  0xfb   : > { %695 = vrot.lane.b32.xlu1 %v1984_v20, %s1680_s17  ;;  %697 = vrot.lane.b32.xlu0 %v1989_v61, %s1680_s17 }
  0xfd   : > { %v2122_v4 = vpop.permute.xlu0 %457 }
  0xff   : > { %699 = vrot.lane.b32.xlu1 %v1994_v22, %s1680_s17  ;;  %701 = vrot.lane.b32.xlu0 %v1999_v3, %s1680_s17 }
 0x101   : > { %v2136_v13 = vpop.permute.xlu1 %459  ;;  %v2138_v36 = vpop.permute.xlu0 %461 }
 0x103   : > { %703 = vrot.lane.b32.xlu1 %v2004_v24, %s1680_s17  ;;  %705 = vrot.lane.b32.xlu0 %v2009_v9, %s1680_s17 }
 0x105   : > { %v2152_v53 = vpop.permute.xlu1 %463  ;;  %v2154_v56 = vpop.permute.xlu0 %465 }
 0x107   : > { %707 = vrot.lane.b32.xlu1 %v2014_v26, %s1680_s17  ;;  %709 = vrot.lane.b32.xlu0 %v2019_v33, %s1680_s17 }
 0x109   : > { %v2170_v38 = vpop.permute.xlu1 %467  ;;  %v2172_v15 = vpop.permute.xlu0 %469 }
 0x10b   : > { %711 = vrot.lane.b32.xlu1 %v2024_v28, %s1680_s17  ;;  %969 = vrot.lane.b32.xlu0 %v905_v47, %s1680_s17  ;;  %v906_v47 = vmul.f32 0.5, %v874_v32  ;;  %v909_v32 = vmul.f32 0.5, %v877_v60 }
 0x10d   : > { %v2188_v23 = vpop.permute.xlu1 %471  ;;  %v2190_v8 = vpop.permute.xlu0 %473 }
 0x10e   : > { %3100 = vst [vmem:[#allocation11_spill] sm:$0xff] %v2190_v8  ;;  %v878_v8 = vmul.f32 %v1586_v59, %v1894_v46  ;;  %v841_v46 = vmul.f32 1.442695, %v601_v45  ;;  %v2213_v59 = vld [vmem:[%s2066_s20 + $0x98] sm:$0xff]  ;;  %v843_v45 = vmul.f32 1.442695, %v602_v50 }
 0x10f   : > { %971 = vrot.lane.b32.xlu1 %v906_v47, %s1680_s17  ;;  %973 = vrot.lane.b32.xlu0 %v907_v2, %s1680_s17  ;;  %v1592_v2 = vpop.eup %1591  ;;  %3103 = vst [vmem:[#allocation14_spill] sm:$0xff] %v2213_v59  ;;  %v2234_v50 = vld [vmem:[%s2066_s20 + $0xb0] sm:$0xff] }
 0x110   : > { %v1594_v39 = vpop.eup %1593  ;;  %v910_v60 = vmul.f32 0.5, %v878_v8  ;;  %v881_v29 = vmul.f32 %v1592_v2, %v1909_v57  ;;  %1607 = vpow2.f32 %v841_v46  ;;  %v605_v57 = vmin.f32 %v2218_v7, 4.1351666  ;;  %v2229_v8 = vld [vmem:[%s2066_s20 + $0xa8] sm:$0xff]  ;;  %3106 = vst [vmem:[#allocation17_spill] sm:$0xff] %v2234_v50 }
 0x111   : > { %v2204_v27 = vpop.permute.xlu1 %475  ;;  %v2206_v47 = vpop.permute.xlu0 %477  ;;  %3105 = vst [vmem:[#allocation16_spill] sm:$0xff] %v2229_v8  ;;  %v882_v17 = vmul.f32 %v1594_v39, %v1914_v58  ;;  %1609 = vpow2.f32 %v843_v45 }
 0x112   : > { %v1596_v40 = vpop.eup %1595  ;;  %v913_v2 = vmul.f32 0.5, %v881_v29  ;;  %1611 = vpow2.f32 %v845_v52  ;;  %v849_v58 = vmul.f32 1.442695, %v605_v57 }
 0x113   : > { %975 = vrot.lane.b32.xlu1 %v908_v42, %s1680_s17  ;;  %977 = vrot.lane.b32.xlu0 %v909_v32, %s1680_s17  ;;  %v604_v32 = vmin.f32 %v2213_v59, 4.1351666  ;;  %v1598_v34 = vpop.eup %1597  ;;  %v883_v35 = vmul.f32 %v1596_v40, %v1919_v63  ;;  %v607_v63 = vmin.f32 %v2234_v50, 4.1351666  ;;  %v914_v29 = vmul.f32 0.5, %v882_v17  ;;  %v2261_v17 = vld [vmem:[%s2066_s20 + $0xc8] sm:$0xff] }
 0x114   : > { %v1600_v46 = vpop.eup %1599  ;;  %v884_v7 = vmul.f32 %v1598_v34, %v1924_v0  ;;  %3109 = vst [vmem:[#allocation20_spill] sm:$0xff] %v2261_v17 }
 0x115   : > { %v2220_v10 = vpop.permute.xlu1 %479  ;;  %v2222_v42 = vpop.permute.xlu0 %481  ;;  %v847_v51 = vmul.f32 1.442695, %v604_v32  ;;  %v915_v40 = vmul.f32 0.5, %v883_v35  ;;  %v885_v45 = vmul.f32 %v1600_v46, %v1929_v5  ;;  %v2250_v32 = vld [vmem:[%s2066_s20 + $0xc0] sm:$0xff]  ;;  %v853_v0 = vmul.f32 1.442695, %v607_v63 }
 0x116   : > { %v1602_v39 = vpop.eup %1601  ;;  %3108 = vst [vmem:[#allocation19_spill] sm:$0xff] %v2250_v32  ;;  %v609_v5 = vmin.f32 %v2250_v32, 4.1351666  ;;  %v916_v35 = vmul.f32 0.5, %v884_v7  ;;  %v2277_v7 = vld [vmem:[%s2066_s20 + $0xd8] sm:$0xff] }
 0x117   : > { %979 = vrot.lane.b32.xlu1 %v910_v60, %s1680_s17  ;;  %981 = vrot.lane.b32.xlu0 %v911_v25, %s1680_s17  ;;  %v606_v25 = vmin.f32 %v2229_v8, 4.1351666  ;;  %v1604_v52 = vpop.eup %1603  ;;  %1613 = vpow2.f32 %v847_v51  ;;  %v917_v46 = vmul.f32 0.5, %v885_v45  ;;  %v886_v50 = vmul.f32 %v1602_v39, %v1934_v6  ;;  %3111 = vst [vmem:[#allocation22_spill] sm:$0xff] %v2277_v7 }
 0x118   : > { %1615 = vpow2.f32 %v849_v58  ;;  %v1606_v34 = vpop.eup %1605  ;;  %v887_v51 = vmul.f32 %v1604_v52, %v1939_v11  ;;  %v857_v6 = vmul.f32 1.442695, %v609_v5 }
 0x119   : > { %v2236_v59 = vpop.permute.xlu1 %483  ;;  %v2238_v60 = vpop.permute.xlu0 %485  ;;  %v851_v57 = vmul.f32 1.442695, %v606_v25  ;;  %v2266_v25 = vld [vmem:[%s2066_s20 + $0xd0] sm:$0xff]  ;;  %v918_v45 = vmul.f32 0.5, %v886_v50  ;;  %v888_v32 = vmul.f32 %v1606_v34, %v1944_v12  ;;  %v2293_v50 = vld [vmem:[%s2066_s20 + $0xe8] sm:$0xff] }
 0x11a   : > { %3110 = vst [vmem:[#allocation21_spill] sm:$0xff] %v2266_v25  ;;  %v1608_v58 = vpop.eup %1607  ;;  %v611_v11 = vmin.f32 %v2266_v25, 4.1351666  ;;  %v919_v52 = vmul.f32 0.5, %v887_v51  ;;  %3113 = vst [vmem:[#allocation24_spill] sm:$0xff] %v2293_v50 }
 0x11b   : > { %983 = vrot.lane.b32.xlu1 %v912_v19, %s1680_s17  ;;  %985 = vrot.lane.b32.xlu0 %v913_v2, %s1680_s17  ;;  %v608_v2 = vmin.f32 %v2245_v62, 4.1351666  ;;  %1617 = vpow2.f32 %v851_v57  ;;  %v1610_v39 = vpop.eup %1609  ;;  %v889_v57 = vmul.f32 %v1608_v58, %v1949_v37  ;;  %v920_v51 = vmul.f32 0.5, %v888_v32 }
 0x11c   : > { %1619 = vpow2.f32 %v853_v0  ;;  %v1612_v0 = vpop.eup %1611  ;;  %v861_v12 = vmul.f32 1.442695, %v611_v11  ;;  %v890_v25 = vmul.f32 %v1610_v39, %v1954_v14 }
 0x11d   : > { %v2252_v8 = vpop.permute.xlu1 %487  ;;  %v2254_v19 = vpop.permute.xlu0 %489  ;;  %v855_v63 = vmul.f32 1.442695, %v608_v2  ;;  %v2282_v2 = vld [vmem:[%s2066_s20 + $0xe0] sm:$0xff]  ;;  %v921_v58 = vmul.f32 0.5, %v889_v57 }
 0x11e   : > { %3112 = vst [vmem:[#allocation23_spill] sm:$0xff] %v2282_v2  ;;  %v613_v37 = vmin.f32 %v2282_v2, 4.1351666  ;;  %v922_v39 = vmul.f32 0.5, %v890_v25 }
 0x11f   : > { %987 = vrot.lane.b32.xlu1 %v914_v29, %s1680_s17  ;;  %989 = vrot.lane.b32.xlu0 %v915_v40, %s1680_s17  ;;  %v610_v40 = vmin.f32 %v2261_v17, 4.1351666  ;;  %1621 = vpow2.f32 %v855_v63  ;;  %v891_v63 = vmul.f32 %v1612_v0, %v1959_v43 }
 0x120   : > { %1623 = vpow2.f32 %v857_v6  ;;  %v865_v14 = vmul.f32 1.442695, %v613_v37 }
 0x121   : > { %v2268_v62 = vpop.permute.xlu1 %491  ;;  %v2270_v29 = vpop.permute.xlu0 %493  ;;  %v859_v5 = vmul.f32 1.442695, %v610_v40  ;;  %v2298_v40 = vld [vmem:[%s2066_s20 + $0xf0] sm:$0xff]  ;;  %v923_v57 = vmul.f32 0.5, %v891_v63 }
 0x122   : > { %v1614_v34 = vpop.eup %1613  ;;  %3114 = vst [vmem:[#allocation25_spill] sm:$0xff] %v2298_v40  ;;  %v615_v43 = vmin.f32 %v2298_v40, 4.1351666 }
 0x123   : > { %991 = vrot.lane.b32.xlu1 %v916_v35, %s1680_s17  ;;  %993 = vrot.lane.b32.xlu0 %v917_v46, %s1680_s17  ;;  %v612_v46 = vmin.f32 %v2277_v7, 4.1351666  ;;  %v1616_v6 = vpop.eup %1615  ;;  %1625 = vpow2.f32 %v859_v5  ;;  %v892_v0 = vmul.f32 %v1614_v34, %v1964_v16 }
 0x124   : > { %1627 = vpow2.f32 %v861_v12  ;;  %v893_v2 = vmul.f32 %v1616_v6, %v1969_v49  ;;  %v869_v25 = vmul.f32 1.442695, %v615_v43 }
 0x125   : > { %v2284_v17 = vpop.permute.xlu1 %495  ;;  %v2286_v35 = vpop.permute.xlu0 %497  ;;  %v863_v11 = vmul.f32 1.442695, %v612_v46  ;;  %v924_v37 = vmul.f32 0.5, %v892_v0 }
 0x126   : > { %v1618_v32 = vpop.eup %1617  ;;  %v925_v49 = vmul.f32 0.5, %v893_v2 }
 0x127   : > { %995 = vrot.lane.b32.xlu1 %v918_v45, %s1680_s17  ;;  %997 = vrot.lane.b32.xlu0 %v919_v52, %s1680_s17  ;;  %v614_v52 = vmin.f32 %v2293_v50, 4.1351666  ;;  %1629 = vpow2.f32 %v863_v11  ;;  %v894_v34 = vmul.f32 %v1618_v32, %v1974_v18 }
 0x128   : > { %1631 = vpow2.f32 %v865_v14 }
 0x129   : > { %v2300_v7 = vpop.permute.xlu1 %499  ;;  %v2302_v45 = vpop.permute.xlu0 %501  ;;  %v926_v43 = vmul.f32 0.5, %v894_v34 }
 0x12a   : > { %3115 = vst [vmem:[#allocation26_spill] sm:$0xff] %v2302_v45  ;;  %v2311_v45 = vld [vmem:[%s2066_s20 + $0xf8] sm:$0xff] }
 0x12b   : > { %999 = vrot.lane.b32.xlu1 %v920_v51, %s1680_s17  ;;  %1001 = vrot.lane.b32.xlu0 %v921_v58, %s1680_s17  ;;  %3116 = vst [vmem:[#allocation27_spill] sm:$0xff] %v2311_v45  ;;  %v1620_v51 = vpop.eup %1619  ;;  %v867_v58 = vmul.f32 1.442695, %v614_v52  ;;  %v616_v12 = vmin.f32 %v2311_v45, 4.1351666 }
 0x12c   : > { %v1622_v16 = vpop.eup %1621  ;;  %v895_v63 = vmul.f32 %v1620_v51, %v1979_v55 }
 0x12d   : > { %v2313_v5 = vpop.permute.xlu1 %503  ;;  %v2315_v46 = vpop.permute.xlu0 %505  ;;  %1633 = vpow2.f32 %v867_v58  ;;  %v871_v52 = vmul.f32 1.442695, %v616_v12  ;;  %v896_v2 = vmul.f32 %v1622_v16, %v1984_v20 }
 0x12e   : > { %3117 = vst [vmem:[#allocation28_spill] sm:$0xff] %v2313_v5  ;;  %3118 = vst [vmem:[#allocation29_spill] sm:$0xff] %v2315_v46  ;;  %v1624_v11 = vpop.eup %1623  ;;  %1635 = vpow2.f32 %v869_v25 }
 0x12f   : > { %1003 = vrot.lane.b32.xlu1 %v922_v39, %s1680_s17  ;;  %1005 = vrot.lane.b32.xlu0 %v923_v57, %s1680_s17  ;;  %v1626_v14 = vpop.eup %1625  ;;  %v927_v39 = vmul.f32 0.5, %v895_v63  ;;  %v897_v18 = vmul.f32 %v1624_v11, %v1989_v61  ;;  %1637 = vpow2.f32 %v871_v52  ;;  %v928_v51 = vmul.f32 0.5, %v896_v2 }
 0x130   : > { %v1628_v57 = vpop.eup %1627  ;;  %v898_v25 = vmul.f32 %v1626_v14, %v1994_v22 }
 0x131   : > { %v2322_v6 = vpop.permute.xlu1 %507  ;;  %v2324_v40 = vpop.permute.xlu0 %509  ;;  %v929_v58 = vmul.f32 0.5, %v897_v18  ;;  %v899_v12 = vmul.f32 %v1628_v57, %v1999_v3 }
 0x132   : > { %3119 = vst [vmem:[#allocation30_spill] sm:$0xff] %v2322_v6  ;;  %3120 = vst [vmem:[#allocation31_spill] sm:$0xff] %v2324_v40  ;;  %v1630_v0 = vpop.eup %1629  ;;  %v1639_v6 = vld [vmem:[%s1710_s15] sm:$0xff] }
 0x133   : > { %1007 = vrot.lane.b32.xlu1 %v924_v37, %s1680_s17  ;;  %1009 = vrot.lane.b32.xlu0 %v925_v49, %s1680_s17  ;;  %v1632_v16 = vpop.eup %1631  ;;  %v930_v49 = vmul.f32 0.5, %v898_v25  ;;  %v931_v34 = vmul.f32 0.5, %v899_v12  ;;  %v900_v63 = vmul.f32 %v1630_v0, %v2004_v24  ;;  %v553_v46 = vadd.f32 %v1639_v6, %v2122_v4 }
 0x134   : > { %v901_v11 = vmul.f32 %v1632_v16, %v2009_v9 }
 0x135   : > { %v2330_v55 = vpop.permute.xlu1 %511  ;;  %v2332_v32 = vpop.permute.xlu0 %513  ;;  %v932_v14 = vmul.f32 0.5, %v900_v63 }
 0x136   : > { %3121 = vst [vmem:[#allocation32_spill] sm:$0xff] %v2330_v55  ;;  %3122 = vst [vmem:[#allocation33_spill] sm:$0xff] %v2332_v32 }
 0x137   : > { %1011 = vrot.lane.b32.xlu1 %v926_v43, %s1680_s17  ;;  %1013 = vrot.lane.b32.xlu0 %v927_v39, %s1680_s17  ;;  %v1634_v37 = vpop.eup %1633  ;;  %v933_v43 = vmul.f32 0.5, %v901_v11 }
 0x138   : > { %v1636_v3 = vpop.eup %1635  ;;  %v902_v39 = vmul.f32 %v1634_v37, %v2014_v26 }
 0x139   : > { %v2338_v20 = vpop.permute.xlu1 %515  ;;  %v2340_v61 = vpop.permute.xlu0 %517  ;;  %v903_v2 = vmul.f32 %v1636_v3, %v2019_v33 }
 0x13a   : > { %3123 = vst [vmem:[#allocation34_spill] sm:$0xff] %v2338_v20  ;;  %3124 = vst [vmem:[#allocation35_spill] sm:$0xff] %v2340_v61  ;;  %v934_v24 = vmul.f32 0.5, %v902_v39 }
 0x13b   : > { %1015 = vrot.lane.b32.xlu1 %v928_v51, %s1680_s17  ;;  %1017 = vrot.lane.b32.xlu0 %v929_v58, %s1680_s17  ;;  %v1638_v51 = vpop.eup %1637  ;;  %v935_v9 = vmul.f32 0.5, %v903_v2 }
 0x13c   : > { %v904_v0 = vmul.f32 %v1638_v51, %v2024_v28 }
 0x13d   : > { %v2346_v52 = vpop.permute.xlu1 %519  ;;  %v650_v22 = vpop.permute.xlu0 %649 }
 0x13e   : > { %3125 = vst [vmem:[#allocation36_spill] sm:$0xff] %v2346_v52  ;;  %v936_v26 = vmul.f32 0.5, %v904_v0  ;;  %v745_v32 = vmul.f32 %v650_v22, %v2073_v30  ;;  %v1642_v22 = vld [vmem:[%s1710_s15 + $0x18] sm:$0xff] }
 0x13f   : > { %1019 = vrot.lane.b32.xlu1 %v930_v49, %s1680_s17  ;;  %1021 = vrot.lane.b32.xlu0 %v931_v34, %s1680_s17 }
 0x140   : > { %v2409_v5 = vadd.f32 %v745_v32, %v553_v46  ;;  %v1641_v46 = vld [vmem:[%s1710_s15 + $0x10] sm:$0xff] }
 0x141   : > { %v652_v18 = vpop.permute.xlu1 %651  ;;  %v654_v57 = vpop.permute.xlu0 %653 }
 0x143   : > { %1023 = vrot.lane.b32.xlu1 %v932_v14, %s1680_s17  ;;  %1025 = vrot.lane.b32.xlu0 %v933_v43, %s1680_s17 }
 0x145   : > { %v656_v58 = vpop.permute.xlu1 %655  ;;  %v658_v25 = vpop.permute.xlu0 %657 }
 0x147   : > { %1027 = vrot.lane.b32.xlu1 %v934_v24, %s1680_s17  ;;  %1029 = vrot.lane.b32.xlu0 %v935_v9, %s1680_s17 }
 0x149   : > { %v660_v12 = vpop.permute.xlu1 %659  ;;  %v662_v33 = vpop.permute.xlu0 %661 }
 0x14b   : > { %1031 = vrot.lane.b32.xlu1 %v936_v26, %s1680_s17 }
 0x14d   : > { %v2358_v16 = vpop.permute.xlu1 %663  ;;  %v2360_v37 = vpop.permute.xlu0 %665 }
 0x151   : > { %v2362_v49 = vpop.permute.xlu1 %667  ;;  %v2364_v34 = vpop.permute.xlu0 %669 }
 0x155   : > { %v2366_v28 = vpop.permute.xlu1 %671  ;;  %v2368_v63 = vpop.permute.xlu0 %673 }
 0x159   : > { %v2370_v11 = vpop.permute.xlu1 %675  ;;  %v2372_v3 = vpop.permute.xlu0 %677 }
 0x15d   : > { %v2374_v14 = vpop.permute.xlu1 %679  ;;  %v2376_v43 = vpop.permute.xlu0 %681 }
 0x161   : > { %v2378_v39 = vpop.permute.xlu1 %683  ;;  %v2380_v2 = vpop.permute.xlu0 %685 }
 0x165   : > { %v2382_v51 = vpop.permute.xlu1 %687  ;;  %v2384_v24 = vpop.permute.xlu0 %689 }
 0x169   : > { %v2386_v9 = vpop.permute.xlu1 %691  ;;  %v2388_v0 = vpop.permute.xlu0 %693 }
 0x16d   : > { %v2390_v26 = vpop.permute.xlu1 %695  ;;  %v2392_v52 = vpop.permute.xlu0 %697 }
 0x16e   : > { %3126 = vst [vmem:[#allocation37_spill] sm:$0xff] %v2392_v52 }
 0x171   : > { %v2394_v45 = vpop.permute.xlu1 %699  ;;  %v2396_v61 = vpop.permute.xlu0 %701 }
 0x172   : > { %3127 = vst [vmem:[#allocation38_spill] sm:$0xff] %v2394_v45  ;;  %3128 = vst [vmem:[#allocation39_spill] sm:$0xff] %v2396_v61  ;;  %v746_v45 = vmul.f32 %v652_v18, %v2084_v41  ;;  %v747_v61 = vmul.f32 %v654_v57, %v2080_v31  ;;  %v555_v41 = vadd.f32 %v1641_v46, %v2138_v36 }
 0x173   : > { %v748_v31 = vmul.f32 %v656_v58, %v2092_v44  ;;  %v749_v57 = vmul.f32 %v658_v25, %v2096_v48 }
 0x174   : > { %v2428_v18 = vadd.f32 %v747_v61, %v555_v41 }
 0x175   : > { %v2398_v20 = vpop.permute.xlu1 %703  ;;  %v2400_v50 = vpop.permute.xlu0 %705 }
 0x176   : > { %3129 = vst [vmem:[#allocation40_spill] sm:$0xff] %v2398_v20  ;;  %3130 = vst [vmem:[#allocation41_spill] sm:$0xff] %v2400_v50  ;;  %v1640_v50 = vld [vmem:[%s1710_s15 + $0x8] sm:$0xff] }
 0x177   : > { %v554_v30 = vadd.f32 %v1640_v50, %v2136_v13 }
 0x179   : > { %v2403_v55 = vpop.permute.xlu1 %707  ;;  %v2405_v40 = vpop.permute.xlu0 %709  ;;  %v2425_v6 = vadd.f32 %v746_v45, %v554_v30  ;;  %v1643_v45 = vld [vmem:[%s1710_s15 + $0x20] sm:$0xff] }
 0x17a   : > { %v557_v61 = vadd.f32 %v1643_v45, %v2154_v56 }
 0x17d   : > { %v2413_v20 = vpop.permute.xlu1 %711  ;;  %v2415_v52 = vpop.permute.xlu0 %969 }
 0x17e   : > { %3131 = vst [vmem:[#allocation42_spill] sm:$0xff] %v2413_v20  ;;  %3132 = vst [vmem:[#allocation43_spill] sm:$0xff] %v2415_v52  ;;  %v1161_v4 = vadd.f32 %v2415_v52, %v2409_v5  ;;  %v556_v20 = vadd.f32 %v1642_v22, %v2152_v53  ;;  %v750_v53 = vmul.f32 %v660_v12, %v2105_v54 }
 0x17f   : > { %v2451_v22 = vadd.f32 %v749_v57, %v557_v61  ;;  %v752_v57 = vmul.f32 %v2358_v16, %v2117_v1  ;;  %v3136_v1 = vld [vmem:[#allocation4_spill] sm:$0xff] }
 0x180   : > { %v1193_v32 = vmax.f32 %v1161_v4, 0.0  ;;  %v2447_v25 = vadd.f32 %v748_v31, %v556_v20  ;;  %v751_v4 = vmul.f32 %v662_v33, %v2108_v21 }
 0x181   : > { %v2431_v13 = vpop.permute.xlu1 %971  ;;  %v2433_v50 = vpop.permute.xlu0 %973 }
 0x182   : > { %v1225_v52 = vmin.f32 %v1193_v32, 16.0  ;;  %v1162_v44 = vadd.f32 %v2431_v13, %v2425_v6  ;;  %v1163_v58 = vadd.f32 %v2433_v50, %v2428_v18  ;;  %v1644_v32 = vld [vmem:[%s1710_s15 + $0x28] sm:$0xff] }
 0x183   : > { %v558_v45 = vadd.f32 %v1644_v32, %v2170_v38 }
 0x184   : > { %v1194_v30 = vmax.f32 %v1162_v44, 0.0  ;;  %1289 = vrot.lane.b32.xlu0 %v1225_v52, %s1679_s16  ;;  %v1195_v46 = vmax.f32 %v1163_v58, 0.0  ;;  %v1645_v52 = vld [vmem:[%s1710_s15 + $0x30] sm:$0xff]  ;;  %v3133_v58 = vld [vmem:[#allocation2_spill] sm:$0xff] }
 0x185   : > { %v2454_v56 = vpop.permute.xlu1 %975  ;;  %v2456_v41 = vpop.permute.xlu0 %977  ;;  %v559_v12 = vadd.f32 %v1645_v52, %v2172_v15  ;;  %v2470_v38 = vadd.f32 %v750_v53, %v558_v45  ;;  %v753_v15 = vmul.f32 %v2360_v37, %v3133_v58  ;;  %v1646_v53 = vld [vmem:[%s1710_s15 + $0x38] sm:$0xff]  ;;  %v3134_v37 = vld [vmem:[#allocation11_spill] sm:$0xff] }
 0x186   : > { %v1226_v48 = vmin.f32 %v1194_v30, 16.0  ;;  %v1164_v54 = vadd.f32 %v2454_v56, %v2447_v25  ;;  %v1227_v21 = vmin.f32 %v1195_v46, 16.0  ;;  %v1165_v31 = vadd.f32 %v2456_v41, %v2451_v22 }
 0x187   : > { %v2475_v61 = vadd.f32 %v751_v4, %v559_v12  ;;  %v560_v45 = vadd.f32 %v1646_v53, %v2188_v23 }
 0x188   : > { %v1196_v44 = vmax.f32 %v1164_v54, 0.0  ;;  %1291 = vrot.lane.b32.xlu1 %v1226_v48, %s1679_s16  ;;  %v1197_v30 = vmax.f32 %v1165_v31, 0.0  ;;  %1293 = vrot.lane.b32.xlu0 %v1227_v21, %s1679_s16  ;;  %v1647_v48 = vld [vmem:[%s1710_s15 + $0x40] sm:$0xff]  ;;  %v3135_v31 = vld [vmem:[#allocation3_spill] sm:$0xff] }
 0x189   : > { %v2480_v46 = vpop.permute.xlu1 %979  ;;  %v2482_v32 = vpop.permute.xlu0 %981  ;;  %v561_v4 = vadd.f32 %v1647_v48, %v3134_v37  ;;  %v2496_v23 = vadd.f32 %v752_v57, %v560_v45  ;;  %v1648_v57 = vld [vmem:[%s1710_s15 + $0x48] sm:$0xff] }
 0x18a   : > { %v1228_v52 = vmin.f32 %v1196_v44, 16.0  ;;  %v1166_v16 = vadd.f32 %v2480_v46, %v2470_v38  ;;  %v1229_v54 = vmin.f32 %v1197_v30, 16.0  ;;  %v1167_v21 = vadd.f32 %v2482_v32, %v2475_v61 }
 0x18b   : > { %v754_v44 = vmul.f32 %v2362_v49, %v3135_v31  ;;  %v2501_v53 = vadd.f32 %v753_v15, %v561_v4  ;;  %v755_v30 = vmul.f32 %v2364_v34, %v3136_v1  ;;  %v562_v45 = vadd.f32 %v1648_v57, %v2204_v27  ;;  %v3138_v57 = vld [vmem:[#allocation6_spill] sm:$0xff] }
 0x18c   : > { %v1198_v58 = vmax.f32 %v1166_v16, 0.0  ;;  %1295 = vrot.lane.b32.xlu1 %v1228_v52, %s1679_s16  ;;  %v1199_v48 = vmax.f32 %v1167_v21, 0.0  ;;  %1297 = vrot.lane.b32.xlu0 %v1229_v54, %s1679_s16  ;;  %v1649_v52 = vld [vmem:[%s1710_s15 + $0x50] sm:$0xff]  ;;  %v3137_v54 = vld [vmem:[#allocation5_spill] sm:$0xff] }
 0x18d   : > { %v2506_v37 = vpop.permute.xlu1 %983  ;;  %v2508_v12 = vpop.permute.xlu0 %985  ;;  %v563_v34 = vadd.f32 %v1649_v52, %v2206_v47  ;;  %v2522_v27 = vadd.f32 %v754_v44, %v562_v45  ;;  %v756_v21 = vmul.f32 %v2366_v28, %v3137_v54  ;;  %v757_v47 = vmul.f32 %v2368_v63, %v3138_v57  ;;  %v1650_v44 = vld [vmem:[%s1710_s15 + $0x58] sm:$0xff] }
 0x18e   : > { %v1230_v33 = vmin.f32 %v1198_v58, 16.0  ;;  %v1168_v15 = vadd.f32 %v2506_v37, %v2496_v23  ;;  %v1231_v1 = vmin.f32 %v1199_v48, 16.0  ;;  %v1169_v4 = vadd.f32 %v2508_v12, %v2501_v53 }
 0x18f   : > { %v2527_v58 = vadd.f32 %v755_v30, %v563_v34  ;;  %v564_v45 = vadd.f32 %v1650_v44, %v2220_v10  ;;  %v1651_v30 = vld [vmem:[%s1710_s15 + $0x60] sm:$0xff]  ;;  %v3140_v44 = vld [vmem:[#allocation8_spill] sm:$0xff] }
 0x190   : > { %v1200_v31 = vmax.f32 %v1168_v15, 0.0  ;;  %1299 = vrot.lane.b32.xlu1 %v1230_v33, %s1679_s16  ;;  %v1201_v48 = vmax.f32 %v1169_v4, 0.0  ;;  %1301 = vrot.lane.b32.xlu0 %v1231_v1, %s1679_s16  ;;  %v565_v63 = vadd.f32 %v1651_v30, %v2222_v42  ;;  %v3139_v4 = vld [vmem:[#allocation7_spill] sm:$0xff]  ;;  %v759_v42 = vmul.f32 %v2372_v3, %v3140_v44 }
 0x191   : > { %v2532_v52 = vpop.permute.xlu1 %987  ;;  %v2534_v16 = vpop.permute.xlu0 %989  ;;  %v2548_v10 = vadd.f32 %v756_v21, %v564_v45  ;;  %v758_v54 = vmul.f32 %v2370_v11, %v3139_v4  ;;  %v1652_v21 = vld [vmem:[%s1710_s15 + $0x68] sm:$0xff] }
 0x192   : > { %v1232_v49 = vmin.f32 %v1200_v31, 16.0  ;;  %v1170_v33 = vadd.f32 %v2532_v52, %v2522_v27  ;;  %v1233_v15 = vmin.f32 %v1201_v48, 16.0  ;;  %v1171_v1 = vadd.f32 %v2534_v16, %v2527_v58 }
 0x193   : > { %v2553_v57 = vadd.f32 %v757_v47, %v565_v63  ;;  %v566_v45 = vadd.f32 %v1652_v21, %v2236_v59  ;;  %v1653_v47 = vld [vmem:[%s1710_s15 + $0x70] sm:$0xff]  ;;  %v3142_v21 = vld [vmem:[#allocation10_spill] sm:$0xff] }
 0x194   : > { %v1202_v31 = vmax.f32 %v1170_v33, 0.0  ;;  %1303 = vrot.lane.b32.xlu1 %v1232_v49, %s1679_s16  ;;  %v1203_v48 = vmax.f32 %v1171_v1, 0.0  ;;  %1305 = vrot.lane.b32.xlu0 %v1233_v15, %s1679_s16  ;;  %v567_v3 = vadd.f32 %v1653_v47, %v2238_v60  ;;  %v3141_v1 = vld [vmem:[#allocation9_spill] sm:$0xff]  ;;  %v761_v60 = vmul.f32 %v2376_v43, %v3142_v21 }
 0x195   : > { %v2558_v30 = vpop.permute.xlu1 %991  ;;  %v2560_v34 = vpop.permute.xlu0 %993  ;;  %v2574_v59 = vadd.f32 %v758_v54, %v566_v45  ;;  %v760_v4 = vmul.f32 %v2374_v14, %v3141_v1  ;;  %v1654_v54 = vld [vmem:[%s1710_s15 + $0x78] sm:$0xff] }
 0x196   : > { %v1234_v28 = vmin.f32 %v1202_v31, 16.0  ;;  %v1172_v49 = vadd.f32 %v2558_v30, %v2548_v10  ;;  %v1235_v33 = vmin.f32 %v1203_v48, 16.0  ;;  %v1173_v15 = vadd.f32 %v2560_v34, %v2553_v57 }
 0x197   : > { %v2579_v44 = vadd.f32 %v759_v42, %v567_v3  ;;  %v568_v45 = vadd.f32 %v1654_v54, %v2252_v8  ;;  %v1655_v42 = vld [vmem:[%s1710_s15 + $0x80] sm:$0xff]  ;;  %v3144_v54 = vld [vmem:[#allocation13_spill] sm:$0xff] }
 0x198   : > { %v1204_v31 = vmax.f32 %v1172_v49, 0.0  ;;  %1307 = vrot.lane.b32.xlu1 %v1234_v28, %s1679_s16  ;;  %v1205_v48 = vmax.f32 %v1173_v15, 0.0  ;;  %1309 = vrot.lane.b32.xlu0 %v1235_v33, %s1679_s16  ;;  %v569_v43 = vadd.f32 %v1655_v42, %v2254_v19  ;;  %v3143_v15 = vld [vmem:[#allocation12_spill] sm:$0xff]  ;;  %v763_v19 = vmul.f32 %v2380_v2, %v3144_v54 }
 0x199   : > { %v2584_v47 = vpop.permute.xlu1 %995  ;;  %v2586_v63 = vpop.permute.xlu0 %997  ;;  %v2600_v8 = vadd.f32 %v760_v4, %v568_v45  ;;  %v762_v1 = vmul.f32 %v2378_v39, %v3143_v15  ;;  %v1656_v4 = vld [vmem:[%s1710_s15 + $0x88] sm:$0xff] }
 0x19a   : > { %v1236_v11 = vmin.f32 %v1204_v31, 16.0  ;;  %v1174_v28 = vadd.f32 %v2584_v47, %v2574_v59  ;;  %v1237_v49 = vmin.f32 %v1205_v48, 16.0  ;;  %v1175_v33 = vadd.f32 %v2586_v63, %v2579_v44 }
 0x19b   : > { %v2605_v21 = vadd.f32 %v761_v60, %v569_v43  ;;  %v570_v45 = vadd.f32 %v1656_v4, %v2268_v62  ;;  %v1657_v60 = vld [vmem:[%s1710_s15 + $0x90] sm:$0xff]  ;;  %v3146_v4 = vld [vmem:[#allocation15_spill] sm:$0xff] }
 0x19c   : > { %v1206_v31 = vmax.f32 %v1174_v28, 0.0  ;;  %1311 = vrot.lane.b32.xlu1 %v1236_v11, %s1679_s16  ;;  %v1207_v48 = vmax.f32 %v1175_v33, 0.0  ;;  %1313 = vrot.lane.b32.xlu0 %v1237_v49, %s1679_s16  ;;  %v571_v2 = vadd.f32 %v1657_v60, %v2270_v29  ;;  %v3145_v33 = vld [vmem:[#allocation14_spill] sm:$0xff]  ;;  %v765_v29 = vmul.f32 %v2384_v24, %v3146_v4 }
 0x19d   : > { %v2610_v42 = vpop.permute.xlu1 %999  ;;  %v2612_v3 = vpop.permute.xlu0 %1001  ;;  %v2626_v62 = vadd.f32 %v762_v1, %v570_v45  ;;  %v764_v15 = vmul.f32 %v2382_v51, %v3145_v33  ;;  %v1658_v1 = vld [vmem:[%s1710_s15 + $0x98] sm:$0xff] }
 0x19e   : > { %v1238_v14 = vmin.f32 %v1206_v31, 16.0  ;;  %v1176_v11 = vadd.f32 %v2610_v42, %v2600_v8  ;;  %v1239_v28 = vmin.f32 %v1207_v48, 16.0  ;;  %v1177_v49 = vadd.f32 %v2612_v3, %v2605_v21 }
 0x19f   : > { %v2631_v54 = vadd.f32 %v763_v19, %v571_v2  ;;  %v572_v45 = vadd.f32 %v1658_v1, %v2284_v17  ;;  %v1659_v19 = vld [vmem:[%s1710_s15 + $0xa0] sm:$0xff]  ;;  %v3148_v1 = vld [vmem:[#allocation17_spill] sm:$0xff] }
 0x1a0   : > { %v1208_v31 = vmax.f32 %v1176_v11, 0.0  ;;  %1315 = vrot.lane.b32.xlu1 %v1238_v14, %s1679_s16  ;;  %v1209_v48 = vmax.f32 %v1177_v49, 0.0  ;;  %1317 = vrot.lane.b32.xlu0 %v1239_v28, %s1679_s16  ;;  %v573_v24 = vadd.f32 %v1659_v19, %v2286_v35  ;;  %v3147_v49 = vld [vmem:[#allocation16_spill] sm:$0xff]  ;;  %v767_v35 = vmul.f32 %v2388_v0, %v3148_v1  ;;  %v3150_v0 = vld [vmem:[#allocation26_spill] sm:$0xff] }
 0x1a1   : > { %v2636_v60 = vpop.permute.xlu1 %1003  ;;  %v2638_v43 = vpop.permute.xlu0 %1005  ;;  %v2652_v17 = vadd.f32 %v764_v15, %v572_v45  ;;  %v766_v33 = vmul.f32 %v2386_v9, %v3147_v49  ;;  %v1660_v15 = vld [vmem:[%s1710_s15 + $0xa8] sm:$0xff]  ;;  %v3152_v49 = vld [vmem:[#allocation18_spill] sm:$0xff] }
 0x1a2   : > { %v1240_v39 = vmin.f32 %v1208_v31, 16.0  ;;  %v1178_v14 = vadd.f32 %v2636_v60, %v2626_v62  ;;  %v1241_v11 = vmin.f32 %v1209_v48, 16.0  ;;  %v1179_v28 = vadd.f32 %v2638_v43, %v2631_v54  ;;  %v3154_v9 = vld [vmem:[#allocation19_spill] sm:$0xff] }
 0x1a3   : > { %v2657_v4 = vadd.f32 %v765_v29, %v573_v24  ;;  %v574_v45 = vadd.f32 %v1660_v15, %v2300_v7  ;;  %v1661_v29 = vld [vmem:[%s1710_s15 + $0xb0] sm:$0xff] }
 0x1a4   : > { %v1210_v31 = vmax.f32 %v1178_v14, 0.0  ;;  %1319 = vrot.lane.b32.xlu1 %v1240_v39, %s1679_s16  ;;  %v1211_v48 = vmax.f32 %v1179_v28, 0.0  ;;  %1321 = vrot.lane.b32.xlu0 %v1241_v11, %s1679_s16  ;;  %v575_v14 = vadd.f32 %v1661_v29, %v3150_v0  ;;  %v3155_v29 = vld [vmem:[#allocation37_spill] sm:$0xff] }
 0x1a5   : > { %v2662_v19 = vpop.permute.xlu1 %1007  ;;  %v2664_v2 = vpop.permute.xlu0 %1009  ;;  %v2678_v7 = vadd.f32 %v766_v33, %v574_v45  ;;  %v1662_v33 = vld [vmem:[%s1710_s15 + $0xb8] sm:$0xff]  ;;  %v3158_v45 = vld [vmem:[#allocation28_spill] sm:$0xff] }
 0x1a6   : > { %3149 = vst [vmem:[#allocation2_spill] sm:$0xff] %v2664_v2  ;;  %v1242_v51 = vmin.f32 %v1210_v31, 16.0  ;;  %v1180_v39 = vadd.f32 %v2662_v19, %v2652_v17  ;;  %v1243_v24 = vmin.f32 %v1211_v48, 16.0  ;;  %v1181_v28 = vadd.f32 %v2664_v2, %v2657_v4 }
 0x1a7   : > { %3151 = vst [vmem:[#allocation11_spill] sm:$0xff] %v2678_v7  ;;  %v768_v31 = vmul.f32 %v2390_v26, %v3152_v49  ;;  %v2683_v15 = vadd.f32 %v767_v35, %v575_v14  ;;  %v769_v48 = vmul.f32 %v3155_v29, %v3154_v9  ;;  %v576_v36 = vadd.f32 %v1662_v33, %v3158_v45  ;;  %v1663_v35 = vld [vmem:[%s1710_s15 + $0xc0] sm:$0xff]  ;;  %v3159_v9 = vld [vmem:[#allocation29_spill] sm:$0xff] }
 0x1a8   : > { %v1212_v1 = vmax.f32 %v1180_v39, 0.0  ;;  %1323 = vrot.lane.b32.xlu1 %v1242_v51, %s1679_s16  ;;  %v1213_v0 = vmax.f32 %v1181_v28, 0.0  ;;  %1325 = vrot.lane.b32.xlu0 %v1243_v24, %s1679_s16  ;;  %v577_v39 = vadd.f32 %v1663_v35, %v3159_v9  ;;  %v3162_v29 = vld [vmem:[#allocation38_spill] sm:$0xff]  ;;  %v3165_v35 = vld [vmem:[#allocation39_spill] sm:$0xff] }
 0x1a9   : > { %3153 = vst [vmem:[#allocation3_spill] sm:$0xff] %v2683_v15  ;;  %v2688_v11 = vpop.permute.xlu1 %1011  ;;  %v2690_v20 = vpop.permute.xlu0 %1013  ;;  %v2704_v49 = vadd.f32 %v768_v31, %v576_v36  ;;  %v1664_v36 = vld [vmem:[%s1710_s15 + $0xc8] sm:$0xff]  ;;  %v3168_v31 = vld [vmem:[#allocation30_spill] sm:$0xff] }
 0x1aa   : > { %3156 = vst [vmem:[#allocation4_spill] sm:$0xff] %v2688_v11  ;;  %3157 = vst [vmem:[#allocation5_spill] sm:$0xff] %v2690_v20  ;;  %v1244_v2 = vmin.f32 %v1212_v1, 16.0  ;;  %v1182_v51 = vadd.f32 %v2688_v11, %v2678_v7  ;;  %v1245_v14 = vmin.f32 %v1213_v0, 16.0  ;;  %v1183_v28 = vadd.f32 %v2690_v20, %v2683_v15  ;;  %v3161_v1 = vld [vmem:[#allocation20_spill] sm:$0xff]  ;;  %v3164_v11 = vld [vmem:[#allocation21_spill] sm:$0xff] }
 0x1ab   : > { %3160 = vst [vmem:[#allocation6_spill] sm:$0xff] %v2704_v49  ;;  %v770_v33 = vmul.f32 %v3162_v29, %v3161_v1  ;;  %v2709_v26 = vadd.f32 %v769_v48, %v577_v39  ;;  %v771_v0 = vmul.f32 %v3165_v35, %v3164_v11  ;;  %v578_v15 = vadd.f32 %v1664_v36, %v3168_v31  ;;  %v1665_v48 = vld [vmem:[%s1710_s15 + $0xd0] sm:$0xff]  ;;  %v3169_v11 = vld [vmem:[#allocation31_spill] sm:$0xff] }
 0x1ac   : > { %v1214_v45 = vmax.f32 %v1182_v51, 0.0  ;;  %1327 = vrot.lane.b32.xlu1 %v1244_v2, %s1679_s16  ;;  %v1215_v9 = vmax.f32 %v1183_v28, 0.0  ;;  %1329 = vrot.lane.b32.xlu0 %v1245_v14, %s1679_s16  ;;  %v579_v39 = vadd.f32 %v1665_v48, %v3169_v11  ;;  %v3171_v35 = vld [vmem:[#allocation40_spill] sm:$0xff]  ;;  %v3174_v48 = vld [vmem:[#allocation41_spill] sm:$0xff] }
 0x1ad   : > { %3163 = vst [vmem:[#allocation7_spill] sm:$0xff] %v2709_v26  ;;  %v2714_v24 = vpop.permute.xlu1 %1015  ;;  %v2716_v20 = vpop.permute.xlu0 %1017  ;;  %v2730_v29 = vadd.f32 %v770_v33, %v578_v15  ;;  %v1666_v15 = vld [vmem:[%s1710_s15 + $0xd8] sm:$0xff]  ;;  %v3176_v33 = vld [vmem:[#allocation32_spill] sm:$0xff] }
 0x1ae   : > { %3166 = vst [vmem:[#allocation8_spill] sm:$0xff] %v2714_v24  ;;  %3167 = vst [vmem:[#allocation9_spill] sm:$0xff] %v2716_v20  ;;  %v1246_v7 = vmin.f32 %v1214_v45, 16.0  ;;  %v1184_v2 = vadd.f32 %v2714_v24, %v2704_v49  ;;  %v1247_v28 = vmin.f32 %v1215_v9, 16.0  ;;  %v1185_v1 = vadd.f32 %v2716_v20, %v2709_v26  ;;  %v3170_v45 = vld [vmem:[#allocation22_spill] sm:$0xff]  ;;  %v3173_v24 = vld [vmem:[#allocation23_spill] sm:$0xff] }
 0x1af   : > { %v772_v36 = vmul.f32 %v3171_v35, %v3170_v45  ;;  %v2735_v51 = vadd.f32 %v771_v0, %v579_v39  ;;  %v773_v9 = vmul.f32 %v3174_v48, %v3173_v24  ;;  %v580_v26 = vadd.f32 %v1666_v15, %v3176_v33  ;;  %v1667_v0 = vld [vmem:[%s1710_s15 + $0xe0] sm:$0xff]  ;;  %v3177_v24 = vld [vmem:[#allocation33_spill] sm:$0xff] }
 0x1b0   : > { %v1216_v31 = vmax.f32 %v1184_v2, 0.0  ;;  %1331 = vrot.lane.b32.xlu1 %v1246_v7, %s1679_s16  ;;  %v1217_v11 = vmax.f32 %v1185_v1, 0.0  ;;  %1333 = vrot.lane.b32.xlu0 %v1247_v28, %s1679_s16  ;;  %v581_v39 = vadd.f32 %v1667_v0, %v3177_v24  ;;  %v3179_v2 = vld [vmem:[#allocation25_spill] sm:$0xff] }
 0x1b1   : > { %3172 = vst [vmem:[#allocation10_spill] sm:$0xff] %v2735_v51  ;;  %v2740_v14 = vpop.permute.xlu1 %1019  ;;  %v2742_v20 = vpop.permute.xlu0 %1021  ;;  %v2756_v35 = vadd.f32 %v772_v36, %v580_v26  ;;  %v1668_v26 = vld [vmem:[%s1710_s15 + $0xe8] sm:$0xff]  ;;  %v3182_v36 = vld [vmem:[#allocation34_spill] sm:$0xff] }
 0x1b2   : > { %3175 = vst [vmem:[#allocation12_spill] sm:$0xff] %v2742_v20  ;;  %v1248_v49 = vmin.f32 %v1216_v31, 16.0  ;;  %v1186_v7 = vadd.f32 %v2740_v14, %v2730_v29  ;;  %v1249_v1 = vmin.f32 %v1217_v11, 16.0  ;;  %v1187_v45 = vadd.f32 %v2742_v20, %v2735_v51  ;;  %v3178_v31 = vld [vmem:[#allocation24_spill] sm:$0xff] }
 0x1b3   : > { %v774_v48 = vmul.f32 %v2403_v55, %v3178_v31  ;;  %v2761_v33 = vadd.f32 %v773_v9, %v581_v39  ;;  %v775_v11 = vmul.f32 %v2405_v40, %v3179_v2  ;;  %v582_v20 = vadd.f32 %v1668_v26, %v3182_v36  ;;  %v1669_v9 = vld [vmem:[%s1710_s15 + $0xf0] sm:$0xff]  ;;  %v3183_v40 = vld [vmem:[#allocation35_spill] sm:$0xff] }
 0x1b4   : > { %v1218_v15 = vmax.f32 %v1186_v7, 0.0  ;;  %1335 = vrot.lane.b32.xlu1 %v1248_v49, %s1679_s16  ;;  %v1219_v0 = vmax.f32 %v1187_v45, 0.0  ;;  %1337 = vrot.lane.b32.xlu0 %v1249_v1, %s1679_s16  ;;  %v583_v2 = vadd.f32 %v1669_v9, %v3183_v40  ;;  %v3184_v31 = vld [vmem:[#allocation27_spill] sm:$0xff]  ;;  %v1670_v40 = vld [vmem:[%s1710_s15 + $0xf8] sm:$0xff]  ;;  %v3186_v39 = vld [vmem:[#allocation36_spill] sm:$0xff] }
 0x1b5   : > { %v2766_v24 = vpop.permute.xlu1 %1023  ;;  %v2768_v28 = vpop.permute.xlu0 %1025  ;;  %v2782_v45 = vadd.f32 %v774_v48, %v582_v20 }
 0x1b6   : > { %3180 = vst [vmem:[#allocation13_spill] sm:$0xff] %v2766_v24  ;;  %3181 = vst [vmem:[#allocation14_spill] sm:$0xff] %v2768_v28  ;;  %v1250_v51 = vmin.f32 %v1218_v15, 16.0  ;;  %v1188_v49 = vadd.f32 %v2766_v24, %v2756_v35  ;;  %v1251_v7 = vmin.f32 %v1219_v0, 16.0  ;;  %v1189_v1 = vadd.f32 %v2768_v28, %v2761_v33  ;;  %v3185_v15 = vld [vmem:[#allocation42_spill] sm:$0xff] }
 0x1b7   : > { %v776_v26 = vmul.f32 %v3185_v15, %v3184_v31  ;;  %v2787_v55 = vadd.f32 %v775_v11, %v583_v2  ;;  %v584_v28 = vadd.f32 %v1670_v40, %v3186_v39 }
 0x1b8   : > { %v1220_v36 = vmax.f32 %v1188_v49, 0.0  ;;  %1339 = vrot.lane.b32.xlu1 %v1250_v51, %s1679_s16  ;;  %v1221_v24 = vmax.f32 %v1189_v1, 0.0  ;;  %1341 = vrot.lane.b32.xlu0 %v1251_v7, %s1679_s16 }
 0x1b9   : > { %v2790_v0 = vpop.permute.xlu1 %1027  ;;  %v2792_v9 = vpop.permute.xlu0 %1029  ;;  %v2804_v7 = vadd.f32 %v776_v26, %v584_v28  ;;  %v3187_v26 = vld [vmem:[#allocation43_spill] sm:$0xff] }
 0x1ba   : > { %v1252_v20 = vmin.f32 %v1220_v36, 16.0  ;;  %v1094_v48 = vsub.f32 %v2782_v45, %v2790_v0  ;;  %v1190_v49 = vadd.f32 %v2790_v0, %v2782_v45  ;;  %v1253_v51 = vmin.f32 %v1221_v24, 16.0 }
 0x1bb   : > { %v1191_v2 = vadd.f32 %v2792_v9, %v2787_v55 }
 0x1bc   : > { %v1222_v1 = vmax.f32 %v1190_v49, 0.0  ;;  %1343 = vrot.lane.b32.xlu1 %v1252_v20, %s1679_s16  ;;  %1345 = vrot.lane.b32.xlu0 %v1253_v51, %s1679_s16  ;;  %v3188_v20 = vsub.f32 %v2409_v5, %v3187_v26 }
 0x1bd   : > { %v1223_v39 = vmax.f32 %v1191_v2, 0.0  ;;  %v2808_v31 = vpop.permute.xlu1 %1031  ;;  %v3189_v2 = vsub.f32 %v2425_v6, %v2431_v13  ;;  %v3191_v13 = vsub.f32 %v2447_v25, %v2454_v56  ;;  %v3193_v25 = vsub.f32 %v2470_v38, %v2480_v46 }
 0x1be   : > { %v1254_v15 = vmin.f32 %v1222_v1, 16.0  ;;  %v1096_v24 = vsub.f32 %v2804_v7, %v2808_v31  ;;  %v1192_v36 = vadd.f32 %v2808_v31, %v2804_v7  ;;  %v1097_v49 = vmax.f32 %v3188_v20, 0.0 }
 0x1bf   : > { %v1255_v40 = vmin.f32 %v1223_v39, 16.0  ;;  %v1098_v1 = vmax.f32 %v3189_v2, 0.0  ;;  %v3190_v39 = vsub.f32 %v2428_v18, %v2433_v50  ;;  %v1100_v18 = vmax.f32 %v3191_v13, 0.0 }
 0x1c0   : > { %v1224_v11 = vmax.f32 %v1192_v36, 0.0  ;;  %1347 = vrot.lane.b32.xlu1 %v1254_v15, %s1679_s16  ;;  %v1129_v51 = vmin.f32 %v1097_v49, 16.0  ;;  %v1102_v56 = vmax.f32 %v3193_v25, 0.0  ;;  %v3195_v13 = vsub.f32 %v2496_v23, %v2506_v37 }
 0x1c1   : > { %1349 = vrot.lane.b32.xlu0 %v1255_v40, %s1679_s16  ;;  %v1099_v15 = vmax.f32 %v3190_v39, 0.0  ;;  %v1130_v6 = vmin.f32 %v1098_v1, 16.0  ;;  %v3192_v40 = vsub.f32 %v2451_v22, %v2456_v41  ;;  %v1132_v1 = vmin.f32 %v1100_v18, 16.0 }
 0x1c2   : > { %v1256_v28 = vmin.f32 %v1224_v11, 16.0  ;;  %v3194_v39 = vsub.f32 %v2475_v61, %v2482_v32  ;;  %v1134_v46 = vmin.f32 %v1102_v56, 16.0  ;;  %v1104_v18 = vmax.f32 %v3195_v13, 0.0 }
 0x1c3   : > { %v1131_v50 = vmin.f32 %v1099_v15, 16.0 }
 0x1c4   : > { %1351 = vrot.lane.b32.xlu1 %v1256_v28, %s1679_s16  ;;  %v1101_v28 = vmax.f32 %v3192_v40, 0.0  ;;  %v1103_v15 = vmax.f32 %v3194_v39, 0.0  ;;  %v1136_v37 = vmin.f32 %v1104_v18, 16.0  ;;  %v3201_v18 = vsub.f32 %v2574_v59, %v2584_v47 }
 0x1c6   : > { %v1133_v41 = vmin.f32 %v1101_v28, 16.0  ;;  %v1135_v32 = vmin.f32 %v1103_v15, 16.0  ;;  %v3199_v15 = vsub.f32 %v2548_v10, %v2558_v30 }
 0x1f6   : > { %v1290_v5 = vpop.permute.xlu0 %1289 }
 0x1f7   : > { %v1386_v11 = vsel %vm1385_vm0, %v1129_v51, %v1290_v5 }
 0x1f8   : > { %v1419_v36 = vsel %vm1418_vm1, %v1386_v11, %v1290_v5 }
 0x1f9   : > { %1452 = vst.msk [vmem:[%s2830_s23] sm:$0xff] %vm1451_vm2, %v1419_v36 }
 0x1fa   : > { %v1292_v26 = vpop.permute.xlu1 %1291  ;;  %v1294_v49 = vpop.permute.xlu0 %1293 }
 0x1fb   : > { %v1387_v20 = vsel %vm1385_vm0, %v1130_v6, %v1292_v26  ;;  %v1388_v2 = vsel %vm1385_vm0, %v1131_v50, %v1294_v49  ;;  %v3196_v50 = vsub.f32 %v2501_v53, %v2508_v12 }
 0x1fc   : > { %v1420_v51 = vsel %vm1418_vm1, %v1387_v20, %v1292_v26  ;;  %v1421_v22 = vsel %vm1418_vm1, %v1388_v2, %v1294_v49 }
 0x1fd   : > { %1453 = vst.msk [vmem:[%s2830_s23 + $0x8] sm:$0xff] %vm1451_vm2, %v1420_v51  ;;  %1454 = vst.msk [vmem:[%s2830_s23 + $0x10] sm:$0xff] %vm1451_vm2, %v1421_v22  ;;  %v1105_v40 = vmax.f32 %v3196_v50, 0.0  ;;  %v3197_v51 = vsub.f32 %v2522_v27, %v2532_v52 }
 0x1fe   : > { %v1296_v5 = vpop.permute.xlu1 %1295  ;;  %v1298_v36 = vpop.permute.xlu0 %1297 }
 0x1ff   : > { %v1389_v11 = vsel %vm1385_vm0, %v1132_v1, %v1296_v5  ;;  %v1390_v38 = vsel %vm1385_vm0, %v1133_v41, %v1298_v36  ;;  %v1106_v2 = vmax.f32 %v3197_v51, 0.0  ;;  %v1137_v53 = vmin.f32 %v1105_v40, 16.0 }
 0x200   : > { %v1422_v6 = vsel %vm1418_vm1, %v1389_v11, %v1296_v5  ;;  %v1423_v61 = vsel %vm1418_vm1, %v1390_v38, %v1298_v36  ;;  %v3198_v1 = vsub.f32 %v2527_v58, %v2534_v16  ;;  %v1108_v5 = vmax.f32 %v3199_v15, 0.0 }
 0x201   : > { %1455 = vst.msk [vmem:[%s2830_s23 + $0x18] sm:$0xff] %vm1451_vm2, %v1422_v6  ;;  %1456 = vst.msk [vmem:[%s2830_s23 + $0x20] sm:$0xff] %vm1451_vm2, %v1423_v61  ;;  %v1138_v52 = vmin.f32 %v1106_v2, 16.0  ;;  %v3200_v11 = vsub.f32 %v2553_v57, %v2560_v34  ;;  %v1110_v61 = vmax.f32 %v3201_v18, 0.0 }
 0x202   : > { %v1300_v28 = vpop.permute.xlu1 %1299  ;;  %v1302_v20 = vpop.permute.xlu0 %1301  ;;  %v1107_v25 = vmax.f32 %v3198_v1, 0.0  ;;  %v1140_v30 = vmin.f32 %v1108_v5, 16.0  ;;  %v3207_v5 = vsub.f32 %v2652_v17, %v2662_v19 }
 0x203   : > { %v1391_v26 = vsel %vm1385_vm0, %v1134_v46, %v1300_v28  ;;  %v1392_v23 = vsel %vm1385_vm0, %v1135_v32, %v1302_v20  ;;  %v1109_v36 = vmax.f32 %v3200_v11, 0.0  ;;  %v3202_v32 = vsub.f32 %v2579_v44, %v2586_v63 }
 0x204   : > { %v1424_v49 = vsel %vm1418_vm1, %v1391_v26, %v1300_v28  ;;  %v1425_v12 = vsel %vm1418_vm1, %v1392_v23, %v1302_v20  ;;  %v1139_v58 = vmin.f32 %v1107_v25, 16.0  ;;  %v1142_v47 = vmin.f32 %v1110_v61, 16.0 }
 0x205   : > { %1457 = vst.msk [vmem:[%s2830_s23 + $0x28] sm:$0xff] %vm1451_vm2, %v1424_v49  ;;  %1458 = vst.msk [vmem:[%s2830_s23 + $0x30] sm:$0xff] %vm1451_vm2, %v1425_v12  ;;  %v1141_v57 = vmin.f32 %v1109_v36, 16.0  ;;  %v1111_v50 = vmax.f32 %v3202_v32, 0.0  ;;  %v3203_v49 = vsub.f32 %v2600_v8, %v2610_v42  ;;  %v3205_v25 = vsub.f32 %v2626_v62, %v2636_v60  ;;  %v3214_v32 = vld [vmem:[#allocation5_spill] sm:$0xff] }
 0x206   : > { %v1304_v56 = vpop.permute.xlu1 %1303  ;;  %v1306_v41 = vpop.permute.xlu0 %1305 }
 0x207   : > { %v1393_v22 = vsel %vm1385_vm0, %v1136_v37, %v1304_v56  ;;  %v1394_v27 = vsel %vm1385_vm0, %v1137_v53, %v1306_v41  ;;  %v1112_v23 = vmax.f32 %v3203_v49, 0.0  ;;  %v1143_v44 = vmin.f32 %v1111_v50, 16.0 }
 0x208   : > { %v1426_v39 = vsel %vm1418_vm1, %v1393_v22, %v1304_v56  ;;  %v1427_v16 = vsel %vm1418_vm1, %v1394_v27, %v1306_v41  ;;  %v3204_v37 = vsub.f32 %v2605_v21, %v2612_v3  ;;  %v1114_v56 = vmax.f32 %v3205_v25, 0.0 }
 0x209   : > { %1459 = vst.msk [vmem:[%s2830_s23 + $0x38] sm:$0xff] %vm1451_vm2, %v1426_v39  ;;  %1460 = vst.msk [vmem:[%s2830_s23 + $0x40] sm:$0xff] %vm1451_vm2, %v1427_v16  ;;  %v1144_v42 = vmin.f32 %v1112_v23, 16.0  ;;  %v3206_v22 = vsub.f32 %v2631_v54, %v2638_v43  ;;  %v1116_v16 = vmax.f32 %v3207_v5, 0.0  ;;  %v3216_v23 = vld [vmem:[#allocation6_spill] sm:$0xff] }
 0x20a   : > { %v1308_v6 = vpop.permute.xlu1 %1307  ;;  %v1310_v46 = vpop.permute.xlu0 %1309  ;;  %v1113_v51 = vmax.f32 %v3204_v37, 0.0  ;;  %v1146_v60 = vmin.f32 %v1114_v56, 16.0 }
 0x20b   : > { %v1395_v38 = vsel %vm1385_vm0, %v1138_v52, %v1308_v6  ;;  %v1396_v10 = vsel %vm1385_vm0, %v1139_v58, %v1310_v46  ;;  %v1115_v41 = vmax.f32 %v3206_v22, 0.0  ;;  %v3208_v58 = vld [vmem:[#allocation2_spill] sm:$0xff]  ;;  %v1148_v19 = vmin.f32 %v1116_v16, 16.0 }
 0x20c   : > { %v1428_v13 = vsel %vm1418_vm1, %v1395_v38, %v1308_v6  ;;  %v1429_v34 = vsel %vm1418_vm1, %v1396_v10, %v1310_v46  ;;  %v1145_v21 = vmin.f32 %v1113_v51, 16.0  ;;  %v3209_v11 = vsub.f32 %v2657_v4, %v3208_v58  ;;  %v3210_v10 = vld [vmem:[#allocation11_spill] sm:$0xff] }
 0x20d   : > { %1461 = vst.msk [vmem:[%s2830_s23 + $0x48] sm:$0xff] %vm1451_vm2, %v1428_v13  ;;  %1462 = vst.msk [vmem:[%s2830_s23 + $0x50] sm:$0xff] %vm1451_vm2, %v1429_v34  ;;  %v1147_v54 = vmin.f32 %v1115_v41, 16.0  ;;  %v3222_v41 = vsub.f32 %v2730_v29, %v2740_v14 }
 0x20e   : > { %v1312_v40 = vpop.permute.xlu1 %1311  ;;  %v1314_v26 = vpop.permute.xlu0 %1313  ;;  %v1117_v36 = vmax.f32 %v3209_v11, 0.0  ;;  %v3226_v11 = vld [vmem:[#allocation13_spill] sm:$0xff] }
 0x20f   : > { %v1397_v28 = vsel %vm1385_vm0, %v1140_v30, %v1312_v40  ;;  %v1398_v59 = vsel %vm1385_vm0, %v1141_v57, %v1314_v26  ;;  %v3211_v30 = vld [vmem:[#allocation4_spill] sm:$0xff]  ;;  %v3213_v57 = vld [vmem:[#allocation3_spill] sm:$0xff] }
 0x210   : > { %v1430_v20 = vsel %vm1418_vm1, %v1397_v28, %v1312_v40  ;;  %v1431_v63 = vsel %vm1418_vm1, %v1398_v59, %v1314_v26  ;;  %v3212_v18 = vsub.f32 %v3210_v10, %v3211_v30  ;;  %v1149_v34 = vmin.f32 %v1117_v36, 16.0 }
 0x211   : > { %1463 = vst.msk [vmem:[%s2830_s23 + $0x58] sm:$0xff] %vm1451_vm2, %v1430_v20  ;;  %1464 = vst.msk [vmem:[%s2830_s23 + $0x60] sm:$0xff] %vm1451_vm2, %v1431_v63  ;;  %v3215_v50 = vsub.f32 %v3213_v57, %v3214_v32  ;;  %v3217_v63 = vld [vmem:[#allocation8_spill] sm:$0xff]  ;;  %v3227_v36 = vsub.f32 %v2756_v35, %v3226_v11  ;;  %v3230_v32 = vsub.f32 %v2787_v55, %v2792_v9 }
 0x212   : > { %v1316_v2 = vpop.permute.xlu1 %1315  ;;  %v1318_v53 = vpop.permute.xlu0 %1317  ;;  %v1118_v61 = vmax.f32 %v3212_v18, 0.0 }
 0x213   : > { %v1399_v12 = vsel %vm1385_vm0, %v1142_v47, %v1316_v2  ;;  %v1400_v8 = vsel %vm1385_vm0, %v1143_v44, %v1318_v53  ;;  %v1119_v40 = vmax.f32 %v3215_v50, 0.0  ;;  %v3218_v44 = vsub.f32 %v3216_v23, %v3217_v63 }
 0x214   : > { %v1432_v1 = vsel %vm1418_vm1, %v1399_v12, %v1316_v2  ;;  %v1433_v3 = vsel %vm1418_vm1, %v1400_v8, %v1318_v53  ;;  %v1150_v49 = vmin.f32 %v1118_v61, 16.0  ;;  %v3219_v12 = vld [vmem:[#allocation7_spill] sm:$0xff]  ;;  %v3220_v53 = vld [vmem:[#allocation9_spill] sm:$0xff]  ;;  %v1127_v50 = vmax.f32 %v3230_v32, 0.0 }
 0x215   : > { %1465 = vst.msk [vmem:[%s2830_s23 + $0x68] sm:$0xff] %vm1451_vm2, %v1432_v1  ;;  %1466 = vst.msk [vmem:[%s2830_s23 + $0x70] sm:$0xff] %vm1451_vm2, %v1433_v3  ;;  %v1120_v37 = vmax.f32 %v3218_v44, 0.0  ;;  %v1151_v2 = vmin.f32 %v1119_v40, 16.0  ;;  %v3221_v1 = vsub.f32 %v3219_v12, %v3220_v53 }
 0x216   : > { %v1320_v39 = vpop.permute.xlu1 %1319  ;;  %v1322_v52 = vpop.permute.xlu0 %1321  ;;  %v1159_v9 = vmin.f32 %v1127_v50, 16.0 }
 0x217   : > { %v1401_v27 = vsel %vm1385_vm0, %v1144_v42, %v1320_v39  ;;  %v1402_v62 = vsel %vm1385_vm0, %v1145_v21, %v1322_v52  ;;  %v1121_v8 = vmax.f32 %v3221_v1, 0.0  ;;  %v1152_v22 = vmin.f32 %v1120_v37, 16.0 }
 0x218   : > { %v1434_v15 = vsel %vm1418_vm1, %v1401_v27, %v1320_v39  ;;  %v1435_v43 = vsel %vm1418_vm1, %v1402_v62, %v1322_v52  ;;  %v1122_v39 = vmax.f32 %v3222_v41, 0.0  ;;  %v3224_v62 = vld [vmem:[#allocation12_spill] sm:$0xff] }
 0x219   : > { %1467 = vst.msk [vmem:[%s2830_s23 + $0x78] sm:$0xff] %vm1451_vm2, %v1434_v15  ;;  %1468 = vst.msk [vmem:[%s2830_s23 + $0x80] sm:$0xff] %vm1451_vm2, %v1435_v43  ;;  %v1153_v52 = vmin.f32 %v1121_v8, 16.0  ;;  %v3223_v15 = vld [vmem:[#allocation10_spill] sm:$0xff] }
 0x21a   : > { %v1324_v6 = vpop.permute.xlu1 %1323  ;;  %v1326_v46 = vpop.permute.xlu0 %1325  ;;  %v1154_v29 = vmin.f32 %v1122_v39, 16.0 }
 0x21b   : > { %v1403_v38 = vsel %vm1385_vm0, %v1146_v60, %v1324_v6  ;;  %v1404_v17 = vsel %vm1385_vm0, %v1147_v54, %v1326_v46  ;;  %v3225_v60 = vsub.f32 %v3223_v15, %v3224_v62 }
 0x21c   : > { %v1436_v13 = vsel %vm1418_vm1, %v1403_v38, %v1324_v6  ;;  %v1437_v4 = vsel %vm1418_vm1, %v1404_v17, %v1326_v46  ;;  %v1124_v6 = vmax.f32 %v3227_v36, 0.0 }
 0x21d   : > { %1469 = vst.msk [vmem:[%s2830_s23 + $0x88] sm:$0xff] %vm1451_vm2, %v1436_v13  ;;  %1470 = vst.msk [vmem:[%s2830_s23 + $0x90] sm:$0xff] %vm1451_vm2, %v1437_v4  ;;  %v1123_v5 = vmax.f32 %v3225_v60, 0.0  ;;  %v3228_v13 = vld [vmem:[#allocation14_spill] sm:$0xff] }
 0x21e   : > { %v1328_v28 = vpop.permute.xlu1 %1327  ;;  %v1330_v20 = vpop.permute.xlu0 %1329  ;;  %v3229_v17 = vsub.f32 %v2761_v33, %v3228_v13  ;;  %v1156_v4 = vmin.f32 %v1124_v6, 16.0 }
 0x21f   : > { %v1405_v26 = vsel %vm1385_vm0, %v1148_v19, %v1328_v28  ;;  %v1406_v47 = vsel %vm1385_vm0, %v1149_v34, %v1330_v20  ;;  %v1155_v46 = vmin.f32 %v1123_v5, 16.0  ;;  %v1126_v34 = vmax.f32 %v1094_v48, 0.0 }
 0x220   : > { %v1438_v59 = vsel %vm1418_vm1, %v1405_v26, %v1328_v28  ;;  %v1439_v51 = vsel %vm1418_vm1, %v1406_v47, %v1330_v20  ;;  %v1125_v19 = vmax.f32 %v3229_v17, 0.0  ;;  %v1128_v20 = vmax.f32 %v1096_v24, 0.0 }
 0x221   : > { %1471 = vst.msk [vmem:[%s2830_s23 + $0x98] sm:$0xff] %vm1451_vm2, %v1438_v59  ;;  %1472 = vst.msk [vmem:[%s2830_s23 + $0xa0] sm:$0xff] %vm1451_vm2, %v1439_v51  ;;  %v1158_v48 = vmin.f32 %v1126_v34, 16.0 }
 0x222   : > { %v1332_v42 = vpop.permute.xlu1 %1331  ;;  %v1334_v56 = vpop.permute.xlu0 %1333  ;;  %v1157_v57 = vmin.f32 %v1125_v19, 16.0  ;;  %v1160_v44 = vmin.f32 %v1128_v20, 16.0 }
 0x223   : > { %v1407_v25 = vsel %vm1385_vm0, %v1150_v49, %v1332_v42  ;;  %v1408_v21 = vsel %vm1385_vm0, %v1151_v2, %v1334_v56 }
 0x224   : > { %v1440_v3 = vsel %vm1418_vm1, %v1407_v25, %v1332_v42  ;;  %v1441_v27 = vsel %vm1418_vm1, %v1408_v21, %v1334_v56 }
 0x225   : > { %1473 = vst.msk [vmem:[%s2830_s23 + $0xa8] sm:$0xff] %vm1451_vm2, %v1440_v3  ;;  %1474 = vst.msk [vmem:[%s2830_s23 + $0xb0] sm:$0xff] %vm1451_vm2, %v1441_v27 }
 0x226   : > { %v1336_v16 = vpop.permute.xlu1 %1335  ;;  %v1338_v54 = vpop.permute.xlu0 %1337 }
 0x227   : > { %v1409_v43 = vsel %vm1385_vm0, %v1152_v22, %v1336_v16  ;;  %v1410_v14 = vsel %vm1385_vm0, %v1153_v52, %v1338_v54 }
 0x228   : > { %v1442_v58 = vsel %vm1418_vm1, %v1409_v43, %v1336_v16  ;;  %v1443_v38 = vsel %vm1418_vm1, %v1410_v14, %v1338_v54 }
 0x229   : > { %1475 = vst.msk [vmem:[%s2830_s23 + $0xb8] sm:$0xff] %vm1451_vm2, %v1442_v58  ;;  %1476 = vst.msk [vmem:[%s2830_s23 + $0xc0] sm:$0xff] %vm1451_vm2, %v1443_v38 }
 0x22a   : > { %v1340_v10 = vpop.permute.xlu1 %1339  ;;  %v1342_v18 = vpop.permute.xlu0 %1341 }
 0x22b   : > { %v1411_v30 = vsel %vm1385_vm0, %v1154_v29, %v1340_v10  ;;  %v1412_v35 = vsel %vm1385_vm0, %v1155_v46, %v1342_v18 }
 0x22c   : > { %v1444_v61 = vsel %vm1418_vm1, %v1411_v30, %v1340_v10  ;;  %v1445_v33 = vsel %vm1418_vm1, %v1412_v35, %v1342_v18 }
 0x22d   : > { %1477 = vst.msk [vmem:[%s2830_s23 + $0xc8] sm:$0xff] %vm1451_vm2, %v1444_v61  ;;  %1478 = vst.msk [vmem:[%s2830_s23 + $0xd0] sm:$0xff] %vm1451_vm2, %v1445_v33 }
 0x22e   : > { %v1344_v40 = vpop.permute.xlu1 %1343  ;;  %v1346_v26 = vpop.permute.xlu0 %1345 }
 0x22f   : > { %v1413_v28 = vsel %vm1385_vm0, %v1156_v4, %v1344_v40  ;;  %v1414_v0 = vsel %vm1385_vm0, %v1157_v57, %v1346_v26 }
 0x230   : > { %v1446_v45 = vsel %vm1418_vm1, %v1413_v28, %v1344_v40  ;;  %v1447_v55 = vsel %vm1418_vm1, %v1414_v0, %v1346_v26 }
 0x231   : > { %1479 = vst.msk [vmem:[%s2830_s23 + $0xd8] sm:$0xff] %vm1451_vm2, %v1446_v45  ;;  %1480 = vst.msk [vmem:[%s2830_s23 + $0xe0] sm:$0xff] %vm1451_vm2, %v1447_v55 }
 0x232   : > { %v1348_v59 = vpop.permute.xlu1 %1347 }
 0x233   : > { %v1415_v47 = vsel %vm1385_vm0, %v1158_v48, %v1348_v59  ;;  %v1350_v49 = vpop.permute.xlu0 %1349 }
 0x234   : > { %v1448_v23 = vsel %vm1418_vm1, %v1415_v47, %v1348_v59  ;;  %v1416_v63 = vsel %vm1385_vm0, %v1159_v9, %v1350_v49 }
 0x235   : > { %1481 = vst.msk [vmem:[%s2830_s23 + $0xe8] sm:$0xff] %vm1451_vm2, %v1448_v23  ;;  %v1449_v7 = vsel %vm1418_vm1, %v1416_v63, %v1350_v49 }
 0x236   : > { %1482 = vst.msk [vmem:[%s2830_s23 + $0xf0] sm:$0xff] %vm1451_vm2, %v1449_v7  ;;  %v1352_v31 = vpop.permute.xlu1 %1351 }
 0x237   : > { %v1417_v24 = vsel %vm1385_vm0, %v1160_v44, %v1352_v31 }
 0x238   : > { %v1450_v37 = vsel %vm1418_vm1, %v1417_v24, %v1352_v31 }
 0x239   : > { %1483 = vst.msk [vmem:[%s2830_s23 + $0xf8] sm:$0xff] %vm1451_vm2, %v1450_v37 }
 0x23a PF: > { %s12_s9 = sadd.s32 1, %s1677_s9  }
 0x23b   : > { %p9_p4 = scmp.ge.s32.totalorder %s12_s9, 8  }
 0x23d   :  { %11 = sbr.rel (!%p9_p4) target bundleno = 1 (0x1), region = 61 }

// kernel: run.8
= control target key start
LH: loop header
LB: loop body
LE: loop exit
PB: predicated region body
PF: predicated region fallthrough
CT: control target
= control target key end

     0   :  { %s2313_s24 = smov 0   ;;  %s2315_s25 = smov 0   ;;  %s2974_s0 = inlined_call_operand.vmem [shape: f32[128,2048], index: 0, kind: input, shape index: {}]   ;;  %s2975_s1 = inlined_call_operand.vmem [shape: bf16[2048,128], index: 1, kind: input, shape index: {}]   ;;  %s2976_s2 = inlined_call_operand.vmem [shape: f32[1,128], index: 2, kind: input, shape index: {}, may-alias: {2,4,6}]   ;;  %s2977_s3 = inlined_call_operand.vmem [shape: bf16[128,128], index: 3, kind: input, shape index: {}]   ;;  %s2978_s4 = inlined_call_operand.vmem [shape: f32[1,128], index: 4, kind: input, shape index: {}, may-alias: {2,4,6}]   ;;  %s2979_s5 = inlined_call_operand.vmem [shape: bf16[128,128], index: 5, kind: input, shape index: {}]   ;;  %s2980_s6 = inlined_call_operand.vmem [shape: f32[1,128], index: 6, kind: input, shape index: {}, may-alias: {2,4,6}]   ;;  %s2981_s7 = inlined_call_operand.vmem [shape: f32[128,128], index: 7, kind: output, shape index: {}]  }
   0x1   :  { %s2317_s26 = smov 0   ;;  %s2319_s27 = smov 0  }
   0x2   :  { %s2321_s28 = smov 0  }
   0x3 LB: > { %s26_s29 = sadd.s32 1, %s2266_s27  ;;  %p45_p1 = scmp.ne.s32.totalorder %s2258_s25, %s2254_s24  ;;  %s2270_s28 = sphi %s2321_s28, %s17_s28   ;;  %s2266_s27 = sphi %s2319_s27, %s2985_s27   ;;  %s2262_s26 = sphi %s2317_s26, %s2984_s26   ;;  %s2258_s25 = sphi %s2315_s25, %s2983_s25   ;;  %s2254_s24 = sphi %s2313_s24, %s2982_s24  }
   0x4   : > { %p27_p0 = scmp.ge.s32.totalorder %s26_s29, 4  ;;  %p46_p2 = scmp.eq.s32.totalorder %s2270_s28, 0 }
   0x5   : > { %s38_s8 = sadd.s32 1, %s2258_s25  ;;  %p1789_p5 = scmp.ge.s32.totalorder %s2270_s28, 4 }
   0x6   : > { %s2987_s29 = smov (%p27_p0, %s26_s29), 0  ;;  %p47_p3 = por %p46_p2, %p45_p1 }
   0x7   : > { %s34_s30 = ssub.s32 %s2266_s27, %s2987_s29  ;;  %243 = sbr.rel (%p1789_p5) target bundleno = 50 (0x32), region = 36 }
   0x8   : > { %p36_p4 = scmp.eq.s32.totalorder %s34_s30, 0 }
   0xa   : > { %s2348_s9 = scalar_select %p36_p4, %s2258_s25, %s38_s8  }
   0xe   : > { %246 = sbr.rel (!%p47_p3) target bundleno = 50 (0x32), region = 40  ;;  %s248_s10 = sand.u32 (%p47_p3), 1, %s2258_s25  }
   0xf   : > { %s1854_s11 = sshll.u32 (%p47_p3), %s2266_s27, 5  ;;  %s1790_s12 = sshll.u32 (%p47_p3), %s248_s10, 9 }
  0x10   : > { %s2356_s15 = scalar_lea.vmem (%p47_p3), %s2974_s0, %s1854_s11  ;;  %s2361_s16 = scalar_lea.vmem (%p47_p3), [#allocation3], %s1790_s12 }
  0x11   : > { %v269_v0 = vld [vmem:[%s2356_s15] sm:$0xff] (%p47_p3)  ;;  %v271_v1 = vld [vmem:[%s2356_s15 + $0x8] sm:$0xff] (%p47_p3)  ;;  %v273_v2 = vld [vmem:[%s2356_s15 + $0x10] sm:$0xff] (%p47_p3) }
  0x12   : > { %270 = vst [vmem:[%s2361_s16] sm:$0xff] (%p47_p3), %v269_v0  ;;  %272 = vst [vmem:[%s2361_s16 + $0x8] sm:$0xff] (%p47_p3), %v271_v1  ;;  %v275_v3 = vld [vmem:[%s2356_s15 + $0x18] sm:$0xff] (%p47_p3)  ;;  %v277_v4 = vld [vmem:[%s2356_s15 + $0x80] sm:$0xff] (%p47_p3) }
  0x13   : > { %274 = vst [vmem:[%s2361_s16 + $0x10] sm:$0xff] (%p47_p3), %v273_v2  ;;  %v279_v5 = vld [vmem:[%s2356_s15 + $0x88] sm:$0xff] (%p47_p3)  ;;  %276 = vst [vmem:[%s2361_s16 + $0x18] sm:$0xff] (%p47_p3), %v275_v3  ;;  %v281_v6 = vld [vmem:[%s2356_s15 + $0x90] sm:$0xff] (%p47_p3) }
  0x14   : > { %278 = vst [vmem:[%s2361_s16 + $0x20] sm:$0xff] (%p47_p3), %v277_v4  ;;  %280 = vst [vmem:[%s2361_s16 + $0x28] sm:$0xff] (%p47_p3), %v279_v5  ;;  %v283_v7 = vld [vmem:[%s2356_s15 + $0x98] sm:$0xff] (%p47_p3)  ;;  %v285_v8 = vld [vmem:[%s2356_s15 + $0x100] sm:$0xff] (%p47_p3) }
  0x15   : > { %282 = vst [vmem:[%s2361_s16 + $0x30] sm:$0xff] %v281_v6  ;;  %284 = vst [vmem:[%s2361_s16 + $0x38] sm:$0xff] %v283_v7  ;;  %v287_v9 = vld [vmem:[%s2356_s15 + $0x108] sm:$0xff]  ;;  %v289_v10 = vld [vmem:[%s2356_s15 + $0x110] sm:$0xff] }
  0x16   : > { %286 = vst [vmem:[%s2361_s16 + $0x40] sm:$0xff] %v285_v8  ;;  %v291_v11 = vld [vmem:[%s2356_s15 + $0x118] sm:$0xff]  ;;  %288 = vst [vmem:[%s2361_s16 + $0x48] sm:$0xff] %v287_v9  ;;  %v293_v12 = vld [vmem:[%s2356_s15 + $0x180] sm:$0xff] }
  0x17   : > { %290 = vst [vmem:[%s2361_s16 + $0x50] sm:$0xff] %v289_v10  ;;  %292 = vst [vmem:[%s2361_s16 + $0x58] sm:$0xff] %v291_v11  ;;  %v295_v13 = vld [vmem:[%s2356_s15 + $0x188] sm:$0xff]  ;;  %v297_v14 = vld [vmem:[%s2356_s15 + $0x190] sm:$0xff] }
  0x18   : > { %294 = vst [vmem:[%s2361_s16 + $0x60] sm:$0xff] %v293_v12  ;;  %296 = vst [vmem:[%s2361_s16 + $0x68] sm:$0xff] %v295_v13  ;;  %v299_v15 = vld [vmem:[%s2356_s15 + $0x198] sm:$0xff]  ;;  %v301_v16 = vld [vmem:[%s2356_s15 + $0x200] sm:$0xff] }
  0x19   : > { %298 = vst [vmem:[%s2361_s16 + $0x70] sm:$0xff] %v297_v14  ;;  %v303_v17 = vld [vmem:[%s2356_s15 + $0x208] sm:$0xff]  ;;  %300 = vst [vmem:[%s2361_s16 + $0x78] sm:$0xff] %v299_v15  ;;  %v305_v18 = vld [vmem:[%s2356_s15 + $0x210] sm:$0xff] }
  0x1a   : > { %302 = vst [vmem:[%s2361_s16 + $0x80] sm:$0xff] %v301_v16  ;;  %304 = vst [vmem:[%s2361_s16 + $0x88] sm:$0xff] %v303_v17  ;;  %v307_v19 = vld [vmem:[%s2356_s15 + $0x218] sm:$0xff]  ;;  %v309_v20 = vld [vmem:[%s2356_s15 + $0x280] sm:$0xff] }
  0x1b   : > { %306 = vst [vmem:[%s2361_s16 + $0x90] sm:$0xff] %v305_v18  ;;  %308 = vst [vmem:[%s2361_s16 + $0x98] sm:$0xff] %v307_v19  ;;  %v311_v21 = vld [vmem:[%s2356_s15 + $0x288] sm:$0xff]  ;;  %v313_v22 = vld [vmem:[%s2356_s15 + $0x290] sm:$0xff] }
  0x1c   : > { %310 = vst [vmem:[%s2361_s16 + $0xa0] sm:$0xff] %v309_v20  ;;  %v315_v23 = vld [vmem:[%s2356_s15 + $0x298] sm:$0xff]  ;;  %312 = vst [vmem:[%s2361_s16 + $0xa8] sm:$0xff] %v311_v21  ;;  %v317_v24 = vld [vmem:[%s2356_s15 + $0x300] sm:$0xff] }
  0x1d   : > { %314 = vst [vmem:[%s2361_s16 + $0xb0] sm:$0xff] %v313_v22  ;;  %316 = vst [vmem:[%s2361_s16 + $0xb8] sm:$0xff] %v315_v23  ;;  %v319_v25 = vld [vmem:[%s2356_s15 + $0x308] sm:$0xff]  ;;  %v321_v26 = vld [vmem:[%s2356_s15 + $0x310] sm:$0xff] }
  0x1e   : > { %318 = vst [vmem:[%s2361_s16 + $0xc0] sm:$0xff] %v317_v24  ;;  %320 = vst [vmem:[%s2361_s16 + $0xc8] sm:$0xff] %v319_v25  ;;  %v323_v27 = vld [vmem:[%s2356_s15 + $0x318] sm:$0xff]  ;;  %v325_v28 = vld [vmem:[%s2356_s15 + $0x380] sm:$0xff] }
  0x1f   : > { %322 = vst [vmem:[%s2361_s16 + $0xd0] sm:$0xff] %v321_v26  ;;  %v327_v29 = vld [vmem:[%s2356_s15 + $0x388] sm:$0xff]  ;;  %324 = vst [vmem:[%s2361_s16 + $0xd8] sm:$0xff] %v323_v27  ;;  %v329_v30 = vld [vmem:[%s2356_s15 + $0x390] sm:$0xff] }
  0x20   : > { %326 = vst [vmem:[%s2361_s16 + $0xe0] sm:$0xff] %v325_v28  ;;  %328 = vst [vmem:[%s2361_s16 + $0xe8] sm:$0xff] %v327_v29  ;;  %v331_v31 = vld [vmem:[%s2356_s15 + $0x398] sm:$0xff]  ;;  %v333_v32 = vld [vmem:[%s2356_s15 + $0x400] sm:$0xff] }
  0x21   : > { %330 = vst [vmem:[%s2361_s16 + $0xf0] sm:$0xff] %v329_v30  ;;  %332 = vst [vmem:[%s2361_s16 + $0xf8] sm:$0xff] %v331_v31  ;;  %v335_v33 = vld [vmem:[%s2356_s15 + $0x408] sm:$0xff]  ;;  %v337_v34 = vld [vmem:[%s2356_s15 + $0x410] sm:$0xff] }
  0x22   : > { %334 = vst [vmem:[%s2361_s16 + $0x100] sm:$0xff] %v333_v32  ;;  %v339_v35 = vld [vmem:[%s2356_s15 + $0x418] sm:$0xff]  ;;  %336 = vst [vmem:[%s2361_s16 + $0x108] sm:$0xff] %v335_v33  ;;  %v341_v36 = vld [vmem:[%s2356_s15 + $0x480] sm:$0xff] }
  0x23   : > { %338 = vst [vmem:[%s2361_s16 + $0x110] sm:$0xff] %v337_v34  ;;  %340 = vst [vmem:[%s2361_s16 + $0x118] sm:$0xff] %v339_v35  ;;  %v343_v37 = vld [vmem:[%s2356_s15 + $0x488] sm:$0xff]  ;;  %v345_v38 = vld [vmem:[%s2356_s15 + $0x490] sm:$0xff] }
  0x24   : > { %342 = vst [vmem:[%s2361_s16 + $0x120] sm:$0xff] %v341_v36  ;;  %344 = vst [vmem:[%s2361_s16 + $0x128] sm:$0xff] %v343_v37  ;;  %v347_v39 = vld [vmem:[%s2356_s15 + $0x498] sm:$0xff]  ;;  %v349_v40 = vld [vmem:[%s2356_s15 + $0x500] sm:$0xff] }
  0x25   : > { %346 = vst [vmem:[%s2361_s16 + $0x130] sm:$0xff] %v345_v38  ;;  %v351_v41 = vld [vmem:[%s2356_s15 + $0x508] sm:$0xff]  ;;  %348 = vst [vmem:[%s2361_s16 + $0x138] sm:$0xff] %v347_v39  ;;  %v353_v42 = vld [vmem:[%s2356_s15 + $0x510] sm:$0xff] }
  0x26   : > { %350 = vst [vmem:[%s2361_s16 + $0x140] sm:$0xff] %v349_v40  ;;  %352 = vst [vmem:[%s2361_s16 + $0x148] sm:$0xff] %v351_v41  ;;  %v355_v43 = vld [vmem:[%s2356_s15 + $0x518] sm:$0xff]  ;;  %v357_v44 = vld [vmem:[%s2356_s15 + $0x580] sm:$0xff] }
  0x27   : > { %354 = vst [vmem:[%s2361_s16 + $0x150] sm:$0xff] %v353_v42  ;;  %356 = vst [vmem:[%s2361_s16 + $0x158] sm:$0xff] %v355_v43  ;;  %v359_v45 = vld [vmem:[%s2356_s15 + $0x588] sm:$0xff]  ;;  %v361_v46 = vld [vmem:[%s2356_s15 + $0x590] sm:$0xff] }
  0x28   : > { %358 = vst [vmem:[%s2361_s16 + $0x160] sm:$0xff] %v357_v44  ;;  %v363_v47 = vld [vmem:[%s2356_s15 + $0x598] sm:$0xff]  ;;  %360 = vst [vmem:[%s2361_s16 + $0x168] sm:$0xff] %v359_v45  ;;  %v365_v48 = vld [vmem:[%s2356_s15 + $0x600] sm:$0xff] }
  0x29   : > { %362 = vst [vmem:[%s2361_s16 + $0x170] sm:$0xff] %v361_v46  ;;  %364 = vst [vmem:[%s2361_s16 + $0x178] sm:$0xff] %v363_v47  ;;  %v367_v49 = vld [vmem:[%s2356_s15 + $0x608] sm:$0xff]  ;;  %v369_v50 = vld [vmem:[%s2356_s15 + $0x610] sm:$0xff] }
  0x2a   : > { %366 = vst [vmem:[%s2361_s16 + $0x180] sm:$0xff] %v365_v48  ;;  %368 = vst [vmem:[%s2361_s16 + $0x188] sm:$0xff] %v367_v49  ;;  %v371_v51 = vld [vmem:[%s2356_s15 + $0x618] sm:$0xff]  ;;  %v373_v52 = vld [vmem:[%s2356_s15 + $0x680] sm:$0xff] }
  0x2b   : > { %370 = vst [vmem:[%s2361_s16 + $0x190] sm:$0xff] %v369_v50  ;;  %v375_v53 = vld [vmem:[%s2356_s15 + $0x688] sm:$0xff]  ;;  %372 = vst [vmem:[%s2361_s16 + $0x198] sm:$0xff] %v371_v51  ;;  %v377_v54 = vld [vmem:[%s2356_s15 + $0x690] sm:$0xff] }
  0x2c   : > { %374 = vst [vmem:[%s2361_s16 + $0x1a0] sm:$0xff] %v373_v52  ;;  %376 = vst [vmem:[%s2361_s16 + $0x1a8] sm:$0xff] %v375_v53  ;;  %v379_v55 = vld [vmem:[%s2356_s15 + $0x698] sm:$0xff]  ;;  %v381_v56 = vld [vmem:[%s2356_s15 + $0x700] sm:$0xff] }
  0x2d   : > { %378 = vst [vmem:[%s2361_s16 + $0x1b0] sm:$0xff] %v377_v54  ;;  %380 = vst [vmem:[%s2361_s16 + $0x1b8] sm:$0xff] %v379_v55  ;;  %v383_v57 = vld [vmem:[%s2356_s15 + $0x708] sm:$0xff]  ;;  %v385_v58 = vld [vmem:[%s2356_s15 + $0x710] sm:$0xff] }
  0x2e   : > { %382 = vst [vmem:[%s2361_s16 + $0x1c0] sm:$0xff] %v381_v56  ;;  %v387_v59 = vld [vmem:[%s2356_s15 + $0x718] sm:$0xff]  ;;  %384 = vst [vmem:[%s2361_s16 + $0x1c8] sm:$0xff] %v383_v57  ;;  %v389_v60 = vld [vmem:[%s2356_s15 + $0x780] sm:$0xff] }
  0x2f   : > { %386 = vst [vmem:[%s2361_s16 + $0x1d0] sm:$0xff] %v385_v58  ;;  %388 = vst [vmem:[%s2361_s16 + $0x1d8] sm:$0xff] %v387_v59  ;;  %v391_v61 = vld [vmem:[%s2356_s15 + $0x788] sm:$0xff]  ;;  %v393_v62 = vld [vmem:[%s2356_s15 + $0x790] sm:$0xff] }
  0x30   : > { %390 = vst [vmem:[%s2361_s16 + $0x1e0] sm:$0xff] %v389_v60  ;;  %392 = vst [vmem:[%s2361_s16 + $0x1e8] sm:$0xff] %v391_v61  ;;  %v395_v63 = vld [vmem:[%s2356_s15 + $0x798] sm:$0xff] }
  0x31   : > { %394 = vst [vmem:[%s2361_s16 + $0x1f0] sm:$0xff] %v393_v62  ;;  %396 = vst [vmem:[%s2361_s16 + $0x1f8] sm:$0xff] %v395_v63 }
  0x32 PF: > { %p1793_p6 = scmp.ge.s32.totalorder %s2270_s28, 1  ;;  %p410_p7 = scmp.lt.s32.totalorder %s2270_s28, 5 }
  0x34   : > { %p411_p8 = pnand %p1793_p6, %p410_p7 }
  0x35   : > { %s417_s17 = sand.u32 (!%p411_p8), 1, %s2254_s24   ;;  %s1795_s18 = sshll.u32 (!%p411_p8), %s2262_s26, 6 }
  0x36   : > { %414 = sbr.rel (%p411_p8) target bundleno = 1168 (0x490), region = 67  ;;  %s1794_s19 = sshll.u32 (!%p411_p8), %s417_s17, 9 }
  0x37   : > { %p456_p9 = scmp.lt.s32.totalorder (!%p411_p8), %s1795_s18, 255  ;;  %s2497_s30 = scalar_lea.vmem (!%p411_p8), [#allocation3], %s1794_s19 }
  0x38   : > { %p1797_p10 = scmp.ne.s32.totalorder (!%p411_p8), %s2262_s26, 0 }
  0x3d   : > { %s2989_s18 = smov (!%p456_p9, %s1795_s18), 255  ;;  %471 = sbr.rel (%p1797_p10) target bundleno = 71 (0x47), region = 75 }
  0x3e   : > { %s1796_s20 = sshll.u32 %s2989_s18, 2  ;;  %v2272_v0 = vmov (!%p1797_p10), 0.0  }
  0x3f   : > { %s2495_s23 = scalar_lea.vmem %s2975_s1, %s1796_s20  ;;  %472 = vst [vmem:[#allocation2] sm:$0xff] (!%p1797_p10), %v2272_v0  ;;  %473 = vst [vmem:[#allocation2 + $0x8] sm:$0xff] (!%p1797_p10), %v2272_v0 }
  0x40   : > { %474 = vst [vmem:[#allocation2 + $0x10] sm:$0xff] (!%p1797_p10), %v2272_v0  ;;  %475 = vst [vmem:[#allocation2 + $0x18] sm:$0xff] (!%p1797_p10), %v2272_v0 }
  0x41   : > { %476 = vst [vmem:[#allocation2 + $0x20] sm:$0xff] (!%p1797_p10), %v2272_v0  ;;  %477 = vst [vmem:[#allocation2 + $0x28] sm:$0xff] (!%p1797_p10), %v2272_v0 }
  0x42   : > { %478 = vst [vmem:[#allocation2 + $0x30] sm:$0xff] (!%p1797_p10), %v2272_v0  ;;  %479 = vst [vmem:[#allocation2 + $0x38] sm:$0xff] (!%p1797_p10), %v2272_v0 }
  0x43   : > { %480 = vst [vmem:[#allocation2 + $0x40] sm:$0xff] (!%p1797_p10), %v2272_v0  ;;  %481 = vst [vmem:[#allocation2 + $0x48] sm:$0xff] (!%p1797_p10), %v2272_v0 }
  0x44   : > { %482 = vst [vmem:[#allocation2 + $0x50] sm:$0xff] %v2272_v0  ;;  %483 = vst [vmem:[#allocation2 + $0x58] sm:$0xff] %v2272_v0 }
  0x45   : > { %484 = vst [vmem:[#allocation2 + $0x60] sm:$0xff] %v2272_v0  ;;  %485 = vst [vmem:[#allocation2 + $0x68] sm:$0xff] %v2272_v0 }
  0x46   : > { %486 = vst [vmem:[#allocation2 + $0x70] sm:$0xff] %v2272_v0  ;;  %487 = vst [vmem:[#allocation2 + $0x78] sm:$0xff] %v2272_v0 }
  0x47 PF: > { %v2120_v1 = vld [vmem:[%s2495_s23 + $0x40] sm:$0xff]   ;;  %v2124_v5 = vld [vmem:[%s2495_s23 + $0x48] sm:$0xff]   ;;  %v2128_v9 = vld [vmem:[%s2495_s23 + $0x50] sm:$0xff]   ;;  %p1830_p11 = scmp.ne.s32.totalorder %s2262_s26, 3 }
  0x48   : > { %v2121_v2 = vld [vmem:[%s2495_s23 + $0xc0] sm:$0xff]   ;;  %1855 = vmatprep.subr.bf16.mxu0 %v2120_v1  ;;  %v2125_v6 = vld [vmem:[%s2495_s23 + $0xc8] sm:$0xff]   ;;  %v2129_v10 = vld [vmem:[%s2495_s23 + $0xd0] sm:$0xff]  }
  0x49   : > { %v2122_v3 = vld [vmem:[%s2495_s23] sm:$0xff]   ;;  %1919 = vmatprep.subr.bf16.mxu1 %v2121_v2  ;;  %v2126_v7 = vld [vmem:[%s2495_s23 + $0x8] sm:$0xff]   ;;  %v2130_v11 = vld [vmem:[%s2495_s23 + $0x10] sm:$0xff]  }
  0x4a   : > { %v2123_v4 = vld [vmem:[%s2495_s23 + $0x80] sm:$0xff]   ;;  %1856 = vmatpush3.bf16.msra.mxu0 %v2122_v3  ;;  %v2127_v8 = vld [vmem:[%s2495_s23 + $0x88] sm:$0xff]   ;;  %v2131_v12 = vld [vmem:[%s2495_s23 + $0x90] sm:$0xff]  }
  0x4b   : > { %1920 = vmatpush3.bf16.msra.mxu1 %v2123_v4  ;;  %1857 = vmatprep.subr.bf16.mxu0 %v2124_v5  ;;  %v2132_v13 = vld [vmem:[%s2495_s23 + $0x58] sm:$0xff]   ;;  %v2136_v17 = vld [vmem:[%s2495_s23 + $0x60] sm:$0xff]   ;;  %v2140_v21 = vld [vmem:[%s2495_s23 + $0x68] sm:$0xff]  }
  0x4c   : > { %1921 = vmatprep.subr.bf16.mxu1 %v2125_v6  ;;  %v2133_v14 = vld [vmem:[%s2495_s23 + $0xd8] sm:$0xff]   ;;  %v2137_v18 = vld [vmem:[%s2495_s23 + $0xe0] sm:$0xff]   ;;  %v2141_v22 = vld [vmem:[%s2495_s23 + $0xe8] sm:$0xff]  }
  0x4d   : > { %v2134_v15 = vld [vmem:[%s2495_s23 + $0x18] sm:$0xff]   ;;  %v2138_v19 = vld [vmem:[%s2495_s23 + $0x20] sm:$0xff]   ;;  %v2142_v23 = vld [vmem:[%s2495_s23 + $0x28] sm:$0xff]  }
  0x4e   : > { %1858 = vmatpush3.bf16.msra.mxu0 %v2126_v7  ;;  %v2135_v16 = vld [vmem:[%s2495_s23 + $0x98] sm:$0xff]   ;;  %v2139_v20 = vld [vmem:[%s2495_s23 + $0xa0] sm:$0xff]   ;;  %v2143_v24 = vld [vmem:[%s2495_s23 + $0xa8] sm:$0xff]  }
  0x4f   : > { %1922 = vmatpush3.bf16.msra.mxu1 %v2127_v8  ;;  %1859 = vmatprep.subr.bf16.mxu0 %v2128_v9  ;;  %v2144_v25 = vld [vmem:[%s2495_s23 + $0x70] sm:$0xff]   ;;  %v2148_v29 = vld [vmem:[%s2495_s23 + $0x78] sm:$0xff]   ;;  %v505_v33 = vld [vmem:[%s2497_s30 + $0x8] sm:$0xff] }
  0x50   : > { %1923 = vmatprep.subr.bf16.mxu1 %v2129_v10  ;;  %v2145_v26 = vld [vmem:[%s2495_s23 + $0xf0] sm:$0xff]   ;;  %v2149_v30 = vld [vmem:[%s2495_s23 + $0xf8] sm:$0xff]   ;;  %v509_v34 = vld [vmem:[%s2497_s30 + $0x28] sm:$0xff] }
  0x51   : > { %v2146_v27 = vld [vmem:[%s2495_s23 + $0x30] sm:$0xff]   ;;  %v2150_v31 = vld [vmem:[%s2495_s23 + $0x38] sm:$0xff]   ;;  %v569_v36 = vpack.c.bf16 %v509_v34, %v505_v33  ;;  %v504_v38 = vld [vmem:[%s2497_s30] sm:$0xff] }
  0x52   : > { %1860 = vmatpush3.bf16.msra.mxu0 %v2130_v11  ;;  %v2147_v28 = vld [vmem:[%s2495_s23 + $0xb0] sm:$0xff]   ;;  %v2151_v32 = vld [vmem:[%s2495_s23 + $0xb8] sm:$0xff]   ;;  %v508_v39 = vld [vmem:[%s2497_s30 + $0x20] sm:$0xff] }
  0x53   : > { %1924 = vmatpush3.bf16.msra.mxu1 %v2131_v12  ;;  %1861 = vmatprep.subr.bf16.mxu0 %v2132_v13  ;;  %v507_v35 = vld [vmem:[%s2497_s30 + $0x18] sm:$0xff]  ;;  %v568_v41 = vpack.c.bf16 %v508_v39, %v504_v38  ;;  %v506_v42 = vld [vmem:[%s2497_s30 + $0x10] sm:$0xff]  ;;  %v513_v44 = vld [vmem:[%s2497_s30 + $0x48] sm:$0xff] }
  0x54   : > { %1925 = vmatprep.subr.bf16.mxu1 %v2133_v14  ;;  %v511_v37 = vld [vmem:[%s2497_s30 + $0x38] sm:$0xff]  ;;  %v510_v43 = vld [vmem:[%s2497_s30 + $0x30] sm:$0xff]  ;;  %888 = vmatprep.mubr.bf16.mxu0 %v569_v36  ;;  %v517_v46 = vld [vmem:[%s2497_s30 + $0x68] sm:$0xff] }
  0x55   : > { %v571_v40 = vpack.c.bf16 %v511_v37, %v507_v35  ;;  %v570_v45 = vpack.c.bf16 %v510_v43, %v506_v42  ;;  %v515_v47 = vld [vmem:[%s2497_s30 + $0x58] sm:$0xff]  ;;  %v573_v49 = vpack.c.bf16 %v517_v46, %v513_v44  ;;  %v512_v51 = vld [vmem:[%s2497_s30 + $0x40] sm:$0xff]  ;;  %v514_v53 = vld [vmem:[%s2497_s30 + $0x50] sm:$0xff] }
  0x56   : > { %1862 = vmatpush3.bf16.msra.mxu0 %v2134_v15  ;;  %v519_v48 = vld [vmem:[%s2497_s30 + $0x78] sm:$0xff]  ;;  %v516_v52 = vld [vmem:[%s2497_s30 + $0x60] sm:$0xff]  ;;  %v518_v54 = vld [vmem:[%s2497_s30 + $0x70] sm:$0xff] }
  0x57   : > { %1926 = vmatpush3.bf16.msra.mxu1 %v2135_v16  ;;  %1863 = vmatprep.subr.bf16.mxu0 %v2136_v17  ;;  %v575_v50 = vpack.c.bf16 %v519_v48, %v515_v47  ;;  %v521_v55 = vld [vmem:[%s2497_s30 + $0x88] sm:$0xff]  ;;  %v523_v57 = vld [vmem:[%s2497_s30 + $0x98] sm:$0xff]  ;;  %v572_v59 = vpack.c.bf16 %v516_v52, %v512_v51  ;;  %v574_v60 = vpack.c.bf16 %v518_v54, %v514_v53  ;;  %v520_v63 = vld [vmem:[%s2497_s30 + $0x80] sm:$0xff] }
  0x58   : > { %1927 = vmatprep.subr.bf16.mxu1 %v2137_v18  ;;  %985 = vmatprep.mubr.bf16.mxu1 %v571_v40  ;;  %v525_v56 = vld [vmem:[%s2497_s30 + $0xa8] sm:$0xff]  ;;  %v527_v58 = vld [vmem:[%s2497_s30 + $0xb8] sm:$0xff]  ;;  %v524_v0 = vld [vmem:[%s2497_s30 + $0xa0] sm:$0xff] }
  0x59   : > { %v577_v61 = vpack.c.bf16 %v525_v56, %v521_v55  ;;  %v579_v62 = vpack.c.bf16 %v527_v58, %v523_v57  ;;  %v522_v1 = vld [vmem:[%s2497_s30 + $0x90] sm:$0xff]  ;;  %v529_v3 = vld [vmem:[%s2497_s30 + $0xc8] sm:$0xff]  ;;  %v531_v5 = vld [vmem:[%s2497_s30 + $0xd8] sm:$0xff]  ;;  %v576_v7 = vpack.c.bf16 %v524_v0, %v520_v63 }
  0x5a   : > { %1864 = vmatpush3.bf16.msra.mxu0 %v2138_v19  ;;  %v526_v2 = vld [vmem:[%s2497_s30 + $0xb0] sm:$0xff]  ;;  %v533_v4 = vld [vmem:[%s2497_s30 + $0xe8] sm:$0xff]  ;;  %v535_v6 = vld [vmem:[%s2497_s30 + $0xf8] sm:$0xff] }
  0x5b   : > { %1928 = vmatpush3.bf16.msra.mxu1 %v2139_v20  ;;  %1865 = vmatprep.subr.bf16.mxu0 %v2140_v21  ;;  %v578_v8 = vpack.c.bf16 %v526_v2, %v522_v1  ;;  %v581_v9 = vpack.c.bf16 %v533_v4, %v529_v3  ;;  %v583_v10 = vpack.c.bf16 %v535_v6, %v531_v5  ;;  %v528_v11 = vld [vmem:[%s2497_s30 + $0xc0] sm:$0xff]  ;;  %v530_v13 = vld [vmem:[%s2497_s30 + $0xd0] sm:$0xff]  ;;  %v537_v15 = vld [vmem:[%s2497_s30 + $0x108] sm:$0xff] }
  0x5c   : > { %1929 = vmatprep.subr.bf16.mxu1 %v2141_v22  ;;  %v532_v12 = vld [vmem:[%s2497_s30 + $0xe0] sm:$0xff]  ;;  %v534_v14 = vld [vmem:[%s2497_s30 + $0xf0] sm:$0xff]  ;;  %v541_v16 = vld [vmem:[%s2497_s30 + $0x128] sm:$0xff] }
  0x5d   : > { %v539_v17 = vld [vmem:[%s2497_s30 + $0x118] sm:$0xff]  ;;  %v580_v19 = vpack.c.bf16 %v532_v12, %v528_v11  ;;  %v582_v20 = vpack.c.bf16 %v534_v14, %v530_v13  ;;  %v585_v21 = vpack.c.bf16 %v541_v16, %v537_v15  ;;  %v544_v35 = vld [vmem:[%s2497_s30 + $0x140] sm:$0xff]  ;;  %v546_v37 = vld [vmem:[%s2497_s30 + $0x150] sm:$0xff] }
  0x5e   : > { %1866 = vmatpush3.bf16.msra.mxu0 %v2142_v23  ;;  %v543_v18 = vld [vmem:[%s2497_s30 + $0x138] sm:$0xff]  ;;  %v536_v23 = vld [vmem:[%s2497_s30 + $0x100] sm:$0xff]  ;;  %v550_v38 = vld [vmem:[%s2497_s30 + $0x170] sm:$0xff] }
  0x5f   : > { %1930 = vmatpush3.bf16.msra.mxu1 %v2143_v24  ;;  %1867 = vmatprep.subr.bf16.mxu0 %v2144_v25  ;;  %v587_v22 = vpack.c.bf16 %v543_v18, %v539_v17  ;;  %v540_v24 = vld [vmem:[%s2497_s30 + $0x120] sm:$0xff]  ;;  %v538_v25 = vld [vmem:[%s2497_s30 + $0x110] sm:$0xff]  ;;  %v553_v39 = vld [vmem:[%s2497_s30 + $0x188] sm:$0xff]  ;;  %v590_v44 = vpack.c.bf16 %v550_v38, %v546_v37 }
  0x60   : > { %1931 = vmatprep.subr.bf16.mxu1 %v2145_v26  ;;  %v542_v26 = vld [vmem:[%s2497_s30 + $0x130] sm:$0xff]  ;;  %v548_v36 = vld [vmem:[%s2497_s30 + $0x160] sm:$0xff]  ;;  %v557_v40 = vld [vmem:[%s2497_s30 + $0x1a8] sm:$0xff] }
  0x61   : > { %v559_v42 = vld [vmem:[%s2497_s30 + $0x1b8] sm:$0xff]  ;;  %v588_v43 = vpack.c.bf16 %v548_v36, %v544_v35  ;;  %v552_v47 = vld [vmem:[%s2497_s30 + $0x180] sm:$0xff]  ;;  %v561_v51 = vld [vmem:[%s2497_s30 + $0x1c8] sm:$0xff] }
  0x62   : > { %1868 = vmatpush3.bf16.msra.mxu0 %v2146_v27  ;;  %v545_v27 = vld [vmem:[%s2497_s30 + $0x148] sm:$0xff]  ;;  %v556_v48 = vld [vmem:[%s2497_s30 + $0x1a0] sm:$0xff]  ;;  %v563_v53 = vld [vmem:[%s2497_s30 + $0x1d8] sm:$0xff] }
  0x63   : > { %1932 = vmatpush3.bf16.msra.mxu1 %v2147_v28  ;;  %1869 = vmatprep.subr.bf16.mxu0 %v2148_v29  ;;  %v549_v28 = vld [vmem:[%s2497_s30 + $0x168] sm:$0xff]  ;;  %v547_v29 = vld [vmem:[%s2497_s30 + $0x158] sm:$0xff]  ;;  %v592_v55 = vpack.c.bf16 %v556_v48, %v552_v47 }
  0x64   : > { %1933 = vmatprep.subr.bf16.mxu1 %v2149_v30  ;;  %v551_v30 = vld [vmem:[%s2497_s30 + $0x178] sm:$0xff]  ;;  %v589_v33 = vpack.c.bf16 %v549_v28, %v545_v27  ;;  %v565_v52 = vld [vmem:[%s2497_s30 + $0x1e8] sm:$0xff]  ;;  %v490_v28 = vld [vmem:[#allocation2 + $0x10] sm:$0xff] }
  0x65   : > { %v591_v34 = vpack.c.bf16 %v551_v30, %v547_v29  ;;  %v567_v54 = vld [vmem:[%s2497_s30 + $0x1f8] sm:$0xff]  ;;  %v597_v57 = vpack.c.bf16 %v565_v52, %v561_v51  ;;  %v489_v15 = vld [vmem:[#allocation2 + $0x8] sm:$0xff] }
  0x66   : > { %1870 = vmatpush3.bf16.msra.mxu0 %v2150_v31  ;;  %v584_v31 = vpack.c.bf16 %v540_v24, %v536_v23  ;;  %v599_v58 = vpack.c.bf16 %v567_v54, %v563_v53  ;;  %v493_v51 = vld [vmem:[#allocation2 + $0x28] sm:$0xff] }
  0x67   : > { %1934 = vmatpush3.bf16.msra.mxu1 %v2151_v32  ;;  %v586_v32 = vpack.c.bf16 %v542_v26, %v538_v25 }
  0x69   : > { %889 = vmatmul.mubr.bf16.vlgmr.msra.gmra.mrb[0].mxu0 %v568_v41  ;;  %v555_v41 = vld [vmem:[%s2497_s30 + $0x198] sm:$0xff] }
  0x6a   : > { %986 = vmatmul.mubr.bf16.vlgmr.msra.gmra.mrb[0].mxu1 %v570_v45  ;;  %896 = vmatprep.mubr.bf16.mxu0 %v573_v49  ;;  %v593_v45 = vpack.c.bf16 %v557_v40, %v553_v39  ;;  %v595_v46 = vpack.c.bf16 %v559_v42, %v555_v41  ;;  %v554_v49 = vld [vmem:[%s2497_s30 + $0x190] sm:$0xff] }
  0x6b   : > { %993 = vmatprep.mubr.bf16.mxu1 %v575_v50  ;;  %v558_v50 = vld [vmem:[%s2497_s30 + $0x1b0] sm:$0xff] }
  0x6c   : > { %v594_v56 = vpack.c.bf16 %v558_v50, %v554_v49 }
  0x71   : > { %897 = vmatmul.mubr.bf16.gmra.mrb[4].mxu0 %v572_v59  ;;  %v560_v59 = vld [vmem:[%s2497_s30 + $0x1c0] sm:$0xff] }
  0x72   : > { %994 = vmatmul.mubr.bf16.gmra.mrb[4].mxu1 %v574_v60  ;;  %904 = vmatprep.mubr.bf16.mxu0 %v577_v61  ;;  %v564_v60 = vld [vmem:[%s2497_s30 + $0x1e0] sm:$0xff]  ;;  %v562_v61 = vld [vmem:[%s2497_s30 + $0x1d0] sm:$0xff] }
  0x73   : > { %1001 = vmatprep.mubr.bf16.mxu1 %v579_v62  ;;  %v566_v62 = vld [vmem:[%s2497_s30 + $0x1f0] sm:$0xff]  ;;  %v596_v63 = vpack.c.bf16 %v564_v60, %v560_v59 }
  0x74   : > { %v598_v0 = vpack.c.bf16 %v566_v62, %v562_v61 }
  0x79   : > { %905 = vmatmul.mubr.bf16.gmra.mrb[8].mxu0 %v576_v7 }
  0x7a   : > { %1002 = vmatmul.mubr.bf16.gmra.mrb[8].mxu1 %v578_v8  ;;  %912 = vmatprep.mubr.bf16.mxu0 %v581_v9 }
  0x7b   : > { %1009 = vmatprep.mubr.bf16.mxu1 %v583_v10  ;;  %v488_v10 = vld [vmem:[#allocation2] sm:$0xff] }
  0x81   : > { %913 = vmatmul.mubr.bf16.gmra.mrb[12].mxu0 %v580_v19 }
  0x82   : > { %1010 = vmatmul.mubr.bf16.gmra.mrb[12].mxu1 %v582_v20  ;;  %920 = vmatprep.mubr.bf16.mxu0 %v585_v21 }
  0x83   : > { %1017 = vmatprep.mubr.bf16.mxu1 %v587_v22 }
  0x89   : > { %921 = vmatmul.mubr.bf16.gmra.mrb[16].mxu0 %v584_v31 }
  0x8a   : > { %1018 = vmatmul.mubr.bf16.gmra.mrb[16].mxu1 %v586_v32  ;;  %928 = vmatprep.mubr.bf16.mxu0 %v589_v33  ;;  %v491_v33 = vld [vmem:[#allocation2 + $0x18] sm:$0xff] }
  0x8b   : > { %1025 = vmatprep.mubr.bf16.mxu1 %v591_v34 }
  0x91   : > { %929 = vmatmul.mubr.bf16.gmra.mrb[20].mxu0 %v588_v43 }
  0x92   : > { %1026 = vmatmul.mubr.bf16.gmra.mrb[20].mxu1 %v590_v44  ;;  %936 = vmatprep.mubr.bf16.mxu0 %v593_v45 }
  0x93   : > { %1033 = vmatprep.mubr.bf16.mxu1 %v595_v46  ;;  %v492_v46 = vld [vmem:[#allocation2 + $0x20] sm:$0xff] }
  0x99   : > { %937 = vmatmul.mubr.bf16.gmra.mrb[24].mxu0 %v592_v55 }
  0x9a   : > { %1034 = vmatmul.mubr.bf16.gmra.mrb[24].mxu1 %v594_v56  ;;  %944 = vmatprep.mubr.bf16.mxu0 %v597_v57 }
  0x9b   : > { %1041 = vmatprep.mubr.bf16.mxu1 %v599_v58 }
  0xa1   : > { %945 = vmatmul.mubr.bf16.gmra.mrb[28].mxu0 %v596_v63 }
  0xa2   : > { %1042 = vmatmul.mubr.bf16.gmra.mrb[28].mxu1 %v598_v0  ;;  %v494_v0 = vld [vmem:[#allocation2 + $0x30] sm:$0xff] }
 0x13c   : > { %v1871_v1 = vpop.f32.mrb[0].mxu0 }
 0x13d   : > { %v1935_v2 = vpop.f32.mrb[0].mxu1  ;;  %v1872_v3 = vpop.f32.mrb[1].mxu0 }
 0x13e   : > { %v1873_v4 = vadd.f32 %v1872_v3, %v1871_v1  ;;  %v1936_v5 = vpop.f32.mrb[1].mxu1  ;;  %v1874_v6 = vpop.f32.mrb[2].mxu0 }
 0x13f   : > { %v1937_v7 = vadd.f32 %v1936_v5, %v1935_v2  ;;  %v1938_v8 = vpop.f32.mrb[2].mxu1  ;;  %v1875_v9 = vpop.f32.mrb[3].mxu0  ;;  %v495_v5 = vld [vmem:[#allocation2 + $0x38] sm:$0xff] }
 0x140   : > { %v1876_v11 = vadd.f32 %v1875_v9, %v1874_v6  ;;  %v1939_v12 = vpop.f32.mrb[3].mxu1 }
 0x141   : > { %v988_v13 = vadd.f32 %v1937_v7, %v1873_v4  ;;  %v1940_v14 = vadd.f32 %v1939_v12, %v1938_v8 }
 0x143   : > { %v1050_v16 = vadd.f32 %v988_v13, %v488_v10  ;;  %v991_v17 = vadd.f32 %v1940_v14, %v1876_v11 }
 0x144   : > { %v1877_v18 = vpop.f32.mrb[4].mxu0 }
 0x145   : > { %1066 = vst [vmem:[#allocation2] sm:$0xff] %v1050_v16  ;;  %v1051_v19 = vadd.f32 %v991_v17, %v489_v15  ;;  %v1941_v20 = vpop.f32.mrb[4].mxu1  ;;  %v1878_v21 = vpop.f32.mrb[5].mxu0 }
 0x146   : > { %v1879_v22 = vadd.f32 %v1878_v21, %v1877_v18  ;;  %v1942_v23 = vpop.f32.mrb[5].mxu1  ;;  %v1880_v24 = vpop.f32.mrb[6].mxu0  ;;  %v496_v18 = vld [vmem:[#allocation2 + $0x40] sm:$0xff] }
 0x147   : > { %1067 = vst [vmem:[#allocation2 + $0x8] sm:$0xff] %v1051_v19  ;;  %v1943_v25 = vadd.f32 %v1942_v23, %v1941_v20  ;;  %v1944_v26 = vpop.f32.mrb[6].mxu1  ;;  %v1881_v27 = vpop.f32.mrb[7].mxu0  ;;  %v497_v23 = vld [vmem:[#allocation2 + $0x48] sm:$0xff] }
 0x148   : > { %v1882_v29 = vadd.f32 %v1881_v27, %v1880_v24  ;;  %v1945_v30 = vpop.f32.mrb[7].mxu1 }
 0x149   : > { %v996_v31 = vadd.f32 %v1943_v25, %v1879_v22  ;;  %v1946_v32 = vadd.f32 %v1945_v30, %v1944_v26 }
 0x14b   : > { %v1052_v34 = vadd.f32 %v996_v31, %v490_v28  ;;  %v999_v35 = vadd.f32 %v1946_v32, %v1882_v29 }
 0x14c   : > { %v1883_v36 = vpop.f32.mrb[8].mxu0 }
 0x14d   : > { %1068 = vst [vmem:[#allocation2 + $0x10] sm:$0xff] %v1052_v34  ;;  %v1053_v37 = vadd.f32 %v999_v35, %v491_v33  ;;  %v1947_v38 = vpop.f32.mrb[8].mxu1  ;;  %v1884_v39 = vpop.f32.mrb[9].mxu0 }
 0x14e   : > { %v1885_v40 = vadd.f32 %v1884_v39, %v1883_v36  ;;  %v1948_v41 = vpop.f32.mrb[9].mxu1  ;;  %v1886_v42 = vpop.f32.mrb[10].mxu0  ;;  %v498_v36 = vld [vmem:[#allocation2 + $0x50] sm:$0xff] }
 0x14f   : > { %1069 = vst [vmem:[#allocation2 + $0x18] sm:$0xff] %v1053_v37  ;;  %v1949_v43 = vadd.f32 %v1948_v41, %v1947_v38  ;;  %v1950_v44 = vpop.f32.mrb[10].mxu1  ;;  %v1887_v45 = vpop.f32.mrb[11].mxu0  ;;  %v499_v41 = vld [vmem:[#allocation2 + $0x58] sm:$0xff] }
 0x150   : > { %v1888_v47 = vadd.f32 %v1887_v45, %v1886_v42  ;;  %v1951_v48 = vpop.f32.mrb[11].mxu1 }
 0x151   : > { %v1004_v49 = vadd.f32 %v1949_v43, %v1885_v40  ;;  %v1952_v50 = vadd.f32 %v1951_v48, %v1950_v44 }
 0x153   : > { %v1054_v52 = vadd.f32 %v1004_v49, %v492_v46  ;;  %v1007_v53 = vadd.f32 %v1952_v50, %v1888_v47 }
 0x154   : > { %v1889_v54 = vpop.f32.mrb[12].mxu0 }
 0x155   : > { %1070 = vst [vmem:[#allocation2 + $0x20] sm:$0xff] %v1054_v52  ;;  %v1055_v55 = vadd.f32 %v1007_v53, %v493_v51  ;;  %v1953_v56 = vpop.f32.mrb[12].mxu1  ;;  %v1890_v57 = vpop.f32.mrb[13].mxu0 }
 0x156   : > { %v1891_v58 = vadd.f32 %v1890_v57, %v1889_v54  ;;  %v1954_v59 = vpop.f32.mrb[13].mxu1  ;;  %v1892_v60 = vpop.f32.mrb[14].mxu0  ;;  %v500_v54 = vld [vmem:[#allocation2 + $0x60] sm:$0xff] }
 0x157   : > { %1071 = vst [vmem:[#allocation2 + $0x28] sm:$0xff] %v1055_v55  ;;  %v1955_v61 = vadd.f32 %v1954_v59, %v1953_v56  ;;  %v1956_v62 = vpop.f32.mrb[14].mxu1  ;;  %v1893_v63 = vpop.f32.mrb[15].mxu0  ;;  %v501_v59 = vld [vmem:[#allocation2 + $0x68] sm:$0xff] }
 0x158   : > { %v1894_v1 = vadd.f32 %v1893_v63, %v1892_v60  ;;  %v1957_v2 = vpop.f32.mrb[15].mxu1 }
 0x159   : > { %v1012_v3 = vadd.f32 %v1955_v61, %v1891_v58  ;;  %v1958_v4 = vadd.f32 %v1957_v2, %v1956_v62 }
 0x15b   : > { %v1056_v6 = vadd.f32 %v1012_v3, %v494_v0  ;;  %v1015_v7 = vadd.f32 %v1958_v4, %v1894_v1 }
 0x15c   : > { %v1895_v8 = vpop.f32.mrb[16].mxu0 }
 0x15d   : > { %1072 = vst [vmem:[#allocation2 + $0x30] sm:$0xff] %v1056_v6  ;;  %v1057_v9 = vadd.f32 %v1015_v7, %v495_v5  ;;  %v1959_v10 = vpop.f32.mrb[16].mxu1  ;;  %v1896_v11 = vpop.f32.mrb[17].mxu0 }
 0x15e   : > { %v1897_v12 = vadd.f32 %v1896_v11, %v1895_v8  ;;  %v1960_v13 = vpop.f32.mrb[17].mxu1  ;;  %v1898_v14 = vpop.f32.mrb[18].mxu0  ;;  %v502_v8 = vld [vmem:[#allocation2 + $0x70] sm:$0xff] }
 0x15f   : > { %1073 = vst [vmem:[#allocation2 + $0x38] sm:$0xff] %v1057_v9  ;;  %v1961_v15 = vadd.f32 %v1960_v13, %v1959_v10  ;;  %v1962_v16 = vpop.f32.mrb[18].mxu1  ;;  %v1899_v17 = vpop.f32.mrb[19].mxu0  ;;  %v503_v13 = vld [vmem:[#allocation2 + $0x78] sm:$0xff] }
 0x160   : > { %v1900_v19 = vadd.f32 %v1899_v17, %v1898_v14  ;;  %v1963_v20 = vpop.f32.mrb[19].mxu1  ;;  %v2152_v17 = vld [vmem:[%s2977_s3] sm:$0xff] (!%p1830_p11)  }
 0x161   : > { %v1020_v21 = vadd.f32 %v1961_v15, %v1897_v12  ;;  %v1964_v22 = vadd.f32 %v1963_v20, %v1962_v16  ;;  %2015 = vmatprep.subr.bf16.mxu0 (!%p1830_p11), %v2152_v17  ;;  %v2155_v20 = vld [vmem:[%s2977_s3 + $0x18] sm:$0xff] (!%p1830_p11)  }
 0x162   : > { %2016 = vmatpush3.bf16.msra.mxu0 (!%p1830_p11), %v2152_v17 }
 0x163   : > { %v1058_v24 = vadd.f32 %v1020_v21, %v496_v18  ;;  %v1023_v25 = vadd.f32 %v1964_v22, %v1900_v19  ;;  %v2153_v18 = vld [vmem:[%s2977_s3 + $0x8] sm:$0xff] (!%p1830_p11)   ;;  %v2154_v19 = vld [vmem:[%s2977_s3 + $0x10] sm:$0xff] (!%p1830_p11)   ;;  %v1086_v21 = vld [vmem:[#allocation2] sm:$0xff] (!%p1830_p11) }
 0x164   : > { %v1901_v26 = vpop.f32.mrb[20].mxu0  ;;  %2017 = vmatprep.subr.bf16.mxu0 (!%p1830_p11), %v2153_v18  ;;  %v1087_v22 = vld [vmem:[#allocation2 + $0x8] sm:$0xff] (!%p1830_p11) }
 0x165   : > { %1074 = vst [vmem:[#allocation2 + $0x40] sm:$0xff] %v1058_v24  ;;  %v1059_v27 = vadd.f32 %v1023_v25, %v497_v23  ;;  %v1965_v28 = vpop.f32.mrb[20].mxu1  ;;  %v1902_v29 = vpop.f32.mrb[21].mxu0  ;;  %v2612_v23 = vld [vmem:[%s2976_s2] ss:$0 sm:$0xff] (!%p1830_p11) }
 0x166   : > { %v1903_v30 = vadd.f32 %v1902_v29, %v1901_v26  ;;  %v1966_v31 = vpop.f32.mrb[21].mxu1  ;;  %v1904_v32 = vpop.f32.mrb[22].mxu0  ;;  %2018 = vmatpush3.bf16.msra.mxu0 (!%p1830_p11), %v2153_v18  ;;  %v1109_v24 = vadd.f32 (!%p1830_p11), %v2612_v23, %v1086_v21  ;;  %v1110_v25 = vadd.f32 (!%p1830_p11), %v2612_v23, %v1087_v22 }
 0x167   : > { %1075 = vst [vmem:[#allocation2 + $0x48] sm:$0xff] %v1059_v27  ;;  %v1967_v33 = vadd.f32 %v1966_v31, %v1965_v28  ;;  %v1968_v34 = vpop.f32.mrb[22].mxu1  ;;  %v1905_v35 = vpop.f32.mrb[23].mxu0  ;;  %2019 = vmatprep.subr.bf16.mxu0 (!%p1830_p11), %v2154_v19  ;;  %v2156_v28 = vld [vmem:[%s2977_s3 + $0x20] sm:$0xff] (!%p1830_p11)   ;;  %v2161_v31 = vld [vmem:[%s2979_s5 + $0x8] sm:$0xff] (!%p1830_p11)  }
 0x168   : > { %v1906_v37 = vadd.f32 %v1905_v35, %v1904_v32  ;;  %v1969_v38 = vpop.f32.mrb[23].mxu1  ;;  %v1125_v26 = vmax.f32 (!%p1830_p11), %v1109_v24, 0.0  ;;  %v1126_v27 = vmax.f32 (!%p1830_p11), %v1110_v25, 0.0  ;;  %v2157_v32 = vld [vmem:[%s2977_s3 + $0x28] sm:$0xff] (!%p1830_p11)   ;;  %v2158_v35 = vld [vmem:[%s2977_s3 + $0x30] sm:$0xff] (!%p1830_p11)  }
 0x169   : > { %v1028_v39 = vadd.f32 %v1967_v33, %v1903_v30  ;;  %v1970_v40 = vadd.f32 %v1969_v38, %v1968_v34  ;;  %v2160_v30 = vld [vmem:[%s2979_s5] sm:$0xff] (!%p1830_p11)   ;;  %v1088_v33 = vld [vmem:[#allocation2 + $0x10] sm:$0xff] (!%p1830_p11)  ;;  %v1089_v34 = vld [vmem:[#allocation2 + $0x18] sm:$0xff] (!%p1830_p11) }
 0x16a   : > { %2020 = vmatpush3.bf16.msra.mxu0 (!%p1830_p11), %v2154_v19  ;;  %v1141_v29 = vpack.c.bf16 (!%p1830_p11), %v1126_v27, %v1125_v26  ;;  %2047 = vmatprep.subr.bf16.mxu1 (!%p1830_p11), %v2160_v30  ;;  %v1091_v38 = vld [vmem:[#allocation2 + $0x28] sm:$0xff] (!%p1830_p11)  ;;  %v2166_v25 = vld [vmem:[%s2979_s5 + $0x30] sm:$0xff] (!%p1830_p11)   ;;  %v2167_v26 = vld [vmem:[%s2979_s5 + $0x38] sm:$0xff] (!%p1830_p11)  }
 0x16b   : > { %v1060_v42 = vadd.f32 %v1028_v39, %v498_v36  ;;  %v1031_v43 = vadd.f32 %v1970_v40, %v1906_v37  ;;  %2021 = vmatprep.subr.bf16.mxu0 (!%p1830_p11), %v2155_v20  ;;  %2048 = vmatpush3.bf16.msra.mxu1 (!%p1830_p11), %v2160_v30  ;;  %v2162_v36 = vld [vmem:[%s2979_s5 + $0x10] sm:$0xff] (!%p1830_p11)   ;;  %v1090_v37 = vld [vmem:[#allocation2 + $0x20] sm:$0xff] (!%p1830_p11)  ;;  %v1111_v39 = vadd.f32 (!%p1830_p11), %v2612_v23, %v1088_v33 }
 0x16c   : > { %v1907_v44 = vpop.f32.mrb[24].mxu0  ;;  %2031 = vmatprep.mubr.bf16.mxu0 (!%p1830_p11), %v1141_v29  ;;  %2049 = vmatprep.subr.bf16.mxu1 (!%p1830_p11), %v2161_v31  ;;  %v1112_v40 = vadd.f32 (!%p1830_p11), %v2612_v23, %v1089_v34 }
 0x16d   : > { %1076 = vst [vmem:[#allocation2 + $0x50] sm:$0xff] %v1060_v42  ;;  %v1061_v45 = vadd.f32 %v1031_v43, %v499_v41  ;;  %v1971_v46 = vpop.f32.mrb[24].mxu1  ;;  %v1908_v47 = vpop.f32.mrb[25].mxu0  ;;  %v2163_v41 = vld [vmem:[%s2979_s5 + $0x18] sm:$0xff] (!%p1830_p11)   ;;  %v1113_v42 = vadd.f32 (!%p1830_p11), %v2612_v23, %v1090_v37  ;;  %v1114_v43 = vadd.f32 (!%p1830_p11), %v2612_v23, %v1091_v38 }
 0x16e   : > { %v1909_v48 = vadd.f32 %v1908_v47, %v1907_v44  ;;  %v1972_v49 = vpop.f32.mrb[25].mxu1  ;;  %v1910_v50 = vpop.f32.mrb[26].mxu0  ;;  %2022 = vmatpush3.bf16.msra.mxu0 (!%p1830_p11), %v2155_v20  ;;  %v2159_v44 = vld [vmem:[%s2977_s3 + $0x38] sm:$0xff] (!%p1830_p11)   ;;  %v2164_v47 = vld [vmem:[%s2979_s5 + $0x20] sm:$0xff] (!%p1830_p11)  }
 0x16f   : > { %1077 = vst [vmem:[#allocation2 + $0x58] sm:$0xff] %v1061_v45  ;;  %v1973_v51 = vadd.f32 %v1972_v49, %v1971_v46  ;;  %v1974_v52 = vpop.f32.mrb[26].mxu1  ;;  %v1911_v53 = vpop.f32.mrb[27].mxu0  ;;  %2023 = vmatprep.subr.bf16.mxu0 (!%p1830_p11), %v2156_v28  ;;  %2050 = vmatpush3.bf16.msra.mxu1 (!%p1830_p11), %v2161_v31  ;;  %v1127_v45 = vmax.f32 (!%p1830_p11), %v1111_v39, 0.0  ;;  %v1128_v46 = vmax.f32 (!%p1830_p11), %v1112_v40, 0.0  ;;  %v1130_v49 = vmax.f32 (!%p1830_p11), %v1114_v43, 0.0 }
 0x170   : > { %v1912_v55 = vadd.f32 %v1911_v53, %v1910_v50  ;;  %v1975_v56 = vpop.f32.mrb[27].mxu1  ;;  %2051 = vmatprep.subr.bf16.mxu1 (!%p1830_p11), %v2162_v36  ;;  %v1092_v50 = vld [vmem:[#allocation2 + $0x30] sm:$0xff] (!%p1830_p11)  ;;  %v1095_v53 = vld [vmem:[#allocation2 + $0x48] sm:$0xff] (!%p1830_p11) }
 0x171   : > { %v1036_v57 = vadd.f32 %v1973_v51, %v1909_v48  ;;  %v1976_v58 = vadd.f32 %v1975_v56, %v1974_v52  ;;  %v1129_v48 = vmax.f32 (!%p1830_p11), %v1113_v42, 0.0  ;;  %v1093_v51 = vld [vmem:[#allocation2 + $0x38] sm:$0xff] (!%p1830_p11)  ;;  %v1094_v52 = vld [vmem:[#allocation2 + $0x40] sm:$0xff] (!%p1830_p11) }
 0x172   : > { %2024 = vmatpush3.bf16.msra.mxu0 (!%p1830_p11), %v2156_v28  ;;  %v1116_v56 = vadd.f32 (!%p1830_p11), %v2612_v23, %v1093_v51 }
 0x173   : > { %v1062_v60 = vadd.f32 %v1036_v57, %v500_v54  ;;  %v1039_v61 = vadd.f32 %v1976_v58, %v1912_v55  ;;  %2025 = vmatprep.subr.bf16.mxu0 (!%p1830_p11), %v2157_v32  ;;  %2052 = vmatpush3.bf16.msra.mxu1 (!%p1830_p11), %v2162_v36  ;;  %v1142_v54 = vpack.c.bf16 (!%p1830_p11), %v1128_v46, %v1127_v45  ;;  %v2165_v57 = vld [vmem:[%s2979_s5 + $0x28] sm:$0xff] (!%p1830_p11)  }
 0x174   : > { %v1913_v62 = vpop.f32.mrb[28].mxu0  ;;  %2053 = vmatprep.subr.bf16.mxu1 (!%p1830_p11), %v2163_v41  ;;  %v1115_v55 = vadd.f32 (!%p1830_p11), %v2612_v23, %v1092_v50  ;;  %v1143_v58 = vpack.c.bf16 (!%p1830_p11), %v1130_v49, %v1129_v48 }
 0x175   : > { %1078 = vst [vmem:[#allocation2 + $0x60] sm:$0xff] %v1062_v60  ;;  %v1063_v63 = vadd.f32 %v1039_v61, %v501_v59  ;;  %v1977_v0 = vpop.f32.mrb[28].mxu1  ;;  %v1914_v1 = vpop.f32.mrb[29].mxu0  ;;  %v1117_v59 = vadd.f32 (!%p1830_p11), %v2612_v23, %v1094_v52  ;;  %v1118_v60 = vadd.f32 (!%p1830_p11), %v2612_v23, %v1095_v53 }
 0x176   : > { %v1915_v2 = vadd.f32 %v1914_v1, %v1913_v62  ;;  %v1978_v3 = vpop.f32.mrb[29].mxu1  ;;  %v1916_v4 = vpop.f32.mrb[30].mxu0  ;;  %2026 = vmatpush3.bf16.msra.mxu0 (!%p1830_p11), %v2157_v32  ;;  %v1131_v61 = vmax.f32 (!%p1830_p11), %v1115_v55, 0.0  ;;  %v1132_v62 = vmax.f32 (!%p1830_p11), %v1116_v56, 0.0  ;;  %v1096_v1 = vld [vmem:[#allocation2 + $0x50] sm:$0xff] (!%p1830_p11) }
 0x177   : > { %1079 = vst [vmem:[#allocation2 + $0x68] sm:$0xff] %v1063_v63  ;;  %v1979_v5 = vadd.f32 %v1978_v3, %v1977_v0  ;;  %v1980_v6 = vpop.f32.mrb[30].mxu1  ;;  %v1917_v7 = vpop.f32.mrb[31].mxu0  ;;  %2027 = vmatprep.subr.bf16.mxu0 (!%p1830_p11), %v2158_v35  ;;  %2054 = vmatpush3.bf16.msra.mxu1 (!%p1830_p11), %v2163_v41  ;;  %v1133_v63 = vmax.f32 (!%p1830_p11), %v1117_v59, 0.0  ;;  %v1134_v0 = vmax.f32 (!%p1830_p11), %v1118_v60, 0.0 }
 0x178   : > { %v1918_v9 = vadd.f32 %v1917_v7, %v1916_v4  ;;  %v1981_v10 = vpop.f32.mrb[31].mxu1  ;;  %2055 = vmatprep.subr.bf16.mxu1 (!%p1830_p11), %v2164_v47 }
 0x179   : > { %v1044_v11 = vadd.f32 %v1979_v5, %v1915_v2  ;;  %v1982_v12 = vadd.f32 %v1981_v10, %v1980_v6  ;;  %1085 = sbr.rel (%p1830_p11) target bundleno = 1168 (0x490), region = 79  ;;  %v1097_v2 = vld [vmem:[#allocation2 + $0x58] sm:$0xff] (!%p1830_p11)  ;;  %v1144_v5 = vpack.c.bf16 (!%p1830_p11), %v1132_v62, %v1131_v61  ;;  %v1119_v6 = vadd.f32 (!%p1830_p11), %v2612_v23, %v1096_v1 }
 0x17a   : > { %2028 = vmatpush3.bf16.msra.mxu0 (!%p1830_p11), %v2158_v35  ;;  %v1120_v7 = vadd.f32 (!%p1830_p11), %v2612_v23, %v1097_v2 }
 0x17b   : > { %v1064_v14 = vadd.f32 %v1044_v11, %v502_v8  ;;  %v1047_v15 = vadd.f32 %v1982_v12, %v1918_v9  ;;  %2029 = vmatprep.subr.bf16.mxu0 (!%p1830_p11), %v2159_v44  ;;  %2056 = vmatpush3.bf16.msra.mxu1 (!%p1830_p11), %v2164_v47  ;;  %v1145_v8 = vpack.c.bf16 (!%p1830_p11), %v1134_v0, %v1133_v63  ;;  %v1135_v11 = vmax.f32 (!%p1830_p11), %v1119_v6, 0.0 }
 0x17c   : > { %2057 = vmatprep.subr.bf16.mxu1 (!%p1830_p11), %v2165_v57  ;;  %v1098_v3 = vld [vmem:[#allocation2 + $0x60] sm:$0xff] (!%p1830_p11)  ;;  %v1136_v12 = vmax.f32 (!%p1830_p11), %v1120_v7, 0.0 }
 0x17d   : > { %1080 = vst [vmem:[#allocation2 + $0x70] sm:$0xff] %v1064_v14  ;;  %v1065_v16 = vadd.f32 %v1047_v15, %v503_v13  ;;  %v1121_v9 = vadd.f32 (!%p1830_p11), %v2612_v23, %v1098_v3 }
 0x17e   : > { %2030 = vmatpush3.bf16.msra.mxu0 (!%p1830_p11), %v2159_v44  ;;  %v1099_v4 = vld [vmem:[#allocation2 + $0x68] sm:$0xff] (!%p1830_p11)  ;;  %v1146_v17 = vpack.c.bf16 (!%p1830_p11), %v1136_v12, %v1135_v11 }
 0x17f   : > { %1081 = vst [vmem:[#allocation2 + $0x78] sm:$0xff] %v1065_v16  ;;  %2058 = vmatpush3.bf16.msra.mxu1 (!%p1830_p11), %v2165_v57  ;;  %v1122_v10 = vadd.f32 (!%p1830_p11), %v2612_v23, %v1099_v4  ;;  %v1137_v13 = vmax.f32 (!%p1830_p11), %v1121_v9, 0.0 }
 0x180   : > { %2059 = vmatprep.subr.bf16.mxu1 %v2166_v25 }
 0x181   : > { %2032 = vmatmul.mubr.bf16.vlgmr.msra.gmra.mrb[0].mxu0 %v1142_v54  ;;  %v1138_v14 = vmax.f32 %v1122_v10, 0.0 }
 0x182   : > { %2035 = vmatprep.mubr.bf16.mxu0 %v1143_v58 }
 0x183   : > { %v1147_v20 = vpack.c.bf16 %v1138_v14, %v1137_v13  ;;  %2060 = vmatpush3.bf16.msra.mxu1 %v2166_v25 }
 0x184   : > { %v1100_v15 = vld [vmem:[#allocation2 + $0x70] sm:$0xff]  ;;  %2061 = vmatprep.subr.bf16.mxu1 %v2167_v26 }
 0x185   : > { %v1123_v18 = vadd.f32 %v2612_v23, %v1100_v15 }
 0x186   : > { %v1101_v16 = vld [vmem:[#allocation2 + $0x78] sm:$0xff] }
 0x187   : > { %v1124_v19 = vadd.f32 %v2612_v23, %v1101_v16  ;;  %v1139_v21 = vmax.f32 %v1123_v18, 0.0  ;;  %2062 = vmatpush3.bf16.msra.mxu1 %v2167_v26  ;;  %v1832_v23 = vld [vmem:[%s2978_s4] ss:$0 sm:$0xff] }
 0x189   : > { %2036 = vmatmul.mubr.bf16.gmra.mrb[4].mxu0 %v1144_v5  ;;  %v1140_v22 = vmax.f32 %v1124_v19, 0.0  ;;  %v1509_v19 = vlaneseq }
 0x18a   : > { %2039 = vmatprep.mubr.bf16.mxu0 %v1145_v8 }
 0x18b   : > { %v1148_v24 = vpack.c.bf16 %v1140_v22, %v1139_v21  ;;  %v1841_v21 = vld [vmem:[%s2980_s6] ss:$0 sm:$0xff] }
 0x191   : > { %2040 = vmatmul.mubr.bf16.gmra.mrb[8].mxu0 %v1146_v17 }
 0x192   : > { %2043 = vmatprep.mubr.bf16.mxu0 %v1147_v20  ;;  %v2669_v20 = vand.u32 127, %v1509_v19 }
 0x194   : > { %vm1511_vm0 = vcmp.lt.s32.totalorder %v2669_v20, 5 }
 0x199   : > { %2044 = vmatmul.mubr.bf16.gmra.mrb[12].mxu0 %v1148_v24 }
 0x254   : > { %v2033_v27 = vpop.f32.mrb[0].mxu0 }
 0x255   : > { %v1263_v28 = vadd.f32 %v2033_v27, %v1832_v23  ;;  %v1254_v29 = vpop.f32.mrb[1].mxu0 }
 0x256   : > { %v1255_v30 = vadd.f32 %v1832_v23, %v1254_v29  ;;  %v2034_v31 = vpop.f32.mrb[2].mxu0 }
 0x257   : > { %v1266_v32 = vadd.f32 %v2034_v31, %v1832_v23  ;;  %v1257_v33 = vpop.f32.mrb[3].mxu0  ;;  %v1319_v35 = vmax.f32 %v1263_v28, 0.0 }
 0x258   : > { %v1258_v34 = vadd.f32 %v1832_v23, %v1257_v33  ;;  %v1317_v37 = vmax.f32 %v1255_v30, 0.0 }
 0x259   : > { %v1320_v36 = vmax.f32 %v1266_v32, 0.0 }
 0x25a   : > { %v1318_v38 = vmax.f32 %v1258_v34, 0.0 }
 0x25b   : > { %v1334_v39 = vpack.c.bf16 %v1320_v36, %v1319_v35 }
 0x25c   : > { %v2037_v40 = vpop.f32.mrb[4].mxu0  ;;  %v1333_v41 = vpack.c.bf16 %v1318_v38, %v1317_v37 }
 0x25d   : > { %v1279_v42 = vadd.f32 %v2037_v40, %v1832_v23  ;;  %v1270_v43 = vpop.f32.mrb[5].mxu0 }
 0x25e   : > { %v1271_v44 = vadd.f32 %v1832_v23, %v1270_v43  ;;  %v2038_v45 = vpop.f32.mrb[6].mxu0  ;;  %2063 = vmatprep.mubr.bf16.mxu1 %v1333_v41 }
 0x25f   : > { %v1323_v46 = vmax.f32 %v1279_v42, 0.0  ;;  %v1282_v47 = vadd.f32 %v2038_v45, %v1832_v23  ;;  %v1273_v48 = vpop.f32.mrb[7].mxu0  ;;  %2064 = vmatmul.mubr.bf16.vlgmr.msra.gmra.mrb[0].mxu1 %v1334_v39 }
 0x260   : > { %v1274_v49 = vadd.f32 %v1832_v23, %v1273_v48  ;;  %v1321_v51 = vmax.f32 %v1271_v44, 0.0 }
 0x261   : > { %v1324_v50 = vmax.f32 %v1282_v47, 0.0 }
 0x262   : > { %v1322_v52 = vmax.f32 %v1274_v49, 0.0 }
 0x263   : > { %v1336_v53 = vpack.c.bf16 %v1324_v50, %v1323_v46 }
 0x264   : > { %v1335_v54 = vpack.c.bf16 %v1322_v52, %v1321_v51  ;;  %v2041_v55 = vpop.f32.mrb[8].mxu0 }
 0x265   : > { %v1295_v56 = vadd.f32 %v2041_v55, %v1832_v23  ;;  %v1286_v57 = vpop.f32.mrb[9].mxu0 }
 0x266   : > { %v1287_v58 = vadd.f32 %v1832_v23, %v1286_v57  ;;  %v2042_v59 = vpop.f32.mrb[10].mxu0  ;;  %2067 = vmatprep.mubr.bf16.mxu1 %v1335_v54 }
 0x267   : > { %v1327_v60 = vmax.f32 %v1295_v56, 0.0  ;;  %v1298_v61 = vadd.f32 %v2042_v59, %v1832_v23  ;;  %v1289_v62 = vpop.f32.mrb[11].mxu0  ;;  %2068 = vmatmul.mubr.bf16.gmra.mrb[4].mxu1 %v1336_v53 }
 0x268   : > { %v1290_v63 = vadd.f32 %v1832_v23, %v1289_v62  ;;  %v1325_v1 = vmax.f32 %v1287_v58, 0.0 }
 0x269   : > { %v1328_v0 = vmax.f32 %v1298_v61, 0.0 }
 0x26a   : > { %v1326_v2 = vmax.f32 %v1290_v63, 0.0 }
 0x26b   : > { %v1338_v3 = vpack.c.bf16 %v1328_v0, %v1327_v60 }
 0x26c   : > { %v1337_v4 = vpack.c.bf16 %v1326_v2, %v1325_v1  ;;  %v2045_v5 = vpop.f32.mrb[12].mxu0 }
 0x26d   : > { %v1311_v6 = vadd.f32 %v2045_v5, %v1832_v23  ;;  %v1302_v7 = vpop.f32.mrb[13].mxu0 }
 0x26e   : > { %v1303_v8 = vadd.f32 %v1832_v23, %v1302_v7  ;;  %v2046_v9 = vpop.f32.mrb[14].mxu0  ;;  %2071 = vmatprep.mubr.bf16.mxu1 %v1337_v4 }
 0x26f   : > { %v1331_v10 = vmax.f32 %v1311_v6, 0.0  ;;  %v1314_v11 = vadd.f32 %v2046_v9, %v1832_v23  ;;  %v1305_v12 = vpop.f32.mrb[15].mxu0  ;;  %2072 = vmatmul.mubr.bf16.gmra.mrb[8].mxu1 %v1338_v3 }
 0x270   : > { %v1306_v13 = vadd.f32 %v1832_v23, %v1305_v12  ;;  %v1329_v15 = vmax.f32 %v1303_v8, 0.0 }
 0x271   : > { %v1332_v14 = vmax.f32 %v1314_v11, 0.0 }
 0x272   : > { %v1330_v16 = vmax.f32 %v1306_v13, 0.0 }
 0x273   : > { %v1340_v17 = vpack.c.bf16 %v1332_v14, %v1331_v10 }
 0x274   : > { %v1339_v18 = vpack.c.bf16 %v1330_v16, %v1329_v15 }
 0x276   : > { %2075 = vmatprep.mubr.bf16.mxu1 %v1339_v18 }
 0x277   : > { %2076 = vmatmul.mubr.bf16.gmra.mrb[12].mxu1 %v1340_v17 }
 0x332   : > { %v2065_v22 = vpop.f32.mrb[0].mxu1 }
 0x333   : > { %v2675_v24 = vadd.f32 %v2065_v22, %v1841_v21  ;;  %v1446_v25 = vpop.f32.mrb[1].mxu1 }
 0x334   : > { %v2677_v26 = vadd.f32 %v1841_v21, %v1446_v25  ;;  %v2066_v23 = vpop.f32.mrb[2].mxu1 }
 0x335   : > { %v2679_v27 = vadd.f32 %v2066_v23, %v1841_v21  ;;  %v1449_v28 = vpop.f32.mrb[3].mxu1  ;;  %v1514_v29 = vsel %vm1511_vm0, %v2675_v24, -1e+30 }
 0x336   : > { %v2684_v30 = vadd.f32 %v1841_v21, %v1449_v28  ;;  %1532 = vmax.xlane.f32.xlu1 %v1514_v29  ;;  %v1512_v31 = vsel %vm1511_vm0, %v2677_v26, -1e+30 }
 0x337   : > { %1528 = vmax.xlane.f32.xlu0 %v1512_v31  ;;  %v2692_v32 = vsel %vm1511_vm0, %v2679_v27, -1e+30 }
 0x338   : > { %v2698_v34 = vsel %vm1511_vm0, %v2684_v30, -1e+30 }
 0x33a   : > { %1534 = vmax.xlane.f32.xlu1 %v2692_v32  ;;  %v2069_v33 = vpop.f32.mrb[4].mxu1 }
 0x33b   : > { %v2700_v35 = vadd.f32 %v2069_v33, %v1841_v21  ;;  %v1462_v36 = vpop.f32.mrb[5].mxu1  ;;  %1530 = vmax.xlane.f32.xlu0 %v2698_v34 }
 0x33c   : > { %v2070_v37 = vpop.f32.mrb[6].mxu1  ;;  %v2708_v41 = vadd.f32 %v1841_v21, %v1462_v36 }
 0x33d   : > { %v2703_v38 = vadd.f32 %v2070_v37, %v1841_v21  ;;  %v1465_v39 = vpop.f32.mrb[7].mxu1  ;;  %v1518_v40 = vsel %vm1511_vm0, %v2700_v35, -1e+30 }
 0x33e   : > { %v2710_v42 = vadd.f32 %v1841_v21, %v1465_v39  ;;  %v2718_v45 = vsel %vm1511_vm0, %v2708_v41, -1e+30 }
 0x33f   : > { %1540 = vmax.xlane.f32.xlu0 %v1518_v40  ;;  %v1519_v43 = vsel %vm1511_vm0, %v2703_v38, -1e+30 }
 0x340   : > { %1542 = vmax.xlane.f32.xlu1 %v1519_v43  ;;  %v1517_v48 = vsel %vm1511_vm0, %v2710_v42, -1e+30 }
 0x342   : > { %v2073_v44 = vpop.f32.mrb[8].mxu1 }
 0x343   : > { %v2720_v46 = vadd.f32 %v2073_v44, %v1841_v21  ;;  %v1478_v47 = vpop.f32.mrb[9].mxu1  ;;  %1536 = vmax.xlane.f32.xlu0 %v2718_v45 }
 0x344   : > { %v2074_v49 = vpop.f32.mrb[10].mxu1  ;;  %1538 = vmax.xlane.f32.xlu1 %v1517_v48  ;;  %v2733_v53 = vadd.f32 %v1841_v21, %v1478_v47 }
 0x345   : > { %v2726_v50 = vadd.f32 %v2074_v49, %v1841_v21  ;;  %v1481_v51 = vpop.f32.mrb[11].mxu1  ;;  %v2731_v52 = vsel %vm1511_vm0, %v2720_v46, -1e+30 }
 0x346   : > { %v2735_v54 = vadd.f32 %v1841_v21, %v1481_v51  ;;  %v2747_v57 = vsel %vm1511_vm0, %v2733_v53, -1e+30 }
 0x347   : > { %1548 = vmax.xlane.f32.xlu0 %v2731_v52  ;;  %v2741_v55 = vsel %vm1511_vm0, %v2726_v50, -1e+30 }
 0x348   : > { %1550 = vmax.xlane.f32.xlu1 %v2741_v55  ;;  %v2753_v59 = vsel %vm1511_vm0, %v2735_v54, -1e+30 }
 0x34a   : > { %v2077_v56 = vpop.f32.mrb[12].mxu1 }
 0x34b   : > { %v1494_v58 = vpop.f32.mrb[13].mxu1  ;;  %1544 = vmax.xlane.f32.xlu0 %v2747_v57  ;;  %v2758_v63 = vadd.f32 %v2077_v56, %v1841_v21 }
 0x34c   : > { %v2755_v60 = vadd.f32 %v1841_v21, %v1494_v58  ;;  %v2078_v61 = vpop.f32.mrb[14].mxu1  ;;  %1546 = vmax.xlane.f32.xlu1 %v2753_v59 }
 0x34d   : > { %v1497_v62 = vpop.f32.mrb[15].mxu1  ;;  %v2768_v2 = vadd.f32 %v2078_v61, %v1841_v21  ;;  %v2779_v4 = vsel %vm1511_vm0, %v2758_v63, -1e+30 }
 0x34e   : > { %v2760_v0 = vadd.f32 %v1841_v21, %v1497_v62  ;;  %v2765_v1 = vsel %vm1511_vm0, %v2755_v60, -1e+30 }
 0x34f   : > { %1552 = vmax.xlane.f32.xlu0 %v2765_v1  ;;  %v2785_v5 = vsel %vm1511_vm0, %v2768_v2, -1e+30 }
 0x350   : > { %v2773_v3 = vsel %vm1511_vm0, %v2760_v0, -1e+30 }
 0x351   : > { %1554 = vmax.xlane.f32.xlu1 %v2773_v3 }
 0x353   : > { %1556 = vmax.xlane.f32.xlu0 %v2779_v4 }
 0x355   : > { %1558 = vmax.xlane.f32.xlu1 %v2785_v5 }
 0x3c3   : > { %v1533_v6 = vpop.xlane.xlu1 %1532 }
 0x3c4   : > { %v1562_v7 = vsub.f32 %v1514_v29, %v1533_v6  ;;  %v1529_v8 = vpop.xlane.xlu0 %1528 }
 0x3c5   : > { %v1560_v9 = vsub.f32 %v1512_v31, %v1529_v8 }
 0x3c6   : > { %v1580_v10 = vmul.f32 1.442695, %v1562_v7 }
 0x3c7   : > { %v1576_v11 = vmul.f32 1.442695, %v1560_v9  ;;  %v1535_v12 = vpop.xlane.xlu1 %1534 }
 0x3c8   : > { %2168 = vpow2.f32 %v1580_v10  ;;  %v1563_v13 = vsub.f32 %v2692_v32, %v1535_v12  ;;  %v1531_v14 = vpop.xlane.xlu0 %1530 }
 0x3c9   : > { %v1561_v15 = vsub.f32 %v2698_v34, %v1531_v14  ;;  %2170 = vpow2.f32 %v1576_v11 }
 0x3ca   : > { %v1582_v16 = vmul.f32 1.442695, %v1563_v13 }
 0x3cb   : > { %v1578_v17 = vmul.f32 1.442695, %v1561_v15 }
 0x3cc   : > { %2172 = vpow2.f32 %v1582_v16  ;;  %v1541_v18 = vpop.xlane.xlu0 %1540 }
 0x3cd   : > { %v1566_v19 = vsub.f32 %v1518_v40, %v1541_v18  ;;  %v1543_v21 = vpop.xlane.xlu1 %1542  ;;  %2174 = vpow2.f32 %v1578_v17 }
 0x3ce   : > { %v1567_v22 = vsub.f32 %v1519_v43, %v1543_v21 }
 0x3cf   : > { %v1588_v25 = vmul.f32 1.442695, %v1566_v19 }
 0x3d0   : > { %v1590_v23 = vmul.f32 1.442695, %v1567_v22  ;;  %v1537_v28 = vpop.xlane.xlu0 %1536 }
 0x3d1   : > { %2176 = vpow2.f32 %v1588_v25  ;;  %v1564_v29 = vsub.f32 %v2718_v45, %v1537_v28  ;;  %v1539_v31 = vpop.xlane.xlu1 %1538 }
 0x3d2   : > { %v2791_v32 = vpop.eup %2168  ;;  %v1565_v33 = vsub.f32 %v1517_v48, %v1539_v31  ;;  %2178 = vpow2.f32 %v1590_v23 }
 0x3d3   : > { %v1584_v34 = vmul.f32 1.442695, %v1564_v29  ;;  %1612 = vadd.xlane.f32.xlu0 %v2791_v32  ;;  %v2794_v39 = vpop.eup %2170 }
 0x3d4   : > { %v1586_v36 = vmul.f32 1.442695, %v1565_v33  ;;  %v1549_v37 = vpop.xlane.xlu0 %1548 }
 0x3d5   : > { %2180 = vpow2.f32 %v1584_v34  ;;  %v1570_v40 = vsub.f32 %v2731_v52, %v1549_v37  ;;  %v1551_v43 = vpop.xlane.xlu1 %1550 }
 0x3d6   : > { %v2797_v44 = vpop.eup %2172  ;;  %v1571_v45 = vsub.f32 %v2741_v55, %v1551_v43  ;;  %2182 = vpow2.f32 %v1586_v36 }
 0x3d7   : > { %v1596_v47 = vmul.f32 1.442695, %v1570_v40  ;;  %1614 = vadd.xlane.f32.xlu1 %v2797_v44  ;;  %1608 = vadd.xlane.f32.xlu0 %v2794_v39  ;;  %v2803_v58 = vpop.eup %2174 }
 0x3d8   : > { %v1598_v48 = vmul.f32 1.442695, %v1571_v45  ;;  %v1545_v49 = vpop.xlane.xlu0 %1544 }
 0x3d9   : > { %2184 = vpow2.f32 %v1596_v47  ;;  %v1568_v51 = vsub.f32 %v2747_v57, %v1545_v49  ;;  %v1547_v56 = vpop.xlane.xlu1 %1546 }
 0x3da   : > { %v1569_v52 = vsub.f32 %v2753_v59, %v1547_v56  ;;  %2186 = vpow2.f32 %v1598_v48 }
 0x3db   : > { %v2806_v61 = vpop.eup %2176  ;;  %v1592_v62 = vmul.f32 1.442695, %v1568_v51  ;;  %1610 = vadd.xlane.f32.xlu1 %v2803_v58 }
 0x3dc   : > { %v1594_v55 = vmul.f32 1.442695, %v1569_v52  ;;  %1620 = vadd.xlane.f32.xlu0 %v2806_v61  ;;  %v1553_v6 = vpop.xlane.xlu0 %1552  ;;  %v2811_v8 = vpop.eup %2178 }
 0x3dd   : > { %2188 = vpow2.f32 %v1592_v62  ;;  %v1572_v7 = vsub.f32 %v2765_v1, %v1553_v6 }
 0x3de   : > { %v1555_v57 = vpop.xlane.xlu1 %1554  ;;  %2190 = vpow2.f32 %v1594_v55 }
 0x3df   : > { %v2813_v9 = vpop.eup %2180  ;;  %v1600_v10 = vmul.f32 1.442695, %v1572_v7  ;;  %v1573_v59 = vsub.f32 %v2773_v3, %v1555_v57  ;;  %1622 = vadd.xlane.f32.xlu1 %v2811_v8 }
 0x3e0   : > { %1616 = vadd.xlane.f32.xlu0 %v2813_v9  ;;  %v1557_v11 = vpop.xlane.xlu0 %1556  ;;  %v2819_v14 = vpop.eup %2182 }
 0x3e1   : > { %2192 = vpow2.f32 %v1600_v10  ;;  %v1602_v12 = vmul.f32 1.442695, %v1573_v59  ;;  %v1574_v13 = vsub.f32 %v2779_v4, %v1557_v11 }
 0x3e2   : > { %v1559_v1 = vpop.xlane.xlu1 %1558 }
 0x3e3   : > { %v2821_v15 = vpop.eup %2184  ;;  %2194 = vpow2.f32 %v1602_v12  ;;  %v1604_v16 = vmul.f32 1.442695, %v1574_v13  ;;  %v1575_v17 = vsub.f32 %v2785_v5, %v1559_v1  ;;  %1618 = vadd.xlane.f32.xlu1 %v2819_v14 }
 0x3e4   : > { %1628 = vadd.xlane.f32.xlu0 %v2821_v15  ;;  %v2826_v18 = vpop.eup %2186 }
 0x3e5   : > { %2196 = vpow2.f32 %v1604_v16  ;;  %v1606_v3 = vmul.f32 1.442695, %v1575_v17 }
 0x3e7   : > { %v2828_v19 = vpop.eup %2188  ;;  %2198 = vpow2.f32 %v1606_v3  ;;  %1630 = vadd.xlane.f32.xlu1 %v2826_v18 }
 0x3e8   : > { %1624 = vadd.xlane.f32.xlu0 %v2828_v19  ;;  %v2832_v4 = vpop.eup %2190 }
 0x3eb   : > { %v2834_v21 = vpop.eup %2192  ;;  %1626 = vadd.xlane.f32.xlu1 %v2832_v4 }
 0x3ec   : > { %1632 = vadd.xlane.f32.xlu0 %v2834_v21 }
 0x3ed   : > { %v2838_v5 = vpop.eup %2194 }
 0x3ef   : > { %v2840_v22 = vpop.eup %2196  ;;  %1634 = vadd.xlane.f32.xlu1 %v2838_v5 }
 0x3f0   : > { %1636 = vadd.xlane.f32.xlu0 %v2840_v22 }
 0x3f1   : > { %v2844_v25 = vpop.eup %2198 }
 0x3f3   : > { %1638 = vadd.xlane.f32.xlu1 %v2844_v25 }
 0x460   : > { %v1613_v23 = vpop.xlane.xlu0 %1612 }
 0x461   : > { %2200 = vrcp.f32 %v1613_v23 }
 0x464   : > { %v1615_v28 = vpop.xlane.xlu1 %1614  ;;  %v1609_v29 = vpop.xlane.xlu0 %1608 }
 0x465   : > { %2202 = vrcp.f32 %v1615_v28 }
 0x466   : > { %2204 = vrcp.f32 %v1609_v29 }
 0x468   : > { %v1611_v31 = vpop.xlane.xlu1 %1610 }
 0x469   : > { %2206 = vrcp.f32 %v1611_v31  ;;  %v1621_v33 = vpop.xlane.xlu0 %1620 }
 0x46a   : > { %2208 = vrcp.f32 %v1621_v33 }
 0x46b   : > { %v2201_v34 = vpop.eup %2200 }
 0x46c   : > { %v1645_v36 = vmul.f32 %v2201_v34, %v2791_v32  ;;  %v1623_v37 = vpop.xlane.xlu1 %1622 }
 0x46d   : > { %2210 = vrcp.f32 %v1623_v37  ;;  %v1617_v40 = vpop.xlane.xlu0 %1616 }
 0x46e   : > { %v1674_v43 = vsel %vm1511_vm0, %v1645_v36, %v2675_v24  ;;  %2212 = vrcp.f32 %v1617_v40 }
 0x46f   : > { %v2203_v45 = vpop.eup %2202  ;;  %1690 = vst [vmem:[%s2981_s7 + $0x10] sm:$0xff] %v1674_v43 }
 0x470   : > { %v2205_v47 = vpop.eup %2204  ;;  %v1647_v48 = vmul.f32 %v2203_v45, %v2797_v44  ;;  %v1619_v49 = vpop.xlane.xlu1 %1618 }
 0x471   : > { %v1641_v51 = vmul.f32 %v2205_v47, %v2794_v39  ;;  %2214 = vrcp.f32 %v1619_v49  ;;  %v1629_v32 = vpop.xlane.xlu0 %1628 }
 0x472   : > { %v1675_v56 = vsel %vm1511_vm0, %v1647_v48, %v2679_v27  ;;  %2216 = vrcp.f32 %v1629_v32 }
 0x473   : > { %v2207_v24 = vpop.eup %2206  ;;  %1691 = vst [vmem:[%s2981_s7 + $0x18] sm:$0xff] %v1675_v56  ;;  %v1672_v52 = vsel %vm1511_vm0, %v1641_v51, %v2677_v26 }
 0x474   : > { %v2209_v44 = vpop.eup %2208  ;;  %1688 = vst [vmem:[%s2981_s7] sm:$0xff] %v1672_v52  ;;  %v1643_v39 = vmul.f32 %v2207_v24, %v2803_v58  ;;  %v1631_v62 = vpop.xlane.xlu1 %1630 }
 0x475   : > { %v1653_v27 = vmul.f32 %v2209_v44, %v2806_v61  ;;  %2218 = vrcp.f32 %v1631_v62  ;;  %v1625_v55 = vpop.xlane.xlu0 %1624 }
 0x476   : > { %v1673_v6 = vsel %vm1511_vm0, %v1643_v39, %v2684_v30  ;;  %2220 = vrcp.f32 %v1625_v55 }
 0x477   : > { %v2211_v7 = vpop.eup %2210  ;;  %1689 = vst [vmem:[%s2981_s7 + $0x8] sm:$0xff] %v1673_v6  ;;  %v1678_v26 = vsel %vm1511_vm0, %v1653_v27, %v2700_v35 }
 0x478   : > { %v2213_v58 = vpop.eup %2212  ;;  %1694 = vst [vmem:[%s2981_s7 + $0x30] sm:$0xff] %v1678_v26  ;;  %v1655_v61 = vmul.f32 %v2211_v7, %v2811_v8  ;;  %v1627_v57 = vpop.xlane.xlu1 %1626 }
 0x479   : > { %v1649_v30 = vmul.f32 %v2213_v58, %v2813_v9  ;;  %2222 = vrcp.f32 %v1627_v57  ;;  %v1633_v10 = vpop.xlane.xlu0 %1632 }
 0x47a   : > { %v1679_v59 = vsel %vm1511_vm0, %v1655_v61, %v2703_v38  ;;  %2224 = vrcp.f32 %v1633_v10 }
 0x47b   : > { %v2215_v11 = vpop.eup %2214  ;;  %1695 = vst [vmem:[%s2981_s7 + $0x38] sm:$0xff] %v1679_v59  ;;  %v1676_v35 = vsel %vm1511_vm0, %v1649_v30, %v2708_v41 }
 0x47c   : > { %v2217_v8 = vpop.eup %2216  ;;  %1692 = vst [vmem:[%s2981_s7 + $0x20] sm:$0xff] %v1676_v35  ;;  %v1651_v9 = vmul.f32 %v2215_v11, %v2819_v14  ;;  %v1635_v12 = vpop.xlane.xlu1 %1634 }
 0x47d   : > { %v1661_v38 = vmul.f32 %v2217_v8, %v2821_v15  ;;  %2226 = vrcp.f32 %v1635_v12  ;;  %v1637_v13 = vpop.xlane.xlu0 %1636 }
 0x47e   : > { %v1677_v1 = vsel %vm1511_vm0, %v1651_v9, %v2710_v42  ;;  %2228 = vrcp.f32 %v1637_v13 }
 0x47f   : > { %v2219_v16 = vpop.eup %2218  ;;  %1693 = vst [vmem:[%s2981_s7 + $0x28] sm:$0xff] %v1677_v1  ;;  %v1682_v41 = vsel %vm1511_vm0, %v1661_v38, %v2720_v46 }
 0x480   : > { %v2221_v14 = vpop.eup %2220  ;;  %1698 = vst [vmem:[%s2981_s7 + $0x50] sm:$0xff] %v1682_v41  ;;  %v1663_v15 = vmul.f32 %v2219_v16, %v2826_v18  ;;  %v1639_v17 = vpop.xlane.xlu1 %1638 }
 0x481   : > { %v1657_v42 = vmul.f32 %v2221_v14, %v2828_v19  ;;  %2230 = vrcp.f32 %v1639_v17 }
 0x482   : > { %v1683_v3 = vsel %vm1511_vm0, %v1663_v15, %v2726_v50 }
 0x483   : > { %v2223_v23 = vpop.eup %2222  ;;  %1699 = vst [vmem:[%s2981_s7 + $0x58] sm:$0xff] %v1683_v3  ;;  %v1680_v46 = vsel %vm1511_vm0, %v1657_v42, %v2733_v53 }
 0x484   : > { %v2225_v28 = vpop.eup %2224  ;;  %1696 = vst [vmem:[%s2981_s7 + $0x40] sm:$0xff] %v1680_v46  ;;  %v1659_v18 = vmul.f32 %v2223_v23, %v2832_v4 }
 0x485   : > { %v1665_v19 = vmul.f32 %v2225_v28, %v2834_v21 }
 0x486   : > { %v1681_v50 = vsel %vm1511_vm0, %v1659_v18, %v2735_v54 }
 0x487   : > { %v2227_v29 = vpop.eup %2226  ;;  %1697 = vst [vmem:[%s2981_s7 + $0x48] sm:$0xff] %v1681_v50  ;;  %v1684_v53 = vsel %vm1511_vm0, %v1665_v19, %v2755_v60 }
 0x488   : > { %v2229_v31 = vpop.eup %2228  ;;  %1700 = vst [vmem:[%s2981_s7 + $0x60] sm:$0xff] %v1684_v53  ;;  %v1667_v4 = vmul.f32 %v2227_v29, %v2838_v5 }
 0x489   : > { %v1669_v21 = vmul.f32 %v2229_v31, %v2840_v22 }
 0x48a   : > { %v1685_v54 = vsel %vm1511_vm0, %v1667_v4, %v2760_v0 }
 0x48b   : > { %v2231_v33 = vpop.eup %2230  ;;  %1701 = vst [vmem:[%s2981_s7 + $0x68] sm:$0xff] %v1685_v54  ;;  %v1686_v60 = vsel %vm1511_vm0, %v1669_v21, %v2758_v63 }
 0x48c   : > { %1702 = vst [vmem:[%s2981_s7 + $0x70] sm:$0xff] %v1686_v60  ;;  %v1671_v5 = vmul.f32 %v2231_v33, %v2844_v25 }
 0x48e   : > { %v1687_v22 = vsel %vm1511_vm0, %v1671_v5, %v2768_v2 }
 0x48f   : > { %1703 = vst [vmem:[%s2981_s7 + $0x78] sm:$0xff] %v1687_v22 }
 0x490 PF: > { %s17_s28 = sadd.s32 1, %s2270_s28   ;;  %s2982_s24 = smov %s2258_s25 }
 0x491   : > { %p14_p12 = scmp.ge.s32.totalorder %s17_s28, 6   ;;  %s2983_s25 = smov %s2348_s9 }
 0x492   : > { %s2984_s26 = smov %s2266_s27  ;;  %s2985_s27 = smov %s2987_s29 }
 0x493   :  { %16 = sbr.rel (!%p14_p12) target bundleno = 3 (0x3), region = 117 }

// kernel: run.9
= control target key start
LH: loop header
LB: loop body
LE: loop exit
PB: predicated region body
PF: predicated region fallthrough
CT: control target
= control target key end

     0   :  { %s1762_s9 = smov 0   ;;  %s3122_s0 = inlined_call_operand.vmem [shape: f32[768,4], index: 0, kind: input, shape index: {}]   ;;  %s3123_s1 = inlined_call_operand.vmem [shape: f32[768,4], index: 1, kind: input, shape index: {}]   ;;  %s3124_s2 = inlined_call_operand.vmem [shape: f32[768,4], index: 2, kind: output, shape index: {}]  }
   0x1 LB: > { %s1618_s10 = sadd.s32 4294967295, %s1743_s9   ;;  %p1622_p0 = scmp.ge.s32.totalorder %s1743_s9, 1  ;;  %s1743_s9 = sphi %s1762_s9, %s12_s9  }
   0x2   : > { %p124_p1 = scmp.lt.s32.totalorder %s1743_s9, 4 }
   0x4   : > { %p125_p2 = pnand %p1622_p0, %p124_p1 }
   0x6   : > { %128 = sbr.rel (%p125_p2) target bundleno = 570 (0x23a), region = 28 }
   0xd   : > { %s1623_s11 = sshll.u32 %s1618_s10, 5  ;;  %s1745_s16 = smov 2   ;;  %vm1451_vm0 = vcmask 15360   ;;  %vm1484_vm1 = vcmask 23552   ;;  %vm1517_vm2 = vcmask 31744  }
   0xe   : > { %p152_p3 = scmp.lt.s32.totalorder %s1623_s11, 95  ;;  %s1746_s17 = smov 126  }
  0x10   : > { %s3311_s11 = smov (!%p152_p3, %s1623_s11), 95 }
  0x11   : > { %s1770_s12 = sshll.u32 %s3311_s11, 3 }
  0x12   : > { %s1776_s15 = scalar_lea.vmem %s3123_s1, %s1770_s12  ;;  %s2128_s20 = scalar_lea.vmem %s3122_s0, %s1770_s12 }
  0x13   : > { %v1779_v0 = vld [vmem:[%s1776_s15] sm:$0xff]  ;;  %v1782_v1 = vld [vmem:[%s1776_s15 + $0x10] sm:$0xff]  ;;  %v1789_v2 = vld [vmem:[%s1776_s15 + $0x8] sm:$0xff]  ;;  %s2902_s23 = scalar_lea.vmem %s3124_s2, %s1770_s12 }
  0x14   : > { %265 = vrot.lane.b32.xlu0 %v1779_v0, %s1745_s16  ;;  %269 = vrot.lane.b32.xlu1 %v1782_v1, %s1745_s16  ;;  %v1792_v3 = vld [vmem:[%s1776_s15 + $0x18] sm:$0xff]  ;;  %v1799_v4 = vld [vmem:[%s1776_s15 + $0x20] sm:$0xff] }
  0x15   : > { %v1802_v5 = vld [vmem:[%s1776_s15 + $0x28] sm:$0xff]  ;;  %v1809_v6 = vld [vmem:[%s1776_s15 + $0x30] sm:$0xff]  ;;  %v1812_v7 = vld [vmem:[%s1776_s15 + $0x38] sm:$0xff] }
  0x16   : > { %v1819_v8 = vld [vmem:[%s1776_s15 + $0x40] sm:$0xff]  ;;  %v1822_v9 = vld [vmem:[%s1776_s15 + $0x48] sm:$0xff]  ;;  %v1829_v10 = vld [vmem:[%s1776_s15 + $0x50] sm:$0xff] }
  0x17   : > { %v1832_v11 = vld [vmem:[%s1776_s15 + $0x58] sm:$0xff]  ;;  %v1839_v12 = vld [vmem:[%s1776_s15 + $0x60] sm:$0xff]  ;;  %v1842_v13 = vld [vmem:[%s1776_s15 + $0x68] sm:$0xff] }
  0x18   : > { %267 = vrot.lane.b32.xlu0 %v1789_v2, %s1745_s16  ;;  %271 = vrot.lane.b32.xlu1 %v1792_v3, %s1745_s16  ;;  %v1849_v14 = vld [vmem:[%s1776_s15 + $0x70] sm:$0xff]  ;;  %v1852_v15 = vld [vmem:[%s1776_s15 + $0x78] sm:$0xff] }
  0x19   : > { %v1859_v16 = vld [vmem:[%s1776_s15 + $0x80] sm:$0xff]  ;;  %v1862_v17 = vld [vmem:[%s1776_s15 + $0x88] sm:$0xff]  ;;  %v1869_v18 = vld [vmem:[%s1776_s15 + $0x90] sm:$0xff] }
  0x1a   : > { %v1872_v19 = vld [vmem:[%s1776_s15 + $0x98] sm:$0xff]  ;;  %v1879_v20 = vld [vmem:[%s1776_s15 + $0xa0] sm:$0xff]  ;;  %v1882_v21 = vld [vmem:[%s1776_s15 + $0xa8] sm:$0xff] }
  0x1b   : > { %v1889_v22 = vld [vmem:[%s1776_s15 + $0xb0] sm:$0xff]  ;;  %v1892_v23 = vld [vmem:[%s1776_s15 + $0xb8] sm:$0xff]  ;;  %v1899_v24 = vld [vmem:[%s1776_s15 + $0xc0] sm:$0xff] }
  0x1c   : > { %273 = vrot.lane.b32.xlu0 %v1799_v4, %s1745_s16  ;;  %275 = vrot.lane.b32.xlu1 %v1802_v5, %s1745_s16  ;;  %v1902_v25 = vld [vmem:[%s1776_s15 + $0xc8] sm:$0xff]  ;;  %v1909_v26 = vld [vmem:[%s1776_s15 + $0xd0] sm:$0xff] }
  0x1d   : > { %v1912_v27 = vld [vmem:[%s1776_s15 + $0xd8] sm:$0xff]  ;;  %v1919_v28 = vld [vmem:[%s1776_s15 + $0xe0] sm:$0xff]  ;;  %v1922_v29 = vld [vmem:[%s1776_s15 + $0xe8] sm:$0xff] }
  0x1e   : > { %v1929_v30 = vld [vmem:[%s1776_s15 + $0xf0] sm:$0xff]  ;;  %v1932_v31 = vld [vmem:[%s1776_s15 + $0xf8] sm:$0xff] }
  0x20   : > { %277 = vrot.lane.b32.xlu0 %v1809_v6, %s1745_s16  ;;  %279 = vrot.lane.b32.xlu1 %v1812_v7, %s1745_s16 }
  0x24   : > { %281 = vrot.lane.b32.xlu0 %v1819_v8, %s1745_s16  ;;  %283 = vrot.lane.b32.xlu1 %v1822_v9, %s1745_s16 }
  0x28   : > { %285 = vrot.lane.b32.xlu0 %v1829_v10, %s1745_s16  ;;  %287 = vrot.lane.b32.xlu1 %v1832_v11, %s1745_s16 }
  0x2c   : > { %289 = vrot.lane.b32.xlu0 %v1839_v12, %s1745_s16  ;;  %291 = vrot.lane.b32.xlu1 %v1842_v13, %s1745_s16 }
  0x30   : > { %293 = vrot.lane.b32.xlu0 %v1849_v14, %s1745_s16  ;;  %295 = vrot.lane.b32.xlu1 %v1852_v15, %s1745_s16 }
  0x34   : > { %297 = vrot.lane.b32.xlu0 %v1859_v16, %s1745_s16  ;;  %299 = vrot.lane.b32.xlu1 %v1862_v17, %s1745_s16 }
  0x38   : > { %301 = vrot.lane.b32.xlu0 %v1869_v18, %s1745_s16  ;;  %303 = vrot.lane.b32.xlu1 %v1872_v19, %s1745_s16 }
  0x3c   : > { %305 = vrot.lane.b32.xlu0 %v1879_v20, %s1745_s16  ;;  %307 = vrot.lane.b32.xlu1 %v1882_v21, %s1745_s16 }
  0x40   : > { %309 = vrot.lane.b32.xlu0 %v1889_v22, %s1745_s16  ;;  %311 = vrot.lane.b32.xlu1 %v1892_v23, %s1745_s16 }
  0x44   : > { %313 = vrot.lane.b32.xlu0 %v1899_v24, %s1745_s16  ;;  %315 = vrot.lane.b32.xlu1 %v1902_v25, %s1745_s16 }
  0x48   : > { %317 = vrot.lane.b32.xlu0 %v1909_v26, %s1745_s16  ;;  %319 = vrot.lane.b32.xlu1 %v1912_v27, %s1745_s16 }
  0x4c   : > { %321 = vrot.lane.b32.xlu0 %v1919_v28, %s1745_s16  ;;  %323 = vrot.lane.b32.xlu1 %v1922_v29, %s1745_s16 }
  0x50   : > { %325 = vrot.lane.b32.xlu0 %v1929_v30, %s1745_s16  ;;  %327 = vrot.lane.b32.xlu1 %v1932_v31, %s1745_s16 }
  0x86   : > { %v266_v32 = vpop.permute.xlu0 %265  ;;  %v270_v33 = vpop.permute.xlu1 %269 }
  0x87   : > { %v1939_v34 = vsub.f32 %v1779_v0, %v266_v32  ;;  %v1942_v35 = vsub.f32 %v1782_v1, %v270_v33 }
  0x89   : > { %v393_v36 = vmul.f32 0.5, %v1939_v34  ;;  %v395_v41 = vmul.f32 0.5, %v1942_v35 }
  0x8a   : > { %v268_v37 = vpop.permute.xlu0 %267  ;;  %v272_v38 = vpop.permute.xlu1 %271 }
  0x8b   : > { %v1946_v39 = vsub.f32 %v1789_v2, %v268_v37  ;;  %457 = vrot.lane.b32.xlu0 %v393_v36, %s1746_s17  ;;  %v1950_v40 = vsub.f32 %v1792_v3, %v272_v38 }
  0x8d   : > { %v394_v42 = vmul.f32 0.5, %v1946_v39  ;;  %v396_v47 = vmul.f32 0.5, %v1950_v40 }
  0x8e   : > { %v274_v43 = vpop.permute.xlu0 %273  ;;  %v276_v44 = vpop.permute.xlu1 %275 }
  0x8f   : > { %v1955_v45 = vsub.f32 %v1799_v4, %v274_v43  ;;  %461 = vrot.lane.b32.xlu0 %v395_v41, %s1746_s17  ;;  %459 = vrot.lane.b32.xlu1 %v394_v42, %s1746_s17  ;;  %v1960_v46 = vsub.f32 %v1802_v5, %v276_v44 }
  0x91   : > { %v397_v48 = vmul.f32 0.5, %v1955_v45  ;;  %v398_v53 = vmul.f32 0.5, %v1960_v46 }
  0x92   : > { %v278_v49 = vpop.permute.xlu0 %277  ;;  %v280_v50 = vpop.permute.xlu1 %279 }
  0x93   : > { %v1965_v51 = vsub.f32 %v1809_v6, %v278_v49  ;;  %463 = vrot.lane.b32.xlu1 %v396_v47, %s1746_s17  ;;  %465 = vrot.lane.b32.xlu0 %v397_v48, %s1746_s17  ;;  %v1970_v52 = vsub.f32 %v1812_v7, %v280_v50 }
  0x95   : > { %v399_v54 = vmul.f32 0.5, %v1965_v51  ;;  %v400_v59 = vmul.f32 0.5, %v1970_v52 }
  0x96   : > { %v282_v55 = vpop.permute.xlu0 %281  ;;  %v284_v56 = vpop.permute.xlu1 %283 }
  0x97   : > { %v1975_v57 = vsub.f32 %v1819_v8, %v282_v55  ;;  %467 = vrot.lane.b32.xlu1 %v398_v53, %s1746_s17  ;;  %469 = vrot.lane.b32.xlu0 %v399_v54, %s1746_s17  ;;  %v1980_v58 = vsub.f32 %v1822_v9, %v284_v56 }
  0x99   : > { %v401_v60 = vmul.f32 0.5, %v1975_v57  ;;  %v402_v1 = vmul.f32 0.5, %v1980_v58 }
  0x9a   : > { %v286_v61 = vpop.permute.xlu0 %285  ;;  %v288_v62 = vpop.permute.xlu1 %287 }
  0x9b   : > { %v1985_v63 = vsub.f32 %v1829_v10, %v286_v61  ;;  %471 = vrot.lane.b32.xlu1 %v400_v59, %s1746_s17  ;;  %473 = vrot.lane.b32.xlu0 %v401_v60, %s1746_s17  ;;  %v1990_v0 = vsub.f32 %v1832_v11, %v288_v62 }
  0x9d   : > { %v403_v2 = vmul.f32 0.5, %v1985_v63  ;;  %v404_v7 = vmul.f32 0.5, %v1990_v0 }
  0x9e   : > { %v290_v3 = vpop.permute.xlu0 %289  ;;  %v292_v4 = vpop.permute.xlu1 %291 }
  0x9f   : > { %v1995_v5 = vsub.f32 %v1839_v12, %v290_v3  ;;  %475 = vrot.lane.b32.xlu1 %v402_v1, %s1746_s17  ;;  %477 = vrot.lane.b32.xlu0 %v403_v2, %s1746_s17  ;;  %v2000_v6 = vsub.f32 %v1842_v13, %v292_v4 }
  0xa1   : > { %v405_v8 = vmul.f32 0.5, %v1995_v5  ;;  %v406_v32 = vmul.f32 0.5, %v2000_v6 }
  0xa2   : > { %v294_v9 = vpop.permute.xlu0 %293  ;;  %v296_v10 = vpop.permute.xlu1 %295 }
  0xa3   : > { %v2005_v11 = vsub.f32 %v1849_v14, %v294_v9  ;;  %479 = vrot.lane.b32.xlu1 %v404_v7, %s1746_s17  ;;  %481 = vrot.lane.b32.xlu0 %v405_v8, %s1746_s17  ;;  %v2010_v12 = vsub.f32 %v1852_v15, %v296_v10 }
  0xa5   : > { %v407_v13 = vmul.f32 0.5, %v2005_v11  ;;  %v408_v38 = vmul.f32 0.5, %v2010_v12 }
  0xa6   : > { %v298_v33 = vpop.permute.xlu0 %297  ;;  %v300_v36 = vpop.permute.xlu1 %299 }
  0xa7   : > { %v2015_v37 = vsub.f32 %v1859_v16, %v298_v33  ;;  %483 = vrot.lane.b32.xlu1 %v406_v32, %s1746_s17  ;;  %485 = vrot.lane.b32.xlu0 %v407_v13, %s1746_s17  ;;  %v2020_v14 = vsub.f32 %v1862_v17, %v300_v36 }
  0xa9   : > { %v409_v15 = vmul.f32 0.5, %v2015_v37  ;;  %v410_v44 = vmul.f32 0.5, %v2020_v14 }
  0xaa   : > { %v302_v41 = vpop.permute.xlu0 %301  ;;  %v304_v42 = vpop.permute.xlu1 %303 }
  0xab   : > { %v2025_v43 = vsub.f32 %v1869_v18, %v302_v41  ;;  %487 = vrot.lane.b32.xlu1 %v408_v38, %s1746_s17  ;;  %489 = vrot.lane.b32.xlu0 %v409_v15, %s1746_s17  ;;  %v2030_v16 = vsub.f32 %v1872_v19, %v304_v42  ;;  %v2146_v41 = vld [vmem:[%s2128_s20 + $0x8] sm:$0xff] }
  0xad   : > { %v411_v17 = vmul.f32 0.5, %v2025_v43  ;;  %v412_v50 = vmul.f32 0.5, %v2030_v16 }
  0xae   : > { %v306_v47 = vpop.permute.xlu0 %305  ;;  %v308_v48 = vpop.permute.xlu1 %307 }
  0xaf   : > { %v2035_v49 = vsub.f32 %v1879_v20, %v306_v47  ;;  %491 = vrot.lane.b32.xlu1 %v410_v44, %s1746_s17  ;;  %493 = vrot.lane.b32.xlu0 %v411_v17, %s1746_s17  ;;  %v2040_v18 = vsub.f32 %v1882_v21, %v308_v48  ;;  %v2154_v44 = vld [vmem:[%s2128_s20 + $0x18] sm:$0xff]  ;;  %v620_v47 = vmul.f32 0.2, %v2146_v41  ;;  %v2158_v48 = vld [vmem:[%s2128_s20 + $0x20] sm:$0xff] }
  0xb1   : > { %v413_v19 = vmul.f32 0.5, %v2035_v49  ;;  %v414_v56 = vmul.f32 0.5, %v2040_v18 }
  0xb2   : > { %v310_v53 = vpop.permute.xlu0 %309  ;;  %v312_v54 = vpop.permute.xlu1 %311 }
  0xb3   : > { %v2045_v55 = vsub.f32 %v1889_v22, %v310_v53  ;;  %495 = vrot.lane.b32.xlu1 %v412_v50, %s1746_s17  ;;  %497 = vrot.lane.b32.xlu0 %v413_v19, %s1746_s17  ;;  %v2050_v20 = vsub.f32 %v1892_v23, %v312_v54  ;;  %v622_v19 = vmul.f32 0.2, %v2154_v44  ;;  %v2162_v53 = vld [vmem:[%s2128_s20 + $0x28] sm:$0xff]  ;;  %v623_v54 = vmul.f32 0.2, %v2158_v48 }
  0xb5   : > { %v415_v21 = vmul.f32 0.5, %v2045_v55  ;;  %v416_v62 = vmul.f32 0.5, %v2050_v20 }
  0xb6   : > { %v314_v59 = vpop.permute.xlu0 %313  ;;  %v316_v60 = vpop.permute.xlu1 %315 }
  0xb7   : > { %v2055_v61 = vsub.f32 %v1899_v24, %v314_v59  ;;  %499 = vrot.lane.b32.xlu1 %v414_v56, %s1746_s17  ;;  %501 = vrot.lane.b32.xlu0 %v415_v21, %s1746_s17  ;;  %v2060_v22 = vsub.f32 %v1902_v25, %v316_v60  ;;  %v652_v21 = vmin.f32 %v620_v47, 4.1351666  ;;  %v2170_v59 = vld [vmem:[%s2128_s20 + $0x30] sm:$0xff]  ;;  %v624_v60 = vmul.f32 0.2, %v2162_v53 }
  0xb9   : > { %v417_v23 = vmul.f32 0.5, %v2055_v61  ;;  %v418_v4 = vmul.f32 0.5, %v2060_v22 }
  0xba   : > { %v318_v1 = vpop.permute.xlu0 %317  ;;  %v320_v2 = vpop.permute.xlu1 %319 }
  0xbb   : > { %v2065_v3 = vsub.f32 %v1909_v26, %v318_v1  ;;  %503 = vrot.lane.b32.xlu1 %v416_v62, %s1746_s17  ;;  %505 = vrot.lane.b32.xlu0 %v417_v23, %s1746_s17  ;;  %v2070_v24 = vsub.f32 %v1912_v27, %v320_v2  ;;  %v654_v23 = vmin.f32 %v622_v19, 4.1351666  ;;  %v2174_v1 = vld [vmem:[%s2128_s20 + $0x38] sm:$0xff]  ;;  %v2177_v2 = vld [vmem:[%s2128_s20 + $0x40] sm:$0xff] }
  0xbc   : > { %3164 = vst [vmem:[#allocation2_spill] sm:$0xff] %v2174_v1  ;;  %3165 = vst [vmem:[#allocation3_spill] sm:$0xff] %v2177_v2  ;;  %v2200_v19 = vld [vmem:[%s2128_s20 + $0x58] sm:$0xff] }
  0xbd   : > { %v419_v25 = vmul.f32 0.5, %v2065_v3  ;;  %v420_v10 = vmul.f32 0.5, %v2070_v24  ;;  %3168 = vst [vmem:[#allocation6_spill] sm:$0xff] %v2200_v19 }
  0xbe   : > { %v322_v7 = vpop.permute.xlu0 %321  ;;  %v324_v8 = vpop.permute.xlu1 %323 }
  0xbf   : > { %v2075_v9 = vsub.f32 %v1919_v28, %v322_v7  ;;  %507 = vrot.lane.b32.xlu1 %v418_v4, %s1746_s17  ;;  %509 = vrot.lane.b32.xlu0 %v419_v25, %s1746_s17  ;;  %v2080_v26 = vsub.f32 %v1922_v29, %v324_v8  ;;  %v655_v4 = vmin.f32 %v623_v54, 4.1351666  ;;  %v625_v25 = vmul.f32 0.2, %v2170_v59 }
  0xc0   : > { %v877_v7 = vmul.f32 1.442695, %v652_v21  ;;  %v656_v8 = vmin.f32 %v624_v60, 4.1351666  ;;  %v2208_v21 = vld [vmem:[%s2128_s20 + $0x60] sm:$0xff] }
  0xc1   : > { %v421_v27 = vmul.f32 0.5, %v2075_v9  ;;  %v422_v36 = vmul.f32 0.5, %v2080_v26  ;;  %3169 = vst [vmem:[#allocation7_spill] sm:$0xff] %v2208_v21 }
  0xc2   : > { %v326_v32 = vpop.permute.xlu0 %325  ;;  %v328_v13 = vpop.permute.xlu1 %327 }
  0xc3   : > { %v2085_v33 = vsub.f32 %v1929_v30, %v326_v32  ;;  %511 = vrot.lane.b32.xlu1 %v420_v10, %s1746_s17  ;;  %513 = vrot.lane.b32.xlu0 %v421_v27, %s1746_s17  ;;  %v2090_v28 = vsub.f32 %v1932_v31, %v328_v13  ;;  %v2135_v30 = vld [vmem:[%s2128_s20] sm:$0xff]  ;;  %v2142_v31 = vld [vmem:[%s2128_s20 + $0x10] sm:$0xff]  ;;  %v626_v10 = vmul.f32 0.2, %v2174_v1  ;;  %v881_v27 = vmul.f32 1.442695, %v654_v23 }
  0xc4   : > { %v619_v15 = vmul.f32 0.2, %v2135_v30  ;;  %v621_v42 = vmul.f32 0.2, %v2142_v31  ;;  %v627_v32 = vmul.f32 0.2, %v2177_v2 }
  0xc5   : > { %v423_v29 = vmul.f32 0.5, %v2085_v33  ;;  %v424_v38 = vmul.f32 0.5, %v2090_v28  ;;  %v883_v13 = vmul.f32 1.442695, %v655_v4  ;;  %v2238_v2 = vld [vmem:[%s2128_s20 + $0x78] sm:$0xff] }
  0xc6   : > { %v651_v17 = vmin.f32 %v619_v15, 4.1351666  ;;  %v653_v50 = vmin.f32 %v621_v42, 4.1351666  ;;  %v885_v42 = vmul.f32 1.442695, %v656_v8 }
  0xc7   : > { %515 = vrot.lane.b32.xlu1 %v422_v36, %s1746_s17  ;;  %517 = vrot.lane.b32.xlu0 %v423_v29, %s1746_s17  ;;  %v657_v36 = vmin.f32 %v625_v25, 4.1351666  ;;  %v2191_v29 = vld [vmem:[%s2128_s20 + $0x48] sm:$0xff]  ;;  %v659_v47 = vmin.f32 %v627_v32, 4.1351666  ;;  %3174 = vst [vmem:[#allocation12_spill] sm:$0xff] %v2238_v2 }
  0xc8   : > { %v875_v56 = vmul.f32 1.442695, %v651_v17  ;;  %v879_v62 = vmul.f32 1.442695, %v653_v50  ;;  %3166 = vst [vmem:[#allocation4_spill] sm:$0xff] %v2191_v29 }
  0xc9   : > { %v658_v17 = vmin.f32 %v626_v10, 4.1351666  ;;  %v628_v50 = vmul.f32 0.2, %v2191_v29  ;;  %v887_v54 = vmul.f32 1.442695, %v657_v36 }
  0xca   : > { %1641 = vpow2.f32 %v875_v56  ;;  %v630_v25 = vmul.f32 0.2, %v2200_v19  ;;  %v2216_v10 = vld [vmem:[%s2128_s20 + $0x68] sm:$0xff]  ;;  %v631_v32 = vmul.f32 0.2, %v2208_v21 }
  0xcb   : > { %519 = vrot.lane.b32.xlu1 %v424_v38, %s1746_s17  ;;  %715 = vrot.lane.b32.xlu0 %v1939_v34, %s1746_s17  ;;  %1643 = vpow2.f32 %v879_v62  ;;  %v2194_v38 = vld [vmem:[%s2128_s20 + $0x50] sm:$0xff]  ;;  %v889_v4 = vmul.f32 1.442695, %v658_v17  ;;  %v660_v8 = vmin.f32 %v628_v50, 4.1351666  ;;  %3170 = vst [vmem:[#allocation8_spill] sm:$0xff] %v2216_v10 }
  0xcc   : > { %1645 = vpow2.f32 %v877_v7  ;;  %3167 = vst [vmem:[#allocation5_spill] sm:$0xff] %v2194_v38  ;;  %v629_v56 = vmul.f32 0.2, %v2194_v38  ;;  %v891_v7 = vmul.f32 1.442695, %v659_v47 }
  0xcd   : > { %1647 = vpow2.f32 %v881_v27  ;;  %v662_v19 = vmin.f32 %v630_v25, 4.1351666  ;;  %v632_v38 = vmul.f32 0.2, %v2216_v10  ;;  %v663_v29 = vmin.f32 %v631_v32, 4.1351666 }
  0xce   : > { %1649 = vpow2.f32 %v883_v13  ;;  %v661_v27 = vmin.f32 %v629_v56, 4.1351666  ;;  %v2224_v13 = vld [vmem:[%s2128_s20 + $0x70] sm:$0xff]  ;;  %v2242_v25 = vld [vmem:[%s2128_s20 + $0x80] sm:$0xff] }
  0xcf   : > { %717 = vrot.lane.b32.xlu1 %v1946_v39, %s1746_s17  ;;  %719 = vrot.lane.b32.xlu0 %v1942_v35, %s1746_s17  ;;  %1651 = vpow2.f32 %v885_v42  ;;  %3171 = vst [vmem:[#allocation9_spill] sm:$0xff] %v2224_v13  ;;  %v633_v56 = vmul.f32 0.2, %v2224_v13  ;;  %3175 = vst [vmem:[#allocation13_spill] sm:$0xff] %v2242_v25 }
  0xd0   : > { %1653 = vpow2.f32 %v887_v54  ;;  %v893_v54 = vmul.f32 1.442695, %v660_v8  ;;  %v895_v21 = vmul.f32 1.442695, %v661_v27  ;;  %v664_v27 = vmin.f32 %v632_v38, 4.1351666 }
  0xd1   : > { %1655 = vpow2.f32 %v889_v4  ;;  %v665_v32 = vmin.f32 %v633_v56, 4.1351666 }
  0xd2   : > { %1657 = vpow2.f32 %v891_v7  ;;  %v897_v7 = vmul.f32 1.442695, %v662_v19 }
  0xd3   : > { %721 = vrot.lane.b32.xlu1 %v1950_v40, %s1746_s17  ;;  %723 = vrot.lane.b32.xlu0 %v1955_v45, %s1746_s17  ;;  %1659 = vpow2.f32 %v893_v54 }
  0xd4   : > { %v1642_v23 = vpop.eup %1641  ;;  %1661 = vpow2.f32 %v895_v21  ;;  %v901_v21 = vmul.f32 1.442695, %v664_v27 }
  0xd5   : > { %v1644_v36 = vpop.eup %1643  ;;  %v939_v47 = vmul.f32 %v1642_v23, %v1939_v34  ;;  %1663 = vpow2.f32 %v897_v7 }
  0xd6   : > { %v1646_v50 = vpop.eup %1645  ;;  %v941_v23 = vmul.f32 %v1644_v36, %v1942_v35  ;;  %v899_v35 = vmul.f32 1.442695, %v663_v29 }
  0xd7   : > { %725 = vrot.lane.b32.xlu1 %v1960_v46, %s1746_s17  ;;  %727 = vrot.lane.b32.xlu0 %v1965_v51, %s1746_s17  ;;  %v1648_v34 = vpop.eup %1647  ;;  %v971_v13 = vmul.f32 0.5, %v939_v47  ;;  %v940_v10 = vmul.f32 %v1646_v50, %v1946_v39  ;;  %v635_v39 = vmul.f32 0.2, %v2242_v25  ;;  %v2260_v50 = vld [vmem:[%s2128_s20 + $0x90] sm:$0xff]  ;;  %v903_v25 = vmul.f32 1.442695, %v665_v32 }
  0xd8   : > { %v1650_v1 = vpop.eup %1649  ;;  %v973_v47 = vmul.f32 0.5, %v941_v23  ;;  %v942_v38 = vmul.f32 %v1648_v34, %v1950_v40  ;;  %3178 = vst [vmem:[#allocation16_spill] sm:$0xff] %v2260_v50  ;;  %v2268_v23 = vld [vmem:[%s2128_s20 + $0x98] sm:$0xff]  ;;  %1665 = vpow2.f32 %v899_v35 }
  0xd9   : > { %v1652_v36 = vpop.eup %1651  ;;  %v943_v19 = vmul.f32 %v1650_v1, %v1955_v45  ;;  %3179 = vst [vmem:[#allocation17_spill] sm:$0xff] %v2268_v23  ;;  %v667_v40 = vmin.f32 %v635_v39, 4.1351666  ;;  %v637_v45 = vmul.f32 0.2, %v2260_v50  ;;  %v2274_v1 = vld [vmem:[%s2128_s20 + $0xa0] sm:$0xff]  ;;  %1667 = vpow2.f32 %v901_v21 }
  0xda   : > { %3180 = vst [vmem:[#allocation18_spill] sm:$0xff] %v2274_v1  ;;  %v974_v34 = vmul.f32 0.5, %v942_v38  ;;  %v944_v7 = vmul.f32 %v1652_v36, %v1960_v46  ;;  %v638_v35 = vmul.f32 0.2, %v2268_v23  ;;  %v639_v50 = vmul.f32 0.2, %v2274_v1 }
  0xdb   : > { %729 = vrot.lane.b32.xlu1 %v1970_v52, %s1746_s17  ;;  %731 = vrot.lane.b32.xlu0 %v1975_v57, %s1746_s17  ;;  %v975_v27 = vmul.f32 0.5, %v943_v19  ;;  %1669 = vpow2.f32 %v903_v25  ;;  %v907_v46 = vmul.f32 1.442695, %v667_v40  ;;  %v2287_v36 = vld [vmem:[%s2128_s20 + $0xa8] sm:$0xff] }
  0xdc   : > { %3181 = vst [vmem:[#allocation19_spill] sm:$0xff] %v2287_v36  ;;  %v976_v19 = vmul.f32 0.5, %v944_v7  ;;  %v670_v40 = vmin.f32 %v638_v35, 4.1351666  ;;  %v640_v23 = vmul.f32 0.2, %v2287_v36 }
  0xdd   : > { %v2300_v7 = vld [vmem:[%s2128_s20 + $0xb8] sm:$0xff]  ;;  %v2308_v35 = vld [vmem:[%s2128_s20 + $0xc0] sm:$0xff] }
  0xde   : > { %3183 = vst [vmem:[#allocation21_spill] sm:$0xff] %v2308_v35 }
  0xdf   : > { %733 = vrot.lane.b32.xlu1 %v1980_v58, %s1746_s17  ;;  %735 = vrot.lane.b32.xlu0 %v1985_v63, %s1746_s17 }
  0xe3   : > { %737 = vrot.lane.b32.xlu1 %v1990_v0, %s1746_s17  ;;  %739 = vrot.lane.b32.xlu0 %v1995_v5, %s1746_s17 }
  0xe7   : > { %741 = vrot.lane.b32.xlu1 %v2000_v6, %s1746_s17  ;;  %743 = vrot.lane.b32.xlu0 %v2005_v11, %s1746_s17 }
  0xeb   : > { %745 = vrot.lane.b32.xlu1 %v2010_v12, %s1746_s17  ;;  %747 = vrot.lane.b32.xlu0 %v2015_v37, %s1746_s17 }
  0xef   : > { %749 = vrot.lane.b32.xlu1 %v2020_v14, %s1746_s17  ;;  %751 = vrot.lane.b32.xlu0 %v2025_v43, %s1746_s17 }
  0xf3   : > { %753 = vrot.lane.b32.xlu1 %v2030_v16, %s1746_s17  ;;  %755 = vrot.lane.b32.xlu0 %v2035_v49, %s1746_s17 }
  0xf7   : > { %757 = vrot.lane.b32.xlu1 %v2040_v18, %s1746_s17  ;;  %759 = vrot.lane.b32.xlu0 %v2045_v55, %s1746_s17 }
  0xfb   : > { %761 = vrot.lane.b32.xlu1 %v2050_v20, %s1746_s17  ;;  %763 = vrot.lane.b32.xlu0 %v2055_v61, %s1746_s17 }
  0xfd   : > { %v2196_v15 = vpop.permute.xlu0 %457 }
  0xff   : > { %765 = vrot.lane.b32.xlu1 %v2060_v22, %s1746_s17  ;;  %767 = vrot.lane.b32.xlu0 %v2065_v3, %s1746_s17 }
 0x101   : > { %v2210_v60 = vpop.permute.xlu1 %459  ;;  %v2212_v62 = vpop.permute.xlu0 %461 }
 0x103   : > { %769 = vrot.lane.b32.xlu1 %v2070_v24, %s1746_s17  ;;  %771 = vrot.lane.b32.xlu0 %v2075_v9, %s1746_s17 }
 0x105   : > { %v2226_v17 = vpop.permute.xlu1 %463  ;;  %v2228_v42 = vpop.permute.xlu0 %465 }
 0x106   : > { %3172 = vst [vmem:[#allocation10_spill] sm:$0xff] %v2226_v17  ;;  %3173 = vst [vmem:[#allocation11_spill] sm:$0xff] %v2228_v42  ;;  %v634_v42 = vmul.f32 0.2, %v2238_v2  ;;  %v2251_v17 = vld [vmem:[%s2128_s20 + $0x88] sm:$0xff]  ;;  %v972_v2 = vmul.f32 0.5, %v940_v10 }
 0x107   : > { %773 = vrot.lane.b32.xlu1 %v2080_v26, %s1746_s17  ;;  %775 = vrot.lane.b32.xlu0 %v2085_v33, %s1746_s17  ;;  %3177 = vst [vmem:[#allocation15_spill] sm:$0xff] %v2251_v17  ;;  %v636_v29 = vmul.f32 0.2, %v2251_v17 }
 0x109   : > { %v2244_v4 = vpop.permute.xlu1 %467  ;;  %v2246_v8 = vpop.permute.xlu0 %469 }
 0x10a   : > { %3176 = vst [vmem:[#allocation14_spill] sm:$0xff] %v2246_v8  ;;  %v666_v8 = vmin.f32 %v634_v42, 4.1351666 }
 0x10b   : > { %777 = vrot.lane.b32.xlu1 %v2090_v28, %s1746_s17  ;;  %1035 = vrot.lane.b32.xlu0 %v971_v13, %s1746_s17  ;;  %v1654_v13 = vpop.eup %1653 }
 0x10c   : > { %v1656_v10 = vpop.eup %1655  ;;  %v945_v42 = vmul.f32 %v1654_v13, %v1965_v51  ;;  %v905_v39 = vmul.f32 1.442695, %v666_v8  ;;  %v669_v51 = vmin.f32 %v637_v45, 4.1351666  ;;  %v2292_v8 = vld [vmem:[%s2128_s20 + $0xb0] sm:$0xff] }
 0x10d   : > { %v2262_v54 = vpop.permute.xlu1 %471  ;;  %v2264_v56 = vpop.permute.xlu0 %473  ;;  %3182 = vst [vmem:[#allocation20_spill] sm:$0xff] %v2292_v8  ;;  %v671_v45 = vmin.f32 %v639_v50, 4.1351666 }
 0x10e   : > { %v977_v13 = vmul.f32 0.5, %v945_v42  ;;  %1671 = vpow2.f32 %v905_v39 }
 0x10f   : > { %1037 = vrot.lane.b32.xlu1 %v972_v2, %s1746_s17  ;;  %1039 = vrot.lane.b32.xlu0 %v973_v47, %s1746_s17  ;;  %v1658_v2 = vpop.eup %1657  ;;  %v668_v47 = vmin.f32 %v636_v29, 4.1351666  ;;  %v946_v29 = vmul.f32 %v1656_v10, %v1970_v52  ;;  %1673 = vpow2.f32 %v907_v46  ;;  %v911_v52 = vmul.f32 1.442695, %v669_v51 }
 0x110   : > { %v1660_v38 = vpop.eup %1659  ;;  %v947_v21 = vmul.f32 %v1658_v2, %v1975_v57  ;;  %v641_v57 = vmul.f32 0.2, %v2292_v8  ;;  %v642_v46 = vmul.f32 0.2, %v2300_v7  ;;  %v913_v51 = vmul.f32 1.442695, %v670_v40 }
 0x111   : > { %v2278_v32 = vpop.permute.xlu1 %475  ;;  %v2280_v17 = vpop.permute.xlu0 %477  ;;  %v909_v25 = vmul.f32 1.442695, %v668_v47  ;;  %v978_v42 = vmul.f32 0.5, %v946_v29  ;;  %v948_v47 = vmul.f32 %v1660_v38, %v1980_v58  ;;  %v915_v8 = vmul.f32 1.442695, %v671_v45  ;;  %v2319_v38 = vld [vmem:[%s2128_s20 + $0xc8] sm:$0xff] }
 0x112   : > { %v979_v2 = vmul.f32 0.5, %v947_v21  ;;  %v672_v29 = vmin.f32 %v640_v23, 4.1351666  ;;  %v673_v58 = vmin.f32 %v641_v57, 4.1351666  ;;  %3185 = vst [vmem:[#allocation23_spill] sm:$0xff] %v2319_v38 }
 0x113   : > { %1041 = vrot.lane.b32.xlu1 %v974_v34, %s1746_s17  ;;  %1043 = vrot.lane.b32.xlu0 %v975_v27, %s1746_s17  ;;  %v1662_v27 = vpop.eup %1661  ;;  %1675 = vpow2.f32 %v909_v25  ;;  %v2322_v21 = vld [vmem:[%s2128_s20 + $0xd0] sm:$0xff]  ;;  %v980_v36 = vmul.f32 0.5, %v948_v47  ;;  %v674_v57 = vmin.f32 %v642_v46, 4.1351666 }
 0x114   : > { %v1664_v10 = vpop.eup %1663  ;;  %v949_v50 = vmul.f32 %v1662_v27, %v1985_v63  ;;  %1677 = vpow2.f32 %v911_v52  ;;  %v643_v63 = vmul.f32 0.2, %v2308_v35  ;;  %3186 = vst [vmem:[#allocation24_spill] sm:$0xff] %v2322_v21  ;;  %v645_v35 = vmul.f32 0.2, %v2322_v21 }
 0x115   : > { %v2294_v1 = vpop.permute.xlu1 %479  ;;  %v2296_v34 = vpop.permute.xlu0 %481  ;;  %v950_v25 = vmul.f32 %v1664_v10, %v1990_v0  ;;  %1679 = vpow2.f32 %v913_v51  ;;  %v919_v0 = vmul.f32 1.442695, %v673_v58  ;;  %v2335_v10 = vld [vmem:[%s2128_s20 + $0xd8] sm:$0xff] }
 0x116   : > { %1681 = vpow2.f32 %v915_v8  ;;  %3187 = vst [vmem:[#allocation25_spill] sm:$0xff] %v2335_v10  ;;  %v921_v8 = vmul.f32 1.442695, %v674_v57 }
 0x117   : > { %1045 = vrot.lane.b32.xlu1 %v976_v19, %s1746_s17  ;;  %1047 = vrot.lane.b32.xlu0 %v977_v13, %s1746_s17  ;;  %v1666_v13 = vpop.eup %1665 }
 0x118   : > { %v1668_v27 = vpop.eup %1667  ;;  %v951_v23 = vmul.f32 %v1666_v13, %v1995_v5  ;;  %v675_v5 = vmin.f32 %v643_v63, 4.1351666  ;;  %v677_v63 = vmin.f32 %v645_v35, 4.1351666  ;;  %v2356_v35 = vld [vmem:[%s2128_s20 + $0xf0] sm:$0xff] }
 0x119   : > { %v2310_v39 = vpop.permute.xlu1 %483  ;;  %v2312_v19 = vpop.permute.xlu0 %485  ;;  %v952_v46 = vmul.f32 %v1668_v27, %v2000_v6  ;;  %v2351_v27 = vld [vmem:[%s2128_s20 + $0xe8] sm:$0xff]  ;;  %3190 = vst [vmem:[#allocation28_spill] sm:$0xff] %v2356_v35 }
 0x11a   : > { %3184 = vst [vmem:[#allocation22_spill] sm:$0xff] %v2312_v19  ;;  %v981_v19 = vmul.f32 0.5, %v949_v50  ;;  %v1670_v52 = vpop.eup %1669  ;;  %v982_v50 = vmul.f32 0.5, %v950_v25  ;;  %v983_v13 = vmul.f32 0.5, %v951_v23  ;;  %v646_v25 = vmul.f32 0.2, %v2335_v10 }
 0x11b   : > { %1049 = vrot.lane.b32.xlu1 %v978_v42, %s1746_s17  ;;  %1051 = vrot.lane.b32.xlu0 %v979_v2, %s1746_s17  ;;  %v917_v42 = vmul.f32 1.442695, %v672_v29  ;;  %v644_v2 = vmul.f32 0.2, %v2319_v38  ;;  %v1672_v47 = vpop.eup %1671  ;;  %v953_v51 = vmul.f32 %v1670_v52, %v2005_v11  ;;  %v2340_v29 = vld [vmem:[%s2128_s20 + $0xe0] sm:$0xff]  ;;  %3189 = vst [vmem:[#allocation27_spill] sm:$0xff] %v2351_v27 }
 0x11c   : > { %3188 = vst [vmem:[#allocation26_spill] sm:$0xff] %v2340_v29  ;;  %v923_v6 = vmul.f32 1.442695, %v675_v5  ;;  %v647_v11 = vmul.f32 0.2, %v2340_v29  ;;  %v984_v52 = vmul.f32 0.5, %v952_v46  ;;  %v954_v57 = vmul.f32 %v1672_v47, %v2010_v12 }
 0x11d   : > { %v2326_v40 = vpop.permute.xlu1 %487  ;;  %v2328_v45 = vpop.permute.xlu0 %489  ;;  %1683 = vpow2.f32 %v917_v42  ;;  %v676_v58 = vmin.f32 %v644_v2, 4.1351666  ;;  %v985_v38 = vmul.f32 0.5, %v953_v51  ;;  %v678_v5 = vmin.f32 %v646_v25, 4.1351666 }
 0x11e   : > { %1685 = vpow2.f32 %v919_v0  ;;  %v648_v29 = vmul.f32 0.2, %v2351_v27  ;;  %v927_v12 = vmul.f32 1.442695, %v677_v63  ;;  %v649_v47 = vmul.f32 0.2, %v2356_v35 }
 0x11f   : > { %1053 = vrot.lane.b32.xlu1 %v980_v36, %s1746_s17  ;;  %1055 = vrot.lane.b32.xlu0 %v981_v19, %s1746_s17  ;;  %v1674_v19 = vpop.eup %1673  ;;  %1687 = vpow2.f32 %v921_v8  ;;  %v925_v0 = vmul.f32 1.442695, %v676_v58  ;;  %v986_v51 = vmul.f32 0.5, %v954_v57  ;;  %v2369_v58 = vld [vmem:[%s2128_s20 + $0xf8] sm:$0xff] }
 0x120   : > { %v1676_v23 = vpop.eup %1675  ;;  %v955_v42 = vmul.f32 %v1674_v19, %v2015_v37  ;;  %1689 = vpow2.f32 %v923_v6  ;;  %v679_v37 = vmin.f32 %v647_v11, 4.1351666  ;;  %3191 = vst [vmem:[#allocation29_spill] sm:$0xff] %v2369_v58  ;;  %v680_v63 = vmin.f32 %v648_v29, 4.1351666 }
 0x121   : > { %v2342_v21 = vpop.permute.xlu1 %491  ;;  %v2344_v36 = vpop.permute.xlu0 %493  ;;  %v956_v10 = vmul.f32 %v1676_v23, %v2020_v14  ;;  %1691 = vpow2.f32 %v925_v0  ;;  %v681_v11 = vmin.f32 %v649_v47, 4.1351666  ;;  %v650_v14 = vmul.f32 0.2, %v2369_v58 }
 0x122   : > { %v987_v19 = vmul.f32 0.5, %v955_v42  ;;  %1693 = vpow2.f32 %v927_v12  ;;  %v931_v6 = vmul.f32 1.442695, %v679_v37 }
 0x123   : > { %1057 = vrot.lane.b32.xlu1 %v982_v50, %s1746_s17  ;;  %1059 = vrot.lane.b32.xlu0 %v983_v13, %s1746_s17  ;;  %v1678_v13 = vpop.eup %1677  ;;  %v988_v23 = vmul.f32 0.5, %v956_v10  ;;  %v935_v12 = vmul.f32 1.442695, %v681_v11  ;;  %v682_v37 = vmin.f32 %v650_v14, 4.1351666 }
 0x124   : > { %v1680_v46 = vpop.eup %1679  ;;  %v957_v8 = vmul.f32 %v1678_v13, %v2025_v43 }
 0x125   : > { %v2358_v2 = vpop.permute.xlu1 %495  ;;  %v2360_v50 = vpop.permute.xlu0 %497  ;;  %v958_v42 = vmul.f32 %v1680_v46, %v2030_v16 }
 0x126   : > { %v989_v57 = vmul.f32 0.5, %v957_v8 }
 0x127   : > { %1061 = vrot.lane.b32.xlu1 %v984_v52, %s1746_s17  ;;  %1063 = vrot.lane.b32.xlu0 %v985_v38, %s1746_s17  ;;  %v1682_v52 = vpop.eup %1681  ;;  %v929_v38 = vmul.f32 1.442695, %v678_v5  ;;  %v933_v5 = vmul.f32 1.442695, %v680_v63  ;;  %v990_v47 = vmul.f32 0.5, %v958_v42 }
 0x128   : > { %v1684_v43 = vpop.eup %1683  ;;  %v959_v13 = vmul.f32 %v1682_v52, %v2035_v49  ;;  %v937_v52 = vmul.f32 1.442695, %v682_v37 }
 0x129   : > { %v2371_v25 = vpop.permute.xlu1 %499  ;;  %v2373_v27 = vpop.permute.xlu0 %501  ;;  %1695 = vpow2.f32 %v929_v38  ;;  %v960_v16 = vmul.f32 %v1684_v43, %v2040_v18 }
 0x12a   : > { %v1686_v29 = vpop.eup %1685  ;;  %1697 = vpow2.f32 %v931_v6 }
 0x12b   : > { %1065 = vrot.lane.b32.xlu1 %v986_v51, %s1746_s17  ;;  %1067 = vrot.lane.b32.xlu0 %v987_v19, %s1746_s17  ;;  %v1688_v10 = vpop.eup %1687  ;;  %v991_v51 = vmul.f32 0.5, %v959_v13  ;;  %v961_v49 = vmul.f32 %v1686_v29, %v2045_v55  ;;  %1699 = vpow2.f32 %v933_v5  ;;  %v992_v63 = vmul.f32 0.5, %v960_v16 }
 0x12c   : > { %v1690_v8 = vpop.eup %1689  ;;  %1701 = vpow2.f32 %v935_v12  ;;  %v962_v11 = vmul.f32 %v1688_v10, %v2050_v20 }
 0x12d   : > { %v2380_v35 = vpop.permute.xlu1 %503  ;;  %v2382_v0 = vpop.permute.xlu0 %505  ;;  %v993_v6 = vmul.f32 0.5, %v961_v49  ;;  %v963_v18 = vmul.f32 %v1690_v8, %v2055_v61  ;;  %1703 = vpow2.f32 %v937_v52 }
 0x12e   : > { %3192 = vst [vmem:[#allocation30_spill] sm:$0xff] %v2380_v35  ;;  %3193 = vst [vmem:[#allocation31_spill] sm:$0xff] %v2382_v0  ;;  %v1692_v38 = vpop.eup %1691 }
 0x12f   : > { %1069 = vrot.lane.b32.xlu1 %v988_v23, %s1746_s17  ;;  %1071 = vrot.lane.b32.xlu0 %v989_v57, %s1746_s17  ;;  %v1694_v43 = vpop.eup %1693  ;;  %v994_v57 = vmul.f32 0.5, %v962_v11  ;;  %v995_v42 = vmul.f32 0.5, %v963_v18  ;;  %v964_v13 = vmul.f32 %v1692_v38, %v2060_v22 }
 0x130   : > { %v965_v29 = vmul.f32 %v1694_v43, %v2065_v3 }
 0x131   : > { %v2388_v46 = vpop.permute.xlu1 %507  ;;  %v2390_v19 = vpop.permute.xlu0 %509  ;;  %v996_v37 = vmul.f32 0.5, %v964_v13 }
 0x132   : > { %3194 = vst [vmem:[#allocation32_spill] sm:$0xff] %v2388_v46  ;;  %3195 = vst [vmem:[#allocation33_spill] sm:$0xff] %v2390_v19  ;;  %v997_v10 = vmul.f32 0.5, %v965_v29 }
 0x133   : > { %1073 = vrot.lane.b32.xlu1 %v990_v47, %s1746_s17  ;;  %1075 = vrot.lane.b32.xlu0 %v991_v51, %s1746_s17  ;;  %v1696_v23 = vpop.eup %1695 }
 0x134   : > { %v1698_v5 = vpop.eup %1697  ;;  %v966_v47 = vmul.f32 %v1696_v23, %v2070_v24 }
 0x135   : > { %v2396_v55 = vpop.permute.xlu1 %511  ;;  %v2398_v14 = vpop.permute.xlu0 %513  ;;  %v967_v51 = vmul.f32 %v1698_v5, %v2075_v9 }
 0x136   : > { %3196 = vst [vmem:[#allocation34_spill] sm:$0xff] %v2396_v55  ;;  %3197 = vst [vmem:[#allocation35_spill] sm:$0xff] %v2398_v14  ;;  %v1700_v12 = vpop.eup %1699  ;;  %v998_v49 = vmul.f32 0.5, %v966_v47  ;;  %v587_v14 = vmul.f32 0.1, %v2146_v41 }
 0x137   : > { %1077 = vrot.lane.b32.xlu1 %v992_v63, %s1746_s17  ;;  %1079 = vrot.lane.b32.xlu0 %v993_v6, %s1746_s17  ;;  %v1702_v3 = vpop.eup %1701  ;;  %v999_v8 = vmul.f32 0.5, %v967_v51  ;;  %v968_v52 = vmul.f32 %v1700_v12, %v2080_v26  ;;  %v588_v55 = vmul.f32 0.1, %v2142_v31  ;;  %v1706_v31 = vld [vmem:[%s1776_s15 + $0x8] sm:$0xff] }
 0x138   : > { %v969_v38 = vmul.f32 %v1702_v3, %v2085_v33  ;;  %v1704_v11 = vpop.eup %1703 }
 0x139   : > { %v2404_v20 = vpop.permute.xlu1 %515  ;;  %v2406_v61 = vpop.permute.xlu0 %517  ;;  %v1000_v24 = vmul.f32 0.5, %v968_v52  ;;  %v970_v18 = vmul.f32 %v1704_v11, %v2090_v28 }
 0x13a   : > { %3198 = vst [vmem:[#allocation36_spill] sm:$0xff] %v2404_v20  ;;  %3199 = vst [vmem:[#allocation37_spill] sm:$0xff] %v2406_v61  ;;  %v1001_v9 = vmul.f32 0.5, %v969_v38 }
 0x13b   : > { %1081 = vrot.lane.b32.xlu1 %v994_v57, %s1746_s17  ;;  %1083 = vrot.lane.b32.xlu0 %v995_v42, %s1746_s17  ;;  %v1002_v26 = vmul.f32 0.5, %v970_v18 }
 0x13d   : > { %v2412_v16 = vpop.permute.xlu1 %519  ;;  %v716_v22 = vpop.permute.xlu0 %715 }
 0x13e   : > { %3200 = vst [vmem:[#allocation38_spill] sm:$0xff] %v2412_v16  ;;  %v586_v16 = vmul.f32 0.1, %v2135_v30 }
 0x13f   : > { %1085 = vrot.lane.b32.xlu1 %v996_v37, %s1746_s17  ;;  %1087 = vrot.lane.b32.xlu0 %v997_v10, %s1746_s17 }
 0x140   : > { %v811_v58 = vmul.f32 %v716_v22, %v586_v16  ;;  %v590_v16 = vmul.f32 0.1, %v2158_v48 }
 0x141   : > { %v718_v63 = vpop.permute.xlu1 %717  ;;  %v720_v6 = vpop.permute.xlu0 %719 }
 0x142   : > { %v812_v30 = vmul.f32 %v718_v63, %v587_v14  ;;  %v813_v35 = vmul.f32 %v720_v6, %v588_v55  ;;  %v591_v14 = vmul.f32 0.1, %v2162_v53 }
 0x143   : > { %1089 = vrot.lane.b32.xlu1 %v998_v49, %s1746_s17  ;;  %1091 = vrot.lane.b32.xlu0 %v999_v8, %s1746_s17 }
 0x145   : > { %v722_v43 = vpop.permute.xlu1 %721  ;;  %v724_v23 = vpop.permute.xlu0 %723 }
 0x147   : > { %1093 = vrot.lane.b32.xlu1 %v1000_v24, %s1746_s17  ;;  %1095 = vrot.lane.b32.xlu0 %v1001_v9, %s1746_s17 }
 0x149   : > { %v2423_v57 = vpop.permute.xlu1 %725  ;;  %v2425_v33 = vpop.permute.xlu0 %727 }
 0x14b   : > { %1097 = vrot.lane.b32.xlu1 %v1002_v26, %s1746_s17 }
 0x14d   : > { %v2428_v42 = vpop.permute.xlu1 %729  ;;  %v2430_v13 = vpop.permute.xlu0 %731 }
 0x151   : > { %v2432_v29 = vpop.permute.xlu1 %733  ;;  %v2434_v28 = vpop.permute.xlu0 %735 }
 0x155   : > { %v2436_v5 = vpop.permute.xlu1 %737  ;;  %v2438_v12 = vpop.permute.xlu0 %739 }
 0x159   : > { %v2440_v37 = vpop.permute.xlu1 %741  ;;  %v2442_v10 = vpop.permute.xlu0 %743 }
 0x15d   : > { %v2444_v47 = vpop.permute.xlu1 %745  ;;  %v2446_v51 = vpop.permute.xlu0 %747 }
 0x161   : > { %v2448_v3 = vpop.permute.xlu1 %749  ;;  %v2450_v49 = vpop.permute.xlu0 %751 }
 0x165   : > { %v2452_v8 = vpop.permute.xlu1 %753  ;;  %v2454_v52 = vpop.permute.xlu0 %755 }
 0x169   : > { %v2456_v38 = vpop.permute.xlu1 %757  ;;  %v2458_v11 = vpop.permute.xlu0 %759 }
 0x16d   : > { %v2460_v24 = vpop.permute.xlu1 %761  ;;  %v2462_v9 = vpop.permute.xlu0 %763 }
 0x171   : > { %v2464_v18 = vpop.permute.xlu1 %765  ;;  %v2466_v26 = vpop.permute.xlu0 %767 }
 0x172   : > { %3201 = vst [vmem:[#allocation39_spill] sm:$0xff] %v2464_v18  ;;  %3202 = vst [vmem:[#allocation40_spill] sm:$0xff] %v2466_v26  ;;  %v1705_v18 = vld [vmem:[%s1776_s15] sm:$0xff] }
 0x173   : > { %v553_v26 = vadd.f32 %v1705_v18, %v2196_v15  ;;  %v815_v18 = vmul.f32 %v724_v23, %v590_v16 }
 0x175   : > { %v2469_v61 = vpop.permute.xlu1 %769  ;;  %v2471_v20 = vpop.permute.xlu0 %771  ;;  %v2481_v0 = vadd.f32 %v811_v58, %v553_v26  ;;  %v1707_v58 = vld [vmem:[%s1776_s15 + $0x10] sm:$0xff] }
 0x176   : > { %3203 = vst [vmem:[#allocation41_spill] sm:$0xff] %v2469_v61  ;;  %v589_v61 = vmul.f32 0.1, %v2154_v44  ;;  %v555_v44 = vadd.f32 %v1707_v58, %v2212_v62 }
 0x177   : > { %3206 = vst [vmem:[#allocation44_spill] sm:$0xff] %v2481_v0 }
 0x178   : > { %v814_v48 = vmul.f32 %v722_v43, %v589_v61  ;;  %v2500_v6 = vadd.f32 %v813_v35, %v555_v44  ;;  %v1709_v35 = vld [vmem:[%s1776_s15 + $0x20] sm:$0xff]  ;;  %v3212_v44 = vld [vmem:[#allocation3_spill] sm:$0xff] }
 0x179   : > { %v2475_v19 = vpop.permute.xlu1 %773  ;;  %v2477_v46 = vpop.permute.xlu0 %775 }
 0x17a   : > { %3204 = vst [vmem:[#allocation42_spill] sm:$0xff] %v2475_v19  ;;  %3205 = vst [vmem:[#allocation43_spill] sm:$0xff] %v2477_v46  ;;  %v554_v19 = vadd.f32 %v1706_v31, %v2210_v60  ;;  %v592_v60 = vmul.f32 0.1, %v2170_v59  ;;  %v1708_v46 = vld [vmem:[%s1776_s15 + $0x18] sm:$0xff] }
 0x17c   : > { %v2497_v55 = vadd.f32 %v812_v30, %v554_v19  ;;  %v3210_v19 = vld [vmem:[#allocation11_spill] sm:$0xff]  ;;  %v3211_v30 = vld [vmem:[#allocation2_spill] sm:$0xff]  ;;  %v817_v58 = vmul.f32 %v2425_v33, %v592_v60 }
 0x17d   : > { %v2485_v22 = vpop.permute.xlu1 %777  ;;  %v2487_v41 = vpop.permute.xlu0 %1035  ;;  %v557_v61 = vadd.f32 %v1709_v35, %v3210_v19  ;;  %v593_v16 = vmul.f32 0.1, %v3211_v30 }
 0x17e   : > { %3207 = vst [vmem:[#allocation45_spill] sm:$0xff] %v2485_v22  ;;  %3208 = vst [vmem:[#allocation46_spill] sm:$0xff] %v2487_v41  ;;  %v1227_v15 = vadd.f32 %v2487_v41, %v2481_v0  ;;  %v3209_v41 = vld [vmem:[#allocation10_spill] sm:$0xff] }
 0x17f   : > { %v556_v0 = vadd.f32 %v1708_v46, %v3209_v41  ;;  %v816_v46 = vmul.f32 %v2423_v57, %v591_v14 }
 0x180   : > { %v1259_v63 = vmax.f32 %v1227_v15, 0.0  ;;  %v2524_v15 = vadd.f32 %v815_v18, %v557_v61  ;;  %v1711_v18 = vld [vmem:[%s1776_s15 + $0x30] sm:$0xff] }
 0x181   : > { %v2503_v26 = vpop.permute.xlu1 %1037  ;;  %v2505_v31 = vpop.permute.xlu0 %1039  ;;  %v2519_v23 = vadd.f32 %v814_v48, %v556_v0  ;;  %v1710_v0 = vld [vmem:[%s1776_s15 + $0x28] sm:$0xff] }
 0x182   : > { %v1291_v22 = vmin.f32 %v1259_v63, 16.0  ;;  %v1228_v53 = vadd.f32 %v2503_v26, %v2497_v55  ;;  %v1229_v43 = vadd.f32 %v2505_v31, %v2500_v6  ;;  %v594_v63 = vmul.f32 0.1, %v3212_v44 }
 0x183   : > { %v558_v48 = vadd.f32 %v1710_v0, %v2244_v4  ;;  %v818_v4 = vmul.f32 %v2428_v42, %v593_v16  ;;  %v1712_v42 = vld [vmem:[%s1776_s15 + $0x38] sm:$0xff] }
 0x184   : > { %v1260_v41 = vmax.f32 %v1228_v53, 0.0  ;;  %1355 = vrot.lane.b32.xlu0 %v1291_v22, %s1745_s16  ;;  %v1261_v35 = vmax.f32 %v1229_v43, 0.0  ;;  %v3213_v53 = vld [vmem:[#allocation14_spill] sm:$0xff]  ;;  %v560_v16 = vadd.f32 %v1712_v42, %v2262_v54 }
 0x185   : > { %v2528_v19 = vpop.permute.xlu1 %1041  ;;  %v2530_v59 = vpop.permute.xlu0 %1043  ;;  %v559_v33 = vadd.f32 %v1711_v18, %v3213_v53  ;;  %v2544_v30 = vadd.f32 %v816_v46, %v558_v48  ;;  %v3215_v18 = vld [vmem:[#allocation5_spill] sm:$0xff] }
 0x186   : > { %v1292_v57 = vmin.f32 %v1260_v41, 16.0  ;;  %v1230_v22 = vadd.f32 %v2528_v19, %v2519_v23  ;;  %v1293_v60 = vmin.f32 %v1261_v35, 16.0  ;;  %v1231_v43 = vadd.f32 %v2530_v59, %v2524_v15  ;;  %v3214_v41 = vld [vmem:[#allocation4_spill] sm:$0xff] }
 0x187   : > { %v595_v44 = vmul.f32 0.1, %v3214_v41  ;;  %v2549_v14 = vadd.f32 %v817_v58, %v559_v33  ;;  %v819_v35 = vmul.f32 %v2430_v13, %v594_v63  ;;  %v596_v53 = vmul.f32 0.1, %v3215_v18  ;;  %v1713_v13 = vld [vmem:[%s1776_s15 + $0x40] sm:$0xff] }
 0x188   : > { %v1262_v0 = vmax.f32 %v1230_v22, 0.0  ;;  %1357 = vrot.lane.b32.xlu1 %v1292_v57, %s1745_s16  ;;  %v1263_v61 = vmax.f32 %v1231_v43, 0.0  ;;  %1359 = vrot.lane.b32.xlu0 %v1293_v60, %s1745_s16  ;;  %v561_v63 = vadd.f32 %v1713_v13, %v2264_v56  ;;  %v2570_v43 = vadd.f32 %v818_v4, %v560_v16  ;;  %v3216_v41 = vld [vmem:[#allocation6_spill] sm:$0xff] }
 0x189   : > { %v2554_v62 = vpop.permute.xlu1 %1045  ;;  %v2556_v46 = vpop.permute.xlu0 %1047  ;;  %v820_v54 = vmul.f32 %v2432_v29, %v595_v44  ;;  %v821_v56 = vmul.f32 %v2434_v28, %v596_v53  ;;  %v1714_v29 = vld [vmem:[%s1776_s15 + $0x48] sm:$0xff]  ;;  %v1715_v28 = vld [vmem:[%s1776_s15 + $0x50] sm:$0xff] }
 0x18a   : > { %v1294_v48 = vmin.f32 %v1262_v0, 16.0  ;;  %v1232_v58 = vadd.f32 %v2554_v62, %v2544_v30  ;;  %v1295_v22 = vmin.f32 %v1263_v61, 16.0  ;;  %v1233_v60 = vadd.f32 %v2556_v46, %v2549_v14  ;;  %v3217_v61 = vld [vmem:[#allocation7_spill] sm:$0xff] }
 0x18b   : > { %v597_v0 = vmul.f32 0.1, %v3216_v41  ;;  %v2575_v42 = vadd.f32 %v819_v35, %v561_v63  ;;  %v598_v13 = vmul.f32 0.1, %v3217_v61  ;;  %v562_v44 = vadd.f32 %v1714_v29, %v2278_v32  ;;  %v3218_v41 = vld [vmem:[#allocation8_spill] sm:$0xff] }
 0x18c   : > { %v1264_v18 = vmax.f32 %v1232_v58, 0.0  ;;  %1361 = vrot.lane.b32.xlu1 %v1294_v48, %s1745_s16  ;;  %v1265_v33 = vmax.f32 %v1233_v60, 0.0  ;;  %1363 = vrot.lane.b32.xlu0 %v1295_v22, %s1745_s16  ;;  %v563_v53 = vadd.f32 %v1715_v28, %v2280_v17 }
 0x18d   : > { %v2580_v57 = vpop.permute.xlu1 %1049  ;;  %v2582_v4 = vpop.permute.xlu0 %1051  ;;  %v2596_v60 = vadd.f32 %v820_v54, %v562_v44  ;;  %v822_v32 = vmul.f32 %v2436_v5, %v597_v0  ;;  %v823_v17 = vmul.f32 %v2438_v12, %v598_v13  ;;  %v1716_v5 = vld [vmem:[%s1776_s15 + $0x58] sm:$0xff]  ;;  %v1717_v12 = vld [vmem:[%s1776_s15 + $0x60] sm:$0xff] }
 0x18e   : > { %v1296_v16 = vmin.f32 %v1264_v18, 16.0  ;;  %v1234_v35 = vadd.f32 %v2580_v57, %v2570_v43  ;;  %v1297_v58 = vmin.f32 %v1265_v33, 16.0  ;;  %v1235_v22 = vadd.f32 %v2582_v4, %v2575_v42  ;;  %v3219_v33 = vld [vmem:[#allocation9_spill] sm:$0xff] }
 0x18f   : > { %v599_v18 = vmul.f32 0.1, %v3218_v41  ;;  %v2601_v29 = vadd.f32 %v821_v56, %v563_v53  ;;  %v600_v28 = vmul.f32 0.1, %v3219_v33  ;;  %v564_v0 = vadd.f32 %v1716_v5, %v2294_v1  ;;  %v3220_v41 = vld [vmem:[#allocation12_spill] sm:$0xff] }
 0x190   : > { %v1266_v61 = vmax.f32 %v1234_v35, 0.0  ;;  %1365 = vrot.lane.b32.xlu1 %v1296_v16, %s1745_s16  ;;  %v1267_v63 = vmax.f32 %v1235_v22, 0.0  ;;  %1367 = vrot.lane.b32.xlu0 %v1297_v58, %s1745_s16  ;;  %v565_v13 = vadd.f32 %v1717_v12, %v2296_v34 }
 0x191   : > { %v2606_v48 = vpop.permute.xlu1 %1053  ;;  %v2608_v54 = vpop.permute.xlu0 %1055  ;;  %v2622_v22 = vadd.f32 %v822_v32, %v564_v0  ;;  %v824_v1 = vmul.f32 %v2440_v37, %v599_v18  ;;  %v825_v34 = vmul.f32 %v2442_v10, %v600_v28  ;;  %v1718_v37 = vld [vmem:[%s1776_s15 + $0x68] sm:$0xff]  ;;  %v1719_v10 = vld [vmem:[%s1776_s15 + $0x70] sm:$0xff]  ;;  %v3223_v28 = vld [vmem:[#allocation22_spill] sm:$0xff] }
 0x192   : > { %v1298_v44 = vmin.f32 %v1266_v61, 16.0  ;;  %v1236_v56 = vadd.f32 %v2606_v48, %v2596_v60  ;;  %v1299_v35 = vmin.f32 %v1267_v63, 16.0  ;;  %v1237_v58 = vadd.f32 %v2608_v54, %v2601_v29  ;;  %v3221_v63 = vld [vmem:[#allocation13_spill] sm:$0xff] }
 0x193   : > { %v601_v61 = vmul.f32 0.1, %v3220_v41  ;;  %v2627_v5 = vadd.f32 %v823_v17, %v565_v13  ;;  %v602_v12 = vmul.f32 0.1, %v3221_v63  ;;  %v566_v18 = vadd.f32 %v1718_v37, %v2310_v39 }
 0x194   : > { %v1268_v33 = vmax.f32 %v1236_v56, 0.0  ;;  %1369 = vrot.lane.b32.xlu1 %v1298_v44, %s1745_s16  ;;  %v1269_v53 = vmax.f32 %v1237_v58, 0.0  ;;  %1371 = vrot.lane.b32.xlu0 %v1299_v35, %s1745_s16  ;;  %v567_v56 = vadd.f32 %v1719_v10, %v3223_v28  ;;  %v3225_v10 = vld [vmem:[#allocation16_spill] sm:$0xff] }
 0x195   : > { %v2632_v16 = vpop.permute.xlu1 %1057  ;;  %v2634_v32 = vpop.permute.xlu0 %1059  ;;  %v2648_v41 = vadd.f32 %v824_v1, %v566_v18  ;;  %v826_v39 = vmul.f32 %v2444_v47, %v601_v61  ;;  %v604_v28 = vmul.f32 0.1, %v3225_v10  ;;  %v1720_v47 = vld [vmem:[%s1776_s15 + $0x78] sm:$0xff] }
 0x196   : > { %3222 = vst [vmem:[#allocation10_spill] sm:$0xff] %v2634_v32  ;;  %v1300_v0 = vmin.f32 %v1268_v33, 16.0  ;;  %v1238_v17 = vadd.f32 %v2632_v16, %v2622_v22  ;;  %v1301_v13 = vmin.f32 %v1269_v53, 16.0  ;;  %v1239_v58 = vadd.f32 %v2634_v32, %v2627_v5  ;;  %v3224_v33 = vld [vmem:[#allocation15_spill] sm:$0xff] }
 0x197   : > { %v603_v63 = vmul.f32 0.1, %v3224_v33  ;;  %v2653_v44 = vadd.f32 %v825_v34, %v567_v56  ;;  %v827_v53 = vmul.f32 %v2446_v51, %v602_v12  ;;  %v568_v61 = vadd.f32 %v1720_v47, %v2326_v40  ;;  %v1721_v51 = vld [vmem:[%s1776_s15 + $0x80] sm:$0xff]  ;;  %v3226_v33 = vld [vmem:[#allocation17_spill] sm:$0xff] }
 0x198   : > { %v1270_v37 = vmax.f32 %v1238_v17, 0.0  ;;  %1373 = vrot.lane.b32.xlu1 %v1300_v0, %s1745_s16  ;;  %v1271_v35 = vmax.f32 %v1239_v58, 0.0  ;;  %1375 = vrot.lane.b32.xlu0 %v1301_v13, %s1745_s16  ;;  %v569_v12 = vadd.f32 %v1721_v51, %v2328_v45  ;;  %v829_v45 = vmul.f32 %v2450_v49, %v604_v28  ;;  %v1723_v49 = vld [vmem:[%s1776_s15 + $0x90] sm:$0xff] }
 0x199   : > { %v2658_v32 = vpop.permute.xlu1 %1061  ;;  %v2660_v1 = vpop.permute.xlu0 %1063  ;;  %v2674_v58 = vadd.f32 %v826_v39, %v568_v61  ;;  %v828_v40 = vmul.f32 %v2448_v3, %v603_v63  ;;  %v1722_v3 = vld [vmem:[%s1776_s15 + $0x88] sm:$0xff]  ;;  %v571_v28 = vadd.f32 %v1723_v49, %v2344_v36 }
 0x19a   : > { %v1302_v18 = vmin.f32 %v1270_v37, 16.0  ;;  %v1240_v34 = vadd.f32 %v2658_v32, %v2648_v41  ;;  %v1303_v17 = vmin.f32 %v1271_v35, 16.0  ;;  %v1241_v13 = vadd.f32 %v2660_v1, %v2653_v44  ;;  %v3227_v35 = vld [vmem:[#allocation18_spill] sm:$0xff] }
 0x19b   : > { %v605_v37 = vmul.f32 0.1, %v3226_v33  ;;  %v2679_v47 = vadd.f32 %v827_v53, %v569_v12  ;;  %v606_v51 = vmul.f32 0.1, %v3227_v35  ;;  %v570_v63 = vadd.f32 %v1722_v3, %v2342_v21  ;;  %v3228_v33 = vld [vmem:[#allocation19_spill] sm:$0xff] }
 0x19c   : > { %v1272_v10 = vmax.f32 %v1240_v34, 0.0  ;;  %1377 = vrot.lane.b32.xlu1 %v1302_v18, %s1745_s16  ;;  %v1273_v56 = vmax.f32 %v1241_v13, 0.0  ;;  %1379 = vrot.lane.b32.xlu0 %v1303_v17, %s1745_s16  ;;  %v2705_v3 = vadd.f32 %v829_v45, %v571_v28 }
 0x19d   : > { %v2684_v0 = vpop.permute.xlu1 %1065  ;;  %v2686_v39 = vpop.permute.xlu0 %1067  ;;  %v2700_v13 = vadd.f32 %v828_v40, %v570_v63  ;;  %v830_v21 = vmul.f32 %v2452_v8, %v605_v37  ;;  %v831_v36 = vmul.f32 %v2454_v52, %v606_v51  ;;  %v1724_v8 = vld [vmem:[%s1776_s15 + $0x98] sm:$0xff]  ;;  %v1725_v52 = vld [vmem:[%s1776_s15 + $0xa0] sm:$0xff] }
 0x19e   : > { %v1304_v61 = vmin.f32 %v1272_v10, 16.0  ;;  %v1242_v53 = vadd.f32 %v2684_v0, %v2674_v58  ;;  %v1305_v34 = vmin.f32 %v1273_v56, 16.0  ;;  %v1243_v17 = vadd.f32 %v2686_v39, %v2679_v47  ;;  %v3229_v56 = vld [vmem:[#allocation20_spill] sm:$0xff] }
 0x19f   : > { %v607_v10 = vmul.f32 0.1, %v3228_v33  ;;  %v608_v49 = vmul.f32 0.1, %v3229_v56  ;;  %v572_v37 = vadd.f32 %v1724_v8, %v2358_v2  ;;  %v573_v51 = vadd.f32 %v1725_v52, %v2360_v50 }
 0x1a0   : > { %v1274_v35 = vmax.f32 %v1242_v53, 0.0  ;;  %1381 = vrot.lane.b32.xlu1 %v1304_v61, %s1745_s16  ;;  %v1275_v12 = vmax.f32 %v1243_v17, 0.0  ;;  %1383 = vrot.lane.b32.xlu0 %v1305_v34, %s1745_s16  ;;  %v609_v33 = vmul.f32 0.1, %v2300_v7 }
 0x1a1   : > { %v2710_v18 = vpop.permute.xlu1 %1069  ;;  %v2712_v40 = vpop.permute.xlu0 %1071  ;;  %v2726_v17 = vadd.f32 %v830_v21, %v572_v37  ;;  %v832_v2 = vmul.f32 %v2456_v38, %v607_v10  ;;  %v2731_v56 = vadd.f32 %v831_v36, %v573_v51  ;;  %v833_v50 = vmul.f32 %v2458_v11, %v608_v49  ;;  %v1726_v38 = vld [vmem:[%s1776_s15 + $0xa8] sm:$0xff]  ;;  %v1727_v11 = vld [vmem:[%s1776_s15 + $0xb0] sm:$0xff] }
 0x1a2   : > { %v1306_v63 = vmin.f32 %v1274_v35, 16.0  ;;  %v1244_v45 = vadd.f32 %v2710_v18, %v2700_v13  ;;  %v1307_v53 = vmin.f32 %v1275_v12, 16.0  ;;  %v1245_v34 = vadd.f32 %v2712_v40, %v2705_v3  ;;  %v3230_v12 = vld [vmem:[#allocation21_spill] sm:$0xff] }
 0x1a3   : > { %v610_v8 = vmul.f32 0.1, %v3230_v12  ;;  %v574_v10 = vadd.f32 %v1726_v38, %v2371_v25  ;;  %v575_v49 = vadd.f32 %v1727_v11, %v2373_v27  ;;  %v834_v25 = vmul.f32 %v2460_v24, %v609_v33  ;;  %v1728_v24 = vld [vmem:[%s1776_s15 + $0xb8] sm:$0xff]  ;;  %v3237_v33 = vld [vmem:[#allocation30_spill] sm:$0xff] }
 0x1a4   : > { %v1276_v35 = vmax.f32 %v1244_v45, 0.0  ;;  %1385 = vrot.lane.b32.xlu1 %v1306_v63, %s1745_s16  ;;  %v1277_v52 = vmax.f32 %v1245_v34, 0.0  ;;  %1387 = vrot.lane.b32.xlu0 %v1307_v53, %s1745_s16  ;;  %v3232_v34 = vld [vmem:[#allocation23_spill] sm:$0xff] }
 0x1a5   : > { %v2736_v28 = vpop.permute.xlu1 %1073  ;;  %v2738_v21 = vpop.permute.xlu0 %1075  ;;  %v2752_v53 = vadd.f32 %v832_v2, %v574_v10  ;;  %v2757_v38 = vadd.f32 %v833_v50, %v575_v49  ;;  %v835_v27 = vmul.f32 %v2462_v9, %v610_v8  ;;  %v576_v10 = vadd.f32 %v1728_v24, %v3237_v33  ;;  %v1729_v9 = vld [vmem:[%s1776_s15 + $0xc0] sm:$0xff]  ;;  %v3238_v8 = vld [vmem:[#allocation31_spill] sm:$0xff]  ;;  %v3240_v33 = vld [vmem:[#allocation25_spill] sm:$0xff] }
 0x1a6   : > { %v1308_v7 = vmin.f32 %v1276_v35, 16.0  ;;  %v1246_v36 = vadd.f32 %v2736_v28, %v2726_v17  ;;  %v1309_v63 = vmin.f32 %v1277_v52, 16.0  ;;  %v1247_v51 = vadd.f32 %v2738_v21, %v2731_v56  ;;  %v3234_v52 = vld [vmem:[#allocation24_spill] sm:$0xff] }
 0x1a7   : > { %3231 = vst [vmem:[#allocation11_spill] sm:$0xff] %v2752_v53  ;;  %v611_v35 = vmul.f32 0.1, %v3232_v34  ;;  %3233 = vst [vmem:[#allocation2_spill] sm:$0xff] %v2757_v38  ;;  %v612_v11 = vmul.f32 0.1, %v3234_v52  ;;  %v2778_v52 = vadd.f32 %v834_v25, %v576_v10 }
 0x1a8   : > { %v1278_v12 = vmax.f32 %v1246_v36, 0.0  ;;  %1389 = vrot.lane.b32.xlu1 %v1308_v7, %s1745_s16  ;;  %v1279_v45 = vmax.f32 %v1247_v51, 0.0  ;;  %1391 = vrot.lane.b32.xlu0 %v1309_v63, %s1745_s16  ;;  %v577_v36 = vadd.f32 %v1729_v9, %v3238_v8  ;;  %v613_v7 = vmul.f32 0.1, %v3240_v33  ;;  %v3242_v9 = vld [vmem:[#allocation40_spill] sm:$0xff]  ;;  %v3243_v8 = vld [vmem:[#allocation26_spill] sm:$0xff] }
 0x1a9   : > { %v2762_v37 = vpop.permute.xlu1 %1077  ;;  %v2764_v2 = vpop.permute.xlu0 %1079  ;;  %v3246_v10 = vld [vmem:[#allocation32_spill] sm:$0xff] }
 0x1aa   : > { %3235 = vst [vmem:[#allocation3_spill] sm:$0xff] %v2762_v37  ;;  %3236 = vst [vmem:[#allocation14_spill] sm:$0xff] %v2764_v2  ;;  %v1310_v34 = vmin.f32 %v1278_v12, 16.0  ;;  %v1248_v50 = vadd.f32 %v2762_v37, %v2752_v53  ;;  %v1311_v49 = vmin.f32 %v1279_v45, 16.0  ;;  %v1249_v51 = vadd.f32 %v2764_v2, %v2757_v38  ;;  %v3239_v12 = vld [vmem:[#allocation39_spill] sm:$0xff] }
 0x1ab   : > { %v836_v24 = vmul.f32 %v3239_v12, %v611_v35  ;;  %v2783_v37 = vadd.f32 %v835_v27, %v577_v36  ;;  %v837_v45 = vmul.f32 %v3242_v9, %v612_v11  ;;  %v614_v53 = vmul.f32 0.1, %v3243_v8  ;;  %v1730_v35 = vld [vmem:[%s1776_s15 + $0xc8] sm:$0xff]  ;;  %v1731_v11 = vld [vmem:[%s1776_s15 + $0xd0] sm:$0xff] }
 0x1ac   : > { %v1280_v61 = vmax.f32 %v1248_v50, 0.0  ;;  %1393 = vrot.lane.b32.xlu1 %v1310_v34, %s1745_s16  ;;  %v1281_v63 = vmax.f32 %v1249_v51, 0.0  ;;  %1395 = vrot.lane.b32.xlu0 %v1311_v49, %s1745_s16  ;;  %v578_v12 = vadd.f32 %v1730_v35, %v3246_v10  ;;  %v3247_v50 = vld [vmem:[#allocation33_spill] sm:$0xff]  ;;  %v3249_v10 = vld [vmem:[#allocation27_spill] sm:$0xff] }
 0x1ad   : > { %3241 = vst [vmem:[#allocation4_spill] sm:$0xff] %v2783_v37  ;;  %v2788_v2 = vpop.permute.xlu1 %1081  ;;  %v2790_v25 = vpop.permute.xlu0 %1083  ;;  %v579_v36 = vadd.f32 %v1731_v11, %v3247_v50  ;;  %v615_v34 = vmul.f32 0.1, %v3249_v10  ;;  %v3251_v11 = vld [vmem:[#allocation28_spill] sm:$0xff] }
 0x1ae   : > { %3244 = vst [vmem:[#allocation5_spill] sm:$0xff] %v2788_v2  ;;  %3245 = vst [vmem:[#allocation6_spill] sm:$0xff] %v2790_v25  ;;  %v1312_v33 = vmin.f32 %v1280_v61, 16.0  ;;  %v1250_v27 = vadd.f32 %v2788_v2, %v2778_v52  ;;  %v1313_v51 = vmin.f32 %v1281_v63, 16.0  ;;  %v1251_v9 = vadd.f32 %v2790_v25, %v2783_v37  ;;  %v3248_v61 = vld [vmem:[#allocation41_spill] sm:$0xff] }
 0x1af   : > { %v2804_v8 = vadd.f32 %v836_v24, %v578_v12  ;;  %v838_v35 = vmul.f32 %v3248_v61, %v613_v7  ;;  %v2809_v2 = vadd.f32 %v837_v45, %v579_v36  ;;  %v839_v63 = vmul.f32 %v2471_v20, %v614_v53  ;;  %v1732_v7 = vld [vmem:[%s1776_s15 + $0xd8] sm:$0xff]  ;;  %v3254_v12 = vld [vmem:[#allocation34_spill] sm:$0xff]  ;;  %v3255_v53 = vld [vmem:[#allocation35_spill] sm:$0xff] }
 0x1b0   : > { %v1282_v38 = vmax.f32 %v1250_v27, 0.0  ;;  %1397 = vrot.lane.b32.xlu1 %v1312_v33, %s1745_s16  ;;  %v616_v50 = vmul.f32 0.1, %v3251_v11  ;;  %v1283_v49 = vmax.f32 %v1251_v9, 0.0  ;;  %1399 = vrot.lane.b32.xlu0 %v1313_v51, %s1745_s16  ;;  %v580_v61 = vadd.f32 %v1732_v7, %v3254_v12  ;;  %v1733_v20 = vld [vmem:[%s1776_s15 + $0xe0] sm:$0xff]  ;;  %v3257_v12 = vld [vmem:[#allocation29_spill] sm:$0xff] }
 0x1b1   : > { %3250 = vst [vmem:[#allocation7_spill] sm:$0xff] %v2809_v2  ;;  %v2814_v25 = vpop.permute.xlu1 %1085  ;;  %v2816_v24 = vpop.permute.xlu0 %1087  ;;  %v581_v27 = vadd.f32 %v1733_v20, %v3255_v53  ;;  %v617_v33 = vmul.f32 0.1, %v3257_v12  ;;  %v3258_v20 = vld [vmem:[#allocation43_spill] sm:$0xff] }
 0x1b2   : > { %3252 = vst [vmem:[#allocation8_spill] sm:$0xff] %v2814_v25  ;;  %3253 = vst [vmem:[#allocation9_spill] sm:$0xff] %v2816_v24  ;;  %v1314_v10 = vmin.f32 %v1282_v38, 16.0  ;;  %v1252_v45 = vadd.f32 %v2814_v25, %v2804_v8  ;;  %v1315_v36 = vmin.f32 %v1283_v49, 16.0  ;;  %v1253_v9 = vadd.f32 %v2816_v24, %v2809_v2  ;;  %v3256_v38 = vld [vmem:[#allocation42_spill] sm:$0xff] }
 0x1b3   : > { %v2830_v11 = vadd.f32 %v838_v35, %v580_v61  ;;  %v840_v7 = vmul.f32 %v3256_v38, %v615_v34  ;;  %v2835_v25 = vadd.f32 %v839_v63, %v581_v27  ;;  %v841_v49 = vmul.f32 %v3258_v20, %v616_v50  ;;  %v1734_v35 = vld [vmem:[%s1776_s15 + $0xe8] sm:$0xff]  ;;  %v3261_v61 = vld [vmem:[#allocation36_spill] sm:$0xff]  ;;  %v3262_v50 = vld [vmem:[#allocation37_spill] sm:$0xff] }
 0x1b4   : > { %v1284_v37 = vmax.f32 %v1252_v45, 0.0  ;;  %1401 = vrot.lane.b32.xlu1 %v1314_v10, %s1745_s16  ;;  %v1285_v53 = vmax.f32 %v1253_v9, 0.0  ;;  %1403 = vrot.lane.b32.xlu0 %v1315_v36, %s1745_s16  ;;  %v582_v2 = vadd.f32 %v1734_v35, %v3261_v61  ;;  %v1735_v10 = vld [vmem:[%s1776_s15 + $0xf0] sm:$0xff]  ;;  %v3264_v36 = vld [vmem:[#allocation38_spill] sm:$0xff] }
 0x1b5   : > { %v2839_v51 = vpop.permute.xlu1 %1089  ;;  %v2841_v24 = vpop.permute.xlu0 %1091  ;;  %v583_v27 = vadd.f32 %v1735_v10, %v3262_v50  ;;  %v1736_v50 = vld [vmem:[%s1776_s15 + $0xf8] sm:$0xff] }
 0x1b6   : > { %3259 = vst [vmem:[#allocation12_spill] sm:$0xff] %v2839_v51  ;;  %3260 = vst [vmem:[#allocation13_spill] sm:$0xff] %v2841_v24  ;;  %v1316_v34 = vmin.f32 %v1284_v37, 16.0  ;;  %v1254_v63 = vadd.f32 %v2839_v51, %v2830_v11  ;;  %v1317_v9 = vmin.f32 %v1285_v53, 16.0  ;;  %v1255_v38 = vadd.f32 %v2841_v24, %v2835_v25  ;;  %v3263_v37 = vld [vmem:[#allocation45_spill] sm:$0xff] }
 0x1b7   : > { %v2855_v12 = vadd.f32 %v840_v7, %v582_v2  ;;  %v842_v20 = vmul.f32 %v3263_v37, %v617_v33  ;;  %v2859_v61 = vadd.f32 %v841_v49, %v583_v27  ;;  %v584_v51 = vadd.f32 %v1736_v50, %v3264_v36 }
 0x1b8   : > { %v1286_v35 = vmax.f32 %v1254_v63, 0.0  ;;  %1405 = vrot.lane.b32.xlu1 %v1316_v34, %s1745_s16  ;;  %v1287_v45 = vmax.f32 %v1255_v38, 0.0  ;;  %1407 = vrot.lane.b32.xlu0 %v1317_v9, %s1745_s16 }
 0x1b9   : > { %v2862_v10 = vpop.permute.xlu1 %1093  ;;  %v2864_v53 = vpop.permute.xlu0 %1095  ;;  %v2876_v63 = vadd.f32 %v842_v20, %v584_v51  ;;  %v3265_v51 = vld [vmem:[#allocation44_spill] sm:$0xff]  ;;  %v3266_v20 = vld [vmem:[#allocation46_spill] sm:$0xff] }
 0x1ba   : > { %v1318_v24 = vmin.f32 %v1286_v35, 16.0  ;;  %v1160_v2 = vsub.f32 %v2855_v12, %v2862_v10  ;;  %v1256_v33 = vadd.f32 %v2862_v10, %v2855_v12  ;;  %v1319_v7 = vmin.f32 %v1287_v45, 16.0 }
 0x1bb   : > { %v1161_v49 = vsub.f32 %v2859_v61, %v2864_v53  ;;  %v1257_v34 = vadd.f32 %v2864_v53, %v2859_v61 }
 0x1bc   : > { %v1288_v27 = vmax.f32 %v1256_v33, 0.0  ;;  %1409 = vrot.lane.b32.xlu1 %v1318_v24, %s1745_s16  ;;  %1411 = vrot.lane.b32.xlu0 %v1319_v7, %s1745_s16  ;;  %v3267_v33 = vsub.f32 %v3265_v51, %v3266_v20 }
 0x1bd   : > { %v1289_v9 = vmax.f32 %v1257_v34, 0.0  ;;  %v2880_v36 = vpop.permute.xlu1 %1097 }
 0x1be   : > { %v1320_v38 = vmin.f32 %v1288_v27, 16.0  ;;  %v1258_v37 = vadd.f32 %v2880_v36, %v2876_v63  ;;  %v1163_v7 = vmax.f32 %v3267_v33, 0.0  ;;  %v3268_v27 = vsub.f32 %v2497_v55, %v2503_v26 }
 0x1bf   : > { %v1321_v35 = vmin.f32 %v1289_v9, 16.0  ;;  %v3269_v9 = vsub.f32 %v2500_v6, %v2505_v31  ;;  %v3270_v26 = vsub.f32 %v2519_v23, %v2528_v19  ;;  %v3272_v23 = vsub.f32 %v2544_v30, %v2554_v62 }
 0x1c0   : > { %v1290_v50 = vmax.f32 %v1258_v37, 0.0  ;;  %1413 = vrot.lane.b32.xlu1 %v1320_v38, %s1745_s16  ;;  %v1195_v34 = vmin.f32 %v1163_v7, 16.0  ;;  %v1164_v45 = vmax.f32 %v3268_v27, 0.0 }
 0x1c1   : > { %1415 = vrot.lane.b32.xlu0 %v1321_v35, %s1745_s16  ;;  %v1165_v38 = vmax.f32 %v3269_v9, 0.0  ;;  %v1166_v6 = vmax.f32 %v3270_v26, 0.0  ;;  %v1168_v19 = vmax.f32 %v3272_v23, 0.0  ;;  %v3273_v9 = vsub.f32 %v2549_v14, %v2556_v46 }
 0x1c2   : > { %v1322_v24 = vmin.f32 %v1290_v50, 16.0  ;;  %v1196_v55 = vmin.f32 %v1164_v45, 16.0  ;;  %v3274_v26 = vsub.f32 %v2570_v43, %v2580_v57 }
 0x1c3   : > { %v1197_v31 = vmin.f32 %v1165_v38, 16.0  ;;  %v1198_v27 = vmin.f32 %v1166_v6, 16.0  ;;  %v1169_v38 = vmax.f32 %v3273_v9, 0.0  ;;  %v1200_v30 = vmin.f32 %v1168_v19, 16.0 }
 0x1c4   : > { %1417 = vrot.lane.b32.xlu1 %v1322_v24, %s1745_s16  ;;  %v3271_v24 = vsub.f32 %v2524_v15, %v2530_v59  ;;  %v1170_v6 = vmax.f32 %v3274_v26, 0.0 }
 0x1c5   : > { %v1201_v46 = vmin.f32 %v1169_v38, 16.0  ;;  %v3278_v38 = vsub.f32 %v2622_v22, %v2632_v16 }
 0x1c6   : > { %v1167_v51 = vmax.f32 %v3271_v24, 0.0  ;;  %v1202_v43 = vmin.f32 %v1170_v6, 16.0 }
 0x1c8   : > { %v1199_v15 = vmin.f32 %v1167_v51, 16.0 }
 0x1f6   : > { %v1356_v37 = vpop.permute.xlu0 %1355 }
 0x1f7   : > { %v1452_v35 = vsel %vm1451_vm0, %v1195_v34, %v1356_v37 }
 0x1f8   : > { %v1485_v50 = vsel %vm1484_vm1, %v1452_v35, %v1356_v37 }
 0x1f9   : > { %1518 = vst.msk [vmem:[%s2902_s23] sm:$0xff] %vm1517_vm2, %v1485_v50 }
 0x1fa   : > { %v1358_v20 = vpop.permute.xlu1 %1357  ;;  %v1360_v7 = vpop.permute.xlu0 %1359 }
 0x1fb   : > { %v1453_v33 = vsel %vm1451_vm0, %v1196_v55, %v1358_v20  ;;  %v1454_v45 = vsel %vm1451_vm0, %v1197_v31, %v1360_v7  ;;  %v3275_v31 = vsub.f32 %v2575_v42, %v2582_v4 }
 0x1fc   : > { %v1486_v34 = vsel %vm1484_vm1, %v1453_v33, %v1358_v20  ;;  %v1487_v59 = vsel %vm1484_vm1, %v1454_v45, %v1360_v7 }
 0x1fd   : > { %1519 = vst.msk [vmem:[%s2902_s23 + $0x8] sm:$0xff] %vm1517_vm2, %v1486_v34  ;;  %1520 = vst.msk [vmem:[%s2902_s23 + $0x10] sm:$0xff] %vm1517_vm2, %v1487_v59  ;;  %v1171_v24 = vmax.f32 %v3275_v31, 0.0  ;;  %v3276_v34 = vsub.f32 %v2596_v60, %v2606_v48 }
 0x1fe   : > { %v1362_v37 = vpop.permute.xlu1 %1361  ;;  %v1364_v50 = vpop.permute.xlu0 %1363 }
 0x1ff   : > { %v1455_v35 = vsel %vm1451_vm0, %v1198_v27, %v1362_v37  ;;  %v1456_v62 = vsel %vm1451_vm0, %v1199_v15, %v1364_v50  ;;  %v1172_v45 = vmax.f32 %v3276_v34, 0.0  ;;  %v1203_v4 = vmin.f32 %v1171_v24, 16.0 }
 0x200   : > { %v1488_v55 = vsel %vm1484_vm1, %v1455_v35, %v1362_v37  ;;  %v1489_v14 = vsel %vm1484_vm1, %v1456_v62, %v1364_v50  ;;  %v3277_v27 = vsub.f32 %v2601_v29, %v2608_v54  ;;  %v1174_v37 = vmax.f32 %v3278_v38, 0.0  ;;  %v3279_v35 = vld [vmem:[#allocation10_spill] sm:$0xff] }
 0x201   : > { %1521 = vst.msk [vmem:[%s2902_s23 + $0x18] sm:$0xff] %vm1517_vm2, %v1488_v55  ;;  %1522 = vst.msk [vmem:[%s2902_s23 + $0x20] sm:$0xff] %vm1517_vm2, %v1489_v14  ;;  %v1204_v60 = vmin.f32 %v1172_v45, 16.0  ;;  %v3280_v50 = vsub.f32 %v2627_v5, %v3279_v35  ;;  %v3281_v14 = vsub.f32 %v2648_v41, %v2658_v32  ;;  %v3282_v24 = vsub.f32 %v2653_v44, %v2660_v1 }
 0x202   : > { %v1366_v51 = vpop.permute.xlu1 %1365  ;;  %v1368_v33 = vpop.permute.xlu0 %1367  ;;  %v1173_v23 = vmax.f32 %v3277_v27, 0.0  ;;  %v1206_v22 = vmin.f32 %v1174_v37, 16.0  ;;  %v3284_v45 = vsub.f32 %v2679_v47, %v2686_v39 }
 0x203   : > { %v1457_v20 = vsel %vm1451_vm0, %v1200_v30, %v1366_v51  ;;  %v1458_v57 = vsel %vm1451_vm0, %v1201_v46, %v1368_v33  ;;  %v1175_v55 = vmax.f32 %v3280_v50, 0.0  ;;  %v1176_v46 = vmax.f32 %v3281_v14, 0.0 }
 0x204   : > { %v1490_v7 = vsel %vm1484_vm1, %v1457_v20, %v1366_v51  ;;  %v1491_v42 = vsel %vm1484_vm1, %v1458_v57, %v1368_v33  ;;  %v1205_v54 = vmin.f32 %v1173_v23, 16.0  ;;  %v1177_v51 = vmax.f32 %v3282_v24, 0.0 }
 0x205   : > { %1523 = vst.msk [vmem:[%s2902_s23 + $0x28] sm:$0xff] %vm1517_vm2, %v1490_v7  ;;  %1524 = vst.msk [vmem:[%s2902_s23 + $0x30] sm:$0xff] %vm1517_vm2, %v1491_v42  ;;  %v1207_v31 = vmin.f32 %v1175_v55, 16.0  ;;  %v1208_v41 = vmin.f32 %v1176_v46, 16.0  ;;  %v1179_v42 = vmax.f32 %v3284_v45, 0.0  ;;  %v3288_v50 = vsub.f32 %v2731_v56, %v2738_v21 }
 0x206   : > { %v1370_v19 = vpop.permute.xlu1 %1369  ;;  %v1372_v15 = vpop.permute.xlu0 %1371  ;;  %v1209_v1 = vmin.f32 %v1177_v51, 16.0 }
 0x207   : > { %v1459_v59 = vsel %vm1451_vm0, %v1202_v43, %v1370_v19  ;;  %v1460_v48 = vsel %vm1451_vm0, %v1203_v4, %v1372_v15  ;;  %v3283_v43 = vsub.f32 %v2674_v58, %v2684_v0  ;;  %v1211_v39 = vmin.f32 %v1179_v42, 16.0  ;;  %v3297_v42 = vld [vmem:[#allocation4_spill] sm:$0xff] }
 0x208   : > { %v1492_v9 = vsel %vm1484_vm1, %v1459_v59, %v1370_v19  ;;  %v1493_v29 = vsel %vm1484_vm1, %v1460_v48, %v1372_v15  ;;  %v3285_v59 = vsub.f32 %v2700_v13, %v2710_v18  ;;  %v1183_v55 = vmax.f32 %v3288_v50, 0.0  ;;  %v3305_v50 = vld [vmem:[#allocation12_spill] sm:$0xff] }
 0x209   : > { %1525 = vst.msk [vmem:[%s2902_s23 + $0x38] sm:$0xff] %vm1517_vm2, %v1492_v9  ;;  %1526 = vst.msk [vmem:[%s2902_s23 + $0x40] sm:$0xff] %vm1517_vm2, %v1493_v29  ;;  %v1178_v34 = vmax.f32 %v3283_v43, 0.0  ;;  %v3286_v9 = vsub.f32 %v2705_v3, %v2712_v40  ;;  %v3295_v43 = vld [vmem:[#allocation5_spill] sm:$0xff] }
 0x20a   : > { %v1374_v62 = vpop.permute.xlu1 %1373  ;;  %v1376_v26 = vpop.permute.xlu0 %1375  ;;  %v1180_v15 = vmax.f32 %v3285_v59, 0.0  ;;  %v1215_v21 = vmin.f32 %v1183_v55, 16.0  ;;  %v3306_v55 = vsub.f32 %v2830_v11, %v3305_v50 }
 0x20b   : > { %v1461_v30 = vsel %vm1451_vm0, %v1204_v60, %v1374_v62  ;;  %v1462_v16 = vsel %vm1451_vm0, %v1205_v54, %v1376_v26  ;;  %v1210_v58 = vmin.f32 %v1178_v34, 16.0  ;;  %v1181_v48 = vmax.f32 %v3286_v9, 0.0 }
 0x20c   : > { %v1494_v6 = vsel %vm1484_vm1, %v1461_v30, %v1374_v62  ;;  %v1495_v5 = vsel %vm1484_vm1, %v1462_v16, %v1376_v26  ;;  %v1212_v13 = vmin.f32 %v1180_v15, 16.0  ;;  %v3287_v54 = vsub.f32 %v2726_v17, %v2736_v28  ;;  %v3289_v16 = vld [vmem:[#allocation11_spill] sm:$0xff] }
 0x20d   : > { %1527 = vst.msk [vmem:[%s2902_s23 + $0x48] sm:$0xff] %vm1517_vm2, %v1494_v6  ;;  %1528 = vst.msk [vmem:[%s2902_s23 + $0x50] sm:$0xff] %vm1517_vm2, %v1495_v5  ;;  %v1213_v40 = vmin.f32 %v1181_v48, 16.0  ;;  %v3292_v5 = vld [vmem:[#allocation2_spill] sm:$0xff]  ;;  %v3296_v34 = vsub.f32 %v2778_v52, %v3295_v43 }
 0x20e   : > { %v1378_v20 = vpop.permute.xlu1 %1377  ;;  %v1380_v7 = vpop.permute.xlu0 %1379  ;;  %v1182_v35 = vmax.f32 %v3287_v54, 0.0 }
 0x20f   : > { %v1463_v33 = vsel %vm1451_vm0, %v1206_v22, %v1378_v20  ;;  %v1464_v32 = vsel %vm1451_vm0, %v1207_v31, %v1380_v7  ;;  %v3290_v22 = vld [vmem:[#allocation3_spill] sm:$0xff]  ;;  %v3293_v31 = vld [vmem:[#allocation14_spill] sm:$0xff] }
 0x210   : > { %v1496_v57 = vsel %vm1484_vm1, %v1463_v33, %v1378_v20  ;;  %v1497_v44 = vsel %vm1484_vm1, %v1464_v32, %v1380_v7  ;;  %v1214_v17 = vmin.f32 %v1182_v35, 16.0  ;;  %v3291_v14 = vsub.f32 %v3289_v16, %v3290_v22 }
 0x211   : > { %1529 = vst.msk [vmem:[%s2902_s23 + $0x58] sm:$0xff] %vm1517_vm2, %v1496_v57  ;;  %1530 = vst.msk [vmem:[%s2902_s23 + $0x60] sm:$0xff] %vm1517_vm2, %v1497_v44  ;;  %v3294_v24 = vsub.f32 %v3292_v5, %v3293_v31  ;;  %v1186_v44 = vmax.f32 %v3296_v34, 0.0  ;;  %v1193_v31 = vmax.f32 %v1161_v49, 0.0 }
 0x212   : > { %v1382_v4 = vpop.permute.xlu1 %1381  ;;  %v1384_v23 = vpop.permute.xlu0 %1383  ;;  %v1184_v46 = vmax.f32 %v3291_v14, 0.0 }
 0x213   : > { %v1465_v27 = vsel %vm1451_vm0, %v1208_v41, %v1382_v4  ;;  %v1466_v0 = vsel %vm1451_vm0, %v1209_v1, %v1384_v23  ;;  %v1185_v51 = vmax.f32 %v3294_v24, 0.0  ;;  %v1218_v15 = vmin.f32 %v1186_v44, 16.0 }
 0x214   : > { %v1498_v19 = vsel %vm1484_vm1, %v1465_v27, %v1382_v4  ;;  %v1499_v47 = vsel %vm1484_vm1, %v1466_v0, %v1384_v23  ;;  %v1216_v41 = vmin.f32 %v1184_v46, 16.0  ;;  %v3298_v4 = vld [vmem:[#allocation6_spill] sm:$0xff]  ;;  %v1225_v53 = vmin.f32 %v1193_v31, 16.0 }
 0x215   : > { %1531 = vst.msk [vmem:[%s2902_s23 + $0x68] sm:$0xff] %vm1517_vm2, %v1498_v19  ;;  %1532 = vst.msk [vmem:[%s2902_s23 + $0x70] sm:$0xff] %vm1517_vm2, %v1499_v47  ;;  %v1217_v45 = vmin.f32 %v1185_v51, 16.0  ;;  %v3299_v27 = vsub.f32 %v3297_v42, %v3298_v4  ;;  %v3300_v47 = vld [vmem:[#allocation8_spill] sm:$0xff] }
 0x216   : > { %v1386_v60 = vpop.permute.xlu1 %1385  ;;  %v1388_v37 = vpop.permute.xlu0 %1387 }
 0x217   : > { %v1467_v38 = vsel %vm1451_vm0, %v1210_v58, %v1386_v60  ;;  %v1468_v18 = vsel %vm1451_vm0, %v1211_v39, %v1388_v37  ;;  %v1187_v23 = vmax.f32 %v3299_v27, 0.0  ;;  %v3301_v39 = vsub.f32 %v2804_v8, %v3300_v47 }
 0x218   : > { %v1500_v29 = vsel %vm1484_vm1, %v1467_v38, %v1386_v60  ;;  %v1501_v3 = vsel %vm1484_vm1, %v1468_v18, %v1388_v37  ;;  %v3302_v38 = vld [vmem:[#allocation7_spill] sm:$0xff]  ;;  %v3303_v37 = vld [vmem:[#allocation9_spill] sm:$0xff] }
 0x219   : > { %1533 = vst.msk [vmem:[%s2902_s23 + $0x78] sm:$0xff] %vm1517_vm2, %v1500_v29  ;;  %1534 = vst.msk [vmem:[%s2902_s23 + $0x80] sm:$0xff] %vm1517_vm2, %v1501_v3  ;;  %v1188_v9 = vmax.f32 %v3301_v39, 0.0  ;;  %v1219_v60 = vmin.f32 %v1187_v23, 16.0  ;;  %v3304_v29 = vsub.f32 %v3302_v38, %v3303_v37 }
 0x21a   : > { %v1390_v62 = vpop.permute.xlu1 %1389  ;;  %v1392_v26 = vpop.permute.xlu0 %1391 }
 0x21b   : > { %v1469_v30 = vsel %vm1451_vm0, %v1212_v13, %v1390_v62  ;;  %v1470_v28 = vsel %vm1451_vm0, %v1213_v40, %v1392_v26  ;;  %v1189_v18 = vmax.f32 %v3304_v29, 0.0  ;;  %v1220_v40 = vmin.f32 %v1188_v9, 16.0 }
 0x21c   : > { %v1502_v6 = vsel %vm1484_vm1, %v1469_v30, %v1390_v62  ;;  %v1503_v56 = vsel %vm1484_vm1, %v1470_v28, %v1392_v26  ;;  %v1190_v62 = vmax.f32 %v3306_v55, 0.0 }
 0x21d   : > { %1535 = vst.msk [vmem:[%s2902_s23 + $0x88] sm:$0xff] %vm1517_vm2, %v1502_v6  ;;  %1536 = vst.msk [vmem:[%s2902_s23 + $0x90] sm:$0xff] %vm1517_vm2, %v1503_v56  ;;  %v1221_v26 = vmin.f32 %v1189_v18, 16.0  ;;  %v3307_v6 = vld [vmem:[#allocation13_spill] sm:$0xff] }
 0x21e   : > { %v1394_v20 = vpop.permute.xlu1 %1393  ;;  %v1396_v7 = vpop.permute.xlu0 %1395  ;;  %v3308_v28 = vsub.f32 %v2835_v25, %v3307_v6  ;;  %v1222_v56 = vmin.f32 %v1190_v62, 16.0 }
 0x21f   : > { %v1471_v33 = vsel %vm1451_vm0, %v1214_v17, %v1394_v20  ;;  %v1472_v32 = vsel %vm1451_vm0, %v1215_v21, %v1396_v7  ;;  %v1192_v21 = vmax.f32 %v1160_v2, 0.0 }
 0x220   : > { %v1504_v57 = vsel %vm1484_vm1, %v1471_v33, %v1394_v20  ;;  %v1505_v1 = vsel %vm1484_vm1, %v1472_v32, %v1396_v7  ;;  %v1191_v17 = vmax.f32 %v3308_v28, 0.0  ;;  %v3309_v33 = vsub.f32 %v2876_v63, %v2880_v36 }
 0x221   : > { %1537 = vst.msk [vmem:[%s2902_s23 + $0x98] sm:$0xff] %vm1517_vm2, %v1504_v57  ;;  %1538 = vst.msk [vmem:[%s2902_s23 + $0xa0] sm:$0xff] %vm1517_vm2, %v1505_v1  ;;  %v1224_v2 = vmin.f32 %v1192_v21, 16.0 }
 0x222   : > { %v1398_v19 = vpop.permute.xlu1 %1397  ;;  %v1400_v58 = vpop.permute.xlu0 %1399  ;;  %v1223_v5 = vmin.f32 %v1191_v17, 16.0  ;;  %v1194_v7 = vmax.f32 %v3309_v33, 0.0 }
 0x223   : > { %v1473_v0 = vsel %vm1451_vm0, %v1216_v41, %v1398_v19  ;;  %v1474_v52 = vsel %vm1451_vm0, %v1217_v45, %v1400_v58 }
 0x224   : > { %v1506_v59 = vsel %vm1484_vm1, %v1473_v0, %v1398_v19  ;;  %v1507_v48 = vsel %vm1484_vm1, %v1474_v52, %v1400_v58  ;;  %v1226_v34 = vmin.f32 %v1194_v7, 16.0 }
 0x225   : > { %1539 = vst.msk [vmem:[%s2902_s23 + $0xa8] sm:$0xff] %vm1517_vm2, %v1506_v59  ;;  %1540 = vst.msk [vmem:[%s2902_s23 + $0xb0] sm:$0xff] %vm1517_vm2, %v1507_v48 }
 0x226   : > { %v1402_v13 = vpop.permute.xlu1 %1401  ;;  %v1404_v35 = vpop.permute.xlu0 %1403 }
 0x227   : > { %v1475_v54 = vsel %vm1451_vm0, %v1218_v15, %v1402_v13  ;;  %v1476_v8 = vsel %vm1451_vm0, %v1219_v60, %v1404_v35 }
 0x228   : > { %v1508_v3 = vsel %vm1484_vm1, %v1475_v54, %v1402_v13  ;;  %v1509_v30 = vsel %vm1484_vm1, %v1476_v8, %v1404_v35 }
 0x229   : > { %1541 = vst.msk [vmem:[%s2902_s23 + $0xb8] sm:$0xff] %vm1517_vm2, %v1508_v3  ;;  %1542 = vst.msk [vmem:[%s2902_s23 + $0xc0] sm:$0xff] %vm1517_vm2, %v1509_v30 }
 0x22a   : > { %v1406_v16 = vpop.permute.xlu1 %1405  ;;  %v1408_v14 = vpop.permute.xlu0 %1407 }
 0x22b   : > { %v1477_v22 = vsel %vm1451_vm0, %v1220_v40, %v1406_v16  ;;  %v1478_v11 = vsel %vm1451_vm0, %v1221_v26, %v1408_v14 }
 0x22c   : > { %v1510_v46 = vsel %vm1484_vm1, %v1477_v22, %v1406_v16  ;;  %v1511_v25 = vsel %vm1484_vm1, %v1478_v11, %v1408_v14 }
 0x22d   : > { %1543 = vst.msk [vmem:[%s2902_s23 + $0xc8] sm:$0xff] %vm1517_vm2, %v1510_v46  ;;  %1544 = vst.msk [vmem:[%s2902_s23 + $0xd0] sm:$0xff] %vm1517_vm2, %v1511_v25 }
 0x22e   : > { %v1410_v24 = vpop.permute.xlu1 %1409  ;;  %v1412_v20 = vpop.permute.xlu0 %1411 }
 0x22f   : > { %v1479_v51 = vsel %vm1451_vm0, %v1222_v56, %v1410_v24  ;;  %v1480_v10 = vsel %vm1451_vm0, %v1223_v5, %v1412_v20 }
 0x230   : > { %v1512_v12 = vsel %vm1484_vm1, %v1479_v51, %v1410_v24  ;;  %v1513_v61 = vsel %vm1484_vm1, %v1480_v10, %v1412_v20 }
 0x231   : > { %1545 = vst.msk [vmem:[%s2902_s23 + $0xd8] sm:$0xff] %vm1517_vm2, %v1512_v12  ;;  %1546 = vst.msk [vmem:[%s2902_s23 + $0xe0] sm:$0xff] %vm1517_vm2, %v1513_v61 }
 0x232   : > { %v1414_v49 = vpop.permute.xlu1 %1413 }
 0x233   : > { %v1481_v57 = vsel %vm1451_vm0, %v1224_v2, %v1414_v49  ;;  %v1416_v32 = vpop.permute.xlu0 %1415 }
 0x234   : > { %v1514_v41 = vsel %vm1484_vm1, %v1481_v57, %v1414_v49  ;;  %v1482_v43 = vsel %vm1451_vm0, %v1225_v53, %v1416_v32 }
 0x235   : > { %1547 = vst.msk [vmem:[%s2902_s23 + $0xe8] sm:$0xff] %vm1517_vm2, %v1514_v41  ;;  %v1515_v63 = vsel %vm1484_vm1, %v1482_v43, %v1416_v32 }
 0x236   : > { %1548 = vst.msk [vmem:[%s2902_s23 + $0xf0] sm:$0xff] %vm1517_vm2, %v1515_v63  ;;  %v1418_v36 = vpop.permute.xlu1 %1417 }
 0x237   : > { %v1483_v44 = vsel %vm1451_vm0, %v1226_v34, %v1418_v36 }
 0x238   : > { %v1516_v1 = vsel %vm1484_vm1, %v1483_v44, %v1418_v36 }
 0x239   : > { %1549 = vst.msk [vmem:[%s2902_s23 + $0xf8] sm:$0xff] %vm1517_vm2, %v1516_v1 }
 0x23a PF: > { %s12_s9 = sadd.s32 1, %s1743_s9  }
 0x23b   : > { %p9_p4 = scmp.ge.s32.totalorder %s12_s9, 5  }
 0x23d   :  { %11 = sbr.rel (!%p9_p4) target bundleno = 1 (0x1), region = 61 }

// kernel: tile.16
= control target key start
LH: loop header
LB: loop body
LE: loop exit
PB: predicated region body
PF: predicated region fallthrough
CT: control target
= control target key end

     0   :  { %s64_s0 = inlined_call_operand.vmem [shape: s32[4], index: 0, kind: input, shape index: {}]   ;;  %s65_s1 = inlined_call_operand.vmem [shape: s32[64,4], index: 1, kind: output, shape index: {}]  }
   0x1   :  { %v4_v0 = vld [vmem:[%s64_s0] ss:$0 sm:$0xff] }
   0x2   :  { %5 = vst [vmem:[%s65_s1] sm:$0xff] %v4_v0  ;;  %20 = vst [vmem:[%s65_s1 + $0x8] sm:$0xff] %v4_v0 }
   0x3   :  { %21 = vst [vmem:[%s65_s1 + $0x10] sm:$0xff] %v4_v0  ;;  %22 = vst [vmem:[%s65_s1 + $0x18] sm:$0xff] %v4_v0 }
   0x4   :  { %23 = vst [vmem:[%s65_s1 + $0x20] sm:$0xff] %v4_v0  ;;  %24 = vst [vmem:[%s65_s1 + $0x28] sm:$0xff] %v4_v0 }
   0x5   :  { %25 = vst [vmem:[%s65_s1 + $0x30] sm:$0xff] %v4_v0  ;;  %26 = vst [vmem:[%s65_s1 + $0x38] sm:$0xff] %v4_v0 }

// kernel: tile.17
= control target key start
LH: loop header
LB: loop body
LE: loop exit
PB: predicated region body
PF: predicated region fallthrough
CT: control target
= control target key end

     0   :  { %vm5_vm0 = vcmask 1041409   ;;  %s419_s14 = smov 124   ;;  %s420_s21 = smov 116   ;;  %vm7_vm1 = vcmask 31744   ;;  %vm17_vm2 = vcmask 1048544   ;;  %vm27_vm3 = vcmask 1015744   ;;  %s687_s0 = inlined_call_operand.vmem [shape: s32[64,4], index: 0, kind: input, shape index: {}]   ;;  %s688_s1 = inlined_call_operand.vmem [shape: s32[256], index: 1, kind: output, shape index: {}]  }
   0x1   :  { %v326_v0 = vld [vmem:[%s687_s0 + $0x1f] sm:$0x1]   ;;  %v330_v3 = vld [vmem:[%s687_s0 + $0x1d] sm:$0x1]   ;;  %v328_v6 = vld [vmem:[%s687_s0 + $0x1e] sm:$0x1]  }
   0x2   :  { %v327_v1 = vld [vmem:[%s687_s0 + $0x3e] sm:$0x2]   ;;  %v331_v4 = vld [vmem:[%s687_s0 + $0x3c] sm:$0x2]   ;;  %v329_v7 = vld [vmem:[%s687_s0 + $0x3d] sm:$0x2]  }
   0x3   :  { %v14_v2 = vsel %vm5_vm0, %v327_v1, %v326_v0  ;;  %v34_v5 = vsel %vm5_vm0, %v331_v4, %v330_v3  ;;  %v332_v8 = vld [vmem:[%s687_s0 + $0x1c] sm:$0x1]   ;;  %v24_v9 = vsel %vm5_vm0, %v329_v7, %v328_v6  ;;  %v334_v12 = vld [vmem:[%s687_s0 + $0x1b] sm:$0x1]   ;;  %v336_v14 = vld [vmem:[%s687_s0 + $0x1a] sm:$0x1]  }
   0x4   :  { %15 = vrot.lane.b32.xlu0 %v14_v2, %s419_s14  ;;  %35 = vrot.lane.b32.xlu1 %v34_v5, %s420_s21  ;;  %v333_v10 = vld [vmem:[%s687_s0 + $0x3b] sm:$0x2]   ;;  %v335_v13 = vld [vmem:[%s687_s0 + $0x3a] sm:$0x2]   ;;  %s421_s3 = smov 120   ;;  %s422_s4 = smov 112  }
   0x5   :  { %v44_v11 = vsel %vm5_vm0, %v333_v10, %v332_v8  ;;  %v337_v15 = vld [vmem:[%s687_s0 + $0x39] sm:$0x2]   ;;  %v54_v16 = vsel %vm5_vm0, %v335_v13, %v334_v12  ;;  %v338_v18 = vld [vmem:[%s687_s0 + $0x19] sm:$0x1]   ;;  %v340_v20 = vld [vmem:[%s687_s0 + $0x18] sm:$0x1]  }
   0x6   :  { %v64_v17 = vsel %vm5_vm0, %v337_v15, %v336_v14  ;;  %v339_v19 = vld [vmem:[%s687_s0 + $0x38] sm:$0x2]   ;;  %v341_v21 = vld [vmem:[%s687_s0 + $0x37] sm:$0x2]   ;;  %s423_s13 = smov 108   ;;  %s424_s14 = smov 104  }
   0x7   :  { %v74_v22 = vsel %vm5_vm0, %v339_v19, %v338_v18  ;;  %v84_v23 = vsel %vm5_vm0, %v341_v21, %v340_v20  ;;  %v342_v24 = vld [vmem:[%s687_s0 + $0x17] sm:$0x1]   ;;  %v344_v26 = vld [vmem:[%s687_s0 + $0x16] sm:$0x1]   ;;  %s425_s23 = smov 100   ;;  %s426_s24 = smov 96  }
   0x8   :  { %25 = vrot.lane.b32.xlu0 %v24_v9, %s421_s3  ;;  %45 = vrot.lane.b32.xlu1 %v44_v11, %s422_s4  ;;  %v343_v25 = vld [vmem:[%s687_s0 + $0x36] sm:$0x2]   ;;  %v345_v27 = vld [vmem:[%s687_s0 + $0x35] sm:$0x2]   ;;  %s427_s4 = smov 92   ;;  %s428_s5 = smov 88  }
   0x9   :  { %v94_v28 = vsel %vm5_vm0, %v343_v25, %v342_v24  ;;  %v104_v29 = vsel %vm5_vm0, %v345_v27, %v344_v26  ;;  %v346_v30 = vld [vmem:[%s687_s0 + $0x15] sm:$0x1]   ;;  %v348_v32 = vld [vmem:[%s687_s0 + $0x14] sm:$0x1]   ;;  %v350_v36 = vld [vmem:[%s687_s0 + $0x13] sm:$0x1]  }
   0xa   :  { %v347_v31 = vld [vmem:[%s687_s0 + $0x34] sm:$0x2]   ;;  %v349_v33 = vld [vmem:[%s687_s0 + $0x33] sm:$0x2]   ;;  %v351_v37 = vld [vmem:[%s687_s0 + $0x32] sm:$0x2]  }
   0xb   :  { %v114_v34 = vsel %vm5_vm0, %v347_v31, %v346_v30  ;;  %v124_v35 = vsel %vm5_vm0, %v349_v33, %v348_v32  ;;  %v352_v38 = vld [vmem:[%s687_s0 + $0x12] sm:$0x1]   ;;  %s430_s15 = smov 80   ;;  %v134_v40 = vsel %vm5_vm0, %v351_v37, %v350_v36  ;;  %v354_v42 = vld [vmem:[%s687_s0 + $0x11] sm:$0x1]   ;;  %s432_s29 = smov 72  }
   0xc   :  { %55 = vrot.lane.b32.xlu0 %v54_v16, %s423_s13  ;;  %65 = vrot.lane.b32.xlu1 %v64_v17, %s424_s14  ;;  %v353_v39 = vld [vmem:[%s687_s0 + $0x31] sm:$0x2]   ;;  %s429_s14 = smov 84   ;;  %v355_v43 = vld [vmem:[%s687_s0 + $0x30] sm:$0x2]   ;;  %s433_s9 = smov 68  }
   0xd   :  { %v144_v41 = vsel %vm5_vm0, %v353_v39, %v352_v38  ;;  %v356_v44 = vld [vmem:[%s687_s0 + $0x10] sm:$0x1]   ;;  %v2_v46 = vld [vmem:[%s687_s0] sm:$0x1]   ;;  %v154_v48 = vsel %vm5_vm0, %v355_v43, %v354_v42  ;;  %v358_v51 = vld [vmem:[%s687_s0 + $0xf] sm:$0x1]  }
   0xe   :  { %v357_v45 = vld [vmem:[%s687_s0 + $0x2f] sm:$0x2]   ;;  %v325_v47 = vld [vmem:[%s687_s0 + $0x1f] sm:$0x2]   ;;  %v359_v52 = vld [vmem:[%s687_s0 + $0x2e] sm:$0x2]  }
   0xf   :  { %v6_v49 = vsel %vm5_vm0, %v325_v47, %v2_v46  ;;  %v164_v50 = vsel %vm5_vm0, %v357_v45, %v356_v44  ;;  %v360_v53 = vld [vmem:[%s687_s0 + $0xe] sm:$0x1]   ;;  %s434_s10 = smov 64   ;;  %v174_v55 = vsel %vm5_vm0, %v359_v52, %v358_v51  ;;  %v362_v57 = vld [vmem:[%s687_s0 + $0xd] sm:$0x1]   ;;  %s435_s19 = smov 60  }
  0x10   :  { %75 = vrot.lane.b32.xlu0 %v74_v22, %s425_s23  ;;  %85 = vrot.lane.b32.xlu1 %v84_v23, %s426_s24  ;;  %s431_s24 = smov 76   ;;  %8 = vst.msk [vmem:[#allocation0] sm:$0x3] %vm7_vm1, %v6_v49   ;;  %v361_v54 = vld [vmem:[%s687_s0 + $0x2d] sm:$0x2]   ;;  %s436_s20 = smov 56  }
  0x11   :  { %v184_v56 = vsel %vm5_vm0, %v361_v54, %v360_v53  ;;  %v363_v58 = vld [vmem:[%s687_s0 + $0x2c] sm:$0x2]   ;;  %v364_v59 = vld [vmem:[%s687_s0 + $0xc] sm:$0x1]   ;;  %v366_v63 = vld [vmem:[%s687_s0 + $0xb] sm:$0x1]  }
  0x12   :  { %v365_v60 = vld [vmem:[%s687_s0 + $0x2b] sm:$0x2]   ;;  %v194_v61 = vsel %vm5_vm0, %v363_v58, %v362_v57  ;;  %v367_v0 = vld [vmem:[%s687_s0 + $0x2a] sm:$0x2]   ;;  %v368_v1 = vld [vmem:[%s687_s0 + $0xa] sm:$0x1]  }
  0x13   :  { %v204_v62 = vsel %vm5_vm0, %v365_v60, %v364_v59  ;;  %v369_v2 = vld [vmem:[%s687_s0 + $0x29] sm:$0x2]   ;;  %s438_s30 = smov 48   ;;  %v214_v3 = vsel %vm5_vm0, %v367_v0, %v366_v63  ;;  %v370_v5 = vld [vmem:[%s687_s0 + $0x9] sm:$0x1]   ;;  %s440_s11 = smov 40  }
  0x14   :  { %95 = vrot.lane.b32.xlu0 %v94_v28, %s427_s4  ;;  %105 = vrot.lane.b32.xlu1 %v104_v29, %s428_s5  ;;  %v224_v4 = vsel %vm5_vm0, %v369_v2, %v368_v1  ;;  %v371_v6 = vld [vmem:[%s687_s0 + $0x28] sm:$0x2]   ;;  %v372_v7 = vld [vmem:[%s687_s0 + $0x8] sm:$0x1]   ;;  %s442_s21 = smov 32   ;;  %s444_s2 = smov 24  }
  0x15   :  { %v373_v8 = vld [vmem:[%s687_s0 + $0x27] sm:$0x2]   ;;  %v234_v9 = vsel %vm5_vm0, %v371_v6, %v370_v5  ;;  %v374_v11 = vld [vmem:[%s687_s0 + $0x7] sm:$0x1]   ;;  %v376_v13 = vld [vmem:[%s687_s0 + $0x6] sm:$0x1]  }
  0x16   :  { %v244_v10 = vsel %vm5_vm0, %v373_v8, %v372_v7  ;;  %v375_v12 = vld [vmem:[%s687_s0 + $0x26] sm:$0x2]   ;;  %v377_v14 = vld [vmem:[%s687_s0 + $0x25] sm:$0x2]   ;;  %v378_v17 = vld [vmem:[%s687_s0 + $0x5] sm:$0x1]  }
  0x17   :  { %v254_v15 = vsel %vm5_vm0, %v375_v12, %v374_v11  ;;  %v264_v16 = vsel %vm5_vm0, %v377_v14, %v376_v13  ;;  %v379_v18 = vld [vmem:[%s687_s0 + $0x24] sm:$0x2]   ;;  %v380_v19 = vld [vmem:[%s687_s0 + $0x4] sm:$0x1]   ;;  %v382_v23 = vld [vmem:[%s687_s0 + $0x3] sm:$0x1]  }
  0x18   :  { %115 = vrot.lane.b32.xlu0 %v114_v34, %s429_s14  ;;  %125 = vrot.lane.b32.xlu1 %v124_v35, %s430_s15  ;;  %v381_v20 = vld [vmem:[%s687_s0 + $0x23] sm:$0x2]   ;;  %v274_v21 = vsel %vm5_vm0, %v379_v18, %v378_v17  ;;  %v383_v24 = vld [vmem:[%s687_s0 + $0x22] sm:$0x2]   ;;  %s446_s12 = smov 16   ;;  %s448_s17 = smov 8  }
  0x19   :  { %v284_v22 = vsel %vm5_vm0, %v381_v20, %v380_v19  ;;  %v384_v25 = vld [vmem:[%s687_s0 + $0x2] sm:$0x1]   ;;  %v294_v27 = vsel %vm5_vm0, %v383_v24, %v382_v23  ;;  %v386_v29 = vld [vmem:[%s687_s0 + $0x1] sm:$0x1]   ;;  %s449_s18 = smov 4   ;;  %vm37_vm4 = vcmask 982944  }
  0x1a   :  { %v385_v26 = vld [vmem:[%s687_s0 + $0x21] sm:$0x2]   ;;  %v387_v30 = vld [vmem:[%s687_s0 + $0x20] sm:$0x2]   ;;  %s447_s0 = smov 12   ;;  %vm47_vm5 = vcmask 950144  }
  0x1b   :  { %v304_v28 = vsel %vm5_vm0, %v385_v26, %v384_v25  ;;  %v314_v31 = vsel %vm5_vm0, %v387_v30, %v386_v29  ;;  %vm57_vm6 = vcmask 917344   ;;  %vm67_vm7 = vcmask 884544  }
  0x1c   :  { %135 = vrot.lane.b32.xlu0 %v134_v40, %s431_s24  ;;  %145 = vrot.lane.b32.xlu1 %v144_v41, %s432_s29  ;;  %s437_s29 = smov 52   ;;  %vm77_vm8 = vcmask 851744   ;;  %vm87_vm9 = vcmask 818944   ;;  %vm97_vm10 = vcmask 786144   ;;  %vm107_vm11 = vcmask 753344  }
  0x1d   :  { %vm117_vm12 = vcmask 720544   ;;  %vm127_vm13 = vcmask 687744   ;;  %vm137_vm14 = vcmask 654944   ;;  %vm147_vm15 = vcmask 622144  }
  0x1e   :  { %vm157_vm0 = vcmask 589344   ;;  %vm167_vm1 = vcmask 556544  }
  0x20   :  { %155 = vrot.lane.b32.xlu0 %v154_v48, %s433_s9  ;;  %165 = vrot.lane.b32.xlu1 %v164_v50, %s434_s10  ;;  %s439_s10 = smov 44  }
  0x24   :  { %175 = vrot.lane.b32.xlu0 %v174_v55, %s435_s19  ;;  %185 = vrot.lane.b32.xlu1 %v184_v56, %s436_s20  ;;  %s441_s20 = smov 36  }
  0x28   :  { %195 = vrot.lane.b32.xlu0 %v194_v61, %s437_s29  ;;  %205 = vrot.lane.b32.xlu1 %v204_v62, %s438_s30  ;;  %s443_s30 = smov 28  }
  0x2c   :  { %215 = vrot.lane.b32.xlu0 %v214_v3, %s439_s10  ;;  %225 = vrot.lane.b32.xlu1 %v224_v4, %s440_s11  ;;  %s445_s11 = smov 20  }
  0x30   :  { %235 = vrot.lane.b32.xlu0 %v234_v9, %s441_s20  ;;  %245 = vrot.lane.b32.xlu1 %v244_v10, %s442_s21 }
  0x34   :  { %255 = vrot.lane.b32.xlu0 %v254_v15, %s443_s30  ;;  %265 = vrot.lane.b32.xlu1 %v264_v16, %s444_s2 }
  0x38   :  { %275 = vrot.lane.b32.xlu0 %v274_v21, %s445_s11  ;;  %285 = vrot.lane.b32.xlu1 %v284_v22, %s446_s12 }
  0x3c   :  { %295 = vrot.lane.b32.xlu0 %v294_v27, %s447_s0  ;;  %305 = vrot.lane.b32.xlu1 %v304_v28, %s448_s17 }
  0x40   :  { %315 = vrot.lane.b32.xlu0 %v314_v31, %s449_s18 }
  0x76   :  { %v16_v32 = vpop.permute.xlu0 %15   ;;  %v36_v33 = vpop.permute.xlu1 %35  }
  0x77   :  { %18 = vst.msk [vmem:[#allocation0] sm:$0x3] %vm17_vm2, %v16_v32   ;;  %vm177_vm2 = vcmask 523744  }
  0x7a   :  { %v26_v34 = vpop.permute.xlu0 %25   ;;  %v46_v35 = vpop.permute.xlu1 %45  }
  0x7b   :  { %28 = vst.msk [vmem:[#allocation0] sm:$0x3] %vm27_vm3, %v26_v34   ;;  %vm187_vm3 = vcmask 490944  }
  0x7c   :  { %38 = vst.msk [vmem:[#allocation0] sm:$0x3] %vm37_vm4, %v36_v33   ;;  %vm197_vm4 = vcmask 458144  }
  0x7d   :  { %48 = vst.msk [vmem:[#allocation0] sm:$0x3] %vm47_vm5, %v46_v35   ;;  %vm207_vm5 = vcmask 425344  }
  0x7e   :  { %v56_v36 = vpop.permute.xlu0 %55   ;;  %v66_v37 = vpop.permute.xlu1 %65  }
  0x7f   :  { %58 = vst.msk [vmem:[#allocation0] sm:$0x3] %vm57_vm6, %v56_v36   ;;  %vm217_vm6 = vcmask 392544  }
  0x80   :  { %68 = vst.msk [vmem:[#allocation0] sm:$0x3] %vm67_vm7, %v66_v37   ;;  %vm227_vm7 = vcmask 359744  }
  0x82   :  { %v76_v38 = vpop.permute.xlu0 %75   ;;  %v86_v39 = vpop.permute.xlu1 %85  }
  0x83   :  { %78 = vst.msk [vmem:[#allocation0] sm:$0x3] %vm77_vm8, %v76_v38   ;;  %vm237_vm8 = vcmask 326944  }
  0x84   :  { %88 = vst.msk [vmem:[#allocation0] sm:$0x3] %vm87_vm9, %v86_v39   ;;  %vm247_vm9 = vcmask 294144  }
  0x86   :  { %v96_v40 = vpop.permute.xlu0 %95   ;;  %v106_v41 = vpop.permute.xlu1 %105  }
  0x87   :  { %98 = vst.msk [vmem:[#allocation0] sm:$0x3] %vm97_vm10, %v96_v40   ;;  %vm257_vm10 = vcmask 261344  }
  0x88   :  { %108 = vst.msk [vmem:[#allocation0] sm:$0x3] %vm107_vm11, %v106_v41   ;;  %vm267_vm11 = vcmask 228544  }
  0x8a   :  { %v116_v42 = vpop.permute.xlu0 %115   ;;  %v126_v43 = vpop.permute.xlu1 %125  }
  0x8b   :  { %118 = vst.msk [vmem:[#allocation0] sm:$0x3] %vm117_vm12, %v116_v42   ;;  %vm277_vm12 = vcmask 195744  }
  0x8c   :  { %128 = vst.msk [vmem:[#allocation0] sm:$0x3] %vm127_vm13, %v126_v43   ;;  %vm287_vm13 = vcmask 162944  }
  0x8e   :  { %v136_v44 = vpop.permute.xlu0 %135   ;;  %v146_v45 = vpop.permute.xlu1 %145  }
  0x8f   :  { %138 = vst.msk [vmem:[#allocation0] sm:$0x3] %vm137_vm14, %v136_v44   ;;  %vm297_vm14 = vcmask 130144  }
  0x90   :  { %148 = vst.msk [vmem:[#allocation0] sm:$0x3] %vm147_vm15, %v146_v45   ;;  %vm307_vm15 = vcmask 97344  }
  0x92   :  { %v156_v46 = vpop.permute.xlu0 %155   ;;  %v166_v47 = vpop.permute.xlu1 %165  }
  0x93   :  { %158 = vst.msk [vmem:[#allocation0] sm:$0x3] %vm157_vm0, %v156_v46   ;;  %vm317_vm0 = vcmask 64544  }
  0x94   :  { %168 = vst.msk [vmem:[#allocation0] sm:$0x3] %vm167_vm1, %v166_v47  }
  0x96   :  { %v176_v48 = vpop.permute.xlu0 %175   ;;  %v186_v49 = vpop.permute.xlu1 %185  }
  0x97   :  { %178 = vst.msk [vmem:[#allocation0] sm:$0x3] %vm177_vm2, %v176_v48  }
  0x98   :  { %188 = vst.msk [vmem:[#allocation0] sm:$0x3] %vm187_vm3, %v186_v49  }
  0x9a   :  { %v196_v50 = vpop.permute.xlu0 %195   ;;  %v206_v51 = vpop.permute.xlu1 %205  }
  0x9b   :  { %198 = vst.msk [vmem:[#allocation0] sm:$0x3] %vm197_vm4, %v196_v50  }
  0x9c   :  { %208 = vst.msk [vmem:[#allocation0] sm:$0x3] %vm207_vm5, %v206_v51  }
  0x9e   :  { %v216_v52 = vpop.permute.xlu0 %215   ;;  %v226_v53 = vpop.permute.xlu1 %225  }
  0x9f   :  { %218 = vst.msk [vmem:[#allocation0] sm:$0x3] %vm217_vm6, %v216_v52  }
  0xa0   :  { %228 = vst.msk [vmem:[#allocation0] sm:$0x3] %vm227_vm7, %v226_v53  }
  0xa2   :  { %v236_v54 = vpop.permute.xlu0 %235   ;;  %v246_v55 = vpop.permute.xlu1 %245  }
  0xa3   :  { %238 = vst.msk [vmem:[#allocation0] sm:$0x3] %vm237_vm8, %v236_v54  }
  0xa4   :  { %248 = vst.msk [vmem:[#allocation0] sm:$0x3] %vm247_vm9, %v246_v55  }
  0xa6   :  { %v256_v56 = vpop.permute.xlu0 %255   ;;  %v266_v57 = vpop.permute.xlu1 %265  }
  0xa7   :  { %258 = vst.msk [vmem:[#allocation0] sm:$0x3] %vm257_vm10, %v256_v56  }
  0xa8   :  { %268 = vst.msk [vmem:[#allocation0] sm:$0x3] %vm267_vm11, %v266_v57  }
  0xaa   :  { %v276_v58 = vpop.permute.xlu0 %275   ;;  %v286_v59 = vpop.permute.xlu1 %285  }
  0xab   :  { %278 = vst.msk [vmem:[#allocation0] sm:$0x3] %vm277_vm12, %v276_v58  }
  0xac   :  { %288 = vst.msk [vmem:[#allocation0] sm:$0x3] %vm287_vm13, %v286_v59  }
  0xae   :  { %v296_v60 = vpop.permute.xlu0 %295   ;;  %v306_v61 = vpop.permute.xlu1 %305  }
  0xaf   :  { %298 = vst.msk [vmem:[#allocation0] sm:$0x3] %vm297_vm14, %v296_v60  }
  0xb0   :  { %308 = vst.msk [vmem:[#allocation0] sm:$0x3] %vm307_vm15, %v306_v61  }
  0xb2   :  { %v316_v62 = vpop.permute.xlu0 %315  }
  0xb3   :  { %318 = vst.msk [vmem:[#allocation0] sm:$0x3] %vm317_vm0, %v316_v62  }
  0xba   :  { %v322_v63 = vld [vmem:[#allocation0] sm:$0x3] }
  0xbb   :  { %324 = vst [vmem:[%s688_s1] sm:$0x3] %v322_v63 }

</bundles_post_ra>
